<compile_context>
chip_gen: v5e
topology: v5e:2x2
jax: 0.10.0
libtpu: 0.0.40
codegen_flags: <defaults>
</compile_context>

<pallas_src>
import functools

import numpy as np
import jax
import jax.numpy as jnp
from jax.experimental import pallas as pl
from jax.experimental.pallas import tpu as pltpu

LN_EPS = 1e-5
MXU_DTYPE = jnp.bfloat16   # bf16 operands / f32 accumulate for all MXU dots


# ------------------------------------------------------------------ small helpers

def _layernorm(x, gamma, beta):
    mu = jnp.mean(x, axis=-1, keepdims=True)
    var = jnp.mean((x - mu) ** 2, axis=-1, keepdims=True)
    return (x - mu) * jax.lax.rsqrt(var + LN_EPS) * gamma + beta


def _gelu_exact(x):
    return 0.5 * x * (1.0 + jax.lax.erf(x / jnp.sqrt(jnp.float32(2.0))))


def _depth_spec(shape):
    """Param stacked with a leading depth axis: fetch slab `d` each grid step."""
    rest = tuple(shape[1:])

    def imap(b, d):
        return (d,) + (0,) * len(rest)

    return pl.BlockSpec((1,) + rest, imap)


# ------------------------------------------------------------------ kernels

def lit_layer_kernel(x_ref, g1_ref, b1_ref, wqkv_ref, bqkv_ref, bias_ref,
                     wproj_ref, bproj_ref, g2_ref, b2_ref, w1_ref, bb1_ref,
                     w2_ref, bb2_ref, o_ref, acc_ref,
                     *, num_heads, head_dim, dim):
    """One grid step = one Block applied to one batch element.

    grid=(B, depth); the activation stays resident in the f32 acc_ref scratch for
    the whole depth sweep of each batch element."""
    f32 = jnp.float32
    d = pl.program_id(1)

    @pl.when(d == 0)
    def _():
        acc_ref[...] = x_ref[0].astype(f32)

    x = acc_ref[...]                                            # (N, C) f32 residual

    # ---------------- attention sublayer: x + proj(attn(LN1(x))) ----------------
    y = _layernorm(x, g1_ref[0], b1_ref[0])
    # single QKV matmul (qk scale already folded into the Q columns at prep time)
    qkv = jnp.dot(y.astype(MXU_DTYPE), wqkv_ref[0],
                  preferred_element_type=f32) + bqkv_ref[0]     # (N, 3C) f32
    q = qkv[:, 0 * dim:1 * dim].astype(MXU_DTYPE)
    k = qkv[:, 1 * dim:2 * dim].astype(MXU_DTYPE)
    v = qkv[:, 2 * dim:3 * dim].astype(MXU_DTYPE)
    # head-major (nH, N, hd) operands: lane slices stacked along a new major axis
    qh = jnp.stack([q[:, h * head_dim:(h + 1) * head_dim] for h in range(num_heads)], axis=0)
    kh = jnp.stack([k[:, h * head_dim:(h + 1) * head_dim] for h in range(num_heads)], axis=0)
    vh = jnp.stack([v[:, h * head_dim:(h + 1) * head_dim] for h in range(num_heads)], axis=0)

    # all heads in ONE batched MXU dot: (nH,N,hd) x (nH,N,hd) -> (nH,N,N)
    s = jax.lax.dot_general(qh, kh, (((2,), (2,)), ((0,), (0,))),
                            preferred_element_type=f32)
    s = s + bias_ref[0].astype(f32)                             # relative position bias
    # softmax (f32), denominator on the EUP slot
    s = s - jnp.max(s, axis=-1, keepdims=True)
    e = jnp.exp(s)
    p = e * pl.reciprocal(jnp.sum(e, axis=-1, keepdims=True), approx=True)
    # context, all heads in one batched dot: (nH,N,N) x (nH,N,hd) -> (nH,N,hd)
    ctx = jax.lax.dot_general(p.astype(MXU_DTYPE), vh,
                              (((2,), (1,)), ((0,), (0,))),
                              preferred_element_type=f32)
    # re-assemble heads along the lane axis -> (N, C); out-proj is ONE K=C matmul
    ctx2d = jnp.concatenate([ctx[h] for h in range(num_heads)], axis=-1)
    out = jnp.dot(ctx2d.astype(MXU_DTYPE), wproj_ref[0],
                  preferred_element_type=f32) + bproj_ref[0]
    x = x + out

    # ---------------- MLP sublayer: x + fc2(gelu(fc1(LN2(x)))) ----------------
    y2 = _layernorm(x, g2_ref[0], b2_ref[0])
    h = jnp.dot(y2.astype(MXU_DTYPE), w1_ref[0], preferred_element_type=f32) + bb1_ref[0]
    h = _gelu_exact(h)
    o2 = jnp.dot(h.astype(MXU_DTYPE), w2_ref[0], preferred_element_type=f32) + bb2_ref[0]
    x = x + o2

    acc_ref[...] = x                                            # stays VMEM-resident

    @pl.when(d == pl.num_programs(1) - 1)
    def _():
        o_ref[0] = x.astype(o_ref.dtype)                        # single cast at store


def mlp_layer_kernel(x_ref, g2_ref, b2_ref, w1_ref, bb1_ref, w2_ref, bb2_ref,
                     o_ref, acc_ref):
    """MLPBlock stage (has_msa=False): depth-fused x + fc2(gelu(fc1(LN2(x))))."""
    f32 = jnp.float32
    d = pl.program_id(1)

    @pl.when(d == 0)
    def _():
        acc_ref[...] = x_ref[0].astype(f32)

    x = acc_ref[...]
    y = _layernorm(x, g2_ref[0], b2_ref[0])
    h = jnp.dot(y.astype(MXU_DTYPE), w1_ref[0], preferred_element_type=f32) + bb1_ref[0]
    h = _gelu_exact(h)
    o2 = jnp.dot(h.astype(MXU_DTYPE), w2_ref[0], preferred_element_type=f32) + bb2_ref[0]
    x = x + o2
    acc_ref[...] = x

    @pl.when(d == pl.num_programs(1) - 1)
    def _():
        o_ref[0] = x.astype(o_ref.dtype)


# ------------------------------------------------------------------ LITLayer glue

def get_relative_pos_index(H, W):
    """Same as LITLayer.get_relative_pos_index, in NumPy."""
    coords_h = np.arange(H)
    coords_w = np.arange(W)
    coords = np.stack(np.meshgrid(coords_h, coords_w, indexing="ij"))     # (2, H, W)
    coords_flatten = coords.reshape(2, -1)                                # (2, H*W)
    rel = coords_flatten[:, :, None] - coords_flatten[:, None, :]         # (2, N, N)
    rel = rel.transpose(1, 2, 0).copy()                                   # (N, N, 2)
    rel[:, :, 0] += H - 1
    rel[:, :, 1] += W - 1
    rel[:, :, 0] *= 2 * W - 1
    return rel.sum(-1)                                                    # (N, N)


def make_lit_layer_params(key, dim, depth, num_heads, input_resolution, mlp_ratio=4.0):
    """Deterministic synthetic parameters matching the module's shapes (f32, raw)."""
    H, W = input_resolution
    hidden = int(dim * mlp_ratio)
    table_len = (2 * H - 1) * (2 * W - 1)
    blocks = []
    for i in range(depth):
        ks = jax.random.split(jax.random.fold_in(key, i), 8)
        blocks.append(dict(
            ln1_g=jnp.ones((1, dim), jnp.float32),
            ln1_b=jnp.zeros((1, dim), jnp.float32),
            rel_table=0.02 * jax.random.normal(ks[0], (table_len, num_heads), jnp.float32),
            # stored pre-transposed: (in, out)
            w_qkv=0.02 * jax.random.normal(ks[1], (dim, 3 * dim), jnp.float32),
            b_qkv=0.02 * jax.random.normal(ks[2], (1, 3 * dim), jnp.float32),
            w_proj=0.02 * jax.random.normal(ks[3], (dim, dim), jnp.float32),
            b_proj=0.02 * jax.random.normal(ks[4], (1, dim), jnp.float32),
            ln2_g=jnp.ones((1, dim), jnp.float32),
            ln2_b=jnp.zeros((1, dim), jnp.float32),
            w_fc1=0.02 * jax.random.normal(ks[5], (dim, hidden), jnp.float32),
            b_fc1=0.02 * jax.random.normal(ks[6], (1, hidden), jnp.float32),
            w_fc2=0.02 * jax.random.normal(ks[7], (hidden, dim), jnp.float32),
            b_fc2=jnp.zeros((1, dim), jnp.float32),
        ))
    return blocks


def prepare_layer_params(blocks, num_heads, H, W):
    """One-time host-side prep:
       * fold qk scale (head_dim**-0.5) into the Q slice of w_qkv / b_qkv,
       * pre-gather the relative-position bias to (nH, N, N), stored bf16,
       * cast MXU weights to bf16,
       * stack every per-block tensor along a leading depth axis so the whole
         LITLayer runs in ONE pallas_call with grid=(B, depth)."""
    N = H * W
    pos_ids = jnp.asarray(get_relative_pos_index(H, W).reshape(-1), jnp.int32)
    per_block = []
    for blk in blocks:
        dim = blk["w_qkv"].shape[0]
        hd = dim // num_heads
        scale = hd ** (-0.5)
        w_qkv = blk["w_qkv"].at[:, :dim].multiply(scale)       # fold scale into Q
        b_qkv = blk["b_qkv"].at[:, :dim].multiply(scale)
        # NOTE: bicubic resize of the table is the identity when (H,W)==input_resolution.
        bias = jnp.take(blk["rel_table"], pos_ids, axis=0).reshape(N, N, num_heads)
        bias = jnp.transpose(bias, (2, 0, 1)).astype(MXU_DTYPE)   # (nH, N, N) bf16
        per_block.append(dict(
            ln1_g=blk["ln1_g"], ln1_b=blk["ln1_b"],
            w_qkv=w_qkv.astype(MXU_DTYPE), b_qkv=b_qkv.astype(jnp.float32),
            bias=bias,
            w_proj=blk["w_proj"].astype(MXU_DTYPE), b_proj=blk["b_proj"],
            ln2_g=blk["ln2_g"], ln2_b=blk["ln2_b"],
            w_fc1=blk["w_fc1"].astype(MXU_DTYPE), b_fc1=blk["b_fc1"],
            w_fc2=blk["w_fc2"].astype(MXU_DTYPE), b_fc2=blk["b_fc2"],
        ))
    keys = per_block[0].keys()
    return {k: jnp.stack([pb[k] for pb in per_block], axis=0) for k in keys}


def lit_layer_forward(x, H, W, params, num_heads, input_resolution, has_msa=True):
    """LITLayer.forward (downsample=None, dropout/drop_path=0): returns (x,H,W,x,H,W).
    Single pallas_call for the whole layer; grid=(B, depth), depth 'arbitrary'."""
    B, N, C = x.shape
    assert N == H * W
    depth = params["ln2_g"].shape[0]

    if has_msa:
        assert (H, W) == tuple(input_resolution), "identity bias-resize path only"
        head_dim = C // num_heads
        kern = functools.partial(lit_layer_kernel, num_heads=num_heads,
                                 head_dim=head_dim, dim=C)
        order = ("ln1_g", "ln1_b", "w_qkv", "b_qkv", "bias", "w_proj", "b_proj",
                 "ln2_g", "ln2_b", "w_fc1", "b_fc1", "w_fc2", "b_fc2")
    else:
        kern = mlp_layer_kernel
        order = ("ln2_g", "ln2_b", "w_fc1", "b_fc1", "w_fc2", "b_fc2")

    p_arrays = tuple(params[k] for k in order)
    in_specs = [pl.BlockSpec((1, N, C), lambda b, d: (b, 0, 0))]
    in_specs += [_depth_spec(a.shape) for a in p_arrays]

    out = pl.pallas_call(
        kern,
        grid=(B, depth),
        in_specs=in_specs,
        out_specs=pl.BlockSpec((1, N, C), lambda b, d: (b, 0, 0)),
        out_shape=jax.ShapeDtypeStruct((B, N, C), x.dtype),
        scratch_shapes=[pltpu.VMEM((N, C), jnp.float32)],      # resident f32 residual
        compiler_params=pltpu.CompilerParams(
            dimension_semantics=("parallel", "arbitrary"),
            vmem_limit_bytes=64 * 1024 * 1024),
    )(x, *p_arrays)
    return out, H, W, out, H, W


# ------------------------------------------------------------------ pure-JAX reference

def _ref_forward(x, H, W, blocks, num_heads):
    B, N, C = x.shape
    hd = C // num_heads
    pos_ids = jnp.asarray(get_relative_pos_index(H, W).reshape(-1), jnp.int32)
    for blk in blocks:
        y = _layernorm(x, blk["ln1_g"], blk["ln1_b"])
        qkv = y @ blk["w_qkv"] + blk["b_qkv"]
        qkv = qkv.reshape(B, N, 3, num_heads, hd).transpose(2, 0, 3, 1, 4)
        q, k, v = qkv[0] * hd ** -0.5, qkv[1], qkv[2]
        attn = jnp.einsum("bhnd,bhmd->bhnm", q, k)
        bias = jnp.take(blk["rel_table"], pos_ids, axis=0).reshape(N, N, num_heads)
        attn = attn + jnp.transpose(bias, (2, 0, 1))[None]
        attn = jax.nn.softmax(attn, axis=-1)
        out = jnp.einsum("bhnm,bhmd->bhnd", attn, v).transpose(0, 2, 1, 3).reshape(B, N, C)
        x = x + out @ blk["w_proj"] + blk["b_proj"]
        y = _layernorm(x, blk["ln2_g"], blk["ln2_b"])
        h = _gelu_exact(y @ blk["w_fc1"] + blk["b_fc1"])
        x = x + h @ blk["w_fc2"] + blk["b_fc2"]
    return x


# ------------------------------------------------------------------ main

if __name__ == "__main__":
    # Small but lane-dense config: dim=128 (C multiple of 128 -> dense 128-lane
    # loads/stores), depth=2, num_heads=4 (head_dim=32), input_resolution=(8,8) -> N=64.
    B, H, W = 2, 8, 8
    dim, depth, num_heads, mlp_ratio = 128, 2, 4, 4.0
    input_resolution = (H, W)
    N = H * W

    key = jax.random.PRNGKey(0)
    kx, kp = jax.random.split(key)
    x = jax.random.normal(kx, (B, N, dim), jnp.float32)
    blocks = make_lit_layer_params(kp, dim, depth, num_heads, input_resolution, mlp_ratio)
    params = prepare_layer_params(blocks, num_heads=num_heads, H=H, W=W)

    out, oH, oW, out_down, dH, dW = lit_layer_forward(
        x, H, W, params, num_heads=num_heads,
        input_resolution=input_resolution, has_msa=True)
    out = jax.block_until_ready(out)

    ref = _ref_forward(x, H, W, blocks, num_heads)
    assert out.shape == (B, N, dim) and (oH, oW, dH, dW) == (H, W, H, W)
    max_err = float(jnp.max(jnp.abs(out - ref)))
    # bf16 MXU operands / bias + approx reciprocal -> small numeric delta vs f32 ref.
    assert jnp.allclose(out, ref, atol=2e-2, rtol=2e-2), \
        f"mismatch vs. JAX reference (max abs err {max_err})"

    print("KERNEL_OK")
</pallas_src>

<mosaic_0001>
module attributes {stable_mosaic.version = 11 : i64} {
  func.func @lit_layer_kernel(%arg0: i32, %arg1: i32, %arg2: memref<1x64x128xf32, #tpu.memory_space<vmem>>, %arg3: memref<1x1x128xf32, #tpu.memory_space<vmem>>, %arg4: memref<1x1x128xf32, #tpu.memory_space<vmem>>, %arg5: memref<1x128x384xbf16, #tpu.memory_space<vmem>>, %arg6: memref<1x1x384xf32, #tpu.memory_space<vmem>>, %arg7: memref<1x4x64x64xbf16, #tpu.memory_space<vmem>>, %arg8: memref<1x128x128xbf16, #tpu.memory_space<vmem>>, %arg9: memref<1x1x128xf32, #tpu.memory_space<vmem>>, %arg10: memref<1x1x128xf32, #tpu.memory_space<vmem>>, %arg11: memref<1x1x128xf32, #tpu.memory_space<vmem>>, %arg12: memref<1x128x512xbf16, #tpu.memory_space<vmem>>, %arg13: memref<1x1x512xf32, #tpu.memory_space<vmem>>, %arg14: memref<1x512x128xbf16, #tpu.memory_space<vmem>>, %arg15: memref<1x1x128xf32, #tpu.memory_space<vmem>>, %arg16: memref<1x64x128xf32, #tpu.memory_space<vmem>>, %arg17: memref<64x128xf32, #tpu.memory_space<vmem>>) attributes {dimension_semantics = [#tpu.dimension_semantics<parallel>, #tpu.dimension_semantics<arbitrary>], iteration_bounds = array<i64: 2, 2>, scalar_prefetch = 0 : i64, scratch_operands = 1 : i64, tpu.core_type = #tpu.core_type<tc>, window_params = [{transform_indices = @transform_0, window_bounds = array<i64: 1, 64, 128>}, {transform_indices = @transform_1, window_bounds = array<i64: 1, 1, 128>}, {transform_indices = @transform_2, window_bounds = array<i64: 1, 1, 128>}, {transform_indices = @transform_3, window_bounds = array<i64: 1, 128, 384>}, {transform_indices = @transform_4, window_bounds = array<i64: 1, 1, 384>}, {transform_indices = @transform_5, window_bounds = array<i64: 1, 4, 64, 64>}, {transform_indices = @transform_6, window_bounds = array<i64: 1, 128, 128>}, {transform_indices = @transform_7, window_bounds = array<i64: 1, 1, 128>}, {transform_indices = @transform_8, window_bounds = array<i64: 1, 1, 128>}, {transform_indices = @transform_9, window_bounds = array<i64: 1, 1, 128>}, {transform_indices = @transform_10, window_bounds = array<i64: 1, 128, 512>}, {transform_indices = @transform_11, window_bounds = array<i64: 1, 1, 512>}, {transform_indices = @transform_12, window_bounds = array<i64: 1, 512, 128>}, {transform_indices = @transform_13, window_bounds = array<i64: 1, 1, 128>}, {transform_indices = @transform_14, window_bounds = array<i64: 1, 64, 128>}]} {
    %c0_i32 = arith.constant 0 : i32
    %0 = arith.cmpi eq, %arg1, %c0_i32 : i32
    %1 = arith.extui %0 : i1 to i32
    %c0_i32_0 = arith.constant 0 : i32
    %2 = arith.cmpi ne, %1, %c0_i32_0 : i32
    scf.if %2 {
      %c0_65 = arith.constant 0 : index
      %c0_66 = arith.constant 0 : index
      %c0_67 = arith.constant 0 : index
      %162 = vector.load %arg2[%c0_65, %c0_66, %c0_67] : memref<1x64x128xf32, #tpu.memory_space<vmem>>, vector<1x64x128xf32>
      %163 = vector.shape_cast %162 : vector<1x64x128xf32> to vector<64x128xf32>
      %c0_68 = arith.constant 0 : index
      %c0_69 = arith.constant 0 : index
      %164 = vector.load %arg17[%c0_68, %c0_69] : memref<64x128xf32, #tpu.memory_space<vmem>>, vector<64x128xf32>
      tpu.vector_store %arg17[%c0_68, %c0_69], %163 {strides = array<i32>} : memref<64x128xf32, #tpu.memory_space<vmem>>, vector<64x128xf32>,
    } else {
    }
    %c0 = arith.constant 0 : index
    %c0_1 = arith.constant 0 : index
    %3 = vector.load %arg17[%c0, %c0_1] : memref<64x128xf32, #tpu.memory_space<vmem>>, vector<64x128xf32>
    %c0_2 = arith.constant 0 : index
    %c0_3 = arith.constant 0 : index
    %c0_4 = arith.constant 0 : index
    %4 = vector.load %arg3[%c0_2, %c0_3, %c0_4] : memref<1x1x128xf32, #tpu.memory_space<vmem>>, vector<1x1x128xf32>
    %5 = vector.shape_cast %4 : vector<1x1x128xf32> to vector<1x128xf32>
    %c0_5 = arith.constant 0 : index
    %c0_6 = arith.constant 0 : index
    %c0_7 = arith.constant 0 : index
    %6 = vector.load %arg4[%c0_5, %c0_6, %c0_7] : memref<1x1x128xf32, #tpu.memory_space<vmem>>, vector<1x1x128xf32>
    %7 = vector.shape_cast %6 : vector<1x1x128xf32> to vector<1x128xf32>
    %cst = arith.constant dense<0.000000e+00> : vector<64xf32>
    %8 = vector.multi_reduction <add>, %3, %cst [1] : vector<64x128xf32> to vector<64xf32>
    %9 = vector.shape_cast %8 : vector<64xf32> to vector<64x1xf32>
    %cst_8 = arith.constant 1.280000e+02 : f32
    %10 = vector.broadcast %cst_8 : f32 to vector<64x1xf32>
    %11 = arith.divf %9, %10 : vector<64x1xf32>
    %12 = vector.broadcast %11 : vector<64x1xf32> to vector<64x128xf32>
    %13 = arith.subf %3, %12 : vector<64x128xf32>
    %14 = arith.mulf %13, %13 : vector<64x128xf32>
    %cst_9 = arith.constant dense<0.000000e+00> : vector<64xf32>
    %15 = vector.multi_reduction <add>, %14, %cst_9 [1] : vector<64x128xf32> to vector<64xf32>
    %16 = vector.shape_cast %15 : vector<64xf32> to vector<64x1xf32>
    %cst_10 = arith.constant 1.280000e+02 : f32
    %17 = vector.broadcast %cst_10 : f32 to vector<64x1xf32>
    %18 = arith.divf %16, %17 : vector<64x1xf32>
    %19 = vector.broadcast %11 : vector<64x1xf32> to vector<64x128xf32>
    %20 = arith.subf %3, %19 : vector<64x128xf32>
    %cst_11 = arith.constant 9.99999974E-6 : f32
    %21 = vector.broadcast %cst_11 : f32 to vector<64x1xf32>
    %22 = arith.addf %18, %21 : vector<64x1xf32>
    %23 = math.rsqrt %22 : vector<64x1xf32>
    %24 = vector.broadcast %23 : vector<64x1xf32> to vector<64x128xf32>
    %25 = arith.mulf %20, %24 : vector<64x128xf32>
    %26 = vector.broadcast %5 : vector<1x128xf32> to vector<64x128xf32>
    %27 = arith.mulf %25, %26 : vector<64x128xf32>
    %28 = vector.broadcast %7 : vector<1x128xf32> to vector<64x128xf32>
    %29 = arith.addf %27, %28 : vector<64x128xf32>
    %30 = arith.truncf %29 : vector<64x128xf32> to vector<64x128xbf16>
    %c0_12 = arith.constant 0 : index
    %c0_13 = arith.constant 0 : index
    %c0_14 = arith.constant 0 : index
    %31 = vector.load %arg5[%c0_12, %c0_13, %c0_14] : memref<1x128x384xbf16, #tpu.memory_space<vmem>>, vector<1x128x384xbf16>
    %32 = vector.shape_cast %31 : vector<1x128x384xbf16> to vector<128x384xbf16>
    %cst_15 = arith.constant dense<0.000000e+00> : vector<64x384xf32>
    %33 = tpu.matmul %30, %32, %cst_15 {dimension_numbers = #tpu.dot_dimension_numbers<[1], [0], [0], [1], [0, 0, 1, 1], [], []>} : vector<64x128xbf16>, vector<128x384xbf16>, vector<64x384xf32> -> vector<64x384xf32>
    %c0_16 = arith.constant 0 : index
    %c0_17 = arith.constant 0 : index
    %c0_18 = arith.constant 0 : index
    %34 = vector.load %arg6[%c0_16, %c0_17, %c0_18] : memref<1x1x384xf32, #tpu.memory_space<vmem>>, vector<1x1x384xf32>
    %35 = vector.shape_cast %34 : vector<1x1x384xf32> to vector<1x384xf32>
    %36 = vector.broadcast %35 : vector<1x384xf32> to vector<64x384xf32>
    %37 = arith.addf %33, %36 : vector<64x384xf32>
    %38 = vector.extract_strided_slice %37 {offsets = [0, 0], sizes = [64, 128], strides = [1, 1]} : vector<64x384xf32> to vector<64x128xf32>
    %39 = arith.truncf %38 : vector<64x128xf32> to vector<64x128xbf16>
    %40 = vector.extract_strided_slice %37 {offsets = [0, 128], sizes = [64, 128], strides = [1, 1]} : vector<64x384xf32> to vector<64x128xf32>
    %41 = arith.truncf %40 : vector<64x128xf32> to vector<64x128xbf16>
    %42 = vector.extract_strided_slice %37 {offsets = [0, 256], sizes = [64, 128], strides = [1, 1]} : vector<64x384xf32> to vector<64x128xf32>
    %43 = arith.truncf %42 : vector<64x128xf32> to vector<64x128xbf16>
    %44 = vector.extract_strided_slice %39 {offsets = [0, 0], sizes = [64, 32], strides = [1, 1]} : vector<64x128xbf16> to vector<64x32xbf16>
    %45 = vector.extract_strided_slice %39 {offsets = [0, 32], sizes = [64, 32], strides = [1, 1]} : vector<64x128xbf16> to vector<64x32xbf16>
    %46 = vector.extract_strided_slice %39 {offsets = [0, 64], sizes = [64, 32], strides = [1, 1]} : vector<64x128xbf16> to vector<64x32xbf16>
    %47 = vector.extract_strided_slice %39 {offsets = [0, 96], sizes = [64, 32], strides = [1, 1]} : vector<64x128xbf16> to vector<64x32xbf16>
    %48 = vector.shape_cast %44 : vector<64x32xbf16> to vector<1x64x32xbf16>
    %49 = vector.shape_cast %45 : vector<64x32xbf16> to vector<1x64x32xbf16>
    %50 = vector.shape_cast %46 : vector<64x32xbf16> to vector<1x64x32xbf16>
    %51 = vector.shape_cast %47 : vector<64x32xbf16> to vector<1x64x32xbf16>
    %52 = tpu.concatenate %48, %49, %50, %51 in 0 : vector<1x64x32xbf16>, vector<1x64x32xbf16>, vector<1x64x32xbf16>, vector<1x64x32xbf16> -> vector<4x64x32xbf16>
    %53 = vector.extract_strided_slice %41 {offsets = [0, 0], sizes = [64, 32], strides = [1, 1]} : vector<64x128xbf16> to vector<64x32xbf16>
    %54 = vector.extract_strided_slice %41 {offsets = [0, 32], sizes = [64, 32], strides = [1, 1]} : vector<64x128xbf16> to vector<64x32xbf16>
    %55 = vector.extract_strided_slice %41 {offsets = [0, 64], sizes = [64, 32], strides = [1, 1]} : vector<64x128xbf16> to vector<64x32xbf16>
    %56 = vector.extract_strided_slice %41 {offsets = [0, 96], sizes = [64, 32], strides = [1, 1]} : vector<64x128xbf16> to vector<64x32xbf16>
    %57 = vector.shape_cast %53 : vector<64x32xbf16> to vector<1x64x32xbf16>
    %58 = vector.shape_cast %54 : vector<64x32xbf16> to vector<1x64x32xbf16>
    %59 = vector.shape_cast %55 : vector<64x32xbf16> to vector<1x64x32xbf16>
    %60 = vector.shape_cast %56 : vector<64x32xbf16> to vector<1x64x32xbf16>
    %61 = tpu.concatenate %57, %58, %59, %60 in 0 : vector<1x64x32xbf16>, vector<1x64x32xbf16>, vector<1x64x32xbf16>, vector<1x64x32xbf16> -> vector<4x64x32xbf16>
    %62 = vector.extract_strided_slice %43 {offsets = [0, 0], sizes = [64, 32], strides = [1, 1]} : vector<64x128xbf16> to vector<64x32xbf16>
    %63 = vector.extract_strided_slice %43 {offsets = [0, 32], sizes = [64, 32], strides = [1, 1]} : vector<64x128xbf16> to vector<64x32xbf16>
    %64 = vector.extract_strided_slice %43 {offsets = [0, 64], sizes = [64, 32], strides = [1, 1]} : vector<64x128xbf16> to vector<64x32xbf16>
    %65 = vector.extract_strided_slice %43 {offsets = [0, 96], sizes = [64, 32], strides = [1, 1]} : vector<64x128xbf16> to vector<64x32xbf16>
    %66 = vector.shape_cast %62 : vector<64x32xbf16> to vector<1x64x32xbf16>
    %67 = vector.shape_cast %63 : vector<64x32xbf16> to vector<1x64x32xbf16>
    %68 = vector.shape_cast %64 : vector<64x32xbf16> to vector<1x64x32xbf16>
    %69 = vector.shape_cast %65 : vector<64x32xbf16> to vector<1x64x32xbf16>
    %70 = tpu.concatenate %66, %67, %68, %69 in 0 : vector<1x64x32xbf16>, vector<1x64x32xbf16>, vector<1x64x32xbf16>, vector<1x64x32xbf16> -> vector<4x64x32xbf16>
    %cst_19 = arith.constant dense<0.000000e+00> : vector<4x64x64xf32>
    %71 = tpu.matmul %52, %61, %cst_19 {dimension_numbers = #tpu.dot_dimension_numbers<[2], [2], [1], [1], [0, 0, 0, 1, 1, 1], [0], [0]>} : vector<4x64x32xbf16>, vector<4x64x32xbf16>, vector<4x64x64xf32> -> vector<4x64x64xf32>
    %c0_20 = arith.constant 0 : index
    %c0_21 = arith.constant 0 : index
    %c0_22 = arith.constant 0 : index
    %c0_23 = arith.constant 0 : index
    %72 = vector.load %arg7[%c0_20, %c0_21, %c0_22, %c0_23] : memref<1x4x64x64xbf16, #tpu.memory_space<vmem>>, vector<1x4x64x64xbf16>
    %73 = vector.shape_cast %72 : vector<1x4x64x64xbf16> to vector<4x64x64xbf16>
    %74 = arith.extf %73 : vector<4x64x64xbf16> to vector<4x64x64xf32>
    %75 = arith.addf %71, %74 : vector<4x64x64xf32>
    %cst_24 = arith.constant dense<0xFF800000> : vector<4x64xf32>
    %76 = vector.multi_reduction <maximumf>, %75, %cst_24 [2] : vector<4x64x64xf32> to vector<4x64xf32>
    %77 = vector.shape_cast %76 : vector<4x64xf32> to vector<4x64x1xf32>
    %78 = vector.broadcast %77 : vector<4x64x1xf32> to vector<4x64x64xf32>
    %79 = arith.subf %75, %78 : vector<4x64x64xf32>
    %80 = math.exp %79 : vector<4x64x64xf32>
    %cst_25 = arith.constant dense<0.000000e+00> : vector<4x64xf32>
    %81 = vector.multi_reduction <add>, %80, %cst_25 [2] : vector<4x64x64xf32> to vector<4x64xf32>
    %82 = vector.shape_cast %81 : vector<4x64xf32> to vector<4x64x1xf32>
    %83 = tpu.reciprocal %82 {approx = true} : vector<4x64x1xf32> -> vector<4x64x1xf32>
    %84 = vector.broadcast %83 : vector<4x64x1xf32> to vector<4x64x64xf32>
    %85 = arith.mulf %80, %84 : vector<4x64x64xf32>
    %86 = arith.truncf %85 : vector<4x64x64xf32> to vector<4x64x64xbf16>
    %cst_26 = arith.constant dense<0.000000e+00> : vector<4x64x32xf32>
    %87 = tpu.matmul %86, %70, %cst_26 {dimension_numbers = #tpu.dot_dimension_numbers<[2], [1], [1], [2], [0, 0, 0, 1, 1, 2], [0], [0]>} : vector<4x64x64xbf16>, vector<4x64x32xbf16>, vector<4x64x32xf32> -> vector<4x64x32xf32>
    %88 = vector.extract_strided_slice %87 {offsets = [0, 0, 0], sizes = [1, 64, 32], strides = [1, 1, 1]} : vector<4x64x32xf32> to vector<1x64x32xf32>
    %89 = vector.shape_cast %88 : vector<1x64x32xf32> to vector<64x32xf32>
    %90 = vector.extract_strided_slice %87 {offsets = [1, 0, 0], sizes = [1, 64, 32], strides = [1, 1, 1]} : vector<4x64x32xf32> to vector<1x64x32xf32>
    %91 = vector.shape_cast %90 : vector<1x64x32xf32> to vector<64x32xf32>
    %92 = vector.extract_strided_slice %87 {offsets = [2, 0, 0], sizes = [1, 64, 32], strides = [1, 1, 1]} : vector<4x64x32xf32> to vector<1x64x32xf32>
    %93 = vector.shape_cast %92 : vector<1x64x32xf32> to vector<64x32xf32>
    %94 = vector.extract_strided_slice %87 {offsets = [3, 0, 0], sizes = [1, 64, 32], strides = [1, 1, 1]} : vector<4x64x32xf32> to vector<1x64x32xf32>
    %95 = vector.shape_cast %94 : vector<1x64x32xf32> to vector<64x32xf32>
    %96 = tpu.concatenate %89, %91, %93, %95 in 1 : vector<64x32xf32>, vector<64x32xf32>, vector<64x32xf32>, vector<64x32xf32> -> vector<64x128xf32>
    %97 = arith.truncf %96 : vector<64x128xf32> to vector<64x128xbf16>
    %c0_27 = arith.constant 0 : index
    %c0_28 = arith.constant 0 : index
    %c0_29 = arith.constant 0 : index
    %98 = vector.load %arg8[%c0_27, %c0_28, %c0_29] : memref<1x128x128xbf16, #tpu.memory_space<vmem>>, vector<1x128x128xbf16>
    %99 = vector.shape_cast %98 : vector<1x128x128xbf16> to vector<128x128xbf16>
    %cst_30 = arith.constant dense<0.000000e+00> : vector<64x128xf32>
    %100 = tpu.matmul %97, %99, %cst_30 {dimension_numbers = #tpu.dot_dimension_numbers<[1], [0], [0], [1], [0, 0, 1, 1], [], []>} : vector<64x128xbf16>, vector<128x128xbf16>, vector<64x128xf32> -> vector<64x128xf32>
    %c0_31 = arith.constant 0 : index
    %c0_32 = arith.constant 0 : index
    %c0_33 = arith.constant 0 : index
    %101 = vector.load %arg9[%c0_31, %c0_32, %c0_33] : memref<1x1x128xf32, #tpu.memory_space<vmem>>, vector<1x1x128xf32>
    %102 = vector.shape_cast %101 : vector<1x1x128xf32> to vector<1x128xf32>
    %103 = vector.broadcast %102 : vector<1x128xf32> to vector<64x128xf32>
    %104 = arith.addf %100, %103 : vector<64x128xf32>
    %105 = arith.addf %3, %104 : vector<64x128xf32>
    %c0_34 = arith.constant 0 : index
    %c0_35 = arith.constant 0 : index
    %c0_36 = arith.constant 0 : index
    %106 = vector.load %arg10[%c0_34, %c0_35, %c0_36] : memref<1x1x128xf32, #tpu.memory_space<vmem>>, vector<1x1x128xf32>
    %107 = vector.shape_cast %106 : vector<1x1x128xf32> to vector<1x128xf32>
    %c0_37 = arith.constant 0 : index
    %c0_38 = arith.constant 0 : index
    %c0_39 = arith.constant 0 : index
    %108 = vector.load %arg11[%c0_37, %c0_38, %c0_39] : memref<1x1x128xf32, #tpu.memory_space<vmem>>, vector<1x1x128xf32>
    %109 = vector.shape_cast %108 : vector<1x1x128xf32> to vector<1x128xf32>
    %cst_40 = arith.constant dense<0.000000e+00> : vector<64xf32>
    %110 = vector.multi_reduction <add>, %105, %cst_40 [1] : vector<64x128xf32> to vector<64xf32>
    %111 = vector.shape_cast %110 : vector<64xf32> to vector<64x1xf32>
    %cst_41 = arith.constant 1.280000e+02 : f32
    %112 = vector.broadcast %cst_41 : f32 to vector<64x1xf32>
    %113 = arith.divf %111, %112 : vector<64x1xf32>
    %114 = vector.broadcast %113 : vector<64x1xf32> to vector<64x128xf32>
    %115 = arith.subf %105, %114 : vector<64x128xf32>
    %116 = arith.mulf %115, %115 : vector<64x128xf32>
    %cst_42 = arith.constant dense<0.000000e+00> : vector<64xf32>
    %117 = vector.multi_reduction <add>, %116, %cst_42 [1] : vector<64x128xf32> to vector<64xf32>
    %118 = vector.shape_cast %117 : vector<64xf32> to vector<64x1xf32>
    %cst_43 = arith.constant 1.280000e+02 : f32
    %119 = vector.broadcast %cst_43 : f32 to vector<64x1xf32>
    %120 = arith.divf %118, %119 : vector<64x1xf32>
    %121 = vector.broadcast %113 : vector<64x1xf32> to vector<64x128xf32>
    %122 = arith.subf %105, %121 : vector<64x128xf32>
    %cst_44 = arith.constant 9.99999974E-6 : f32
    %123 = vector.broadcast %cst_44 : f32 to vector<64x1xf32>
    %124 = arith.addf %120, %123 : vector<64x1xf32>
    %125 = math.rsqrt %124 : vector<64x1xf32>
    %126 = vector.broadcast %125 : vector<64x1xf32> to vector<64x128xf32>
    %127 = arith.mulf %122, %126 : vector<64x128xf32>
    %128 = vector.broadcast %107 : vector<1x128xf32> to vector<64x128xf32>
    %129 = arith.mulf %127, %128 : vector<64x128xf32>
    %130 = vector.broadcast %109 : vector<1x128xf32> to vector<64x128xf32>
    %131 = arith.addf %129, %130 : vector<64x128xf32>
    %132 = arith.truncf %131 : vector<64x128xf32> to vector<64x128xbf16>
    %c0_45 = arith.constant 0 : index
    %c0_46 = arith.constant 0 : index
    %c0_47 = arith.constant 0 : index
    %133 = vector.load %arg12[%c0_45, %c0_46, %c0_47] : memref<1x128x512xbf16, #tpu.memory_space<vmem>>, vector<1x128x512xbf16>
    %134 = vector.shape_cast %133 : vector<1x128x512xbf16> to vector<128x512xbf16>
    %cst_48 = arith.constant dense<0.000000e+00> : vector<64x512xf32>
    %135 = tpu.matmul %132, %134, %cst_48 {dimension_numbers = #tpu.dot_dimension_numbers<[1], [0], [0], [1], [0, 0, 1, 1], [], []>} : vector<64x128xbf16>, vector<128x512xbf16>, vector<64x512xf32> -> vector<64x512xf32>
    %c0_49 = arith.constant 0 : index
    %c0_50 = arith.constant 0 : index
    %c0_51 = arith.constant 0 : index
    %136 = vector.load %arg13[%c0_49, %c0_50, %c0_51] : memref<1x1x512xf32, #tpu.memory_space<vmem>>, vector<1x1x512xf32>
    %137 = vector.shape_cast %136 : vector<1x1x512xf32> to vector<1x512xf32>
    %138 = vector.broadcast %137 : vector<1x512xf32> to vector<64x512xf32>
    %139 = arith.addf %135, %138 : vector<64x512xf32>
    %cst_52 = arith.constant 5.000000e-01 : f32
    %140 = vector.broadcast %cst_52 : f32 to vector<64x512xf32>
    %141 = arith.mulf %140, %139 : vector<64x512xf32>
    %cst_53 = arith.constant 2.000000e+00 : f32
    %142 = math.sqrt %cst_53 : f32
    %143 = vector.broadcast %142 : f32 to vector<64x512xf32>
    %144 = arith.divf %139, %143 : vector<64x512xf32>
    %145 = math.erf %144 : vector<64x512xf32>
    %cst_54 = arith.constant 1.000000e+00 : f32
    %146 = vector.broadcast %cst_54 : f32 to vector<64x512xf32>
    %147 = arith.addf %146, %145 : vector<64x512xf32>
    %148 = arith.mulf %141, %147 : vector<64x512xf32>
    %149 = arith.truncf %148 : vector<64x512xf32> to vector<64x512xbf16>
    %c0_55 = arith.constant 0 : index
    %c0_56 = arith.constant 0 : index
    %c0_57 = arith.constant 0 : index
    %150 = vector.load %arg14[%c0_55, %c0_56, %c0_57] : memref<1x512x128xbf16, #tpu.memory_space<vmem>>, vector<1x512x128xbf16>
    %151 = vector.shape_cast %150 : vector<1x512x128xbf16> to vector<512x128xbf16>
    %cst_58 = arith.constant dense<0.000000e+00> : vector<64x128xf32>
    %152 = tpu.matmul %149, %151, %cst_58 {dimension_numbers = #tpu.dot_dimension_numbers<[1], [0], [0], [1], [0, 0, 1, 1], [], []>} : vector<64x512xbf16>, vector<512x128xbf16>, vector<64x128xf32> -> vector<64x128xf32>
    %c0_59 = arith.constant 0 : index
    %c0_60 = arith.constant 0 : index
    %c0_61 = arith.constant 0 : index
    %153 = vector.load %arg15[%c0_59, %c0_60, %c0_61] : memref<1x1x128xf32, #tpu.memory_space<vmem>>, vector<1x1x128xf32>
    %154 = vector.shape_cast %153 : vector<1x1x128xf32> to vector<1x128xf32>
    %155 = vector.broadcast %154 : vector<1x128xf32> to vector<64x128xf32>
    %156 = arith.addf %152, %155 : vector<64x128xf32>
    %157 = arith.addf %105, %156 : vector<64x128xf32>
    %c0_62 = arith.constant 0 : index
    %c0_63 = arith.constant 0 : index
    %158 = vector.load %arg17[%c0_62, %c0_63] : memref<64x128xf32, #tpu.memory_space<vmem>>, vector<64x128xf32>
    tpu.vector_store %arg17[%c0_62, %c0_63], %157 {strides = array<i32>} : memref<64x128xf32, #tpu.memory_space<vmem>>, vector<64x128xf32>,
    %c1_i32 = arith.constant 1 : i32
    %159 = arith.cmpi eq, %arg1, %c1_i32 : i32
    %160 = arith.extui %159 : i1 to i32
    %c0_i32_64 = arith.constant 0 : i32
    %161 = arith.cmpi ne, %160, %c0_i32_64 : i32
    scf.if %161 {
      %c0_65 = arith.constant 0 : index
      %c0_66 = arith.constant 0 : index
      %c0_67 = arith.constant 0 : index
      %162 = vector.load %arg16[%c0_65, %c0_66, %c0_67] : memref<1x64x128xf32, #tpu.memory_space<vmem>>, vector<1x64x128xf32>
      %163 = vector.shape_cast %162 : vector<1x64x128xf32> to vector<64x128xf32>
      %164 = vector.shape_cast %157 : vector<64x128xf32> to vector<1x64x128xf32>
      tpu.vector_store %arg16[%c0_65, %c0_66, %c0_67], %164 {strides = array<i32>} : memref<1x64x128xf32, #tpu.memory_space<vmem>>, vector<1x64x128xf32>,
    } else {
    }
    return
  }
  func.func @transform_0(%arg0: i32, %arg1: i32) -> (i32, i32, i32) {
    %c0_i32 = arith.constant 0 : i32
    %c0_i32_0 = arith.constant 0 : i32
    %c0_i32_1 = arith.constant 0 : i32
    return %arg0, %c0_i32, %c0_i32_0 : i32, i32, i32
  }
  func.func @transform_1(%arg0: i32, %arg1: i32) -> (i32, i32, i32) {
    %c0_i32 = arith.constant 0 : i32
    %c0_i32_0 = arith.constant 0 : i32
    %c0_i32_1 = arith.constant 0 : i32
    return %arg1, %c0_i32, %c0_i32_0 : i32, i32, i32
  }
  func.func @transform_2(%arg0: i32, %arg1: i32) -> (i32, i32, i32) {
    %c0_i32 = arith.constant 0 : i32
    %c0_i32_0 = arith.constant 0 : i32
    %c0_i32_1 = arith.constant 0 : i32
    return %arg1, %c0_i32, %c0_i32_0 : i32, i32, i32
  }
  func.func @transform_3(%arg0: i32, %arg1: i32) -> (i32, i32, i32) {
    %c0_i32 = arith.constant 0 : i32
    %c0_i32_0 = arith.constant 0 : i32
    %c0_i32_1 = arith.constant 0 : i32
    return %arg1, %c0_i32, %c0_i32_0 : i32, i32, i32
  }
  func.func @transform_4(%arg0: i32, %arg1: i32) -> (i32, i32, i32) {
    %c0_i32 = arith.constant 0 : i32
    %c0_i32_0 = arith.constant 0 : i32
    %c0_i32_1 = arith.constant 0 : i32
    return %arg1, %c0_i32, %c0_i32_0 : i32, i32, i32
  }
  func.func @transform_5(%arg0: i32, %arg1: i32) -> (i32, i32, i32, i32) {
    %c0_i32 = arith.constant 0 : i32
    %c0_i32_0 = arith.constant 0 : i32
    %c0_i32_1 = arith.constant 0 : i32
    %c0_i32_2 = arith.constant 0 : i32
    return %arg1, %c0_i32, %c0_i32_0, %c0_i32_1 : i32, i32, i32, i32
  }
  func.func @transform_6(%arg0: i32, %arg1: i32) -> (i32, i32, i32) {
    %c0_i32 = arith.constant 0 : i32
    %c0_i32_0 = arith.constant 0 : i32
    %c0_i32_1 = arith.constant 0 : i32
    return %arg1, %c0_i32, %c0_i32_0 : i32, i32, i32
  }
  func.func @transform_7(%arg0: i32, %arg1: i32) -> (i32, i32, i32) {
    %c0_i32 = arith.constant 0 : i32
    %c0_i32_0 = arith.constant 0 : i32
    %c0_i32_1 = arith.constant 0 : i32
    return %arg1, %c0_i32, %c0_i32_0 : i32, i32, i32
  }
  func.func @transform_8(%arg0: i32, %arg1: i32) -> (i32, i32, i32) {
    %c0_i32 = arith.constant 0 : i32
    %c0_i32_0 = arith.constant 0 : i32
    %c0_i32_1 = arith.constant 0 : i32
    return %arg1, %c0_i32, %c0_i32_0 : i32, i32, i32
  }
  func.func @transform_9(%arg0: i32, %arg1: i32) -> (i32, i32, i32) {
    %c0_i32 = arith.constant 0 : i32
    %c0_i32_0 = arith.constant 0 : i32
    %c0_i32_1 = arith.constant 0 : i32
    return %arg1, %c0_i32, %c0_i32_0 : i32, i32, i32
  }
  func.func @transform_10(%arg0: i32, %arg1: i32) -> (i32, i32, i32) {
    %c0_i32 = arith.constant 0 : i32
    %c0_i32_0 = arith.constant 0 : i32
    %c0_i32_1 = arith.constant 0 : i32
    return %arg1, %c0_i32, %c0_i32_0 : i32, i32, i32
  }
  func.func @transform_11(%arg0: i32, %arg1: i32) -> (i32, i32, i32) {
    %c0_i32 = arith.constant 0 : i32
    %c0_i32_0 = arith.constant 0 : i32
    %c0_i32_1 = arith.constant 0 : i32
    return %arg1, %c0_i32, %c0_i32_0 : i32, i32, i32
  }
  func.func @transform_12(%arg0: i32, %arg1: i32) -> (i32, i32, i32) {
    %c0_i32 = arith.constant 0 : i32
    %c0_i32_0 = arith.constant 0 : i32
    %c0_i32_1 = arith.constant 0 : i32
    return %arg1, %c0_i32, %c0_i32_0 : i32, i32, i32
  }
  func.func @transform_13(%arg0: i32, %arg1: i32) -> (i32, i32, i32) {
    %c0_i32 = arith.constant 0 : i32
    %c0_i32_0 = arith.constant 0 : i32
    %c0_i32_1 = arith.constant 0 : i32
    return %arg1, %c0_i32, %c0_i32_0 : i32, i32, i32
  }
  func.func @transform_14(%arg0: i32, %arg1: i32) -> (i32, i32, i32) {
    %c0_i32 = arith.constant 0 : i32
    %c0_i32_0 = arith.constant 0 : i32
    %c0_i32_1 = arith.constant 0 : i32
    return %arg0, %c0_i32, %c0_i32_0 : i32, i32, i32
  }
}

</mosaic_0001>

<bundles_post_ra>
// kernel: tpu_custom_call.1
= control target key start
LH: loop header
LB: loop body
LE: loop exit
PB: predicated region body
PF: predicated region fallthrough
CT: control target
= control target key end

     0   :  { %s10409_s0 = inlined_call_operand.hbm [shape: f32[2,64,128], index: 0, kind: input, shape index: {}]   ;;  %s10410_s1 = inlined_call_operand.hbm [shape: f32[2,1,128], index: 1, kind: input, shape index: {}]   ;;  %s10411_s2 = inlined_call_operand.hbm [shape: f32[2,1,128], index: 2, kind: input, shape index: {}]   ;;  %s10412_s3 = inlined_call_operand.hbm [shape: bf16[2,128,384], index: 3, kind: input, shape index: {}]   ;;  %s10413_s4 = inlined_call_operand.hbm [shape: f32[2,1,384], index: 4, kind: input, shape index: {}]   ;;  %s10414_s5 = inlined_call_operand.hbm [shape: bf16[2,4,64,64], index: 5, kind: input, shape index: {}]   ;;  %s10415_s6 = inlined_call_operand.hbm [shape: bf16[2,128,128], index: 6, kind: input, shape index: {}]   ;;  %s10416_s7 = inlined_call_operand.vmem [shape: f32[2,1,128], index: 7, kind: input, shape index: {}]   ;;  %s10417_s8 = inlined_call_operand.hbm [shape: f32[2,1,128], index: 8, kind: input, shape index: {}]   ;;  %s10418_s9 = inlined_call_operand.hbm [shape: f32[2,1,128], index: 9, kind: input, shape index: {}]   ;;  %s10419_s10 = inlined_call_operand.hbm [shape: bf16[2,128,512], index: 10, kind: input, shape index: {}]   ;;  %s10420_s11 = inlined_call_operand.vmem [shape: f32[2,1,512], index: 11, kind: input, shape index: {}]   ;;  %s10421_s12 = inlined_call_operand.hbm [shape: bf16[2,512,128], index: 12, kind: input, shape index: {}]   ;;  %s10422_s13 = inlined_call_operand.vmem [shape: f32[2,1,128], index: 13, kind: input, shape index: {}]   ;;  %s10423_s14 = inlined_call_operand.hbm [shape: f32[2,64,128], index: 14, kind: output, shape index: {}]  }
   0x1   :  { %10455 = sst [smem:[#allocation55_spill]] %s10409_s0 }
   0x2   :  { %10456 = sst [smem:[#allocation56_spill]] %s10410_s1 }
   0x3   :  { %10457 = sst [smem:[#allocation57_spill]] %s10411_s2 }
   0x4   :  { %10458 = sst [smem:[#allocation58_spill]] %s10412_s3 }
   0x5   :  { %10459 = sst [smem:[#allocation59_spill]] %s10413_s4 }
   0x6   :  { %10460 = sst [smem:[#allocation60_spill]] %s10414_s5 }
   0x7   :  { %10461 = sst [smem:[#allocation61_spill]] %s10415_s6 }
   0x8   :  { %10462 = sst [smem:[#allocation62_spill]] %s10416_s7 }
   0x9   :  { %10463 = sst [smem:[#allocation63_spill]] %s10417_s8 }
   0xa   :  { %10464 = sst [smem:[#allocation64_spill]] %s10418_s9 }
   0xb   :  { %10465 = sst [smem:[#allocation65_spill]] %s10419_s10 }
   0xc   :  { %10466 = sst [smem:[#allocation66_spill]] %s10420_s11 }
   0xd   :  { %10467 = sst [smem:[#allocation67_spill]] %s10421_s12 }
   0xe   :  { %10468 = sst [smem:[#allocation68_spill]] %s10422_s13 }
   0xf   :  { %10469 = sst [smem:[#allocation69_spill]] %s10423_s14 }
  0x10   :  { %19 = vsyncpa [#allocation4], 0 }
  0x11   :  { %21 = vsyncpa [#allocation4 + $0x1], 0 }
  0x12   :  { %22 = vsyncpa [#allocation7], 0 }
  0x13   :  { %24 = vsyncpa [#allocation7 + $0x1], 0 }
  0x14   :  { %25 = vsyncpa [#allocation10], 0 }
  0x15   :  { %27 = vsyncpa [#allocation10 + $0x1], 0 }
  0x16   :  { %28 = vsyncpa [#allocation13], 0 }
  0x17   :  { %30 = vsyncpa [#allocation13 + $0x1], 0 }
  0x18   :  { %31 = vsyncpa [#allocation16], 0 }
  0x19   :  { %33 = vsyncpa [#allocation16 + $0x1], 0 }
  0x1a   :  { %34 = vsyncpa [#allocation19], 0 }
  0x1b   :  { %36 = vsyncpa [#allocation19 + $0x1], 0 }
  0x1c   :  { %37 = vsyncpa [#allocation5], 0 }
  0x1d   :  { %39 = vsyncpa [#allocation5 + $0x1], 0  ;;  %s7259_s29 = smov 0   ;;  %s7261_s30 = smov 0  }
  0x1e   :  { %s7263_s15 = smov 0   ;;  %s7265_s16 = smov 0  }
  0x1f   :  { %s7267_s17 = smov 0   ;;  %s7269_s18 = smov 0  }
  0x20   :  { %s7271_s19 = smov 0   ;;  %s7273_s20 = smov 0  }
  0x21   :  { %s7275_s21 = smov 0   ;;  %s7277_s22 = smov 0  }
  0x22   :  { %s7279_s23 = smov 0  }
  0x23 LB: > { %10470 = sst [smem:[#allocation29_spill]] %s7131_s30  ;;  %p72_p0 = scmp.eq.s32.totalorder %s7167_s23, 0  ;;  %s7167_s23 = sphi %s7279_s23, %s45_s23   ;;  %s7163_s22 = sphi %s7277_s22, %s10645_s22   ;;  %s7159_s21 = sphi %s7275_s21, %s10644_s21   ;;  %s7155_s20 = sphi %s7273_s20, %s10648_s20   ;;  %s7151_s19 = sphi %s7271_s19, %s10642_s19   ;;  %s7147_s18 = sphi %s7269_s18, %s10641_s18   ;;  %s7143_s17 = sphi %s7267_s17, %s10647_s17   ;;  %s7139_s16 = sphi %s7265_s16, %s10646_s16   ;;  %s7135_s15 = sphi %s7263_s15, %s10639_s15   ;;  %s7131_s30 = sphi %s7261_s30, %s10638_s30   ;;  %s7127_s29 = sphi %s7259_s29, %s10637_s29  }
  0x24   : > { %10471 = sst [smem:[#allocation30_spill]] %s7135_s15  ;;  %p97_p1 = scmp.ne.s32.totalorder %s7135_s15, %s7131_s30 }
  0x25   : > { %10472 = sst [smem:[#allocation31_spill]] %s7147_s18  ;;  %p10436_p2 = scmp.lt.s32.totalorder %s7167_s23, 4 }
  0x26   : > { %10473 = sst [smem:[#allocation32_spill]] %s7151_s19  ;;  %s7320_s25 = sand.u32 1, %s7167_s23  }
  0x27   : > { %10474 = sst [smem:[#allocation33_spill]] %s7155_s20  ;;  %p99_p3 = por %p97_p1, %p72_p0 }
  0x28   : > { %10475 = sst [smem:[#allocation34_spill]] %s7159_s21  ;;  %s7325_s26 = sand.u32 1, %s7135_s15  }
  0x29   : > { %10476 = sst [smem:[#allocation35_spill]] %s7163_s22  ;;  %s490_s24 = scalar_lea.vmem [#allocation6], %s7325_s26 }
  0x2a   : > { %s10477_s1 = sld [smem:[#allocation56_spill]]  ;;  %s497_s13 = sshll.u32 %s490_s24, 4  ;;  %s498_s13 = int_to_ptr.vmem [resolvable:$true] %s497_s13 }
  0x2b   : > { %p7334_p4 = pnand %p10436_p2, %p99_p3  ;;  %p5576_p5 = scmp.ge.s32.totalorder %s7167_s23, 1 }
  0x2c   : > { %p701_p6 = scmp.lt.s32.totalorder %s7167_s23, 5  ;;  %s10426_s27 = scalar_lea.sflag [#allocation7], %s7320_s25 }
  0x2d   : > { %s6220_s24 = smul.u32 192, %s7325_s26  ;;  %s10481_s3 = sld [smem:[#allocation58_spill]] }
  0x2e   : > { %p7345_p7 = pnand %p5576_p5, %p701_p6  ;;  %s6221_s28 = smul.u32 192, %s7159_s21 }
  0x2f   : > { %s525_s9 = scalar_lea.vmem [#allocation9], %s6220_s24  ;;  %s10437_s2 = scalar_lea.sflag [#allocation10], %s7320_s25 }
  0x30   : > { %s493_s14 = scalar_lea.hbm %s10477_s1, %s7159_s21  ;;  %s533_s6 = sshll.u32 %s525_s9, 4  ;;  %s534_s6 = int_to_ptr.vmem [resolvable:$true] %s533_s6 }
  0x31   : > { %s495_s20 = sshll.u32 %s493_s14, 4  ;;  %s10482_s5 = sld [smem:[#allocation60_spill]]  ;;  %s496_s20 = int_to_ptr.hbm [resolvable:$true] %s495_s20 }
  0x32   : > { %6256 = dma.hbm_to_vmem [thread:$0]  (!%p7334_p4), %s496_s20, 16, %s498_s13, %s10426_s27  }
  0x33   : > { %s10479_s14 = scalar_select %p7345_p7, 1, 0 }
  0x34   : > { %s530_s19 = scalar_lea.hbm %s10481_s3, %s6221_s28  ;;  %s7169_s13 = smov 192  }
  0x35   : > { %10480 = sst [smem:[#allocation36_spill]] %s10479_s14  ;;  %s531_s4 = sshll.u32 %s530_s19, 4  ;;  %s532_s4 = int_to_ptr.hbm [resolvable:$true] %s531_s4 }
  0x36   : > { %s7170_s20 = smov 12   ;;  %s5564_s27 = sshll.u32 %s7325_s26, 7 }
  0x37   : > { %6262 = dma.hbm_to_vmem [thread:$0]  (!%p7334_p4), %s532_s4, 3072, %s534_s6, %s10437_s2, %s7169_s13, %s7169_s13, %s7170_s20  }
  0x38   : > { %s6040_s14 = sshll.u32 %s7159_s21, 7  ;;  %s566_s24 = scalar_lea.vmem [#allocation12], %s5564_s27 }
  0x39   : > { %s571_s9 = scalar_lea.hbm %s10482_s5, %s6040_s14  ;;  %s574_s28 = sshll.u32 %s566_s24, 4  ;;  %s575_s28 = int_to_ptr.vmem [resolvable:$true] %s574_s28 }
  0x3a   : > { %s572_s19 = sshll.u32 %s571_s9, 4  ;;  %s10430_s3 = scalar_lea.sflag [#allocation13], %s7320_s25  ;;  %s573_s19 = int_to_ptr.hbm [resolvable:$true] %s572_s19 }
  0x3b   : > { %s10431_s0 = smov 64   ;;  %s10434_s30 = smov 4  }
  0x3c   : > { %6268 = dma.hbm_to_vmem [thread:$0]  (!%p7334_p4), %s573_s19, 2048, %s575_s28, %s10430_s3, %s10431_s0, %s10431_s0, %s10434_s30  }
  0x3d   : > { %s10483_s8 = sld [smem:[#allocation63_spill]]  ;;  %s615_s27 = scalar_lea.vmem [#allocation15], %s7325_s26 }
  0x3e   : > { %s622_s13 = sshll.u32 %s615_s27, 4  ;;  %s10429_s1 = scalar_lea.sflag [#allocation16], %s7320_s25  ;;  %s623_s13 = int_to_ptr.vmem [resolvable:$true] %s622_s13 }
  0x3f   : > { %s5570_s7 = sshll.u32 %s7325_s26, 8  ;;  %s6042_s9 = sshll.u32 %s7159_s21, 8 }
  0x40   : > { %s10484_s10 = sld [smem:[#allocation65_spill]]  ;;  %s650_s6 = scalar_lea.vmem [#allocation18], %s5570_s7 }
  0x41   : > { %s10433_s27 = scalar_lea.sflag [#allocation19], %s7320_s25  ;;  %s10485_s12 = sld [smem:[#allocation67_spill]] }
  0x42   : > { %s7400_s0 = sadd.s32 4294967295, %s7167_s23   ;;  %p71_p9 = scmp.ne.s32.totalorder %s7147_s18, %s7143_s17 }
  0x43   : > { %s618_s14 = scalar_lea.hbm %s10483_s8, %s7159_s21  ;;  %p77_p10 = scmp.ne.s32.totalorder %s7143_s17, %s7139_s16 }
  0x44   : > { %s620_s20 = sshll.u32 %s618_s14, 4  ;;  %s658_s14 = sshll.u32 %s650_s6, 4  ;;  %s621_s20 = int_to_ptr.hbm [resolvable:$true] %s620_s20  ;;  %s659_s14 = int_to_ptr.vmem [resolvable:$true] %s658_s14 }
  0x45   : > { %6274 = dma.hbm_to_vmem [thread:$0]  (!%p7334_p4), %s621_s20, 16, %s623_s13, %s10429_s1  }
  0x46   : > { %s655_s28 = scalar_lea.hbm %s10484_s10, %s6042_s9  ;;  %s7173_s13 = smov 256  }
  0x47   : > { %s656_s4 = sshll.u32 %s655_s28, 4  ;;  %s7174_s20 = smov 16   ;;  %s657_s4 = int_to_ptr.hbm [resolvable:$true] %s656_s4 }
  0x48   : > { %6280 = dma.hbm_to_vmem [thread:$0]  (!%p7334_p4), %s657_s4, 4096, %s659_s14, %s10433_s27, %s7173_s13, %s7173_s13, %s7174_s20  }
  0x49   : > { %s684_s28 = scalar_lea.hbm %s10485_s12, %s6042_s9  ;;  %s679_s1 = scalar_lea.vmem [#allocation20], %s5570_s7 }
  0x4a   : > { %s685_s6 = sshll.u32 %s684_s28, 4  ;;  %s687_s3 = sshll.u32 %s679_s1, 4  ;;  %s7395_s6 = int_to_ptr.hbm [resolvable:$true] %s685_s6  ;;  %s7397_s3 = int_to_ptr.vmem [resolvable:$true] %s687_s3 }
  0x4b   : > { %s5557_s4 = sadd.s32 4294967294, %s7167_s23   ;;  %s54_s9 = sadd.s32 1, %s7159_s21 }
  0x4c   : > { %s57_s14 = sadd.s32 1, %s7163_s22  ;;  %s10486_s13 = sld [smem:[#allocation29_spill]] }
  0x4d   : > { %p55_p8 = scmp.ge.s32.totalorder %s54_s9, 2  ;;  %s64_s1 = sadd.s32 1, %s7147_s18 }
  0x4e   : > { %p7418_p11 = por %p72_p0, %p71_p9  ;;  %p78_p12 = scmp.eq.s32.totalorder %s7400_s0, 0 }
  0x4f   : > { %s10650_s9 = smov (%p55_p8, %s54_s9), 0  ;;  %s10652_s14 = smov (!%p55_p8, %s57_s14), %s7163_s22 }
  0x50   : > { %10487 = sst [smem:[#allocation37_spill]] %s10650_s9  ;;  %p59_p13 = scmp.ge.s32.totalorder %s10652_s14, 2 }
  0x51   : > { %s87_s20 = ssub.s32 %s7159_s21, %s10650_s9  ;;  %p7428_p1 = por %p78_p12, %p77_p10 }
  0x52   : > { %p88_p3 = scmp.eq.s32.totalorder %s87_s20, 0  ;;  %s10654_s14 = smov (%p59_p13, %s10652_s14), 0 }
  0x53   : > { %10490 = sst [smem:[#allocation38_spill]] %s10654_s14  ;;  %s10491_s19 = sadd.s32 1, %s7135_s15 }
  0x54   : > { %s7437_s28 = scalar_select %p88_p3, %s7135_s15, %s10491_s19  }
  0x55   : > { %s61_s27 = ssub.s32 %s7163_s22, %s10654_s14  ;;  %p103_p0 = scmp.ne.s32.totalorder %s10486_s13, %s7127_s29 }
  0x56   : > { %10492 = sst [smem:[#allocation39_spill]] %s7437_s28  ;;  %p62_p5 = scmp.eq.s32.totalorder %s61_s27, 0 }
  0x57   : > { %p439_p6 = scmp.eq.s32.totalorder %s7400_s0, 3  ;;  %p7444_p8 = por %p103_p0, %p78_p12 }
  0x58   : > { %p445_p2 = scmp.eq.s32.totalorder %s5557_s4, 3  ;;  %s465_s27 = sand.u32 1, %s7147_s18  }
  0x59   : > { %s7449_s2 = scalar_select %p62_p5, %s7147_s18, %s64_s1  }
  0x5a   : > { %p7454_p13 = por %p439_p6, %p71_p9  ;;  %p7461_p3 = por %p445_p2, %p77_p10 }
  0x5b   : > { %10494 = sst [smem:[#allocation40_spill]] %s7449_s2  ;;  %s6039_s13 = sshll.u32 %s7163_s22, 6 }
  0x5c   : > { %s10496_s29 = scalar_select %p7461_p3, 1, 0 }
  0x5d   : > { %s5560_s19 = sshll.u32 %s465_s27, 6  ;;  %s10498_s10 = sld [smem:[#allocation55_spill]] }
  0x5e   : > { %10497 = sst [smem:[#allocation41_spill]] %s10496_s29  ;;  %s469_s12 = scalar_lea.vmem [#allocation3], %s5560_s19 }
  0x5f   : > { %s477_s14 = sshll.u32 %s469_s12, 4  ;;  %p10499_p2 = scmp.lt.s32.totalorder %s7167_s23, 4  ;;  %s478_s14 = int_to_ptr.vmem [resolvable:$true] %s477_s14 }
  0x60   : > { %s10500_s2 = sld [smem:[#allocation57_spill]]  ;;  %s466_s5 = scalar_lea.sflag [#allocation4], %s465_s27 }
  0x61   : > { %p6251_p9 = pnand %p10499_p2, %p7418_p11  ;;  %s7175_s8 = smov 128  }
  0x62   : > { %s507_s19 = scalar_lea.vmem [#allocation8], %s7325_s26  ;;  %s10501_s7 = scalar_lea.sflag [#allocation7], %s7320_s25 }
  0x63   : > { %s474_s4 = scalar_lea.hbm %s10498_s10, %s6039_s13  ;;  %s7176_s10 = smov 8  }
  0x64   : > { %s475_s1 = sshll.u32 %s474_s4, 4  ;;  %s514_s12 = sshll.u32 %s507_s19, 4  ;;  %s476_s1 = int_to_ptr.hbm [resolvable:$true] %s475_s1  ;;  %s515_s12 = int_to_ptr.vmem [resolvable:$true] %s514_s12 }
  0x65   : > { %6253 = dma.hbm_to_vmem [thread:$0]  (!%p6251_p9), %s476_s1, 1024, %s478_s14, %s466_s5, %s7175_s8, %s7175_s8, %s7176_s10  }
  0x66   : > { %s510_s18 = scalar_lea.hbm %s10500_s2, %s7159_s21  ;;  %s6222_s4 = smul.u32 3, %s7325_s26 }
  0x67   : > { %s512_s13 = sshll.u32 %s510_s18, 4  ;;  %s5567_s28 = sshll.u32 %s7325_s26, 6  ;;  %s513_s13 = int_to_ptr.hbm [resolvable:$true] %s512_s13 }
  0x68   : > { %6259 = dma.hbm_to_vmem [thread:$0]  (!%p7334_p4), %s513_s13, 16, %s515_s12, %s10501_s7  }
  0x69   : > { %s6223_s22 = smul.u32 3, %s7159_s21  ;;  %s6041_s2 = sshll.u32 %s7159_s21, 6 }
  0x6a   : > { %s10502_s14 = sld [smem:[#allocation59_spill]]  ;;  %s547_s1 = scalar_lea.vmem [#allocation11], %s6222_s4 }
  0x6b   : > { %s555_s5 = sshll.u32 %s547_s1, 4  ;;  %s10503_s19 = sld [smem:[#allocation61_spill]]  ;;  %s556_s5 = int_to_ptr.vmem [resolvable:$true] %s555_s5 }
  0x6c   : > { %s10504_s7 = scalar_lea.sflag [#allocation10], %s7320_s25  ;;  %s588_s9 = scalar_lea.vmem [#allocation14], %s5567_s28 }
  0x6d   : > { %s596_s4 = sshll.u32 %s588_s9, 4  ;;  %s10505_s27 = smov 4   ;;  %s597_s4 = int_to_ptr.vmem [resolvable:$true] %s596_s4 }
  0x6e   : > { %s10508_s13 = sld [smem:[#allocation64_spill]]  ;;  %s10509_s28 = scalar_lea.sflag [#allocation16], %s7320_s25 }
  0x70   : > { %s551_s18 = scalar_lea.hbm %s10502_s14, %s6223_s22  ;;  %s10506_s14 = smov 64  }
  0x71   : > { %s553_s8 = sshll.u32 %s551_s18, 4  ;;  %s593_s12 = scalar_lea.hbm %s10503_s19, %s6041_s2  ;;  %s554_s8 = int_to_ptr.hbm [resolvable:$true] %s553_s8 }
  0x72   : > { %6265 = dma.hbm_to_vmem [thread:$0]  (!%p7334_p4), %s554_s8, 48, %s556_s5, %s10504_s7  }
  0x73   : > { %s594_s22 = sshll.u32 %s593_s12, 4  ;;  %s10507_s18 = scalar_lea.sflag [#allocation13], %s7320_s25  ;;  %s595_s22 = int_to_ptr.hbm [resolvable:$true] %s594_s22 }
  0x74   : > { %6271 = dma.hbm_to_vmem [thread:$0]  (!%p7334_p4), %s595_s22, 1024, %s597_s4, %s10507_s18, %s10506_s14, %s10506_s14, %s10505_s27  }
  0x75   : > { %s635_s15 = scalar_lea.hbm %s10508_s13, %s7159_s21  ;;  %s632_s2 = scalar_lea.vmem [#allocation17], %s7325_s26 }
  0x76   : > { %s637_s29 = sshll.u32 %s635_s15, 4  ;;  %s639_s19 = sshll.u32 %s632_s2, 4  ;;  %s638_s29 = int_to_ptr.hbm [resolvable:$true] %s637_s29  ;;  %s640_s19 = int_to_ptr.vmem [resolvable:$true] %s639_s19 }
  0x77   : > { %6277 = dma.hbm_to_vmem [thread:$0]  (!%p7334_p4), %s638_s29, 16, %s640_s19, %s10509_s28  }
  0x78   : > { %s10510_s5 = scalar_lea.sflag [#allocation19], %s7320_s25  ;;  %705 = sbr.rel (%p7345_p7) target bundleno = 2668 (0xa6c), region = 76 }
  0x79   : > { %6283 = dma.hbm_to_vmem [thread:$0]  (!%p7334_p4), %s7395_s6, 4096, %s7397_s3, %s10510_s5, %s10506_s14, %s10506_s14, %s10505_s27  }
  0x7d   : > { %s7525_s12 = sand.u32 1, %s7143_s17  }
  0x7e   : > { %s5577_s15 = sshll.u32 %s7525_s12, 6  ;;  %s708_s26 = scalar_lea.sflag [#allocation4], %s7525_s12 }
  0x7f   : > { %s7531_s29 = scalar_lea.vmem [#allocation3], %s5577_s15 }
  0x80   : > { %7098 = dma.done.wait (%p7428_p1), %s708_s26, 1024  }
  0x81   : > { %7100 = vsyncadd (%p7428_p1), %s708_s26, 4294966272  ;;  %s10512_s3 = sld [smem:[#allocation29_spill]]  ;;  %s7538_s11 = sand.u32 1, %s7400_s0  }
  0x82   : > { %s718_s6 = scalar_lea.sflag [#allocation7], %s7538_s11 }
  0x87   : > { %s7541_s25 = sand.u32 1, %s10512_s3  }
  0x88   : > { %7102 = dma.done.wait (%p7444_p8), %s718_s6, 32  }
  0x89   : > { %7104 = vsyncadd (%p7444_p8), %s718_s6, 4294967264  ;;  %s6224_s24 = smul.u32 192, %s7541_s25  ;;  %s736_s9 = scalar_lea.sflag [#allocation10], %s7538_s11 }
  0x8b   : > { %s7552_s0 = scalar_lea.vmem [#allocation9], %s6224_s24 }
  0x8c   : > { %7106 = dma.done.wait (%p7444_p8), %s736_s9, 3120  }
  0x8d   : > { %7108 = vsyncadd (%p7444_p8), %s736_s9, 4294964176  ;;  %s6225_s4 = smul.u32 3, %s7541_s25  ;;  %s5578_s27 = sshll.u32 %s7541_s25, 7 }
  0x8e   : > { %s756_s18 = scalar_lea.sflag [#allocation13], %s7538_s11  ;;  %s7563_s1 = scalar_lea.vmem [#allocation12], %s5578_s27 }
  0x8f   : > { %s7560_s14 = scalar_lea.vmem [#allocation11], %s6225_s4 }
  0x90   : > { %7110 = dma.done.wait (%p7444_p8), %s756_s18, 3072  }
  0x91   : > { %7112 = vsyncadd (%p7444_p8), %s756_s18, 4294964224  ;;  %s5579_s10 = sshll.u32 %s7541_s25, 6  ;;  %s776_s2 = scalar_lea.sflag [#allocation16], %s7538_s11 }
  0x92   : > { %s7570_s13 = scalar_lea.vmem [#allocation14], %s5579_s10 }
  0x93   : > { %7114 = dma.done.wait (%p7444_p8), %s776_s2, 32  }
  0x94   : > { %7116 = vsyncadd (%p7444_p8), %s776_s2, 4294967264  ;;  %s5580_s28 = sshll.u32 %s7541_s25, 8  ;;  %s794_s8 = scalar_lea.sflag [#allocation19], %s7538_s11 }
  0x95   : > { %s7581_s26 = scalar_lea.vmem [#allocation18], %s5580_s28 }
  0x96   : > { %7118 = dma.done.wait (%p7444_p8), %s794_s8, 8192  }
  0x97   : > { %7120 = vsyncadd (%p7444_p8), %s794_s8, 4294959104  ;;  %s10513_s3 = sld [smem:[#allocation32_spill]]  ;;  %s7605_s7 = scalar_lea.vmem [#allocation20], %s5580_s28 }
  0x98   : > { %s10514_s4 = sld [smem:[#allocation62_spill]]  ;;  %s7609_s21 = scalar_lea.vmem [#allocation21], %s5577_s15 }
  0x99   : > { %s10515_s2 = sld [smem:[#allocation66_spill]] }
  0x9a   : > { %s10516_s19 = sld [smem:[#allocation68_spill]] }
  0x9d   : > { %p909_p4 = scmp.lt.s32.totalorder %s10513_s3, 1  ;;  %p5584_p7 = scmp.ne.s32.totalorder %s10513_s3, 0 }
  0x9f   : > { %s7589_s6 = scalar_select %p909_p4, %s10513_s3, 1 }
  0xa0   : > { %923 = sbr.rel (%p5584_p7) target bundleno = 174 (0xae), region = 124 }
  0xa1   : > { %s911_s11 = scalar_lea.vmem %s10514_s4, %s7589_s6  ;;  %s5583_s27 = sshll.u32 %s7589_s6, 2 }
  0xa2   : > { %s7599_s5 = scalar_lea.vmem %s10515_s2, %s5583_s27  ;;  %s918_s22 = scalar_lea.vmem %s10516_s19, %s7589_s6 }
  0xa5   : > { %v924_v0 = vld [vmem:[%s7531_s29] sm:$0xff]  ;;  %v925_v1 = vld [vmem:[%s7531_s29 + $0x8] sm:$0xff]  ;;  %v926_v2 = vld [vmem:[%s7531_s29 + $0x10] sm:$0xff] }
  0xa6   : > { %932 = vst [vmem:[#allocation2 + $0x30] sm:$0xff] %v924_v0  ;;  %v927_v3 = vld [vmem:[%s7531_s29 + $0x18] sm:$0xff]  ;;  %v928_v4 = vld [vmem:[%s7531_s29 + $0x20] sm:$0xff]  ;;  %v929_v5 = vld [vmem:[%s7531_s29 + $0x28] sm:$0xff] }
  0xa7   : > { %933 = vst [vmem:[#allocation2] sm:$0xff] %v925_v1  ;;  %v930_v6 = vld [vmem:[%s7531_s29 + $0x30] sm:$0xff]  ;;  %v931_v7 = vld [vmem:[%s7531_s29 + $0x38] sm:$0xff] }
  0xa8   : > { %934 = vst [vmem:[#allocation2 + $0x18] sm:$0xff] %v926_v2 }
  0xa9   : > { %935 = vst [vmem:[#allocation2 + $0x10] sm:$0xff] %v927_v3 }
  0xaa   : > { %936 = vst [vmem:[#allocation2 + $0x8] sm:$0xff] %v928_v4 }
  0xab   : > { %937 = vst [vmem:[#allocation2 + $0x20] sm:$0xff] %v929_v5 }
  0xac   : > { %938 = vst [vmem:[#allocation2 + $0x28] sm:$0xff] %v930_v6 }
  0xad   : > { %939 = vst [vmem:[#allocation2 + $0x38] sm:$0xff] %v931_v7 }
  0xae PF: > { %v940_v10 = vld [vmem:[#allocation2 + $0x30] sm:$0xff]  ;;  %v941_v13 = vld [vmem:[#allocation2] sm:$0xff]  ;;  %v7177_v15 = vmov 128.0   ;;  %v5671_v51 = vld [vmem:[%s7552_s0 + $0xa8] sm:$0xf]  ;;  %s10519_s15 = scalar_lea.vmem [#allocation6], %s7541_s25 }
  0xaf   : > { %v942_v9 = vld [vmem:[#allocation2 + $0x18] sm:$0xff]  ;;  %950 = vadd.xlane.f32.xlu0 %v940_v10  ;;  %6459 = vrcp.f32 %v7177_v15  ;;  %v6065_v53 = vld [vmem:[%s7552_s0 + $0xac] sm:$0xf]  ;;  %v5679_v56 = vld [vmem:[%s7552_s0 + $0xb0] sm:$0xf]  ;;  %s10520_s29 = scalar_lea.vmem [#allocation8], %s7541_s25 }
  0xb0   : > { %954 = vadd.xlane.f32.xlu1 %v942_v9  ;;  %v943_v12 = vld [vmem:[#allocation2 + $0x10] sm:$0xff]  ;;  %v6066_v52 = vld [vmem:[%s7552_s0 + $0xb0] sm:$0xf0]  ;;  %v5673_v55 = vld [vmem:[%s7552_s0 + $0xb4] sm:$0xf0]  ;;  %s7180_s19 = smov 96  }
  0xb1   : > { %v944_v8 = vld [vmem:[#allocation2 + $0x8] sm:$0xff]  ;;  %v5672_v54 = vor.u32 %v6066_v52, %v5671_v51  ;;  %v6067_v57 = vld [vmem:[%s7552_s0 + $0xb8] sm:$0xf0]  ;;  %v5676_v58 = vor.u32 %v6065_v53, %v5673_v55  ;;  %v5659_v60 = vld [vmem:[%s7552_s0 + $0x90] sm:$0xf]  ;;  %s10531_s3 = scalar_lea.vmem [#allocation17], %s7541_s25 }
  0xb2   : > { %958 = vadd.xlane.f32.xlu2 %v944_v8  ;;  %v945_v11 = vld [vmem:[#allocation2 + $0x20] sm:$0xff]  ;;  %v5680_v59 = vor.u32 %v6067_v57, %v5679_v56  ;;  %v6062_v62 = vld [vmem:[%s7552_s0 + $0x94] sm:$0xf]  ;;  %v5667_v1 = vld [vmem:[%s7552_s0 + $0x98] sm:$0xf] }
  0xb3   : > { %v946_v14 = vld [vmem:[#allocation2 + $0x28] sm:$0xff]  ;;  %1311 = vmatpush.bf16.msra.mxu0 %v5672_v54  ;;  %1340 = vmatpush.bf16.msra.mxu1 %v5676_v58  ;;  %v6063_v61 = vld [vmem:[%s7552_s0 + $0x98] sm:$0xf0]  ;;  %v5661_v0 = vld [vmem:[%s7552_s0 + $0x9c] sm:$0xf0] }
  0xb4   : > { %v7637_v38 = vld [vmem:[#allocation2 + $0x38] sm:$0xff]  ;;  %1369 = vmatpush.bf16.msra.mxu2 %v5680_v59  ;;  %v5660_v63 = vor.u32 %v6063_v61, %v5659_v60  ;;  %v6064_v2 = vld [vmem:[%s7552_s0 + $0xa0] sm:$0xf0]  ;;  %v5664_v3 = vor.u32 %v6062_v62, %v5661_v0  ;;  %v6059_v7 = vld [vmem:[%s7552_s0 + $0x7c] sm:$0xf] }
  0xb5   : > { %v6460_v16 = vpop.eup %6459  ;;  %v5668_v4 = vor.u32 %v6064_v2, %v5667_v1  ;;  %v5647_v5 = vld [vmem:[%s7552_s0 + $0x78] sm:$0xf]  ;;  %v6060_v6 = vld [vmem:[%s7552_s0 + $0x80] sm:$0xf0]  ;;  %v6057_v15 = vld [vmem:[%s7552_s0 + $0x68] sm:$0xf0] }
  0xb6   : > { %v967_v17 = vmul.f32 128.0, %v6460_v16  ;;  %vm971_vm0 = vweird.f32 %v6460_v16  ;;  %v6048_v51 = vld [vmem:[%s7552_s0 + $0x20] sm:$0xf0]  ;;  %v6047_v52 = vld [vmem:[%s7552_s0 + $0x1c] sm:$0xf] }
  0xb7   : > { %952 = vadd.xlane.f32.xlu0 %v941_v13  ;;  %1312 = vmatpush.bf16.msra.mxu0 %v5660_v63  ;;  %v5601_v54 = vld [vmem:[%s7552_s0 + $0x24] sm:$0xf0]  ;;  %v5607_v55 = vld [vmem:[%s7552_s0 + $0x20] sm:$0xf]  ;;  %v6049_v56 = vld [vmem:[%s7552_s0 + $0x28] sm:$0xf0] }
  0xb8   : > { %956 = vadd.xlane.f32.xlu1 %v943_v12  ;;  %v968_v18 = vsub.f32 1.0, %v967_v17  ;;  %1341 = vmatpush.bf16.msra.mxu1 %v5664_v3  ;;  %v5604_v58 = vor.u32 %v6047_v52, %v5601_v54  ;;  %v5608_v59 = vor.u32 %v6049_v56, %v5607_v55  ;;  %v5587_v61 = vld [vmem:[%s7552_s0] sm:$0xf]  ;;  %v6045_v62 = vld [vmem:[%s7552_s0 + $0x8] sm:$0xf0] }
  0xb9   : > { %1370 = vmatpush.bf16.msra.mxu2 %v5668_v4  ;;  %v6044_v63 = vld [vmem:[%s7552_s0 + $0x4] sm:$0xf]  ;;  %v5588_v1 = vor.u32 %v6045_v62, %v5587_v61  ;;  %v5589_v2 = vld [vmem:[%s7552_s0 + $0xc] sm:$0xf0]  ;;  %v5595_v3 = vld [vmem:[%s7552_s0 + $0x8] sm:$0xf] }
  0xba   : > { %960 = vadd.xlane.f32.xlu2 %v945_v11  ;;  %v969_v19 = vmul.f32 %v6460_v16, %v968_v18  ;;  %v5637_v18 = vld [vmem:[%s7552_s0 + $0x6c] sm:$0xf0]  ;;  %v5592_v4 = vor.u32 %v6044_v63, %v5589_v2  ;;  %v7740_v54 = vld [vmem:[%s10519_s15] ss:$0 sm:$0xff] }
  0xbb   : > { %v7746_v61 = vld [vmem:[%s10520_s29] ss:$0 sm:$0xff] }
  0xbc   : > { %v970_v20 = vadd.f32 %v6460_v16, %v969_v19  ;;  %v5643_v19 = vld [vmem:[%s7552_s0 + $0x68] sm:$0xf] }
  0xbe   : > { %v7620_v21 = vsel %vm971_vm0, %v6460_v16, %v970_v20  ;;  %v6056_v16 = vld [vmem:[%s7552_s0 + $0x64] sm:$0xf]  ;;  %v6058_v20 = vld [vmem:[%s7552_s0 + $0x70] sm:$0xf0] }
  0xc2   : > { %962 = vadd.xlane.f32.xlu2 %v946_v14 }
 0x122   : > { %v951_v24 = vpop.xlane.xlu0 %950 }
 0x123   : > { %v955_v23 = vpop.xlane.xlu1 %954  ;;  %v973_v25 = vmul.f32 %v7620_v21, %v951_v24  ;;  %v5623_v24 = vld [vmem:[%s7552_s0 + $0x48] sm:$0xf] }
 0x124   : > { %v975_v35 = vmul.f32 %v7620_v21, %v955_v23  ;;  %v5644_v23 = vor.u32 %v6058_v20, %v5643_v19 }
 0x125   : > { %v959_v22 = vpop.xlane.xlu2 %958  ;;  %v7623_v26 = vsub.f32 %v940_v10, %v973_v25  ;;  %v5655_v10 = vld [vmem:[%s7552_s0 + $0x80] sm:$0xf]  ;;  %v6054_v25 = vld [vmem:[%s7552_s0 + $0x50] sm:$0xf0] }
 0x126   : > { %v977_v34 = vmul.f32 %v7620_v21, %v959_v22  ;;  %v7644_v42 = vsub.f32 %v942_v9, %v975_v35  ;;  %v5649_v9 = vld [vmem:[%s7552_s0 + $0x84] sm:$0xf0]  ;;  %v5640_v22 = vor.u32 %v6056_v16, %v5637_v18  ;;  %v5611_v35 = vld [vmem:[%s7552_s0 + $0x30] sm:$0xf] }
 0x127   : > { %v989_v27 = vmul.f32 %v7623_v26, %v7623_v26 }
 0x128   : > { %v7642_v41 = vsub.f32 %v944_v8, %v977_v34  ;;  %v991_v47 = vmul.f32 %v7644_v42, %v7644_v42  ;;  %v5648_v8 = vor.u32 %v6060_v6, %v5647_v5  ;;  %v6046_v5 = vld [vmem:[%s7552_s0 + $0x10] sm:$0xf0] }
 0x129   : > { %997 = vadd.xlane.f32.xlu0 %v989_v27  ;;  %v6053_v27 = vld [vmem:[%s7552_s0 + $0x4c] sm:$0xf]  ;;  %v5596_v6 = vor.u32 %v6046_v5, %v5595_v3 }
 0x12a   : > { %v953_v31 = vpop.xlane.xlu0 %952  ;;  %v993_v46 = vmul.f32 %v7642_v41, %v7642_v41  ;;  %1313 = vmatpush.bf16.msra.mxu0 %v5648_v8 }
 0x12b   : > { %v957_v29 = vpop.xlane.xlu1 %956  ;;  %v974_v32 = vmul.f32 %v7620_v21, %v953_v31  ;;  %v6055_v31 = vld [vmem:[%s7552_s0 + $0x58] sm:$0xf0] }
 0x12c   : > { %v976_v30 = vmul.f32 %v7620_v21, %v957_v29  ;;  %v5625_v29 = vld [vmem:[%s7552_s0 + $0x54] sm:$0xf0] }
 0x12d   : > { %v961_v28 = vpop.xlane.xlu2 %960  ;;  %v7633_v36 = vsub.f32 %v941_v13, %v974_v32  ;;  %v5628_v32 = vor.u32 %v6053_v27, %v5625_v29 }
 0x12e   : > { %v7629_v33 = vsub.f32 %v943_v12, %v976_v30  ;;  %v978_v45 = vmul.f32 %v7620_v21, %v961_v28  ;;  %v5652_v12 = vor.u32 %v6059_v7, %v5649_v9  ;;  %v5624_v28 = vor.u32 %v6054_v25, %v5623_v24  ;;  %v5631_v30 = vld [vmem:[%s7552_s0 + $0x50] sm:$0xf] }
 0x12f   : > { %v990_v39 = vmul.f32 %v7633_v36, %v7633_v36  ;;  %v5632_v34 = vor.u32 %v6055_v31, %v5631_v30 }
 0x130   : > { %v992_v37 = vmul.f32 %v7629_v33, %v7629_v33  ;;  %v7656_v49 = vsub.f32 %v945_v11, %v978_v45  ;;  %v6061_v11 = vld [vmem:[%s7552_s0 + $0x88] sm:$0xf0]  ;;  %1342 = vmatpush.bf16.msra.mxu1 %v5652_v12  ;;  %v5619_v45 = vld [vmem:[%s7552_s0 + $0x38] sm:$0xf] }
 0x131   : > { %964 = vadd.xlane.f32.xlu0 %v7637_v38  ;;  %999 = vadd.xlane.f32.xlu1 %v990_v39  ;;  %v5656_v13 = vor.u32 %v6061_v11, %v5655_v10  ;;  %v6050_v39 = vld [vmem:[%s7552_s0 + $0x34] sm:$0xf] }
 0x132   : > { %1003 = vadd.xlane.f32.xlu2 %v992_v37  ;;  %v994_v50 = vmul.f32 %v7656_v49, %v7656_v49  ;;  %v6051_v37 = vld [vmem:[%s7552_s0 + $0x38] sm:$0xf0] }
 0x133   : > { %1371 = vmatpush.bf16.msra.mxu2 %v5656_v13 }
 0x134   : > { %1343 = vmatpush.bf16.msra.mxu1 %v5640_v22 }
 0x135   : > { %v963_v40 = vpop.xlane.xlu2 %962 }
 0x136   : > { %v979_v43 = vmul.f32 %v7620_v21, %v963_v40  ;;  %v5612_v40 = vor.u32 %v6051_v37, %v5611_v35 }
 0x137   : > { %1372 = vmatpush.bf16.msra.mxu2 %v5644_v23 }
 0x138   : > { %v7647_v44 = vsub.f32 %v946_v14, %v979_v43  ;;  %v5635_v14 = vld [vmem:[%s7552_s0 + $0x60] sm:$0xf]  ;;  %1344 = vmatpush.bf16.msra.mxu1 %v5628_v32 }
 0x139   : > { %1005 = vadd.xlane.f32.xlu0 %v993_v46  ;;  %1001 = vadd.xlane.f32.xlu1 %v991_v47  ;;  %v5636_v17 = vor.u32 %v6057_v15, %v5635_v14  ;;  %v5613_v43 = vld [vmem:[%s7552_s0 + $0x3c] sm:$0xf0]  ;;  %v6052_v46 = vld [vmem:[%s7552_s0 + $0x40] sm:$0xf0] }
 0x13a   : > { %v995_v48 = vmul.f32 %v7647_v44, %v7647_v44  ;;  %v5616_v47 = vor.u32 %v6050_v39, %v5613_v43 }
 0x13b   : > { %1314 = vmatpush.bf16.msra.mxu0 %v5636_v17  ;;  %1373 = vmatpush.bf16.msra.mxu2 %v5632_v34 }
 0x13c   : > { %1009 = vadd.xlane.f32.xlu2 %v995_v48  ;;  %v5620_v48 = vor.u32 %v6052_v46, %v5619_v45  ;;  %1345 = vmatpush.bf16.msra.mxu1 %v5616_v47 }
 0x13f   : > { %1315 = vmatpush.bf16.msra.mxu0 %v5624_v28  ;;  %1374 = vmatpush.bf16.msra.mxu2 %v5620_v48 }
 0x140   : > { %1346 = vmatpush.bf16.msra.mxu1 %v5604_v58 }
 0x141   : > { %1007 = vadd.xlane.f32.xlu1 %v994_v50  ;;  %v5599_v50 = vld [vmem:[%s7552_s0 + $0x18] sm:$0xf]  ;;  %s7178_s0 = smov 32  }
 0x142   : > { %v5600_v53 = vor.u32 %v6048_v51, %v5599_v50 }
 0x143   : > { %1316 = vmatpush.bf16.msra.mxu0 %v5612_v40  ;;  %1375 = vmatpush.bf16.msra.mxu2 %v5608_v59 }
 0x144   : > { %1347 = vmatpush.bf16.msra.mxu1 %v5592_v4 }
 0x147   : > { %1317 = vmatpush.bf16.msra.mxu0 %v5600_v53  ;;  %1376 = vmatpush.bf16.msra.mxu2 %v5596_v6 }
 0x14b   : > { %1318 = vmatpush.bf16.msra.mxu0 %v5588_v1 }
 0x19c   : > { %v998_v57 = vpop.xlane.xlu0 %997 }
 0x19d   : > { %v1013_v60 = vmul.f32 %v998_v57, %v7620_v21 }
 0x19f   : > { %v1021_v0 = vadd.f32 1e-05, %v1013_v60 }
 0x1a1   : > { %6461 = vrsqrt.f32 %v1021_v0  ;;  %vm1035_vm2 = vweird.f32 %v1021_v0 }
 0x1a4   : > { %v1000_v9 = vpop.xlane.xlu1 %999  ;;  %v965_v10 = vpop.xlane.xlu0 %964 }
 0x1a5   : > { %v1004_v7 = vpop.xlane.xlu2 %1003  ;;  %v1014_v11 = vmul.f32 %v1000_v9, %v7620_v21  ;;  %v980_v12 = vmul.f32 %v7620_v21, %v965_v10 }
 0x1a6   : > { %v1016_v8 = vmul.f32 %v1004_v7, %v7620_v21 }
 0x1a7   : > { %v6462_v14 = vpop.eup %6461  ;;  %v1022_v15 = vadd.f32 1e-05, %v1014_v11  ;;  %v7715_v16 = vsub.f32 %v7637_v38, %v980_v12 }
 0x1a8   : > { %v7712_v13 = vadd.f32 1e-05, %v1016_v8  ;;  %v1030_v17 = vmul.f32 %v6462_v14, %v1021_v0  ;;  %vm1036_vm1 = vweird.f32 %v6462_v14 }
 0x1a9   : > { %v996_v18 = vmul.f32 %v7715_v16, %v7715_v16  ;;  %vm7726_vm3 = vmor %vm1035_vm2, %vm1036_vm1  ;;  %vm1045_vm4 = vweird.f32 %v1022_v15 }
 0x1aa   : > { %6463 = vrsqrt.f32 %v7712_v13  ;;  %v1031_v19 = vmul.f32 %v6462_v14, %v1030_v17  ;;  %vm1065_vm9 = vweird.f32 %v7712_v13 }
 0x1ab   : > { %6465 = vrsqrt.f32 %v1022_v15  ;;  %1011 = vadd.xlane.f32.xlu0 %v996_v18 }
 0x1ac   : > { %v1032_v20 = vmul.f32 0.5, %v1031_v19  ;;  %v1002_v22 = vpop.xlane.xlu1 %1001  ;;  %v1006_v24 = vpop.xlane.xlu0 %1005 }
 0x1ad   : > { %v1015_v23 = vmul.f32 %v1002_v22, %v7620_v21  ;;  %v1017_v30 = vmul.f32 %v1006_v24, %v7620_v21 }
 0x1ae   : > { %v1033_v27 = vsub.f32 1.5, %v1032_v20 }
 0x1af   : > { %v1023_v38 = vadd.f32 1e-05, %v1015_v23  ;;  %v7730_v39 = vadd.f32 1e-05, %v1017_v30  ;;  %v1010_v35 = vpop.xlane.xlu2 %1009 }
 0x1b0   : > { %v7721_v25 = vpop.eup %6463  ;;  %v1034_v31 = vmul.f32 %v6462_v14, %v1033_v27 }
 0x1b1   : > { %v6466_v28 = vpop.eup %6465  ;;  %v1060_v32 = vmul.f32 %v7721_v25, %v7712_v13  ;;  %6467 = vrsqrt.f32 %v1023_v38  ;;  %vm1055_vm7 = vweird.f32 %v1023_v38  ;;  %vm1066_vm10 = vweird.f32 %v7721_v25 }
 0x1b2   : > { %v1040_v29 = vmul.f32 %v6466_v28, %v1022_v15  ;;  %vm1046_vm5 = vweird.f32 %v6466_v28  ;;  %v1038_v43 = vsel %vm7726_vm3, %v6462_v14, %v1034_v31  ;;  %6469 = vrsqrt.f32 %v7730_v39  ;;  %vm1067_vm12 = vmor %vm1065_vm9, %vm1066_vm10 }
 0x1b3   : > { %v1061_v45 = vmul.f32 %v7721_v25, %v1060_v32  ;;  %vm1047_vm6 = vmor %vm1045_vm4, %vm1046_vm5  ;;  %v1109_v53 = vmul.f32 %v1038_v43, %v7623_v26  ;;  %vm1075_vm15 = vweird.f32 %v7730_v39  ;;  %vm1678_vm9 = vcmask 261120  }
 0x1b4   : > { %v1041_v34 = vmul.f32 %v6466_v28, %v1040_v29  ;;  %v1008_v40 = vpop.xlane.xlu1 %1007  ;;  %vm1963_vm10 = vcmask 523264  }
 0x1b5   : > { %v1018_v46 = vmul.f32 %v1008_v40, %v7620_v21  ;;  %v1062_v55 = vmul.f32 0.5, %v1061_v45  ;;  %v1120_v60 = vmul.f32 %v7740_v54, %v1109_v53 }
 0x1b6   : > { %v1042_v37 = vmul.f32 0.5, %v1041_v34 }
 0x1b7   : > { %v6468_v48 = vpop.eup %6467  ;;  %v1026_v50 = vadd.f32 1e-05, %v1018_v46  ;;  %v1063_v62 = vsub.f32 1.5, %v1062_v55  ;;  %v1131_v3 = vadd.f32 %v7746_v61, %v1120_v60 }
 0x1b8   : > { %v1043_v47 = vsub.f32 1.5, %v1042_v37  ;;  %v1050_v52 = vmul.f32 %v6468_v48, %v1023_v38  ;;  %vm1056_vm8 = vweird.f32 %v6468_v48  ;;  %v6470_v63 = vpop.eup %6469  ;;  %v1019_v37 = vmul.f32 %v1010_v35, %v7620_v21 }
 0x1b9   : > { %6471 = vrsqrt.f32 %v1026_v50  ;;  %vm1057_vm11 = vmor %vm1055_vm7, %vm1056_vm8  ;;  %v1064_v4 = vmul.f32 %v7721_v25, %v1063_v62  ;;  %v1070_v5 = vmul.f32 %v6470_v63, %v7730_v39  ;;  %vm1085_vm13 = vweird.f32 %v1026_v50 }
 0x1ba   : > { %v1044_v51 = vmul.f32 %v6466_v28, %v1043_v47  ;;  %v1051_v57 = vmul.f32 %v6468_v48, %v1050_v52  ;;  %vm1076_vm0 = vweird.f32 %v6470_v63  ;;  %v1027_v39 = vadd.f32 1e-05, %v1019_v37 }
 0x1bb   : > { %v1068_v10 = vsel %vm1067_vm12, %v7721_v25, %v1064_v4  ;;  %v1071_v11 = vmul.f32 %v6470_v63, %v1070_v5  ;;  %vm1077_vm2 = vmor %vm1075_vm15, %vm1076_vm0 }
 0x1bc   : > { %v1048_v56 = vsel %vm1047_vm6, %v6466_v28, %v1044_v51  ;;  %v1052_v59 = vmul.f32 0.5, %v1051_v57  ;;  %v1112_v14 = vmul.f32 %v1068_v10, %v7629_v33  ;;  %6473 = vrsqrt.f32 %v1027_v39 }
 0x1bd   : > { %v1110_v58 = vmul.f32 %v1048_v56, %v7633_v36  ;;  %v1072_v15 = vmul.f32 0.5, %v1071_v11  ;;  %vm1095_vm3 = vweird.f32 %v1027_v39 }
 0x1be   : > { %v1053_v0 = vsub.f32 1.5, %v1052_v59  ;;  %v1123_v19 = vmul.f32 %v7740_v54, %v1112_v14 }
 0x1bf   : > { %v1121_v26 = vmul.f32 %v7740_v54, %v1110_v58  ;;  %v6472_v36 = vpop.eup %6471  ;;  %v1073_v20 = vsub.f32 1.5, %v1072_v15 }
 0x1c0   : > { %v1054_v2 = vmul.f32 %v6468_v48, %v1053_v0  ;;  %v1080_v6 = vmul.f32 %v6472_v36, %v1026_v50  ;;  %vm1086_vm14 = vweird.f32 %v6472_v36 }
 0x1c1   : > { %v1132_v1 = vadd.f32 %v7746_v61, %v1121_v26  ;;  %vm1087_vm1 = vmor %vm1085_vm13, %vm1086_vm14  ;;  %v1074_v24 = vmul.f32 %v6470_v63, %v1073_v20 }
 0x1c2   : > { %v1058_v8 = vsel %vm1057_vm11, %v6468_v48, %v1054_v2  ;;  %v1081_v9 = vmul.f32 %v6472_v36, %v1080_v6  ;;  %v1175_v2 = vld [vmem:[%s7560_s14] sm:$0x7]  ;;  %s7179_s14 = smov 64   ;;  %vm2768_vm11 = vcmask 785408  }
 0x1c3   : > { %v1139_v7 = vpack.c.bf16 %v1132_v1, %v1131_v3  ;;  %v1111_v12 = vmul.f32 %v1058_v8, %v7644_v42  ;;  %v1134_v42 = vadd.f32 %v7746_v61, %v1123_v19  ;;  %v1078_v27 = vsel %vm1077_vm2, %v6470_v63, %v1074_v24 }
 0x1c4   : > { %v1082_v13 = vmul.f32 0.5, %v1081_v9  ;;  %v1113_v38 = vmul.f32 %v1078_v27, %v7642_v41  ;;  %v7780_v6 = vperm.slane %v1175_v2, 2 }
 0x1c5   : > { %1319 = vmatmul.bf16.vlgmr.msra.gmra.mxu0 %v1139_v7  ;;  %1348 = vmatmul.bf16.vlgmr.msra.gmra.mxu1 %v1139_v7  ;;  %v1122_v17 = vmul.f32 %v7740_v54, %v1111_v12 }
 0x1c6   : > { %1377 = vmatmul.bf16.vlgmr.msra.gmra.mxu2 %v1139_v7  ;;  %v1083_v18 = vsub.f32 1.5, %v1082_v13  ;;  %v1124_v30 = vmul.f32 %v7740_v54, %v1113_v38 }
 0x1c7   : > { %v1133_v22 = vadd.f32 %v7746_v61, %v1122_v17 }
 0x1c8   : > { %v1084_v23 = vmul.f32 %v6472_v36, %v1083_v18  ;;  %v1135_v32 = vadd.f32 %v7746_v61, %v1124_v30 }
 0x1c9   : > { %v1140_v33 = vpack.c.bf16 %v1134_v42, %v1133_v22  ;;  %v7801_v42 = vperm.slane %v1175_v2, 0 }
 0x1ca   : > { %v1088_v25 = vsel %vm1087_vm1, %v6472_v36, %v1084_v23 }
 0x1cb   : > { %v1114_v28 = vmul.f32 %v1088_v25, %v7656_v49  ;;  %v6474_v49 = vpop.eup %6473 }
 0x1cc   : > { %v1090_v40 = vmul.f32 %v6474_v49, %v1027_v39  ;;  %vm1096_vm4 = vweird.f32 %v6474_v49 }
 0x1cd   : > { %v1125_v29 = vmul.f32 %v7740_v54, %v1114_v28  ;;  %vm1097_vm5 = vmor %vm1095_vm3, %vm1096_vm4 }
 0x1ce   : > { %v1091_v41 = vmul.f32 %v6474_v49, %v1090_v40 }
 0x1cf   : > { %v1136_v31 = vadd.f32 %v7746_v61, %v1125_v29 }
 0x1d0   : > { %v1092_v47 = vmul.f32 0.5, %v1091_v41 }
 0x1d1   : > { %v1141_v34 = vpack.c.bf16 %v1136_v31, %v1135_v32 }
 0x1d2   : > { %v1093_v48 = vsub.f32 1.5, %v1092_v47 }
 0x1d4   : > { %v1094_v51 = vmul.f32 %v6474_v49, %v1093_v48 }
 0x1d5   : > { %1324 = vmatmul.bf16.gmra.mxu0 %v1140_v33  ;;  %1353 = vmatmul.bf16.gmra.mxu1 %v1140_v33 }
 0x1d6   : > { %1382 = vmatmul.bf16.gmra.mxu2 %v1140_v33  ;;  %v1098_v55 = vsel %vm1097_vm5, %v6474_v49, %v1094_v51 }
 0x1d7   : > { %v1115_v58 = vmul.f32 %v1098_v55, %v7647_v44  ;;  %v1178_v44 = vperm.slane %v1175_v2, 1 }
 0x1d9   : > { %v1126_v26 = vmul.f32 %v7740_v54, %v1115_v58 }
 0x1db   : > { %v1137_v0 = vadd.f32 %v7746_v61, %v1126_v26 }
 0x1e5   : > { %1329 = vmatmul.bf16.gmra.mxu0 %v1141_v34  ;;  %1358 = vmatmul.bf16.gmra.mxu1 %v1141_v34 }
 0x1e6   : > { %1387 = vmatmul.bf16.gmra.mxu2 %v1141_v34 }
 0x21e   : > { %v1012_v43 = vpop.xlane.xlu0 %1011 }
 0x21f   : > { %v1020_v45 = vmul.f32 %v1012_v43, %v7620_v21 }
 0x221   : > { %v1028_v46 = vadd.f32 1e-05, %v1020_v45 }
 0x223   : > { %6475 = vrsqrt.f32 %v1028_v46  ;;  %vm1105_vm7 = vweird.f32 %v1028_v46 }
 0x229   : > { %v6476_v50 = vpop.eup %6475 }
 0x22a   : > { %v1100_v52 = vmul.f32 %v6476_v50, %v1028_v46  ;;  %vm1106_vm6 = vweird.f32 %v6476_v50 }
 0x22b   : > { %vm1107_vm8 = vmor %vm1105_vm7, %vm1106_vm6 }
 0x22c   : > { %v1101_v53 = vmul.f32 %v6476_v50, %v1100_v52 }
 0x22e   : > { %v1102_v56 = vmul.f32 0.5, %v1101_v53 }
 0x230   : > { %v1103_v57 = vsub.f32 1.5, %v1102_v56 }
 0x232   : > { %v1104_v59 = vmul.f32 %v6476_v50, %v1103_v57 }
 0x234   : > { %v1108_v60 = vsel %vm1107_vm8, %v6476_v50, %v1104_v59 }
 0x235   : > { %v1116_v62 = vmul.f32 %v1108_v60, %v7715_v16 }
 0x237   : > { %v1127_v63 = vmul.f32 %v7740_v54, %v1116_v62 }
 0x239   : > { %v1138_v1 = vadd.f32 %v7746_v61, %v1127_v63 }
 0x23b   : > { %v1142_v36 = vpack.c.bf16 %v1138_v1, %v1137_v0 }
 0x23d   : > { %1334 = vmatmul.bf16.gmra.mxu0 %v1142_v36  ;;  %1363 = vmatmul.bf16.gmra.mxu1 %v1142_v36 }
 0x23e   : > { %1392 = vmatmul.bf16.gmra.mxu2 %v1142_v36 }
 0x242   : > { %v1349_v3 = vpop.f32.mrf.mxu1  ;;  %v1320_v24 = vpop.f32.mrf.mxu0 }
 0x243   : > { %v1350_v4 = vadd.f32 %v1349_v3, %v1178_v44  ;;  %v1321_v33 = vadd.f32 %v1320_v24, %v7801_v42 }
 0x245   : > { %v7778_v5 = vpack.c.bf16 %v1350_v4, %v1350_v4  ;;  %v7806_v25 = vpack.c.bf16 %v1321_v33, %v1321_v33 }
 0x247   : > { %1518 = vrot.lane.b32.xlu0 %v7778_v5, %s7178_s0  ;;  %v1666_v2 = vunpack.c.l.b16 %v7778_v5 }
 0x249   : > { %v1378_v16 = vpop.f32.mrf.mxu2 }
 0x24a   : > { %v7785_v54 = vadd.f32 %v1378_v16, %v7780_v6  ;;  %v1351_v61 = vpop.f32.mrf.mxu1  ;;  %v1322_v48 = vpop.f32.mrf.mxu0 }
 0x24b   : > { %v1352_v41 = vadd.f32 %v1351_v61, %v1178_v44  ;;  %v1323_v58 = vadd.f32 %v1322_v48, %v7801_v42 }
 0x24c   : > { %v7876_v33 = vpack.c.bf16 %v7785_v54, %v7785_v54 }
 0x24d   : > { %v1407_v47 = vpack.c.bf16 %v1352_v41, %v1352_v41  ;;  %v1399_v0 = vpack.c.bf16 %v1323_v58, %v1323_v58 }
 0x24f   : > { %v1667_v63 = vunpack.c.l.b16 %v1407_v47 }
 0x251   : > { %v1380_v27 = vpop.f32.mrf.mxu2  ;;  %v1674_v4 = vpack.c.b16 %v1667_v63, %v1666_v2 }
 0x252   : > { %v1354_v7 = vpop.f32.mrf.mxu1  ;;  %v1325_v57 = vpop.f32.mrf.mxu0 }
 0x253   : > { %v1355_v8 = vadd.f32 %v1354_v7, %v1178_v44  ;;  %v1326_v61 = vadd.f32 %v1325_v57, %v7801_v42 }
 0x255   : > { %v7787_v9 = vpack.c.bf16 %v1355_v8, %v1355_v8 }
 0x257   : > { %1522 = vrot.lane.b32.xlu0 %v7787_v9, %s7178_s0  ;;  %v1668_v53 = vunpack.c.l.b16 %v7787_v9 }
 0x259   : > { %v1383_v28 = vpop.f32.mrf.mxu2 }
 0x25a   : > { %v1356_v10 = vpop.f32.mrf.mxu1  ;;  %v1384_v7 = vadd.f32 %v1383_v28, %v7780_v6 }
 0x25b   : > { %v1357_v11 = vadd.f32 %v1356_v10, %v1178_v44  ;;  %v1381_v10 = vadd.f32 %v1380_v27, %v7780_v6 }
 0x25d   : > { %v7791_v12 = vpack.c.bf16 %v1357_v11, %v1357_v11  ;;  %v1327_v11 = vpop.f32.mrf.mxu0 }
 0x25e   : > { %v1328_v27 = vadd.f32 %v1327_v11, %v7801_v42 }
 0x25f   : > { %1524 = vrot.lane.b32.xlu2 %v7791_v12, %s7178_s0  ;;  %v1669_v51 = vunpack.c.l.b16 %v7791_v12 }
 0x261   : > { %v1385_v38 = vpop.f32.mrf.mxu2  ;;  %v1675_v56 = vpack.c.b16 %v1669_v51, %v1668_v53 }
 0x262   : > { %v1359_v13 = vpop.f32.mrf.mxu1 }
 0x263   : > { %v1360_v14 = vadd.f32 %v1359_v13, %v1178_v44  ;;  %v1695_v26 = vsel %vm1678_vm9, %v1675_v56, 0  ;;  %v1692_v13 = vsel %vm1678_vm9, %v1674_v4, 0 }
 0x265   : > { %v1410_v15 = vpack.c.bf16 %v1360_v14, %v1360_v14 }
 0x267   : > { %1510 = vrot.lane.b32.xlu2 %v1410_v15, %s7179_s14  ;;  %1494 = vrot.lane.b32.xlu1 %v1410_v15, %s7180_s19  ;;  %v1670_v20 = vunpack.c.l.b16 %v1410_v15 }
 0x268   : > { %1526 = vrot.lane.b32.xlu0 %v1410_v15, %s7178_s0 }
 0x269   : > { %v1388_v29 = vpop.f32.mrf.mxu2 }
 0x26a   : > { %v1361_v17 = vpop.f32.mrf.mxu1  ;;  %v1389_v1 = vadd.f32 %v1388_v29, %v7780_v6 }
 0x26b   : > { %v1362_v18 = vadd.f32 %v1361_v17, %v1178_v44  ;;  %v1400_v17 = vpack.c.bf16 %v1326_v61, %v1326_v61 }
 0x26c   : > { %v7855_v8 = vpack.c.bf16 %v1389_v1, %v1389_v1 }
 0x26d   : > { %v1411_v19 = vpack.c.bf16 %v1362_v18, %v1362_v18  ;;  %v7863_v18 = vpack.c.bf16 %v1384_v7, %v1384_v7 }
 0x26f   : > { %1528 = vrot.lane.b32.xlu2 %v1411_v19, %s7178_s0  ;;  %1512 = vrot.lane.b32.xlu1 %v1411_v19, %s7179_s14  ;;  %v1671_v22 = vunpack.c.l.b16 %v1411_v19 }
 0x270   : > { %1496 = vrot.lane.b32.xlu0 %v1411_v19, %s7180_s19  ;;  %v2372_v19 = vunpack.c.l.b16 %v7855_v8 }
 0x271   : > { %v1676_v23 = vpack.c.b16 %v1671_v22, %v1670_v20  ;;  %v1390_v34 = vpop.f32.mrf.mxu2  ;;  %v1655_v20 = vunpack.c.l.b16 %v1399_v0  ;;  %v7866_v22 = vpack.c.bf16 %v1381_v10, %v1381_v10 }
 0x272   : > { %v1391_v60 = vadd.f32 %v1390_v34, %v7780_v6 }
 0x273   : > { %v1698_v50 = vsel %vm1678_vm9, %v1676_v23, 0  ;;  %v1654_v23 = vunpack.c.l.b16 %v7806_v25  ;;  %v2369_v29 = vunpack.c.l.b16 %v7866_v22 }
 0x274   : > { %v7846_v3 = vpack.c.bf16 %v1391_v60, %v1391_v60 }
 0x275   : > { %v1662_v28 = vpack.c.b16 %v1655_v20, %v1654_v23 }
 0x276   : > { %v2373_v15 = vunpack.c.l.b16 %v7846_v3 }
 0x278   : > { %1492 = vrot.lane.b32.xlu0 %v7791_v12, %s7180_s19 }
 0x280   : > { %1462 = vrot.lane.b32.xlu0 %v7806_v25, %s7178_s0 }
 0x2b9   : > { %v7899_v48 = vpop.permute.xlu0 %1518 }
 0x2ba   : > { %v1364_v30 = vpop.f32.mrf.mxu1 }
 0x2bb   : > { %v1365_v31 = vadd.f32 %v1364_v30, %v1178_v44  ;;  %v1330_v30 = vpop.f32.mrf.mxu0 }
 0x2bc   : > { %v1331_v34 = vadd.f32 %v1330_v30, %v7801_v42 }
 0x2bd   : > { %v1412_v32 = vpack.c.bf16 %v1365_v31, %v1365_v31  ;;  %v1401_v31 = vpack.c.bf16 %v1328_v27, %v1328_v27 }
 0x2bf   : > { %1514 = vrot.lane.b32.xlu2 %v1412_v32, %s7179_s14  ;;  %1530 = vrot.lane.b32.xlu1 %v1412_v32, %s7178_s0  ;;  %v1672_v49 = vunpack.c.l.b16 %v1412_v32 }
 0x2c1   : > { %v1393_v45 = vpop.f32.mrf.mxu2 }
 0x2c2   : > { %v1366_v35 = vpop.f32.mrf.mxu1  ;;  %v1394_v59 = vadd.f32 %v1393_v45, %v7780_v6 }
 0x2c3   : > { %v1367_v37 = vadd.f32 %v1366_v35, %v1178_v44  ;;  %v1386_v44 = vadd.f32 %v1385_v38, %v7780_v6  ;;  %v2370_v38 = vunpack.c.l.b16 %v7863_v18  ;;  %v1402_v35 = vpack.c.bf16 %v1331_v34, %v1331_v34 }
 0x2c4   : > { %v7842_v36 = vpack.c.bf16 %v1394_v59, %v1394_v59 }
 0x2c5   : > { %v7812_v39 = vpack.c.bf16 %v1367_v37, %v1367_v37  ;;  %v1657_v37 = vunpack.c.l.b16 %v1401_v31  ;;  %v1658_v53 = vunpack.c.l.b16 %v1402_v35 }
 0x2c7   : > { %1500 = vrot.lane.b32.xlu0 %v7812_v39, %s7180_s19  ;;  %1532 = vrot.lane.b32.xlu2 %v7812_v39, %s7178_s0  ;;  %v1673_v40 = vunpack.c.l.b16 %v7812_v39 }
 0x2c8   : > { %1498 = vrot.lane.b32.xlu1 %v1412_v32, %s7180_s19  ;;  %v2368_v32 = vunpack.c.l.b16 %v7876_v33 }
 0x2c9   : > { %v1677_v43 = vpack.c.b16 %v1673_v40, %v1672_v49  ;;  %v1395_v52 = vpop.f32.mrf.mxu2  ;;  %v1332_v49 = vpop.f32.mrf.mxu0  ;;  %v1656_v40 = vunpack.c.l.b16 %v1400_v17 }
 0x2ca   : > { %v1396_v55 = vadd.f32 %v1395_v52, %v7780_v6  ;;  %v2378_v6 = vpack.c.b16 %v2373_v15, %v2372_v19  ;;  %v2376_v54 = vpack.c.b16 %v2369_v29, %v2368_v32  ;;  %v1333_v41 = vadd.f32 %v1332_v49, %v7801_v42  ;;  %v7907_v57 = vpop.permute.xlu0 %1522 }
 0x2cb   : > { %v1701_v46 = vsel %vm1678_vm9, %v1677_v43, 0  ;;  %v1663_v43 = vpack.c.b16 %v1657_v37, %v1656_v40 }
 0x2cc   : > { %1707 = vmatpush.bf16.xpose.msra.mxu3 %v1701_v46  ;;  %v7838_v62 = vpack.c.bf16 %v1396_v55, %v1396_v55  ;;  %v1403_v45 = vpack.c.bf16 %v1333_v41, %v1333_v41  ;;  %v1898_v41 = vunpack.c.l.b16 %v7899_v48 }
 0x2ce   : > { %v2375_v16 = vunpack.c.l.b16 %v7838_v62  ;;  %v1659_v51 = vunpack.c.l.b16 %v1403_v45 }
 0x2cf   : > { %1488 = vrot.lane.b32.xlu0 %v1407_v47, %s7180_s19  ;;  %1520 = vrot.lane.b32.xlu2 %v1407_v47, %s7178_s0 }
 0x2d0   : > { %1490 = vrot.lane.b32.xlu1 %v7787_v9, %s7180_s19  ;;  %v1664_v55 = vpack.c.b16 %v1659_v51, %v1658_v53 }
 0x2d1   : > { %v1335_v46 = vpop.f32.mrf.mxu0 }
 0x2d4   : > { %1708 = vmatpush.bf16.xpose.msra.mxu3 %v1698_v50 }
 0x2d7   : > { %1430 = vrot.lane.b32.xlu0 %v7806_v25, %s7180_s19  ;;  %1506 = vrot.lane.b32.xlu2 %v7787_v9, %s7179_s14  ;;  %v2374_v9 = vunpack.c.l.b16 %v7842_v36 }
 0x2d8   : > { %1508 = vrot.lane.b32.xlu1 %v7791_v12, %s7179_s14  ;;  %v7859_v12 = vpack.c.bf16 %v1386_v44, %v1386_v44 }
 0x2d9   : > { %v2379_v14 = vpack.c.b16 %v2375_v16, %v2374_v9  ;;  %v1337_v56 = vpop.f32.mrf.mxu0  ;;  %v1495_v2 = vpop.permute.xlu1 %1494 }
 0x2da   : > { %v2371_v24 = vunpack.c.l.b16 %v7859_v12  ;;  %v1338_v58 = vadd.f32 %v1337_v56, %v7801_v42 }
 0x2dc   : > { %1709 = vmatpush.bf16.xpose.msra.mxu3 %v1695_v26  ;;  %v7915_v59 = vpack.c.bf16 %v1338_v58, %v1338_v58  ;;  %v1527_v26 = vpop.permute.xlu0 %1526 }
 0x2dd   : > { %v1902_v15 = vunpack.c.l.b16 %v1527_v26 }
 0x2df   : > { %1448 = vrot.lane.b32.xlu0 %v1399_v0, %s7179_s14  ;;  %1464 = vrot.lane.b32.xlu2 %v1399_v0, %s7178_s0 }
 0x2e0   : > { %1486 = vrot.lane.b32.xlu1 %v7778_v5, %s7180_s19 }
 0x2e1   : > { %v7938_v16 = vpop.permute.xlu1 %1512 }
 0x2e4   : > { %1710 = vmatpush.bf16.xpose.msra.mxu3 %v1692_v13  ;;  %v1497_v1 = vpop.permute.xlu0 %1496 }
 0x2e5   : > { %v1749_v30 = vunpack.c.l.b16 %v1497_v1 }
 0x2e7   : > { %1434 = vrot.lane.b32.xlu0 %v1400_v17, %s7180_s19  ;;  %1502 = vrot.lane.b32.xlu2 %v7778_v5, %s7179_s14  ;;  %v2377_v5 = vpack.c.b16 %v2371_v24, %v2370_v38  ;;  %v1900_v38 = vunpack.c.l.b16 %v7907_v57 }
 0x2e8   : > { %1504 = vrot.lane.b32.xlu1 %v1407_v47, %s7179_s14  ;;  %v1336_v47 = vadd.f32 %v1335_v46, %v7801_v42 }
 0x2ea   : > { %v1404_v50 = vpack.c.bf16 %v1336_v47, %v1336_v47 }
 0x2eb   : > { %5681 = vmatmul.msk.bf16.vlgmr.msra.gmra.mxu3 %vm1678_vm9, %v1662_v28 }
 0x2ec   : > { %2400 = vmatpush.bf16.msrb.mxu3 %v2379_v14  ;;  %v1660_v63 = vunpack.c.l.b16 %v1404_v50  ;;  %v7930_v4 = vpop.permute.xlu0 %1492 }
 0x2ed   : > { %v1747_v47 = vunpack.c.l.b16 %v7930_v4 }
 0x2ef   : > { %1452 = vrot.lane.b32.xlu0 %v1401_v31, %s7179_s14  ;;  %1432 = vrot.lane.b32.xlu2 %v1399_v0, %s7180_s19 }
 0x2f0   : > { %2401 = vmatpush.bf16.msrb.mxu3 %v2378_v6  ;;  %1446 = vrot.lane.b32.xlu1 %v7806_v25, %s7179_s14  ;;  %v7893_v25 = vpop.permute.xlu2 %1524 }
 0x2f4   : > { %2402 = vmatpush.bf16.msrb.mxu3 %v2377_v5  ;;  %v7944_v7 = vpop.permute.xlu0 %1462 }
 0x2f7   : > { %1438 = vrot.lane.b32.xlu0 %v1402_v35, %s7180_s19  ;;  %1466 = vrot.lane.b32.xlu2 %v1400_v17, %s7178_s0 }
 0x2f8   : > { %2403 = vmatpush.bf16.msrb.mxu3 %v2376_v54  ;;  %1468 = vrot.lane.b32.xlu1 %v1401_v31, %s7178_s0  ;;  %v7901_v52 = vpop.permute.xlu2 %1510  ;;  %v1748_v54 = vunpack.c.l.b16 %v1495_v2 }
 0x2fa   : > { %v1754_v37 = vpack.c.b16 %v1749_v30, %v1748_v54 }
 0x2fb   : > { %5682 = vmatmul.msk.bf16.gmra.mxu3 %vm1678_vm9, %v1663_v43 }
 0x2ff   : > { %1456 = vrot.lane.b32.xlu0 %v1403_v45, %s7179_s14  ;;  %1436 = vrot.lane.b32.xlu2 %v1401_v31, %s7180_s19 }
 0x300   : > { %1450 = vrot.lane.b32.xlu1 %v1400_v17, %s7179_s14  ;;  %v1529_v60 = vpop.permute.xlu2 %1528 }
 0x301   : > { %v1903_v19 = vunpack.c.l.b16 %v1529_v60 }
 0x303   : > { %v1908_v24 = vpack.c.b16 %v1903_v19, %v1902_v15 }
 0x305   : > { %v1929_v5 = vsel %vm1678_vm9, %v1908_v24, 0 }
 0x307   : > { %1470 = vrot.lane.b32.xlu2 %v1402_v35, %s7178_s0  ;;  %1442 = vrot.lane.b32.xlu0 %v1404_v50, %s7180_s19 }
 0x308   : > { %1516 = vrot.lane.b32.xlu1 %v7812_v39, %s7179_s14  ;;  %v1661_v39 = vunpack.c.l.b16 %v7915_v59 }
 0x30a   : > { %v1665_v0 = vpack.c.b16 %v1661_v39, %v1660_v63  ;;  %v1886_v39 = vunpack.c.l.b16 %v7944_v7 }
 0x30b   : > { %5683 = vmatmul.msk.bf16.gmra.mxu3 %vm1678_vm9, %v1664_v55 }
 0x30f   : > { %1440 = vrot.lane.b32.xlu2 %v1403_v45, %s7180_s19  ;;  %1570 = vrot.lane.b32.xlu0 %v7842_v36, %s7179_s14 }
 0x310   : > { %1472 = vrot.lane.b32.xlu1 %v1403_v45, %s7178_s0  ;;  %v1775_v45 = vsel %vm1678_vm9, %v1754_v37, 0 }
 0x317   : > { %1460 = vrot.lane.b32.xlu0 %v7915_v59, %s7179_s14  ;;  %1474 = vrot.lane.b32.xlu2 %v1404_v50, %s7178_s0 }
 0x318   : > { %1454 = vrot.lane.b32.xlu1 %v1402_v35, %s7179_s14 }
 0x319   : > { %v7922_v42 = vpop.permute.xlu2 %1514 }
 0x31a   : > { %v1827_v37 = vunpack.c.l.b16 %v7922_v42  ;;  %v1825_v42 = vunpack.c.l.b16 %v7901_v52 }
 0x31b   : > { %5684 = vmatmul.msk.bf16.gmra.mxu3 %vm1678_vm9, %v1665_v0 }
 0x31f   : > { %1566 = vrot.lane.b32.xlu0 %v7855_v8, %s7179_s14  ;;  %1444 = vrot.lane.b32.xlu2 %v7915_v59, %s7180_s19 }
 0x320   : > { %1458 = vrot.lane.b32.xlu1 %v1404_v50, %s7179_s14 }
 0x321   : > { %v1533_v44 = vpop.permute.xlu2 %1532 }
 0x322   : > { %v1905_v11 = vunpack.c.l.b16 %v1533_v44 }
 0x327   : > { %1568 = vrot.lane.b32.xlu0 %v7846_v3, %s7179_s14  ;;  %1550 = vrot.lane.b32.xlu2 %v7855_v8, %s7180_s19 }
 0x328   : > { %1586 = vrot.lane.b32.xlu1 %v7842_v36, %s7178_s0 }
 0x329   : > { %v1521_v61 = vpop.permute.xlu2 %1520 }
 0x32a   : > { %v1899_v49 = vunpack.c.l.b16 %v1521_v61 }
 0x32c   : > { %v1906_v51 = vpack.c.b16 %v1899_v49, %v1898_v41 }
 0x32e   : > { %v1923_v57 = vsel %vm1678_vm9, %v1906_v51, 0  ;;  %v6205_v51 = vld [vmem:[%s7563_s1 + $0x8] sm:$0xff]  }
 0x32f   : > { %1546 = vrot.lane.b32.xlu0 %v7863_v18, %s7180_s19  ;;  %1580 = vrot.lane.b32.xlu2 %v7859_v12, %s7178_s0 }
 0x330   : > { %1554 = vrot.lane.b32.xlu1 %v7842_v36, %s7180_s19 }
 0x331   : > { %v1507_v9 = vpop.permute.xlu2 %1506  ;;  %v1531_v10 = vpop.permute.xlu1 %1530 }
 0x332   : > { %v1904_v13 = vunpack.c.l.b16 %v1531_v10  ;;  %v1823_v53 = vunpack.c.l.b16 %v1507_v9 }
 0x334   : > { %v1909_v14 = vpack.c.b16 %v1905_v11, %v1904_v13 }
 0x336   : > { %v1932_v17 = vsel %vm1678_vm9, %v1909_v14, 0 }
 0x337   : > { %1938 = vmatpush.bf16.xpose.msrb.mxu2 %v1932_v17  ;;  %1576 = vrot.lane.b32.xlu0 %v7866_v22, %s7178_s0 }
 0x338   : > { %1582 = vrot.lane.b32.xlu1 %v7855_v8, %s7178_s0  ;;  %1574 = vrot.lane.b32.xlu2 %v7876_v33, %s7178_s0  ;;  %v1901_v8 = vunpack.c.l.b16 %v7893_v25 }
 0x339   : > { %v1465_v36 = vpop.permute.xlu2 %1464  ;;  %v1501_v20 = vpop.permute.xlu0 %1500 }
 0x33a   : > { %v1499_v6 = vpop.permute.xlu1 %1498  ;;  %v1751_v23 = vunpack.c.l.b16 %v1501_v20  ;;  %v1907_v35 = vpack.c.b16 %v1901_v8, %v1900_v38  ;;  %v1887_v58 = vunpack.c.l.b16 %v1465_v36 }
 0x33b   : > { %v1750_v27 = vunpack.c.l.b16 %v1499_v6 }
 0x33c   : > { %v1926_v40 = vsel %vm1678_vm9, %v1907_v35, 0  ;;  %v1894_v2 = vpack.c.b16 %v1887_v58, %v1886_v39 }
 0x33d   : > { %v1755_v28 = vpack.c.b16 %v1751_v23, %v1750_v27 }
 0x33f   : > { %1562 = vrot.lane.b32.xlu0 %v7863_v18, %s7179_s14  ;;  %v1778_v29 = vsel %vm1678_vm9, %v1755_v28, 0  ;;  %1939 = vmatpush.bf16.xpose.msrb.mxu2 %v1929_v5 }
 0x340   : > { %1584 = vrot.lane.b32.xlu1 %v7846_v3, %s7178_s0  ;;  %1544 = vrot.lane.b32.xlu2 %v7866_v22, %s7180_s19 }
 0x341   : > { %1784 = vmatpush.bf16.xpose.msrb.mxu0 %v1778_v29  ;;  %v7965_v31 = vpop.permute.xlu2 %1502  ;;  %v1489_v32 = vpop.permute.xlu0 %1488  ;;  %v6142_v29 = vld [vmem:[%s7563_s1] sm:$0xff]  }
 0x342   : > { %v1491_v34 = vpop.permute.xlu1 %1490  ;;  %v1745_v0 = vunpack.c.l.b16 %v1489_v32  ;;  %v6144_v8 = vunpack.c.h.bf16 %v6142_v29 }
 0x343   : > { %v1746_v43 = vunpack.c.l.b16 %v1491_v34 }
 0x345   : > { %v1753_v56 = vpack.c.b16 %v1747_v47, %v1746_v43 }
 0x347   : > { %1564 = vrot.lane.b32.xlu0 %v7859_v12, %s7179_s14  ;;  %1940 = vmatpush.bf16.xpose.msrb.mxu2 %v1926_v40 }
 0x348   : > { %1476 = vrot.lane.b32.xlu1 %v7915_v59, %s7178_s0  ;;  %1556 = vrot.lane.b32.xlu2 %v7838_v62, %s7180_s19  ;;  %v1772_v59 = vsel %vm1678_vm9, %v1753_v56, 0  ;;  %v6148_v56 = vunpack.c.h.bf16 %v6205_v51 }
 0x349   : > { %1785 = vmatpush.bf16.xpose.msrb.mxu0 %v1775_v45  ;;  %v1433_v25 = vpop.permute.xlu2 %1432  ;;  %v1431_v46 = vpop.permute.xlu0 %1430  ;;  %v1826_v45 = vunpack.c.l.b16 %v7938_v16 }
 0x34a   : > { %v1509_v50 = vpop.permute.xlu1 %1508  ;;  %v1733_v9 = vunpack.c.l.b16 %v1433_v25  ;;  %v1732_v7 = vunpack.c.l.b16 %v1431_v46 }
 0x34b   : > { %v1824_v55 = vunpack.c.l.b16 %v1509_v50 }
 0x34c   : > { %v1740_v11 = vpack.c.b16 %v1733_v9, %v1732_v7  ;;  %v1821_v9 = vunpack.c.l.b16 %v7965_v31  ;;  %v6143_v7 = vunpack.c.l.bf16 %v6142_v29 }
 0x34d   : > { %v7977_v48 = vpack.c.b16 %v1824_v55, %v1823_v53 }
 0x34f   : > { %1558 = vrot.lane.b32.xlu0 %v7876_v33, %s7179_s14  ;;  %1941 = vmatpush.bf16.xpose.msrb.mxu2 %v1923_v57  ;;  %v1831_v57 = vpack.c.b16 %v1826_v45, %v1825_v42 }
 0x350   : > { %1552 = vrot.lane.b32.xlu1 %v7846_v3, %s7180_s19 }
 0x351   : > { %1786 = vmatpush.bf16.xpose.msrb.mxu0 %v1772_v59  ;;  %v1467_v60 = vpop.permute.xlu2 %1466  ;;  %v7985_v26 = vpop.permute.xlu0 %1448  ;;  %v1852_v39 = vsel %vm1678_vm9, %v1831_v57, 0 }
 0x352   : > { %v1487_v63 = vpop.permute.xlu1 %1486  ;;  %v1888_v6 = vunpack.c.l.b16 %v1467_v60 }
 0x353   : > { %v1744_v1 = vunpack.c.l.b16 %v1487_v63 }
 0x355   : > { %v1752_v44 = vpack.c.b16 %v1745_v0, %v1744_v1 }
 0x356   : > { %5693 = vmatmul.msk.bf16.vlgmr.msrb.gmra.mxu2 %vm1678_vm9, %v1894_v2 }
 0x357   : > { %1588 = vrot.lane.b32.xlu0 %v7838_v62, %s7178_s0  ;;  %v1769_v3 = vsel %vm1678_vm9, %v1752_v44, 0 }
 0x358   : > { %1578 = vrot.lane.b32.xlu1 %v7863_v18, %s7178_s0 }
 0x359   : > { %1787 = vmatpush.bf16.xpose.msrb.mxu0 %v1769_v3  ;;  %v1437_v4 = vpop.permute.xlu2 %1436  ;;  %v1435_v61 = vpop.permute.xlu0 %1434 }
 0x35a   : > { %v7994_v10 = vpop.permute.xlu1 %1504  ;;  %v1735_v19 = vunpack.c.l.b16 %v1437_v4  ;;  %v1734_v36 = vunpack.c.l.b16 %v1435_v61  ;;  %v1849_v61 = vsel %vm1678_vm9, %v7977_v48, 0 }
 0x35b   : > { %v1822_v4 = vunpack.c.l.b16 %v7994_v10 }
 0x35c   : > { %v1741_v27 = vpack.c.b16 %v1735_v19, %v1734_v36 }
 0x360   : > { %5685 = vmatmul.msk.bf16.vlgmr.msrb.gmra.mxu0 %vm1678_vm9, %v1740_v11  ;;  %1548 = vrot.lane.b32.xlu1 %v7859_v12, %s7180_s19 }
 0x361   : > { %v1471_v13 = vpop.permute.xlu2 %1470  ;;  %v7999_v14 = vpop.permute.xlu0 %1452 }
 0x362   : > { %v8001_v15 = vpop.permute.xlu1 %1446  ;;  %v1890_v55 = vunpack.c.l.b16 %v1471_v13 }
 0x363   : > { %v1809_v10 = vunpack.c.l.b16 %v8001_v15 }
 0x368   : > { %1542 = vrot.lane.b32.xlu1 %v7876_v33, %s7180_s19 }
 0x369   : > { %v1441_v18 = vpop.permute.xlu2 %1440  ;;  %v1439_v17 = vpop.permute.xlu0 %1438 }
 0x36a   : > { %v1469_v20 = vpop.permute.xlu1 %1468  ;;  %v1737_v54 = vunpack.c.l.b16 %v1441_v18  ;;  %v1736_v34 = vunpack.c.l.b16 %v1439_v17  ;;  %v1829_v17 = vpack.c.b16 %v1822_v4, %v1821_v9 }
 0x36b   : > { %v1889_v23 = vunpack.c.l.b16 %v1469_v20  ;;  %v6147_v20 = vunpack.c.l.bf16 %v6205_v51 }
 0x36c   : > { %v1742_v41 = vpack.c.b16 %v1737_v54, %v1736_v34  ;;  %v1846_v36 = vsel %vm1678_vm9, %v1829_v17, 0 }
 0x36d   : > { %v1895_v24 = vpack.c.b16 %v1889_v23, %v1888_v6 }
 0x36e   : > { %v1712_v28 = vpop.f32.mrf.mxu3 }
 0x36f   : > { %5694 = vmatmul.msk.bf16.gmra.mxu2 %vm1678_vm9, %v1895_v24  ;;  %v8047_v19 = vadd.f32 %v6143_v7, %v1712_v28 }
 0x370   : > { %5686 = vmatmul.msk.bf16.gmra.mxu0 %vm1678_vm9, %v1741_v27  ;;  %1572 = vrot.lane.b32.xlu1 %v7838_v62, %s7179_s14 }
 0x371   : > { %v8009_v12 = vpop.permute.xlu2 %1474  ;;  %v8011_v33 = vpop.permute.xlu0 %1456  ;;  %v1964_v48 = vsel %vm1963_vm10, %v8047_v19, -inf }
 0x372   : > { %v8013_v38 = vpop.permute.xlu1 %1450 }
 0x376   : > { %v1714_v5 = vpop.f32.mrf.mxu3 }
 0x377   : > { %v8017_v40 = vadd.f32 %v6144_v8, %v1714_v5  ;;  %v1810_v5 = vunpack.c.l.b16 %v7985_v26  ;;  %v1811_v26 = vunpack.c.l.b16 %v8013_v38 }
 0x379   : > { %v1445_v30 = vpop.permute.xlu2 %1444  ;;  %v1443_v32 = vpop.permute.xlu0 %1442  ;;  %v1967_v46 = vsel %vm1963_vm10, %v8017_v40, -inf  ;;  %v1817_v29 = vpack.c.b16 %v1810_v5, %v1809_v10  ;;  %v8081_v10 = vld [vmem:[%s7563_s1 + $0x60] sm:$0xff]  }
 0x37a   : > { %v1517_v35 = vpop.permute.xlu1 %1516  ;;  %v1739_v1 = vunpack.c.l.b16 %v1445_v30  ;;  %v1738_v2 = vunpack.c.l.b16 %v1443_v32 }
 0x37b   : > { %v1828_v49 = vunpack.c.l.b16 %v1517_v35 }
 0x37c   : > { %v1743_v3 = vpack.c.b16 %v1739_v1, %v1738_v2 }
 0x37d   : > { %v1832_v62 = vpack.c.b16 %v1828_v49, %v1827_v37 }
 0x37e   : > { %v1717_v43 = vpop.f32.mrf.mxu3 }
 0x37f   : > { %v1855_v25 = vsel %vm1678_vm9, %v1832_v62, 0  ;;  %v8058_v8 = vadd.f32 %v6147_v20, %v1717_v43 }
 0x380   : > { %5687 = vmatmul.msk.bf16.gmra.mxu0 %vm1678_vm9, %v1742_v41  ;;  %1861 = vmatpush.bf16.xpose.msrb.mxu1 %v1855_v25  ;;  %v1812_v41 = vunpack.c.l.b16 %v7999_v14 }
 0x381   : > { %1968 = vmax.xlane.f32.xlu0 %v1967_v46  ;;  %v8025_v47 = vpop.permute.xlu2 %1550  ;;  %v8027_v50 = vpop.permute.xlu0 %1570  ;;  %v1970_v15 = vsel %vm1963_vm10, %v8058_v8, -inf }
 0x382   : > { %v1473_v53 = vpop.permute.xlu1 %1472  ;;  %v1818_v43 = vpack.c.b16 %v1812_v41, %v1811_v26 }
 0x383   : > { %v1891_v16 = vunpack.c.l.b16 %v1473_v53  ;;  %v1892_v53 = vunpack.c.l.b16 %v8009_v12 }
 0x385   : > { %v1896_v58 = vpack.c.b16 %v1891_v16, %v1890_v55  ;;  %v1814_v55 = vunpack.c.l.b16 %v8011_v33 }
 0x386   : > { %v1719_v59 = vpop.f32.mrf.mxu3 }
 0x387   : > { %v8030_v60 = vadd.f32 %v6148_v56, %v1719_v59  ;;  %5695 = vmatmul.msk.bf16.gmra.mxu2 %vm1678_vm9, %v1896_v58  ;;  %v2449_v58 = vunpack.c.l.b16 %v8025_v47 }
 0x388   : > { %1862 = vmatpush.bf16.xpose.msrb.mxu1 %v1852_v39 }
 0x389   : > { %v8034_v52 = vpop.permute.xlu2 %1580  ;;  %v8036_v63 = vpop.permute.xlu0 %1460  ;;  %v1973_v0 = vsel %vm1963_vm10, %v8030_v60, -inf }
 0x38a   : > { %v1455_v44 = vpop.permute.xlu1 %1454  ;;  %1974 = vmax.xlane.f32.xlu2 %v1973_v0 }
 0x38b   : > { %v1813_v46 = vunpack.c.l.b16 %v1455_v44  ;;  %v1816_v44 = vunpack.c.l.b16 %v8036_v63 }
 0x38d   : > { %v1819_v38 = vpack.c.b16 %v1814_v55, %v1813_v46 }
 0x390   : > { %5688 = vmatmul.msk.bf16.gmra.mxu0 %vm1678_vm9, %v1743_v3  ;;  %1863 = vmatpush.bf16.xpose.msrb.mxu1 %v1849_v61 }
 0x391   : > { %v1567_v11 = vpop.permute.xlu0 %1566 }
 0x392   : > { %v1459_v13 = vpop.permute.xlu1 %1458  ;;  %v8045_v18 = vpop.permute.xlu2 %1574  ;;  %v2526_v23 = vunpack.c.l.b16 %v1567_v11  ;;  %v2602_v11 = vunpack.c.l.b16 %v8034_v52 }
 0x393   : > { %v1815_v0 = vunpack.c.l.b16 %v1459_v13 }
 0x395   : > { %v1820_v61 = vpack.c.b16 %v1816_v44, %v1815_v0  ;;  %v6192_v44 = vunpack.c.h.bf16 %v8081_v10 }
 0x398   : > { %1864 = vmatpush.bf16.xpose.msrb.mxu1 %v1846_v36 }
 0x399   : > { %v1569_v6 = vpop.permute.xlu0 %1568 }
 0x39a   : > { %1965 = vmax.xlane.f32.xlu1 %v1964_v48  ;;  %v1587_v31 = vpop.permute.xlu1 %1586  ;;  %v8053_v24 = vpop.permute.xlu2 %1544  ;;  %v2527_v27 = vunpack.c.l.b16 %v1569_v6  ;;  %v2599_v6 = vunpack.c.l.b16 %v8045_v18 }
 0x39b   : > { %v2605_v12 = vunpack.c.l.b16 %v1587_v31  ;;  %v6208_v31 = vld [vmem:[%s7563_s1 + $0x20] sm:$0xff]  }
 0x39c   : > { %v8056_v28 = vpack.c.b16 %v2527_v27, %v2526_v23  ;;  %v6191_v23 = vunpack.c.l.bf16 %v8081_v10 }
 0x39f   : > { %5689 = vmatmul.msk.bf16.vlgmr.msrb.gmra.mxu1 %vm1678_vm9, %v1817_v29 }
 0x3a1   : > { %v1547_v30 = vpop.permute.xlu0 %1546 }
 0x3a2   : > { %1971 = vmax.xlane.f32.xlu1 %v1970_v15  ;;  %v1555_v32 = vpop.permute.xlu1 %1554  ;;  %v1557_v54 = vpop.permute.xlu2 %1556  ;;  %v2447_v17 = vunpack.c.l.b16 %v1547_v30  ;;  %v6159_v15 = vunpack.c.l.bf16 %v6208_v31  ;;  %v2446_v30 = vunpack.c.l.b16 %v8053_v24 }
 0x3a3   : > { %v2451_v34 = vunpack.c.l.b16 %v1555_v32  ;;  %v2452_v35 = vunpack.c.l.b16 %v1557_v54 }
 0x3a5   : > { %v2456_v37 = vpack.c.b16 %v2452_v35, %v2451_v34 }
 0x3a7   : > { %2477 = vmatpush.bf16.msra.mxu0 %v2456_v37 }
 0x3a9   : > { %v1577_v49 = vpop.permute.xlu0 %1576 }
 0x3aa   : > { %v1583_v62 = vpop.permute.xlu1 %1582  ;;  %v2600_v20 = vunpack.c.l.b16 %v1577_v49  ;;  %v6160_v49 = vunpack.c.h.bf16 %v6208_v31 }
 0x3ab   : > { %v2603_v9 = vunpack.c.l.b16 %v1583_v62  ;;  %v2528_v62 = vunpack.c.l.b16 %v8027_v50  ;;  %v6217_v50 = vld [vmem:[%s7563_s1 + $0x68] sm:$0xff]  }
 0x3ac   : > { %v2607_v27 = vpack.c.b16 %v2600_v20, %v2599_v6  ;;  %v8130_v20 = vpop.f32.mrf.mxu3  ;;  %v6196_v6 = vunpack.c.h.bf16 %v6217_v50 }
 0x3af   : > { %5690 = vmatmul.msk.bf16.gmra.mxu1 %vm1678_vm9, %v1818_v43 }
 0x3b1   : > { %v8066_v45 = vpop.permute.xlu0 %1562 }
 0x3b2   : > { %v1585_v25 = vpop.permute.xlu1 %1584  ;;  %v2524_v55 = vunpack.c.l.b16 %v8066_v45 }
 0x3b3   : > { %v2604_v3 = vunpack.c.l.b16 %v1585_v25 }
 0x3b5   : > { %v2609_v47 = vpack.c.b16 %v2604_v3, %v2603_v9 }
 0x3b9   : > { %v8068_v42 = vpop.permute.xlu0 %1564 }
 0x3ba   : > { %v1477_v51 = vpop.permute.xlu1 %1476 }
 0x3bb   : > { %v1893_v16 = vunpack.c.l.b16 %v1477_v51  ;;  %v2525_v51 = vunpack.c.l.b16 %v8068_v42 }
 0x3bd   : > { %v1897_v56 = vpack.c.b16 %v1893_v16, %v1892_v53  ;;  %v2531_v16 = vpack.c.b16 %v2525_v51, %v2524_v55 }
 0x3bf   : > { %5691 = vmatmul.msk.bf16.gmra.mxu1 %vm1678_vm9, %v1819_v38  ;;  %5696 = vmatmul.msk.bf16.gmra.mxu2 %vm1678_vm9, %v1897_v56  ;;  %v6195_v56 = vunpack.c.l.bf16 %v6217_v50 }
 0x3c1   : > { %v8074_v14 = vpop.permute.xlu0 %1558 }
 0x3c2   : > { %v1553_v57 = vpop.permute.xlu1 %1552 }
 0x3c3   : > { %v2450_v59 = vunpack.c.l.b16 %v1553_v57 }
 0x3c5   : > { %v2455_v39 = vpack.c.b16 %v2450_v59, %v2449_v58  ;;  %v6209_v59 = vld [vmem:[%s7563_s1 + $0x28] sm:$0xff]  }
 0x3c7   : > { %2478 = vmatpush.bf16.msra.mxu0 %v2455_v39  ;;  %v6164_v39 = vunpack.c.h.bf16 %v6209_v59 }
 0x3c9   : > { %v1589_v1 = vpop.permute.xlu0 %1588 }
 0x3ca   : > { %v1579_v2 = vpop.permute.xlu1 %1578  ;;  %v2606_v33 = vunpack.c.l.b16 %v1589_v1  ;;  %v6212_v1 = vld [vmem:[%s7563_s1 + $0x40] sm:$0xff]  }
 0x3cb   : > { %v2601_v7 = vunpack.c.l.b16 %v1579_v2 }
 0x3cc   : > { %v2610_v4 = vpack.c.b16 %v2606_v33, %v2605_v12  ;;  %v6175_v12 = vunpack.c.l.bf16 %v6212_v1 }
 0x3cd   : > { %v2608_v63 = vpack.c.b16 %v2602_v11, %v2601_v7  ;;  %v6213_v7 = vld [vmem:[%s7563_s1 + $0x48] sm:$0xff]   ;;  %v6163_v11 = vunpack.c.l.bf16 %v6209_v59 }
 0x3ce   : > { %2631 = vmatpush.bf16.msra.mxu2 %v2610_v4  ;;  %v6176_v4 = vunpack.c.h.bf16 %v6212_v1 }
 0x3cf   : > { %5692 = vmatmul.msk.bf16.gmra.mxu1 %vm1678_vm9, %v1820_v61 }
 0x3d2   : > { %v1549_v13 = vpop.permute.xlu1 %1548  ;;  %2632 = vmatpush.bf16.msra.mxu2 %v2609_v47 }
 0x3d3   : > { %v2448_v36 = vunpack.c.l.b16 %v1549_v13 }
 0x3d5   : > { %v2454_v48 = vpack.c.b16 %v2448_v36, %v2447_v17  ;;  %v6179_v36 = vunpack.c.l.bf16 %v6213_v7 }
 0x3d6   : > { %2633 = vmatpush.bf16.msra.mxu2 %v2608_v63 }
 0x3d7   : > { %2479 = vmatpush.bf16.msra.mxu0 %v2454_v48 }
 0x3d9   : > { %v1943_v5 = vpop.f32.mrf.mxu2 }
 0x3da   : > { %v1543_v29 = vpop.permute.xlu1 %1542  ;;  %v8086_v52 = vadd.f32 %v6191_v23, %v1943_v5  ;;  %2634 = vmatpush.bf16.msra.mxu2 %v2607_v27  ;;  %v6180_v5 = vunpack.c.h.bf16 %v6213_v7 }
 0x3db   : > { %v2445_v32 = vunpack.c.l.b16 %v1543_v29 }
 0x3dc   : > { %v2036_v54 = vsel %vm1963_vm10, %v8086_v52, -inf }
 0x3dd   : > { %v2453_v34 = vpack.c.b16 %v2446_v30, %v2445_v32  ;;  %v1789_v18 = vpop.f32.mrf.mxu0  ;;  %2037 = vmax.xlane.f32.xlu2 %v2036_v54  ;;  %v1724_v54 = vpop.f32.mrf.mxu3 }
 0x3de   : > { %v8091_v35 = vadd.f32 %v6159_v15, %v1789_v18  ;;  %v6210_v15 = vld [vmem:[%s7563_s1 + $0x30] sm:$0xff]  }
 0x3df   : > { %2480 = vmatpush.bf16.msra.mxu0 %v2453_v34  ;;  %v6214_v34 = vld [vmem:[%s7563_s1 + $0x50] sm:$0xff]   ;;  %v6167_v18 = vunpack.c.l.bf16 %v6210_v15 }
 0x3e0   : > { %v1988_v37 = vsel %vm1963_vm10, %v8091_v35, -inf }
 0x3e1   : > { %1989 = vmax.xlane.f32.xlu0 %v1988_v37  ;;  %v1945_v53 = vpop.f32.mrf.mxu2 }
 0x3e2   : > { %v1573_v26 = vpop.permute.xlu1 %1572  ;;  %v8119_v61 = vadd.f32 %v6192_v44, %v1945_v53  ;;  %v6168_v44 = vunpack.c.h.bf16 %v6210_v15 }
 0x3e3   : > { %v2529_v24 = vunpack.c.l.b16 %v1573_v26 }
 0x3e4   : > { %v2039_v17 = vsel %vm1963_vm10, %v8119_v61, -inf }
 0x3e5   : > { %v2533_v41 = vpack.c.b16 %v2529_v24, %v2528_v62  ;;  %v1791_v43 = vpop.f32.mrf.mxu0  ;;  %v6183_v62 = vunpack.c.l.bf16 %v6214_v34 }
 0x3e6   : > { %v8096_v25 = vadd.f32 %v6160_v49, %v1791_v43 }
 0x3e7   : > { %2554 = vmatpush.bf16.msra.mxu1 %v2533_v41  ;;  %v8151_v41 = vld [vmem:[%s7563_s1 + $0x18] sm:$0xff]  }
 0x3e8   : > { %v1991_v46 = vsel %vm1963_vm10, %v8096_v25, -inf  ;;  %v6155_v55 = vunpack.c.l.bf16 %v8151_v41 }
 0x3e9   : > { %1992 = vmax.xlane.f32.xlu2 %v1991_v46  ;;  %v6218_v46 = vld [vmem:[%s7563_s1 + $0x70] sm:$0xff]  }
 0x3ea   : > { %v6200_v1 = vunpack.c.h.bf16 %v6218_v46 }
 0x3eb   : > { %2555 = vmatpush.bf16.msra.mxu1 %v8056_v28 }
 0x3ed   : > { %v1794_v38 = vpop.f32.mrf.mxu0 }
 0x3ee   : > { %v8128_v10 = vadd.f32 %v6163_v11, %v1794_v38  ;;  %v1727_v38 = vpop.f32.mrf.mxu3 }
 0x3ef   : > { %2556 = vmatpush.bf16.msra.mxu1 %v2531_v16  ;;  %v8161_v59 = vadd.f32 %v6155_v55, %v1727_v38 }
 0x3f0   : > { %v1994_v23 = vsel %vm1963_vm10, %v8128_v10, -inf }
 0x3f2   : > { %v1948_v57 = vpop.f32.mrf.mxu2 }
 0x3f3   : > { %v8104_v58 = vadd.f32 %v6195_v56, %v1948_v57  ;;  %v6199_v56 = vunpack.c.l.bf16 %v6218_v46  ;;  %v6184_v57 = vunpack.c.h.bf16 %v6214_v34 }
 0x3f4   : > { %v8204_v38 = vpop.xlane.xlu0 %1968 }
 0x3f5   : > { %v2042_v42 = vsel %vm1963_vm10, %v8104_v58, -inf  ;;  %v1796_v0 = vpop.f32.mrf.mxu0 }
 0x3f6   : > { %2043 = vmax.xlane.f32.xlu2 %v2042_v42  ;;  %v8109_v45 = vadd.f32 %v6164_v39, %v1796_v0 }
 0x3f8   : > { %v1997_v28 = vsel %vm1963_vm10, %v8109_v45, -inf }
 0x3fa   : > { %v1950_v27 = vpop.f32.mrf.mxu2 }
 0x3fb   : > { %v8138_v29 = vadd.f32 %v6196_v6, %v1950_v27 }
 0x3fd   : > { %v2045_v26 = vsel %vm1963_vm10, %v8138_v29, -inf  ;;  %v1799_v49 = vpop.f32.mrf.mxu0 }
 0x3fe   : > { %1998 = vmax.xlane.f32.xlu2 %v1997_v28  ;;  %v8148_v24 = vadd.f32 %v6167_v18, %v1799_v49  ;;  %v6215_v28 = vld [vmem:[%s7563_s1 + $0x58] sm:$0xff]  }
 0x3ff   : > { %v6187_v7 = vunpack.c.l.bf16 %v6215_v28  ;;  %v6211_v49 = vld [vmem:[%s7563_s1 + $0x38] sm:$0xff]  }
 0x400   : > { %v2000_v50 = vsel %vm1963_vm10, %v8148_v24, -inf }
 0x40a   : > { %v1953_v53 = vpop.f32.mrf.mxu2 }
 0x40b   : > { %v8163_v39 = vadd.f32 %v6199_v56, %v1953_v53  ;;  %v6171_v53 = vunpack.c.l.bf16 %v6211_v49 }
 0x41c   : > { %v1866_v2 = vpop.f32.mrf.mxu1 }
 0x41d   : > { %v8114_v33 = vadd.f32 %v6175_v12, %v1866_v2  ;;  %v1982_v12 = vsel %vm1963_vm10, %v8161_v59, -inf }
 0x41f   : > { %v2012_v3 = vsel %vm1963_vm10, %v8114_v33, -inf }
 0x420   : > { %2013 = vmax.xlane.f32.xlu1 %v2012_v3  ;;  %v1955_v3 = vpop.f32.mrf.mxu2 }
 0x421   : > { %v8174_v11 = vadd.f32 %v6200_v1, %v1955_v3  ;;  %v6172_v1 = vunpack.c.h.bf16 %v6211_v49 }
 0x423   : > { %v2051_v27 = vsel %vm1963_vm10, %v8174_v11, -inf }
 0x424   : > { %v1868_v9 = vpop.f32.mrf.mxu1 }
 0x425   : > { %v8121_v47 = vadd.f32 %v6176_v4, %v1868_v9  ;;  %v2048_v4 = vsel %vm1963_vm10, %v8163_v39, -inf  ;;  %v1801_v9 = vpop.f32.mrf.mxu0 }
 0x427   : > { %v2015_v13 = vsel %vm1963_vm10, %v8121_v47, -inf }
 0x428   : > { %2016 = vmax.xlane.f32.xlu0 %v2015_v13  ;;  %2040 = vmax.xlane.f32.xlu1 %v2039_v17  ;;  %v8176_v13 = vpop.xlane.xlu2 %1974  ;;  %v8178_v17 = vadd.f32 %v6168_v44, %v1801_v9 }
 0x42a   : > { %v2003_v34 = vsel %vm1963_vm10, %v8178_v17, -inf }
 0x42c   : > { %v1871_v63 = vpop.f32.mrf.mxu1 }
 0x42d   : > { %v8132_v48 = vadd.f32 %v6179_v36, %v1871_v63  ;;  %v6219_v36 = vld [vmem:[%s7563_s1 + $0x78] sm:$0xff]  }
 0x42f   : > { %v2018_v31 = vsel %vm1963_vm10, %v8132_v48, -inf }
 0x430   : > { %1995 = vmax.xlane.f32.xlu0 %v1994_v23  ;;  %2019 = vmax.xlane.f32.xlu1 %v2018_v31  ;;  %v8184_v23 = vld [vmem:[%s7563_s1 + $0x10] sm:$0xff]   ;;  %v6203_v31 = vunpack.c.l.bf16 %v6219_v36 }
 0x431   : > { %v6152_v15 = vunpack.c.h.bf16 %v8184_v23 }
 0x434   : > { %v1873_v30 = vpop.f32.mrf.mxu1 }
 0x435   : > { %v8141_v32 = vadd.f32 %v6180_v5, %v1873_v30 }
 0x437   : > { %v2021_v37 = vsel %vm1963_vm10, %v8141_v32, -inf }
 0x438   : > { %2022 = vmax.xlane.f32.xlu0 %v2021_v37  ;;  %2046 = vmax.xlane.f32.xlu1 %v2045_v26  ;;  %v8195_v37 = vadd.f32 %v6152_v15, %v1724_v54 }
 0x43c   : > { %v1876_v43 = vpop.f32.mrf.mxu1 }
 0x43d   : > { %v8154_v51 = vadd.f32 %v6183_v62, %v1876_v43  ;;  %v1804_v62 = vpop.f32.mrf.mxu0  ;;  %v6188_v43 = vunpack.c.h.bf16 %v6215_v28 }
 0x43e   : > { %v8206_v54 = vadd.f32 %v6171_v53, %v1804_v62  ;;  %v1966_v62 = vpop.xlane.xlu1 %1965  ;;  %v6156_v53 = vunpack.c.h.bf16 %v8151_v41 }
 0x43f   : > { %v2024_v16 = vsel %vm1963_vm10, %v8154_v51, -inf }
 0x440   : > { %2001 = vmax.xlane.f32.xlu0 %v2000_v50  ;;  %2025 = vmax.xlane.f32.xlu2 %v2024_v16  ;;  %v1979_v50 = vsel %vm1963_vm10, %v8195_v37, -inf }
 0x442   : > { %v1958_v30 = vpop.f32.mrf.mxu2 }
 0x443   : > { %v8193_v18 = vadd.f32 %v6203_v31, %v1958_v30 }
 0x444   : > { %v1878_v42 = vpop.f32.mrf.mxu1 }
 0x445   : > { %v8165_v0 = vadd.f32 %v6184_v57, %v1878_v42  ;;  %v2054_v46 = vsel %vm1963_vm10, %v8193_v18, -inf }
 0x447   : > { %v2027_v2 = vsel %vm1963_vm10, %v8165_v0, -inf }
 0x448   : > { %1983 = vmax.xlane.f32.xlu0 %v1982_v12  ;;  %2028 = vmax.xlane.f32.xlu1 %v2027_v2  ;;  %v2006_v12 = vsel %vm1963_vm10, %v8206_v54, -inf  ;;  %v1806_v2 = vpop.f32.mrf.mxu0 }
 0x449   : > { %2049 = vmax.xlane.f32.xlu2 %v2048_v4  ;;  %v8213_v44 = vadd.f32 %v6172_v1, %v1806_v2 }
 0x44a   : > { %v1960_v31 = vpop.f32.mrf.mxu2 }
 0x44c   : > { %v1881_v63 = vpop.f32.mrf.mxu1 }
 0x44d   : > { %v8181_v6 = vadd.f32 %v6187_v7, %v1881_v63  ;;  %v2009_v7 = vsel %vm1963_vm10, %v8213_v44, -inf }
 0x44f   : > { %v2030_v5 = vsel %vm1963_vm10, %v8181_v6, -inf }
 0x450   : > { %2052 = vmax.xlane.f32.xlu1 %v2051_v27  ;;  %2031 = vmax.xlane.f32.xlu0 %v2030_v5  ;;  %v2038_v26 = vpop.xlane.xlu2 %2037 }
 0x451   : > { %2004 = vmax.xlane.f32.xlu2 %v2003_v34  ;;  %v2084_v15 = vsub.f32 %v8086_v52, %v2038_v26  ;;  %v6151_v52 = vunpack.c.l.bf16 %v8184_v23  ;;  %v8238_v26 = vpop.xlane.xlu1 %1971 }
 0x454   : > { %v1883_v55 = vpop.f32.mrf.mxu1  ;;  %v1990_v3 = vpop.xlane.xlu0 %1989 }
 0x455   : > { %v8202_v16 = vadd.f32 %v6188_v43, %v1883_v55  ;;  %v2068_v9 = vsub.f32 %v8091_v35, %v1990_v3 }
 0x457   : > { %v2033_v28 = vsel %vm1963_vm10, %v8202_v16, -inf  ;;  %v2108_v27 = vmul.f32 1.442695, %v2068_v9 }
 0x458   : > { %2055 = vmax.xlane.f32.xlu0 %v2054_v46  ;;  %v8241_v46 = vadd.f32 %v6151_v52, %v8130_v20 }
 0x459   : > { %1980 = vmax.xlane.f32.xlu2 %v1979_v50 }
 0x45a   : > { %v1976_v50 = vsel %vm1963_vm10, %v8241_v46, -inf }
 0x45c   : > { %v1993_v56 = vpop.xlane.xlu2 %1992 }
 0x45d   : > { %v2069_v57 = vsub.f32 %v8096_v25, %v1993_v56  ;;  %v6204_v25 = vunpack.c.h.bf16 %v6219_v36  ;;  %v2140_v36 = vmul.f32 1.442695, %v2084_v15  ;;  %v1729_v56 = vpop.f32.mrf.mxu3 }
 0x45f   : > { %v2110_v42 = vmul.f32 1.442695, %v2069_v57  ;;  %v8224_v5 = vadd.f32 %v6204_v25, %v1960_v31 }
 0x460   : > { %2034 = vmax.xlane.f32.xlu0 %v2033_v28  ;;  %v8247_v28 = vadd.f32 %v6156_v53, %v1729_v56  ;;  %v2061_v56 = vsub.f32 %v8017_v40, %v8204_v38 }
 0x461   : > { %6477 = vpow2.f32 %v2110_v42  ;;  %2007 = vmax.xlane.f32.xlu2 %v2006_v12  ;;  %v2057_v35 = vsel %vm1963_vm10, %v8224_v5, -inf }
 0x462   : > { %6479 = vpow2.f32 %v2108_v27  ;;  %v1985_v20 = vsel %vm1963_vm10, %v8247_v28, -inf }
 0x463   : > { %6481 = vpow2.f32 %v2140_v36 }
 0x467   : > { %v8215_v4 = vpop.eup %6477 }
 0x468   : > { %v2183_v63 = vsel %vm1963_vm10, %v8215_v4, 0.0  ;;  %v8229_v30 = vpop.eup %6479 }
 0x469   : > { %2010 = vmax.xlane.f32.xlu2 %v2009_v7  ;;  %2184 = vadd.xlane.f32.xlu0 %v2183_v63  ;;  %v2180_v34 = vsel %vm1963_vm10, %v8229_v30, 0.0  ;;  %v8233_v49 = vpop.eup %6481  ;;  %v2044_v43 = vpop.xlane.xlu2 %2043 }
 0x46a   : > { %1560 = vrot.lane.b32.xlu1 %v7866_v22, %s7179_s14  ;;  %v2228_v22 = vsel %vm1963_vm10, %v8233_v49, 0.0 }
 0x471   : > { %2058 = vmax.xlane.f32.xlu2 %v2057_v35  ;;  %v1999_v23 = vpop.xlane.xlu2 %1998 }
 0x472   : > { %v2071_v1 = vsub.f32 %v8109_v45, %v1999_v23  ;;  %v2060_v45 = vsub.f32 %v8047_v19, %v1966_v62  ;;  %v2086_v19 = vsub.f32 %v8104_v58, %v2044_v43 }
 0x474   : > { %v2114_v9 = vmul.f32 1.442695, %v2071_v1  ;;  %v2092_v35 = vmul.f32 1.442695, %v2060_v45 }
 0x479   : > { %2181 = vadd.xlane.f32.xlu2 %v2180_v34 }
 0x481   : > { %2229 = vadd.xlane.f32.xlu2 %v2228_v22 }
 0x493   : > { %v2014_v55 = vpop.xlane.xlu1 %2013 }
 0x494   : > { %v2076_v57 = vsub.f32 %v8114_v33, %v2014_v55  ;;  %1977 = vmax.xlane.f32.xlu1 %v1976_v50 }
 0x496   : > { %v2124_v42 = vmul.f32 1.442695, %v2076_v57 }
 0x498   : > { %6483 = vpow2.f32 %v2124_v42 }
 0x49b   : > { %v2041_v12 = vpop.xlane.xlu1 %2040  ;;  %v2017_v41 = vpop.xlane.xlu0 %2016 }
 0x49c   : > { %v2085_v2 = vsub.f32 %v8119_v61, %v2041_v12  ;;  %1986 = vmax.xlane.f32.xlu1 %v1985_v20  ;;  %v2077_v3 = vsub.f32 %v8121_v47, %v2017_v41 }
 0x49e   : > { %v2142_v33 = vmul.f32 1.442695, %v2085_v2  ;;  %v2126_v25 = vmul.f32 1.442695, %v2077_v3  ;;  %v8254_v7 = vpop.eup %6483 }
 0x49f   : > { %v2204_v31 = vsel %vm1963_vm10, %v8254_v7, 0.0 }
 0x4a0   : > { %6485 = vpow2.f32 %v2142_v33 }
 0x4a1   : > { %6487 = vpow2.f32 %v2126_v25 }
 0x4a2   : > { %6489 = vpow2.f32 %v2114_v9 }
 0x4a3   : > { %v2020_v63 = vpop.xlane.xlu1 %2019  ;;  %v1996_v27 = vpop.xlane.xlu0 %1995 }
 0x4a4   : > { %v2078_v61 = vsub.f32 %v8132_v48, %v2020_v63  ;;  %2205 = vadd.xlane.f32.xlu1 %v2204_v31  ;;  %v2070_v47 = vsub.f32 %v8128_v10, %v1996_v27  ;;  %v2144_v10 = vmul.f32 1.442695, %v2086_v19 }
 0x4a6   : > { %v8261_v15 = vpop.eup %6485  ;;  %v2128_v36 = vmul.f32 1.442695, %v2078_v61  ;;  %v2112_v34 = vmul.f32 1.442695, %v2070_v47 }
 0x4a7   : > { %v8263_v22 = vpop.eup %6487  ;;  %v2231_v62 = vsel %vm1963_vm10, %v8261_v15, 0.0 }
 0x4a8   : > { %v8268_v52 = vpop.eup %6489  ;;  %6491 = vpow2.f32 %v2128_v36  ;;  %2232 = vadd.xlane.f32.xlu0 %v2231_v62  ;;  %v2207_v48 = vsel %vm1963_vm10, %v8263_v22, 0.0 }
 0x4a9   : > { %6493 = vpow2.f32 %v2112_v34  ;;  %2208 = vadd.xlane.f32.xlu2 %v2207_v48  ;;  %v2189_v53 = vsel %vm1963_vm10, %v8268_v52, 0.0 }
 0x4aa   : > { %6495 = vpow2.f32 %v2092_v35 }
 0x4ab   : > { %v2023_v55 = vpop.xlane.xlu0 %2022  ;;  %v2047_v50 = vpop.xlane.xlu1 %2046  ;;  %6497 = vpow2.f32 %v2144_v10 }
 0x4ac   : > { %2190 = vadd.xlane.f32.xlu1 %v2189_v53  ;;  %v2079_v58 = vsub.f32 %v8141_v32, %v2023_v55  ;;  %v2087_v23 = vsub.f32 %v8138_v29, %v2047_v50  ;;  %v2094_v32 = vmul.f32 1.442695, %v2061_v56 }
 0x4ae   : > { %v8275_v43 = vpop.eup %6491  ;;  %v2130_v57 = vmul.f32 1.442695, %v2079_v58  ;;  %v2146_v41 = vmul.f32 1.442695, %v2087_v23  ;;  %v2062_v23 = vsub.f32 %v8058_v8, %v8238_v26 }
 0x4af   : > { %v8279_v42 = vpop.eup %6493  ;;  %v2210_v1 = vsel %vm1963_vm10, %v8275_v43, 0.0 }
 0x4b0   : > { %v8284_v12 = vpop.eup %6495  ;;  %v2186_v20 = vsel %vm1963_vm10, %v8279_v42, 0.0  ;;  %6499 = vpow2.f32 %v2130_v57 }
 0x4b1   : > { %2211 = vadd.xlane.f32.xlu2 %v2210_v1  ;;  %2187 = vadd.xlane.f32.xlu0 %v2186_v20  ;;  %v2156_v40 = vsel %vm1963_vm10, %v8284_v12, 0.0  ;;  %v8290_v29 = vpop.eup %6497  ;;  %6501 = vpow2.f32 %v2094_v32  ;;  %v2096_v32 = vmul.f32 1.442695, %v2062_v23 }
 0x4b2   : > { %6503 = vpow2.f32 %v2146_v41  ;;  %v2234_v25 = vsel %vm1963_vm10, %v8290_v29, 0.0 }
 0x4b3   : > { %v2026_v38 = vpop.xlane.xlu2 %2025  ;;  %v2002_v2 = vpop.xlane.xlu0 %2001 }
 0x4b4   : > { %2157 = vadd.xlane.f32.xlu1 %v2156_v40  ;;  %v2080_v9 = vsub.f32 %v8154_v51, %v2026_v38  ;;  %v2072_v33 = vsub.f32 %v8148_v24, %v2002_v2 }
 0x4b6   : > { %v8292_v3 = vpop.eup %6499  ;;  %v2132_v63 = vmul.f32 1.442695, %v2080_v9  ;;  %v2116_v47 = vmul.f32 1.442695, %v2072_v33 }
 0x4b7   : > { %v2213_v45 = vsel %vm1963_vm10, %v8292_v3, 0.0  ;;  %v8302_v61 = vpop.eup %6501 }
 0x4b8   : > { %v8304_v36 = vpop.eup %6503  ;;  %6505 = vpow2.f32 %v2132_v63  ;;  %v2159_v19 = vsel %vm1963_vm10, %v8302_v61, 0.0 }
 0x4b9   : > { %2235 = vadd.xlane.f32.xlu2 %v2234_v25  ;;  %2214 = vadd.xlane.f32.xlu0 %v2213_v45  ;;  %6507 = vpow2.f32 %v2116_v47  ;;  %v2237_v62 = vsel %vm1963_vm10, %v8304_v36, 0.0 }
 0x4bb   : > { %v2029_v31 = vpop.xlane.xlu1 %2028  ;;  %v8300_v27 = vpop.xlane.xlu0 %1983 }
 0x4bc   : > { %v2050_v35 = vpop.xlane.xlu2 %2049  ;;  %v2081_v51 = vsub.f32 %v8165_v0, %v2029_v31 }
 0x4bd   : > { %v2088_v24 = vsub.f32 %v8163_v39, %v2050_v35  ;;  %v2063_v35 = vsub.f32 %v8030_v60, %v8176_v13 }
 0x4be   : > { %v2134_v48 = vmul.f32 1.442695, %v2081_v51  ;;  %v8313_v50 = vpop.eup %6505 }
 0x4bf   : > { %v2148_v34 = vmul.f32 1.442695, %v2088_v24  ;;  %v8316_v58 = vpop.eup %6507 }
 0x4c1   : > { %6509 = vpow2.f32 %v2148_v34  ;;  %2160 = vadd.xlane.f32.xlu2 %v2159_v19  ;;  %2238 = vadd.xlane.f32.xlu0 %v2237_v62  ;;  %v2098_v62 = vmul.f32 1.442695, %v2063_v35 }
 0x4c2   : > { %6511 = vpow2.f32 %v2134_v48 }
 0x4c3   : > { %v2053_v10 = vpop.xlane.xlu1 %2052  ;;  %v2032_v53 = vpop.xlane.xlu0 %2031 }
 0x4c4   : > { %v2089_v55 = vsub.f32 %v8174_v11, %v2053_v10  ;;  %v2005_v39 = vpop.xlane.xlu2 %2004  ;;  %v2216_v11 = vsel %vm1963_vm10, %v8313_v50, 0.0  ;;  %v2082_v60 = vsub.f32 %v8181_v6, %v2032_v53 }
 0x4c5   : > { %v2073_v0 = vsub.f32 %v8178_v17, %v2005_v39  ;;  %v2192_v17 = vsel %vm1963_vm10, %v8316_v58, 0.0 }
 0x4c6   : > { %v2150_v56 = vmul.f32 1.442695, %v2089_v55 }
 0x4c7   : > { %v8318_v57 = vpop.eup %6509  ;;  %v2118_v1 = vmul.f32 1.442695, %v2073_v0 }
 0x4c8   : > { %6513 = vpow2.f32 %v2150_v56  ;;  %v2240_v20 = vsel %vm1963_vm10, %v8318_v57, 0.0  ;;  %v8329_v26 = vpop.eup %6511 }
 0x4c9   : > { %6515 = vpow2.f32 %v2118_v1  ;;  %2241 = vadd.xlane.f32.xlu1 %v2240_v20  ;;  %2217 = vadd.xlane.f32.xlu0 %v2216_v11  ;;  %v2219_v25 = vsel %vm1963_vm10, %v8329_v26, 0.0  ;;  %v2136_v1 = vmul.f32 1.442695, %v2082_v60 }
 0x4ca   : > { %2193 = vadd.xlane.f32.xlu2 %v2192_v17  ;;  %6517 = vpow2.f32 %v2096_v32 }
 0x4cb   : > { %v2056_v41 = vpop.xlane.xlu0 %2055 }
 0x4cc   : > { %v1981_v40 = vpop.xlane.xlu2 %1980  ;;  %v2090_v8 = vsub.f32 %v8193_v18, %v2056_v41 }
 0x4cd   : > { %v2065_v6 = vsub.f32 %v8195_v37, %v1981_v40 }
 0x4ce   : > { %v8331_v38 = vpop.eup %6513  ;;  %v2152_v2 = vmul.f32 1.442695, %v2090_v8 }
 0x4cf   : > { %v8333_v9 = vpop.eup %6515  ;;  %v2243_v33 = vsel %vm1963_vm10, %v8331_v38, 0.0 }
 0x4d0   : > { %6519 = vpow2.f32 %v2152_v2  ;;  %v2195_v45 = vsel %vm1963_vm10, %v8333_v9, 0.0  ;;  %v8341_v63 = vpop.eup %6517  ;;  %v2102_v2 = vmul.f32 1.442695, %v2065_v6 }
 0x4d1   : > { %2220 = vadd.xlane.f32.xlu1 %v2219_v25  ;;  %2196 = vadd.xlane.f32.xlu0 %v2195_v45  ;;  %v2162_v34 = vsel %vm1963_vm10, %v8341_v63, 0.0  ;;  %v2066_v25 = vsub.f32 %v8161_v59, %v8300_v27 }
 0x4d2   : > { %2244 = vadd.xlane.f32.xlu2 %v2243_v33 }
 0x4d3   : > { %v2035_v19 = vpop.xlane.xlu0 %2034 }
 0x4d4   : > { %v2008_v18 = vpop.xlane.xlu2 %2007  ;;  %v2083_v17 = vsub.f32 %v8202_v16, %v2035_v19 }
 0x4d5   : > { %v2074_v31 = vsub.f32 %v8206_v54, %v2008_v18  ;;  %v2522_v54 = vunpack.c.l.b16 %v8074_v14 }
 0x4d6   : > { %v8344_v47 = vpop.eup %6519 }
 0x4d7   : > { %v2120_v24 = vmul.f32 1.442695, %v2074_v31  ;;  %v2246_v51 = vsel %vm1963_vm10, %v8344_v47, 0.0 }
 0x4d9   : > { %6521 = vpow2.f32 %v2120_v24  ;;  %2163 = vadd.xlane.f32.xlu0 %v2162_v34  ;;  %v2104_v24 = vmul.f32 1.442695, %v2066_v25 }
 0x4da   : > { %2247 = vadd.xlane.f32.xlu2 %v2246_v51  ;;  %6523 = vpow2.f32 %v2098_v62 }
 0x4dc   : > { %v1561_v48 = vpop.permute.xlu1 %1560  ;;  %v2011_v10 = vpop.xlane.xlu2 %2010 }
 0x4dd   : > { %v2523_v55 = vunpack.c.l.b16 %v1561_v48  ;;  %v2075_v39 = vsub.f32 %v8213_v44, %v2011_v10  ;;  %v2185_v20 = vpop.xlane.xlu0 %2184 }
 0x4df   : > { %v8355_v13 = vpop.eup %6521  ;;  %v2530_v0 = vpack.c.b16 %v2523_v55, %v2522_v54  ;;  %v2122_v56 = vmul.f32 1.442695, %v2075_v39 }
 0x4e0   : > { %v2198_v23 = vsel %vm1963_vm10, %v8355_v13, 0.0  ;;  %v8359_v14 = vpop.eup %6523 }
 0x4e1   : > { %6525 = vpow2.f32 %v2122_v56  ;;  %2199 = vadd.xlane.f32.xlu1 %v2198_v23  ;;  %2557 = vmatpush.bf16.msra.mxu1 %v2530_v0  ;;  %v2165_v41 = vsel %vm1963_vm10, %v8359_v14, 0.0 }
 0x4e2   : > { %6527 = vpow2.f32 %v2136_v1 }
 0x4e3   : > { %6529 = vrcp.f32 %v2185_v20 }
 0x4e4   : > { %v2059_v11 = vpop.xlane.xlu2 %2058 }
 0x4e5   : > { %v2091_v44 = vsub.f32 %v8224_v5, %v2059_v11  ;;  %v2138_v5 = vmul.f32 1.442695, %v2083_v17 }
 0x4e7   : > { %v8363_v53 = vpop.eup %6525  ;;  %v2154_v32 = vmul.f32 1.442695, %v2091_v44 }
 0x4e8   : > { %v2201_v8 = vsel %vm1963_vm10, %v8363_v53, 0.0  ;;  %v8370_v33 = vpop.eup %6527 }
 0x4e9   : > { %6531 = vpow2.f32 %v2154_v32  ;;  %2166 = vadd.xlane.f32.xlu1 %v2165_v41  ;;  %2202 = vadd.xlane.f32.xlu2 %v2201_v8  ;;  %v6530_v40 = vpop.eup %6529  ;;  %v2222_v31 = vsel %vm1963_vm10, %v8370_v33, 0.0 }
 0x4ea   : > { %v2293_v45 = vmul.f32 %v6530_v40, %v8215_v4 }
 0x4ec   : > { %v2182_v37 = vpop.xlane.xlu2 %2181  ;;  %v2325_v34 = vpack.c.bf16 %v2293_v45, %v2293_v45 }
 0x4ed   : > { %6533 = vrcp.f32 %v2182_v37 }
 0x4ee   : > { %6535 = vpow2.f32 %v2102_v2  ;;  %v2434_v4 = vunpack.c.l.b16 %v2325_v34 }
 0x4ef   : > { %v8372_v16 = vpop.eup %6531  ;;  %6537 = vpow2.f32 %v2138_v5 }
 0x4f0   : > { %v2249_v18 = vsel %vm1963_vm10, %v8372_v16, 0.0  ;;  %6539 = vpow2.f32 %v2104_v24 }
 0x4f1   : > { %2250 = vadd.xlane.f32.xlu0 %v2249_v18  ;;  %2223 = vadd.xlane.f32.xlu2 %v2222_v31 }
 0x4f3   : > { %v6534_v35 = vpop.eup %6533 }
 0x4f4   : > { %v8381_v51 = vpop.eup %6535  ;;  %v2292_v19 = vmul.f32 %v6534_v35, %v8229_v30  ;;  %v2230_v11 = vpop.xlane.xlu2 %2229 }
 0x4f5   : > { %v8384_v62 = vpop.eup %6537  ;;  %v2171_v48 = vsel %vm1963_vm10, %v8381_v51, 0.0 }
 0x4f6   : > { %v2324_v59 = vpack.c.bf16 %v2292_v19, %v2292_v19  ;;  %v2225_v10 = vsel %vm1963_vm10, %v8384_v62, 0.0  ;;  %v8391_v55 = vpop.eup %6539 }
 0x4f7   : > { %v2174_v30 = vsel %vm1963_vm10, %v8391_v55, 0.0 }
 0x4f8   : > { %v2433_v27 = vunpack.c.l.b16 %v2324_v59 }
 0x4f9   : > { %2172 = vadd.xlane.f32.xlu2 %v2171_v48  ;;  %2226 = vadd.xlane.f32.xlu0 %v2225_v10 }
 0x4fa   : > { %v2441_v54 = vpack.c.b16 %v2434_v4, %v2433_v27 }
 0x4fc   : > { %5701 = vmatmul.msk.bf16.vlgmr.msra.gmra.mxu0 %vm1963_vm10, %v2441_v54 }
 0x501   : > { %2175 = vadd.xlane.f32.xlu0 %v2174_v30 }
 0x507   : > { %v1978_v39 = vpop.xlane.xlu1 %1977 }
 0x508   : > { %v2064_v60 = vsub.f32 %v8241_v46, %v1978_v39 }
 0x50a   : > { %v2100_v0 = vmul.f32 1.442695, %v2064_v60 }
 0x50c   : > { %6541 = vpow2.f32 %v2100_v0 }
 0x50f   : > { %v1987_v56 = vpop.xlane.xlu1 %1986 }
 0x510   : > { %v2067_v23 = vsub.f32 %v8247_v28, %v1987_v56 }
 0x512   : > { %v8397_v1 = vpop.eup %6541  ;;  %v2106_v20 = vmul.f32 1.442695, %v2067_v23 }
 0x513   : > { %v2168_v44 = vsel %vm1963_vm10, %v8397_v1, 0.0 }
 0x514   : > { %6543 = vpow2.f32 %v2106_v20  ;;  %2169 = vadd.xlane.f32.xlu1 %v2168_v44 }
 0x515   : > { %6545 = vrcp.f32 %v2230_v11 }
 0x517   : > { %v2206_v6 = vpop.xlane.xlu1 %2205 }
 0x518   : > { %6547 = vrcp.f32 %v2206_v6 }
 0x51a   : > { %v8401_v17 = vpop.eup %6543 }
 0x51b   : > { %v2177_v46 = vsel %vm1963_vm10, %v8401_v17, 0.0  ;;  %v2233_v32 = vpop.xlane.xlu0 %2232  ;;  %v6546_v41 = vpop.eup %6545 }
 0x51c   : > { %2178 = vadd.xlane.f32.xlu1 %v2177_v46  ;;  %v2209_v28 = vpop.xlane.xlu2 %2208  ;;  %6549 = vrcp.f32 %v2233_v32  ;;  %v2308_v2 = vmul.f32 %v6546_v41, %v8233_v49 }
 0x51d   : > { %6551 = vrcp.f32 %v2209_v28 }
 0x51e   : > { %v6548_v8 = vpop.eup %6547  ;;  %v2340_v45 = vpack.c.bf16 %v2308_v2, %v2308_v2 }
 0x51f   : > { %v2191_v5 = vpop.xlane.xlu1 %2190  ;;  %v2300_v37 = vmul.f32 %v6548_v8, %v8254_v7 }
 0x520   : > { %6553 = vrcp.f32 %v2191_v5  ;;  %v2587_v27 = vunpack.c.l.b16 %v2340_v45 }
 0x521   : > { %v2332_v31 = vpack.c.bf16 %v2300_v37, %v2300_v37 }
 0x522   : > { %v6550_v40 = vpop.eup %6549 }
 0x523   : > { %v6552_v25 = vpop.eup %6551  ;;  %v2309_v18 = vmul.f32 %v6550_v40, %v8261_v15  ;;  %v2510_v48 = vunpack.c.l.b16 %v2332_v31 }
 0x524   : > { %v2301_v35 = vmul.f32 %v6552_v25, %v8263_v22  ;;  %v2212_v24 = vpop.xlane.xlu2 %2211  ;;  %v2188_v34 = vpop.xlane.xlu0 %2187 }
 0x525   : > { %v2341_v19 = vpack.c.bf16 %v2309_v18, %v2309_v18  ;;  %6555 = vrcp.f32 %v2188_v34 }
 0x526   : > { %v6554_v59 = vpop.eup %6553  ;;  %v2333_v4 = vpack.c.bf16 %v2301_v35, %v2301_v35  ;;  %6557 = vrcp.f32 %v2212_v24 }
 0x527   : > { %v2588_v49 = vunpack.c.l.b16 %v2341_v19  ;;  %v2295_v54 = vmul.f32 %v6554_v59, %v8268_v52  ;;  %v2158_v39 = vpop.xlane.xlu1 %2157 }
 0x528   : > { %v2511_v10 = vunpack.c.l.b16 %v2333_v4 }
 0x529   : > { %v2595_v7 = vpack.c.b16 %v2588_v49, %v2587_v27  ;;  %v2327_v56 = vpack.c.bf16 %v2295_v54, %v2295_v54 }
 0x52a   : > { %v2518_v30 = vpack.c.b16 %v2511_v10, %v2510_v48 }
 0x52b   : > { %5709 = vmatmul.msk.bf16.vlgmr.msra.gmra.mxu2 %vm1963_vm10, %v2595_v7  ;;  %v6556_v15 = vpop.eup %6555  ;;  %v2436_v44 = vunpack.c.l.b16 %v2327_v56 }
 0x52c   : > { %5705 = vmatmul.msk.bf16.vlgmr.msra.gmra.mxu1 %vm1963_vm10, %v2518_v30  ;;  %v2236_v22 = vpop.xlane.xlu2 %2235  ;;  %v2215_v60 = vpop.xlane.xlu0 %2214  ;;  %v2294_v0 = vmul.f32 %v6556_v15, %v8279_v42 }
 0x52d   : > { %v6558_v23 = vpop.eup %6557  ;;  %6559 = vrcp.f32 %v2215_v60 }
 0x52e   : > { %6561 = vrcp.f32 %v2158_v39  ;;  %v2326_v20 = vpack.c.bf16 %v2294_v0, %v2294_v0  ;;  %v2302_v52 = vmul.f32 %v6558_v23, %v8275_v43 }
 0x52f   : > { %6563 = vrcp.f32 %v2236_v22 }
 0x530   : > { %v2435_v11 = vunpack.c.l.b16 %v2326_v20  ;;  %v2334_v8 = vpack.c.bf16 %v2302_v52, %v2302_v52 }
 0x532   : > { %v2442_v6 = vpack.c.b16 %v2436_v44, %v2435_v11  ;;  %v2512_v40 = vunpack.c.l.b16 %v2334_v8 }
 0x533   : > { %v6560_v46 = vpop.eup %6559 }
 0x534   : > { %v2161_v32 = vpop.xlane.xlu2 %2160  ;;  %v2239_v41 = vpop.xlane.xlu0 %2238  ;;  %5702 = vmatmul.msk.bf16.gmra.mxu0 %vm1963_vm10, %v2442_v6  ;;  %v2303_v42 = vmul.f32 %v6560_v46, %v8292_v3 }
 0x535   : > { %v6562_v28 = vpop.eup %6561  ;;  %6565 = vrcp.f32 %v2161_v32 }
 0x536   : > { %v6564_v2 = vpop.eup %6563  ;;  %6567 = vrcp.f32 %v2239_v41  ;;  %v2335_v5 = vpack.c.bf16 %v2303_v42, %v2303_v42  ;;  %v2284_v37 = vmul.f32 %v6562_v28, %v8284_v12 }
 0x537   : > { %v2310_v43 = vmul.f32 %v6564_v2, %v8290_v29 }
 0x538   : > { %v2513_v25 = vunpack.c.l.b16 %v2335_v5  ;;  %v2316_v35 = vpack.c.bf16 %v2284_v37, %v2284_v37 }
 0x539   : > { %v2342_v4 = vpack.c.bf16 %v2310_v43, %v2310_v43 }
 0x53a   : > { %v2519_v18 = vpack.c.b16 %v2513_v25, %v2512_v40  ;;  %v2356_v49 = vunpack.c.l.b16 %v2316_v35 }
 0x53b   : > { %v6566_v45 = vpop.eup %6565  ;;  %v2589_v29 = vunpack.c.l.b16 %v2342_v4 }
 0x53c   : > { %v6568_v31 = vpop.eup %6567  ;;  %v2285_v24 = vmul.f32 %v6566_v45, %v8302_v61  ;;  %v2242_v34 = vpop.xlane.xlu1 %2241  ;;  %5706 = vmatmul.msk.bf16.gmra.mxu1 %vm1963_vm10, %v2519_v18 }
 0x53d   : > { %v2218_v19 = vpop.xlane.xlu0 %2217  ;;  %v2194_v59 = vpop.xlane.xlu2 %2193  ;;  %v2311_v3 = vmul.f32 %v6568_v31, %v8304_v36 }
 0x53e   : > { %v2317_v27 = vpack.c.bf16 %v2285_v24, %v2285_v24  ;;  %6569 = vrcp.f32 %v2218_v19 }
 0x53f   : > { %v2343_v12 = vpack.c.bf16 %v2311_v3, %v2311_v3  ;;  %6571 = vrcp.f32 %v2242_v34 }
 0x540   : > { %v2357_v48 = vunpack.c.l.b16 %v2317_v27  ;;  %6573 = vrcp.f32 %v2194_v59 }
 0x541   : > { %v2590_v10 = vunpack.c.l.b16 %v2343_v12 }
 0x542   : > { %v2364_v7 = vpack.c.b16 %v2357_v48, %v2356_v49 }
 0x543   : > { %v2596_v54 = vpack.c.b16 %v2590_v10, %v2589_v29 }
 0x544   : > { %v2221_v61 = vpop.xlane.xlu1 %2220  ;;  %5697 = vmatmul.msk.bf16.vlgmr.msrb.gmra.mxu3 %vm1963_vm10, %v2364_v7  ;;  %v6570_v39 = vpop.eup %6569 }
 0x545   : > { %v2197_v30 = vpop.xlane.xlu0 %2196  ;;  %6575 = vrcp.f32 %v2221_v61  ;;  %v2245_v15 = vpop.xlane.xlu2 %2244  ;;  %5710 = vmatmul.msk.bf16.gmra.mxu2 %vm1963_vm10, %v2596_v54  ;;  %v2304_v60 = vmul.f32 %v6570_v39, %v8313_v50 }
 0x546   : > { %v6572_v36 = vpop.eup %6571  ;;  %6577 = vrcp.f32 %v2245_v15 }
 0x547   : > { %v6574_v22 = vpop.eup %6573  ;;  %6579 = vrcp.f32 %v2197_v30  ;;  %v2312_v0 = vmul.f32 %v6572_v36, %v8318_v57  ;;  %v2336_v44 = vpack.c.bf16 %v2304_v60, %v2304_v60 }
 0x548   : > { %v2296_v56 = vmul.f32 %v6574_v22, %v8316_v58 }
 0x549   : > { %v2344_v46 = vpack.c.bf16 %v2312_v0, %v2312_v0  ;;  %v2514_v50 = vunpack.c.l.b16 %v2336_v44 }
 0x54a   : > { %v2328_v41 = vpack.c.bf16 %v2296_v56, %v2296_v56 }
 0x54b   : > { %v6576_v23 = vpop.eup %6575  ;;  %v2591_v57 = vunpack.c.l.b16 %v2344_v46 }
 0x54c   : > { %v6578_v20 = vpop.eup %6577  ;;  %v2305_v11 = vmul.f32 %v6576_v23, %v8329_v26  ;;  %v2437_v58 = vunpack.c.l.b16 %v2328_v41 }
 0x54d   : > { %v6580_v52 = vpop.eup %6579  ;;  %v2313_v6 = vmul.f32 %v6578_v20, %v8331_v38  ;;  %v2164_v25 = vpop.xlane.xlu0 %2163 }
 0x54e   : > { %v2297_v32 = vmul.f32 %v6580_v52, %v8333_v9  ;;  %v2337_v28 = vpack.c.bf16 %v2305_v11, %v2305_v11  ;;  %v2248_v43 = vpop.xlane.xlu2 %2247  ;;  %6581 = vrcp.f32 %v2164_v25 }
 0x54f   : > { %v2345_v42 = vpack.c.bf16 %v2313_v6, %v2313_v6 }
 0x550   : > { %v2329_v8 = vpack.c.bf16 %v2297_v32, %v2297_v32  ;;  %v2515_v2 = vunpack.c.l.b16 %v2337_v28 }
 0x551   : > { %v2592_v5 = vunpack.c.l.b16 %v2345_v42 }
 0x552   : > { %v2438_v37 = vunpack.c.l.b16 %v2329_v8  ;;  %v2520_v40 = vpack.c.b16 %v2515_v2, %v2514_v50 }
 0x553   : > { %v2597_v26 = vpack.c.b16 %v2592_v5, %v2591_v57 }
 0x554   : > { %v2200_v45 = vpop.xlane.xlu1 %2199  ;;  %v2443_v18 = vpack.c.b16 %v2438_v37, %v2437_v58  ;;  %5707 = vmatmul.msk.bf16.gmra.mxu1 %vm1963_vm10, %v2520_v40  ;;  %v6582_v31 = vpop.eup %6581 }
 0x555   : > { %5711 = vmatmul.msk.bf16.gmra.mxu2 %vm1963_vm10, %v2597_v26  ;;  %6583 = vrcp.f32 %v2200_v45  ;;  %v2286_v24 = vmul.f32 %v6582_v31, %v8341_v63 }
 0x556   : > { %5703 = vmatmul.msk.bf16.gmra.mxu0 %vm1963_vm10, %v2443_v18 }
 0x557   : > { %v2318_v27 = vpack.c.bf16 %v2286_v24, %v2286_v24 }
 0x559   : > { %v2358_v54 = vunpack.c.l.b16 %v2318_v27 }
 0x55b   : > { %v6584_v35 = vpop.eup %6583 }
 0x55c   : > { %v2167_v38 = vpop.xlane.xlu1 %2166  ;;  %v2203_v9 = vpop.xlane.xlu2 %2202  ;;  %v2298_v34 = vmul.f32 %v6584_v35, %v8355_v13 }
 0x55d   : > { %6585 = vrcp.f32 %v2167_v38 }
 0x55e   : > { %6587 = vrcp.f32 %v2203_v9  ;;  %v2330_v48 = vpack.c.bf16 %v2298_v34, %v2298_v34 }
 0x55f   : > { %6589 = vrcp.f32 %v2248_v43 }
 0x560   : > { %v2439_v63 = vunpack.c.l.b16 %v2330_v48 }
 0x563   : > { %v6586_v19 = vpop.eup %6585 }
 0x564   : > { %v6588_v59 = vpop.eup %6587  ;;  %v2251_v3 = vpop.xlane.xlu0 %2250  ;;  %v2287_v4 = vmul.f32 %v6586_v19, %v8359_v14 }
 0x565   : > { %v2224_v12 = vpop.xlane.xlu2 %2223  ;;  %v2299_v49 = vmul.f32 %v6588_v59, %v8363_v53  ;;  %v6590_v29 = vpop.eup %6589  ;;  %6591 = vrcp.f32 %v2251_v3 }
 0x566   : > { %v2319_v10 = vpack.c.bf16 %v2287_v4, %v2287_v4  ;;  %6593 = vrcp.f32 %v2224_v12  ;;  %v2314_v13 = vmul.f32 %v6590_v29, %v8344_v47 }
 0x567   : > { %v2331_v7 = vpack.c.bf16 %v2299_v49, %v2299_v49 }
 0x568   : > { %v2359_v61 = vunpack.c.l.b16 %v2319_v10  ;;  %v2346_v22 = vpack.c.bf16 %v2314_v13, %v2314_v13 }
 0x569   : > { %v2440_v30 = vunpack.c.l.b16 %v2331_v7 }
 0x56a   : > { %v2365_v39 = vpack.c.b16 %v2359_v61, %v2358_v54  ;;  %v2593_v56 = vunpack.c.l.b16 %v2346_v22  ;;  %v6075_v22 = vld [vmem:[%s7570_s13 + $0x38] sm:$0xff] }
 0x56b   : > { %v2444_v15 = vpack.c.b16 %v2440_v30, %v2439_v63  ;;  %v6592_v36 = vpop.eup %6591  ;;  %2849 = vmatpush.bf16.msra.mxu3 %v6075_v22 }
 0x56c   : > { %5698 = vmatmul.msk.bf16.gmra.mxu3 %vm1963_vm10, %v2365_v39  ;;  %v2227_v14 = vpop.xlane.xlu0 %2226  ;;  %v2315_v53 = vmul.f32 %v6592_v36, %v8372_v16  ;;  %v6594_v60 = vpop.eup %6593 }
 0x56d   : > { %5704 = vmatmul.msk.bf16.gmra.mxu0 %vm1963_vm10, %v2444_v15  ;;  %6595 = vrcp.f32 %v2227_v14  ;;  %v2306_v20 = vmul.f32 %v6594_v60, %v8370_v33  ;;  %v2173_v28 = vpop.xlane.xlu2 %2172  ;;  %v6074_v60 = vld [vmem:[%s7570_s13 + $0x30] sm:$0xff] }
 0x56e   : > { %v2347_v0 = vpack.c.bf16 %v2315_v53, %v2315_v53  ;;  %6597 = vrcp.f32 %v2173_v28  ;;  %v6069_v28 = vld [vmem:[%s7570_s13 + $0x8] sm:$0xff] }
 0x56f   : > { %v2338_v52 = vpack.c.bf16 %v2306_v20, %v2306_v20  ;;  %2850 = vmatpush.bf16.msra.mxu3 %v6074_v60 }
 0x570   : > { %v2594_v23 = vunpack.c.l.b16 %v2347_v0 }
 0x571   : > { %v2516_v32 = vunpack.c.l.b16 %v2338_v52 }
 0x572   : > { %v2598_v11 = vpack.c.b16 %v2594_v23, %v2593_v56 }
 0x573   : > { %v6596_v47 = vpop.eup %6595 }
 0x574   : > { %5712 = vmatmul.msk.bf16.gmra.mxu2 %vm1963_vm10, %v2598_v11  ;;  %v2307_v44 = vmul.f32 %v6596_v47, %v8384_v62  ;;  %v6598_v50 = vpop.eup %6597  ;;  %v2176_v57 = vpop.xlane.xlu0 %2175  ;;  %v6073_v47 = vld [vmem:[%s7570_s13 + $0x28] sm:$0xff] }
 0x575   : > { %v2289_v2 = vmul.f32 %v6598_v50, %v8381_v51  ;;  %2851 = vmatpush.bf16.msra.mxu3 %v6073_v47 }
 0x576   : > { %v2339_v6 = vpack.c.bf16 %v2307_v44, %v2307_v44  ;;  %v6072_v44 = vld [vmem:[%s7570_s13 + $0x20] sm:$0xff] }
 0x577   : > { %v2321_v37 = vpack.c.bf16 %v2289_v2, %v2289_v2 }
 0x578   : > { %v2517_v41 = vunpack.c.l.b16 %v2339_v6 }
 0x579   : > { %v2482_v46 = vpop.f32.mrf.mxu0  ;;  %v2361_v26 = vunpack.c.l.b16 %v2321_v37  ;;  %2852 = vmatpush.bf16.msra.mxu3 %v6072_v44 }
 0x57a   : > { %v2521_v16 = vpack.c.b16 %v2517_v41, %v2516_v32  ;;  %v6071_v32 = vld [vmem:[%s7570_s13 + $0x18] sm:$0xff] }
 0x57c   : > { %5708 = vmatmul.msk.bf16.gmra.mxu1 %vm1963_vm10, %v2521_v16  ;;  %v6070_v16 = vld [vmem:[%s7570_s13 + $0x10] sm:$0xff] }
 0x57d   : > { %2853 = vmatpush.bf16.msra.mxu3 %v6071_v32 }
 0x581   : > { %v2484_v42 = vpop.f32.mrf.mxu0  ;;  %2854 = vmatpush.bf16.msra.mxu3 %v6070_v16 }
 0x582   : > { %v6393_v8 = vpack.i.bf16 %v2484_v42, %v2482_v46  ;;  %v6068_v42 = vld [vmem:[%s7570_s13] sm:$0xff] }
 0x584   : > { %6394 = vrot.lane.b32.xlu2 %v6393_v8, %s7178_s0 }
 0x585   : > { %2855 = vmatpush.bf16.msra.mxu3 %v6069_v28 }
 0x587   : > { %v2170_v33 = vpop.xlane.xlu1 %2169 }
 0x588   : > { %6599 = vrcp.f32 %v2170_v33 }
 0x589   : > { %2856 = vmatpush.bf16.msra.mxu3 %v6068_v42 }
 0x58e   : > { %v6600_v62 = vpop.eup %6599 }
 0x58f   : > { %v2179_v5 = vpop.xlane.xlu1 %2178  ;;  %v2288_v58 = vmul.f32 %v6600_v62, %v8397_v1 }
 0x590   : > { %6601 = vrcp.f32 %v2179_v5 }
 0x591   : > { %v2320_v40 = vpack.c.bf16 %v2288_v58, %v2288_v58  ;;  %6603 = vrcp.f32 %v2176_v57 }
 0x593   : > { %v2360_v25 = vunpack.c.l.b16 %v2320_v40 }
 0x595   : > { %v2366_v43 = vpack.c.b16 %v2361_v26, %v2360_v25 }
 0x596   : > { %v6602_v45 = vpop.eup %6601 }
 0x597   : > { %5699 = vmatmul.msk.bf16.gmra.mxu3 %vm1963_vm10, %v2366_v43  ;;  %v6604_v18 = vpop.eup %6603  ;;  %v2291_v38 = vmul.f32 %v6602_v45, %v8401_v17 }
 0x598   : > { %v2290_v51 = vmul.f32 %v6604_v18, %v8391_v55 }
 0x599   : > { %v2323_v9 = vpack.c.bf16 %v2291_v38, %v2291_v38 }
 0x59a   : > { %v2322_v31 = vpack.c.bf16 %v2290_v51, %v2290_v51 }
 0x59b   : > { %v2363_v35 = vunpack.c.l.b16 %v2323_v9 }
 0x59c   : > { %v2362_v24 = vunpack.c.l.b16 %v2322_v31 }
 0x59e   : > { %v2367_v1 = vpack.c.b16 %v2363_v35, %v2362_v24 }
 0x5a7   : > { %5700 = vmatmul.msk.bf16.gmra.mxu3 %vm1963_vm10, %v2367_v1 }
 0x5a9   : > { %v2559_v34 = vpop.f32.mrf.mxu1 }
 0x5ae   : > { %v2636_v19 = vpop.f32.mrf.mxu2 }
 0x5b1   : > { %v2561_v59 = vpop.f32.mrf.mxu1  ;;  %v2487_v3 = vpop.f32.mrf.mxu0 }
 0x5b2   : > { %v6398_v4 = vpack.i.bf16 %v2561_v59, %v2559_v34 }
 0x5b4   : > { %6399 = vrot.lane.b32.xlu0 %v6398_v4, %s7179_s14 }
 0x5b6   : > { %v2638_v27 = vpop.f32.mrf.mxu2 }
 0x5b7   : > { %v6403_v12 = vpack.i.bf16 %v2638_v27, %v2636_v19 }
 0x5b9   : > { %6404 = vrot.lane.b32.xlu1 %v6403_v12, %s7180_s19  ;;  %v2489_v17 = vpop.f32.mrf.mxu0  ;;  %v2564_v55 = vpop.f32.mrf.mxu1 }
 0x5ba   : > { %v6408_v49 = vpack.i.bf16 %v2489_v17, %v2487_v3 }
 0x5bc   : > { %6409 = vrot.lane.b32.xlu0 %v6408_v49, %s7178_s0 }
 0x5c1   : > { %v2566_v48 = vpop.f32.mrf.mxu1 }
 0x5c2   : > { %v6413_v29 = vpack.i.bf16 %v2566_v48, %v2564_v55 }
 0x5c4   : > { %6414 = vrot.lane.b32.xlu2 %v6413_v29, %s7179_s14 }
 0x5c7   : > { %v2405_v8 = vpop.f32.mrf.mxu3 }
 0x5c8   : > { %v2641_v10 = vpop.f32.mrf.mxu2 }
 0x5cf   : > { %v2407_v58 = vpop.f32.mrf.mxu3 }
 0x5d0   : > { %v2643_v7 = vpop.f32.mrf.mxu2 }
 0x5d1   : > { %v6418_v54 = vpack.i.bf16 %v2643_v7, %v2641_v10  ;;  %v2569_v61 = vpop.f32.mrf.mxu1 }
 0x5d3   : > { %v2492_v63 = vpop.f32.mrf.mxu0  ;;  %6419 = vrot.lane.b32.xlu0 %v6418_v54, %s7180_s19 }
 0x5d8   : > { %v2646_v30 = vpop.f32.mrf.mxu2 }
 0x5d9   : > { %v2571_v13 = vpop.f32.mrf.mxu1 }
 0x5da   : > { %v6428_v39 = vpack.i.bf16 %v2571_v13, %v2569_v61 }
 0x5db   : > { %v2494_v15 = vpop.f32.mrf.mxu0 }
 0x5dc   : > { %v6423_v36 = vpack.i.bf16 %v2494_v15, %v2492_v63  ;;  %6429 = vrot.lane.b32.xlu1 %v6428_v39, %s7179_s14 }
 0x5de   : > { %6424 = vrot.lane.b32.xlu2 %v6423_v36, %s7178_s0  ;;  %v6395_v33 = vpop.permute.xlu2 %6394 }
 0x5df   : > { %v6397_v2 = vunpack.i.h.bf16 %v6395_v33  ;;  %v6396_v62 = vunpack.i.l.bf16 %v6395_v33 }
 0x5e0   : > { %v2648_v14 = vpop.f32.mrf.mxu2 }
 0x5e1   : > { %v6433_v53 = vpack.i.bf16 %v2648_v14, %v2646_v30  ;;  %v2753_v40 = vsel %vm1678_vm9, %v2407_v58, %v6397_v2  ;;  %v2752_v25 = vsel %vm1678_vm9, %v2405_v8, %v6396_v62 }
 0x5e3   : > { %6434 = vrot.lane.b32.xlu0 %v6433_v53, %s7180_s19 }
 0x5ea   : > { %v2497_v0 = vpop.f32.mrf.mxu0 }
 0x5ef   : > { %v2410_v31 = vpop.f32.mrf.mxu3 }
 0x5f2   : > { %v2499_v56 = vpop.f32.mrf.mxu0 }
 0x5f3   : > { %v6438_v23 = vpack.i.bf16 %v2499_v56, %v2497_v0 }
 0x5f5   : > { %6439 = vrot.lane.b32.xlu2 %v6438_v23, %s7178_s0 }
 0x5f7   : > { %v2651_v20 = vpop.f32.mrf.mxu2  ;;  %v2412_v19 = vpop.f32.mrf.mxu3 }
 0x5f9   : > { %v2574_v11 = vpop.f32.mrf.mxu1 }
 0x5ff   : > { %v2653_v52 = vpop.f32.mrf.mxu2 }
 0x600   : > { %v6448_v6 = vpack.i.bf16 %v2653_v52, %v2651_v20 }
 0x601   : > { %v2576_v46 = vpop.f32.mrf.mxu1 }
 0x602   : > { %v6443_v41 = vpack.i.bf16 %v2576_v46, %v2574_v11  ;;  %6449 = vrot.lane.b32.xlu0 %v6448_v6, %s7180_s19 }
 0x604   : > { %6444 = vrot.lane.b32.xlu1 %v6443_v41, %s7179_s14 }
 0x61a   : > { %v2415_v54 = vpop.f32.mrf.mxu3 }
 0x61e   : > { %v6415_v34 = vpop.permute.xlu2 %6414 }
 0x61f   : > { %v6417_v4 = vunpack.i.h.bf16 %v6415_v34  ;;  %v6416_v27 = vunpack.i.l.bf16 %v6415_v34 }
 0x622   : > { %v2417_v36 = vpop.f32.mrf.mxu3 }
 0x626   : > { %v6400_v50 = vpop.permute.xlu0 %6399 }
 0x627   : > { %v6402_v57 = vunpack.i.h.bf16 %v6400_v50  ;;  %v6401_v5 = vunpack.i.l.bf16 %v6400_v50 }
 0x629   : > { %v2761_v45 = vsel %vm1963_vm10, %v2753_v40, %v6402_v57  ;;  %v2760_v18 = vsel %vm1963_vm10, %v2752_v25, %v6401_v5  ;;  %v6455_v40 = vld [vmem:[%s911_s11] ss:$0 sm:$0xff] }
 0x62a   : > { %v2420_v44 = vpop.f32.mrf.mxu3 }
 0x62b   : > { %v6405_v37 = vpop.permute.xlu1 %6404 }
 0x62c   : > { %v6407_v26 = vunpack.i.h.bf16 %v6405_v37  ;;  %v6406_v43 = vunpack.i.l.bf16 %v6405_v37 }
 0x62e   : > { %v2769_v38 = vsel %vm2768_vm11, %v2760_v18, %v6406_v43  ;;  %v2770_v51 = vsel %vm2768_vm11, %v2761_v45, %v6407_v26  ;;  %v6410_v35 = vpop.permute.xlu0 %6409  ;;  %v6687_v43 = vld [vmem:[#allocation2 + $0x30] sm:$0xff] }
 0x62f   : > { %v2777_v9 = vpack.c.bf16 %v2770_v51, %v2769_v38  ;;  %v6412_v24 = vunpack.i.h.bf16 %v6410_v35  ;;  %v6411_v1 = vunpack.i.l.bf16 %v6410_v35  ;;  %v6688_v51 = vld [vmem:[#allocation2] sm:$0xff] }
 0x631   : > { %2857 = vmatmul.bf16.vlgmr.msra.gmra.mxu3 %v2777_v9  ;;  %v2755_v59 = vsel %vm1678_vm9, %v2412_v19, %v6412_v24  ;;  %v2754_v3 = vsel %vm1678_vm9, %v2410_v31, %v6411_v1  ;;  %v6689_v24 = vld [vmem:[#allocation2 + $0x18] sm:$0xff] }
 0x632   : > { %v2762_v49 = vsel %vm1963_vm10, %v2754_v3, %v6416_v27  ;;  %v2763_v48 = vsel %vm1963_vm10, %v2755_v59, %v6417_v4  ;;  %v2422_v16 = vpop.f32.mrf.mxu3  ;;  %v6690_v59 = vld [vmem:[#allocation2 + $0x10] sm:$0xff] }
 0x638   : > { %v6425_v61 = vpop.permute.xlu2 %6424 }
 0x639   : > { %v6427_v30 = vunpack.i.h.bf16 %v6425_v61  ;;  %v6426_v13 = vunpack.i.l.bf16 %v6425_v61 }
 0x63b   : > { %v2756_v53 = vsel %vm1678_vm9, %v2415_v54, %v6426_v13  ;;  %v2757_v22 = vsel %vm1678_vm9, %v2417_v36, %v6427_v30  ;;  %v6693_v54 = vld [vmem:[#allocation2 + $0x28] sm:$0xff] }
 0x645   : > { %v6420_v12 = vpop.permute.xlu0 %6419 }
 0x646   : > { %v6422_v17 = vunpack.i.h.bf16 %v6420_v12  ;;  %v6421_v55 = vunpack.i.l.bf16 %v6420_v12  ;;  %v6691_v12 = vld [vmem:[#allocation2 + $0x8] sm:$0xff] }
 0x648   : > { %v2771_v29 = vsel %vm2768_vm11, %v2762_v49, %v6421_v55  ;;  %v2772_v10 = vsel %vm2768_vm11, %v2763_v48, %v6422_v17  ;;  %v6692_v48 = vld [vmem:[#allocation2 + $0x20] sm:$0xff] }
 0x649   : > { %v2778_v7 = vpack.c.bf16 %v2772_v10, %v2771_v29 }
 0x64b   : > { %2862 = vmatmul.bf16.gmra.mxu3 %v2778_v7 }
 0x64e   : > { %v6430_v63 = vpop.permute.xlu1 %6429 }
 0x64f   : > { %v6432_v39 = vunpack.i.h.bf16 %v6430_v63  ;;  %v6431_v15 = vunpack.i.l.bf16 %v6430_v63  ;;  %v6440_v52 = vpop.permute.xlu2 %6439 }
 0x650   : > { %v6442_v6 = vunpack.i.h.bf16 %v6440_v52  ;;  %v6441_v46 = vunpack.i.l.bf16 %v6440_v52 }
 0x651   : > { %v2764_v56 = vsel %vm1963_vm10, %v2756_v53, %v6431_v15  ;;  %v2765_v23 = vsel %vm1963_vm10, %v2757_v22, %v6432_v39 }
 0x652   : > { %v2758_v8 = vsel %vm1678_vm9, %v2420_v44, %v6441_v46  ;;  %v2759_v33 = vsel %vm1678_vm9, %v2422_v16, %v6442_v6 }
 0x655   : > { %v6435_v14 = vpop.permute.xlu0 %6434 }
 0x656   : > { %v6437_v60 = vunpack.i.h.bf16 %v6435_v14  ;;  %v6436_v0 = vunpack.i.l.bf16 %v6435_v14 }
 0x658   : > { %v2773_v20 = vsel %vm2768_vm11, %v2764_v56, %v6436_v0  ;;  %v2774_v11 = vsel %vm2768_vm11, %v2765_v23, %v6437_v60  ;;  %v6694_v60 = vld [vmem:[#allocation2 + $0x38] sm:$0xff] }
 0x659   : > { %v2779_v47 = vpack.c.bf16 %v2774_v11, %v2773_v20 }
 0x65b   : > { %2867 = vmatmul.bf16.gmra.mxu3 %v2779_v47 }
 0x674   : > { %v6450_v32 = vpop.permute.xlu0 %6449 }
 0x675   : > { %v6452_v50 = vunpack.i.h.bf16 %v6450_v32  ;;  %v6451_v2 = vunpack.i.l.bf16 %v6450_v32 }
 0x676   : > { %v6445_v41 = vpop.permute.xlu1 %6444 }
 0x677   : > { %v6447_v28 = vunpack.i.h.bf16 %v6445_v41  ;;  %v6446_v42 = vunpack.i.l.bf16 %v6445_v41 }
 0x679   : > { %v2766_v62 = vsel %vm1963_vm10, %v2758_v8, %v6446_v42  ;;  %v2767_v57 = vsel %vm1963_vm10, %v2759_v33, %v6447_v28 }
 0x67a   : > { %v2775_v5 = vsel %vm2768_vm11, %v2766_v62, %v6451_v2  ;;  %v2776_v58 = vsel %vm2768_vm11, %v2767_v57, %v6452_v50 }
 0x67b   : > { %v2780_v37 = vpack.c.bf16 %v2776_v58, %v2775_v5  ;;  %v5859_v58 = vld [vmem:[%s7581_s26 + $0xe0] sm:$0xf] }
 0x67d   : > { %2872 = vmatmul.bf16.gmra.mxu3 %v2780_v37  ;;  %v6106_v37 = vld [vmem:[%s7581_s26 + $0xec] sm:$0xf0] }
 0x6b4   : > { %v2858_v25 = vpop.f32.mrf.mxu3 }
 0x6b5   : > { %v2859_v26 = vadd.f32 %v6455_v40, %v2858_v25  ;;  %v5860_v25 = vor.u32 %v6106_v37, %v5859_v58  ;;  %v5795_v58 = vld [vmem:[%s7581_s26 + $0x60] sm:$0xf]  ;;  %v6090_v37 = vld [vmem:[%s7581_s26 + $0x6c] sm:$0xf0] }
 0x6b7   : > { %v8499_v45 = vadd.f32 %v6687_v43, %v2859_v26  ;;  %v5861_v26 = vld [vmem:[%s7581_s26 + $0xf0] sm:$0xf0]  ;;  %v5867_v43 = vld [vmem:[%s7581_s26 + $0xe8] sm:$0xf]  ;;  %3276 = vmatpush.bf16.msrb.mxu0 %v5860_v25  ;;  %v5796_v25 = vor.u32 %v6090_v37, %v5795_v58  ;;  %v6077_v58 = vld [vmem:[%s7581_s26 + $0xc] sm:$0xf] }
 0x6b8   : > { %v5757_v37 = vld [vmem:[%s7581_s26 + $0x18] sm:$0xf0] }
 0x6b9   : > { %10522 = vst [vmem:[#allocation42_spill] sm:$0xff] %v8499_v45  ;;  %2888 = vadd.xlane.f32.xlu2 %v8499_v45 }
 0x6bc   : > { %v2860_v18 = vpop.f32.mrf.mxu3 }
 0x6bd   : > { %v2861_v38 = vadd.f32 %v6455_v40, %v2860_v18  ;;  %v6107_v18 = vld [vmem:[%s7581_s26 + $0xf4] sm:$0xf0] }
 0x6bf   : > { %v8502_v9 = vadd.f32 %v6688_v51, %v2861_v38  ;;  %v5868_v51 = vor.u32 %v6107_v18, %v5867_v43  ;;  %v5803_v43 = vld [vmem:[%s7581_s26 + $0x68] sm:$0xf]  ;;  %v6091_v18 = vld [vmem:[%s7581_s26 + $0x74] sm:$0xf0] }
 0x6c1   : > { %10523 = vst [vmem:[#allocation43_spill] sm:$0xff] %v8502_v9  ;;  %2890 = vadd.xlane.f32.xlu1 %v8502_v9  ;;  %3334 = vmatpush.bf16.msrb.mxu2 %v5868_v51  ;;  %v5804_v51 = vor.u32 %v6091_v18, %v5803_v43 }
 0x6ce   : > { %v2863_v31 = vpop.f32.mrf.mxu3 }
 0x6cf   : > { %v2864_v35 = vadd.f32 %v6455_v40, %v2863_v31  ;;  %v6105_v31 = vld [vmem:[%s7581_s26 + $0xec] sm:$0xf] }
 0x6d1   : > { %v8505_v1 = vadd.f32 %v6689_v24, %v2864_v35  ;;  %v5869_v35 = vld [vmem:[%s7581_s26 + $0xf8] sm:$0xf0] }
 0x6d2   : > { %v5872_v24 = vor.u32 %v6105_v31, %v5869_v35  ;;  %v6089_v31 = vld [vmem:[%s7581_s26 + $0x6c] sm:$0xf]  ;;  %v5805_v35 = vld [vmem:[%s7581_s26 + $0x78] sm:$0xf0] }
 0x6d3   : > { %10524 = vst [vmem:[#allocation44_spill] sm:$0xff] %v8505_v1  ;;  %2892 = vadd.xlane.f32.xlu0 %v8505_v1 }
 0x6d4   : > { %3363 = vmatpush.bf16.msrb.mxu3 %v5872_v24  ;;  %v5808_v24 = vor.u32 %v6089_v31, %v5805_v35 }
 0x6d6   : > { %v2865_v34 = vpop.f32.mrf.mxu3 }
 0x6d7   : > { %v2866_v19 = vadd.f32 %v6455_v40, %v2865_v34  ;;  %v5843_v34 = vld [vmem:[%s7581_s26 + $0xc0] sm:$0xf] }
 0x6d9   : > { %v8508_v3 = vadd.f32 %v6690_v59, %v2866_v19  ;;  %v6102_v19 = vld [vmem:[%s7581_s26 + $0xcc] sm:$0xf0]  ;;  %v6100_v59 = vld [vmem:[%s7581_s26 + $0xc4] sm:$0xf] }
 0x6db   : > { %10525 = vst [vmem:[#allocation45_spill] sm:$0xff] %v8508_v3  ;;  %2894 = vadd.xlane.f32.xlu2 %v8508_v3 }
 0x6de   : > { %v2868_v4 = vpop.f32.mrf.mxu3 }
 0x6df   : > { %v2869_v27 = vadd.f32 %v6455_v40, %v2868_v4  ;;  %v5844_v4 = vor.u32 %v6102_v19, %v5843_v34  ;;  %v5779_v34 = vld [vmem:[%s7581_s26 + $0x40] sm:$0xf]  ;;  %v6086_v19 = vld [vmem:[%s7581_s26 + $0x4c] sm:$0xf0] }
 0x6e1   : > { %v8511_v17 = vadd.f32 %v6691_v12, %v2869_v27  ;;  %v5845_v27 = vld [vmem:[%s7581_s26 + $0xd0] sm:$0xf0]  ;;  %v5851_v12 = vld [vmem:[%s7581_s26 + $0xc8] sm:$0xf]  ;;  %3277 = vmatpush.bf16.msrb.mxu0 %v5844_v4  ;;  %v5780_v4 = vor.u32 %v6086_v19, %v5779_v34 }
 0x6e3   : > { %10526 = vst [vmem:[#allocation46_spill] sm:$0xff] %v8511_v17  ;;  %2896 = vadd.xlane.f32.xlu1 %v8511_v17 }
 0x6e6   : > { %v2870_v55 = vpop.f32.mrf.mxu3 }
 0x6e7   : > { %v2871_v49 = vadd.f32 %v6455_v40, %v2870_v55  ;;  %v6103_v55 = vld [vmem:[%s7581_s26 + $0xd4] sm:$0xf0] }
 0x6e9   : > { %v8514_v29 = vadd.f32 %v6692_v48, %v2871_v49  ;;  %v5848_v49 = vor.u32 %v6100_v59, %v5845_v27  ;;  %v5852_v48 = vor.u32 %v6103_v55, %v5851_v12  ;;  %v6084_v59 = vld [vmem:[%s7581_s26 + $0x44] sm:$0xf]  ;;  %v5781_v27 = vld [vmem:[%s7581_s26 + $0x50] sm:$0xf0]  ;;  %v5787_v12 = vld [vmem:[%s7581_s26 + $0x48] sm:$0xf] }
 0x6ea   : > { %v6087_v55 = vld [vmem:[%s7581_s26 + $0x54] sm:$0xf0] }
 0x6eb   : > { %10527 = vst [vmem:[#allocation47_spill] sm:$0xff] %v8514_v29  ;;  %2898 = vadd.xlane.f32.xlu2 %v8514_v29  ;;  %3335 = vmatpush.bf16.msrb.mxu2 %v5852_v48  ;;  %v5788_v48 = vor.u32 %v6087_v55, %v5787_v12 }
 0x700   : > { %v2873_v10 = vpop.f32.mrf.mxu3 }
 0x701   : > { %v2874_v7 = vadd.f32 %v6455_v40, %v2873_v10  ;;  %v6101_v10 = vld [vmem:[%s7581_s26 + $0xcc] sm:$0xf] }
 0x703   : > { %v8517_v61 = vadd.f32 %v6693_v54, %v2874_v7  ;;  %v5853_v7 = vld [vmem:[%s7581_s26 + $0xd8] sm:$0xf0] }
 0x704   : > { %v5856_v54 = vor.u32 %v6101_v10, %v5853_v7  ;;  %v6085_v10 = vld [vmem:[%s7581_s26 + $0x4c] sm:$0xf]  ;;  %v5789_v7 = vld [vmem:[%s7581_s26 + $0x58] sm:$0xf0] }
 0x705   : > { %10528 = vst [vmem:[#allocation48_spill] sm:$0xff] %v8517_v61  ;;  %2900 = vadd.xlane.f32.xlu2 %v8517_v61 }
 0x706   : > { %3364 = vmatpush.bf16.msrb.mxu3 %v5856_v54  ;;  %v5792_v54 = vor.u32 %v6085_v10, %v5789_v7 }
 0x708   : > { %v2875_v15 = vpop.f32.mrf.mxu3 }
 0x709   : > { %v2876_v14 = vadd.f32 %v6455_v40, %v2875_v15  ;;  %v6104_v40 = vld [vmem:[%s7581_s26 + $0xe4] sm:$0xf] }
 0x70a   : > { %v5864_v38 = vor.u32 %v6104_v40, %v5861_v26  ;;  %v6088_v40 = vld [vmem:[%s7581_s26 + $0x64] sm:$0xf]  ;;  %v5797_v26 = vld [vmem:[%s7581_s26 + $0x70] sm:$0xf0] }
 0x70b   : > { %v8530_v0 = vadd.f32 %v6694_v60, %v2876_v14  ;;  %v5835_v14 = vld [vmem:[%s7581_s26 + $0xa8] sm:$0xf] }
 0x70c   : > { %3305 = vmatpush.bf16.msrb.mxu1 %v5864_v38  ;;  %v5800_v38 = vor.u32 %v6088_v40, %v5797_v26  ;;  %v5760_v40 = vor.u32 %v6077_v58, %v5757_v37 }
 0x70d   : > { %10529 = vst [vmem:[#allocation49_spill] sm:$0xff] %v8530_v0 }
 0x710   : > { %3306 = vmatpush.bf16.msrb.mxu1 %v5848_v49  ;;  %v5784_v49 = vor.u32 %v6084_v59, %v5781_v27 }
 0x72c   : > { %v2889_v63 = vpop.xlane.xlu2 %2888 }
 0x72d   : > { %v2904_v30 = vmul.f32 %v2889_v63, %v7620_v21  ;;  %v5827_v63 = vld [vmem:[%s7581_s26 + $0xa0] sm:$0xf] }
 0x72f   : > { %v8522_v13 = vsub.f32 %v8499_v45, %v2904_v30  ;;  %v6098_v30 = vld [vmem:[%s7581_s26 + $0xac] sm:$0xf0] }
 0x730   : > { %v5828_v15 = vor.u32 %v6098_v30, %v5827_v63  ;;  %v5763_v30 = vld [vmem:[%s7581_s26 + $0x20] sm:$0xf] }
 0x731   : > { %v2920_v39 = vmul.f32 %v8522_v13, %v8522_v13 }
 0x732   : > { %3278 = vmatpush.bf16.msrb.mxu0 %v5828_v15  ;;  %v6080_v15 = vld [vmem:[%s7581_s26 + $0x24] sm:$0xf] }
 0x733   : > { %2928 = vadd.xlane.f32.xlu0 %v2920_v39  ;;  %v6096_v39 = vld [vmem:[%s7581_s26 + $0xa4] sm:$0xf] }
 0x734   : > { %v2891_v36 = vpop.xlane.xlu1 %2890 }
 0x735   : > { %v2905_v53 = vmul.f32 %v2891_v36, %v7620_v21  ;;  %v5829_v36 = vld [vmem:[%s7581_s26 + $0xb0] sm:$0xf0] }
 0x736   : > { %v5832_v60 = vor.u32 %v6096_v39, %v5829_v36  ;;  %v6082_v39 = vld [vmem:[%s7581_s26 + $0x2c] sm:$0xf0] }
 0x737   : > { %v8528_v22 = vsub.f32 %v8502_v9, %v2905_v53  ;;  %v6099_v53 = vld [vmem:[%s7581_s26 + $0xb4] sm:$0xf0] }
 0x738   : > { %3307 = vmatpush.bf16.msrb.mxu1 %v5832_v60  ;;  %v5771_v60 = vld [vmem:[%s7581_s26 + $0x28] sm:$0xf] }
 0x739   : > { %v2921_v56 = vmul.f32 %v8528_v22, %v8528_v22 }
 0x73b   : > { %2930 = vadd.xlane.f32.xlu1 %v2921_v56  ;;  %2902 = vadd.xlane.f32.xlu0 %v8530_v0  ;;  %v5836_v56 = vor.u32 %v6099_v53, %v5835_v14  ;;  %v5764_v14 = vor.u32 %v6082_v39, %v5763_v30  ;;  %v5765_v53 = vld [vmem:[%s7581_s26 + $0x30] sm:$0xf0] }
 0x73d   : > { %3336 = vmatpush.bf16.msrb.mxu2 %v5836_v56  ;;  %v6083_v56 = vld [vmem:[%s7581_s26 + $0x34] sm:$0xf0] }
 0x746   : > { %v2893_v23 = vpop.xlane.xlu0 %2892 }
 0x747   : > { %v2906_v20 = vmul.f32 %v2893_v23, %v7620_v21  ;;  %v6097_v23 = vld [vmem:[%s7581_s26 + $0xac] sm:$0xf] }
 0x749   : > { %v8537_v11 = vsub.f32 %v8505_v1, %v2906_v20  ;;  %v5837_v20 = vld [vmem:[%s7581_s26 + $0xb8] sm:$0xf0] }
 0x74b   : > { %v2922_v47 = vmul.f32 %v8537_v11, %v8537_v11 }
 0x74d   : > { %2932 = vadd.xlane.f32.xlu1 %v2922_v47  ;;  %v5840_v47 = vor.u32 %v6097_v23, %v5837_v20  ;;  %v5768_v23 = vor.u32 %v6080_v15, %v5765_v53  ;;  %v5772_v20 = vor.u32 %v6083_v56, %v5771_v60 }
 0x74e   : > { %v2895_v44 = vpop.xlane.xlu2 %2894 }
 0x74f   : > { %v2907_v52 = vmul.f32 %v2895_v44, %v7620_v21  ;;  %v5811_v44 = vld [vmem:[%s7581_s26 + $0x80] sm:$0xf]  ;;  %3365 = vmatpush.bf16.msrb.mxu3 %v5840_v47  ;;  %v6081_v47 = vld [vmem:[%s7581_s26 + $0x2c] sm:$0xf] }
 0x751   : > { %v8543_v6 = vsub.f32 %v8508_v3, %v2907_v52  ;;  %v6094_v52 = vld [vmem:[%s7581_s26 + $0x8c] sm:$0xf0] }
 0x753   : > { %v2923_v46 = vmul.f32 %v8543_v6, %v8543_v6 }
 0x755   : > { %2934 = vadd.xlane.f32.xlu2 %v2923_v46  ;;  %v6092_v46 = vld [vmem:[%s7581_s26 + $0x84] sm:$0xf] }
 0x756   : > { %v2897_v32 = vpop.xlane.xlu1 %2896 }
 0x757   : > { %v2908_v41 = vmul.f32 %v2897_v32, %v7620_v21  ;;  %v5812_v32 = vor.u32 %v6094_v52, %v5811_v44  ;;  %v5773_v44 = vld [vmem:[%s7581_s26 + $0x38] sm:$0xf0] }
 0x759   : > { %v8549_v16 = vsub.f32 %v8511_v17, %v2908_v41  ;;  %v5813_v41 = vld [vmem:[%s7581_s26 + $0x90] sm:$0xf0]  ;;  %3279 = vmatpush.bf16.msrb.mxu0 %v5812_v32  ;;  %v5747_v32 = vld [vmem:[%s7581_s26] sm:$0xf] }
 0x75b   : > { %v2924_v28 = vmul.f32 %v8549_v16, %v8549_v16 }
 0x75d   : > { %2936 = vadd.xlane.f32.xlu0 %v2924_v28  ;;  %v5819_v28 = vld [vmem:[%s7581_s26 + $0x88] sm:$0xf]  ;;  %3280 = vmatpush.bf16.msrb.mxu0 %v5796_v25 }
 0x75e   : > { %v2899_v42 = vpop.xlane.xlu2 %2898 }
 0x75f   : > { %v2909_v8 = vmul.f32 %v2899_v42, %v7620_v21  ;;  %v6095_v42 = vld [vmem:[%s7581_s26 + $0x94] sm:$0xf0] }
 0x761   : > { %v8555_v33 = vsub.f32 %v8514_v29, %v2909_v8  ;;  %v5816_v8 = vor.u32 %v6092_v46, %v5813_v41  ;;  %3281 = vmatpush.bf16.msrb.mxu0 %v5780_v4  ;;  %v5776_v46 = vor.u32 %v6081_v47, %v5773_v44  ;;  %v6078_v41 = vld [vmem:[%s7581_s26 + $0xc] sm:$0xf0] }
 0x763   : > { %v2925_v50 = vmul.f32 %v8555_v33, %v8555_v33  ;;  %3308 = vmatpush.bf16.msrb.mxu1 %v5816_v8  ;;  %v5749_v8 = vld [vmem:[%s7581_s26 + $0x10] sm:$0xf0] }
 0x765   : > { %2938 = vadd.xlane.f32.xlu1 %v2925_v50  ;;  %v5820_v50 = vor.u32 %v6095_v42, %v5819_v28  ;;  %3282 = vmatpush.bf16.msrb.mxu0 %v5764_v14  ;;  %v6076_v28 = vld [vmem:[%s7581_s26 + $0x4] sm:$0xf]  ;;  %v5748_v42 = vor.u32 %v6078_v41, %v5747_v32  ;;  %v8645_v14 = vld [vmem:[%s10531_s3] ss:$0 sm:$0xff] }
 0x767   : > { %3337 = vmatpush.bf16.msrb.mxu2 %v5820_v50  ;;  %3309 = vmatpush.bf16.msrb.mxu1 %v5800_v38  ;;  %v5755_v50 = vld [vmem:[%s7581_s26 + $0x8] sm:$0xf] }
 0x769   : > { %3283 = vmatpush.bf16.msrb.mxu0 %v5748_v42 }
 0x76b   : > { %3338 = vmatpush.bf16.msrb.mxu2 %v5804_v51  ;;  %3310 = vmatpush.bf16.msrb.mxu1 %v5784_v49 }
 0x76f   : > { %3339 = vmatpush.bf16.msrb.mxu2 %v5788_v48  ;;  %3311 = vmatpush.bf16.msrb.mxu1 %v5768_v23 }
 0x773   : > { %3340 = vmatpush.bf16.msrb.mxu2 %v5772_v20 }
 0x778   : > { %v2901_v2 = vpop.xlane.xlu2 %2900 }
 0x779   : > { %v2910_v62 = vmul.f32 %v2901_v2, %v7620_v21  ;;  %v6093_v2 = vld [vmem:[%s7581_s26 + $0x8c] sm:$0xf] }
 0x77b   : > { %v8561_v57 = vsub.f32 %v8517_v61, %v2910_v62  ;;  %v5821_v62 = vld [vmem:[%s7581_s26 + $0x98] sm:$0xf0] }
 0x77d   : > { %v2926_v5 = vmul.f32 %v8561_v57, %v8561_v57 }
 0x77f   : > { %2940 = vadd.xlane.f32.xlu2 %v2926_v5  ;;  %v5824_v5 = vor.u32 %v6093_v2, %v5821_v62  ;;  %v6079_v2 = vld [vmem:[%s7581_s26 + $0x14] sm:$0xf0]  ;;  %v5752_v62 = vor.u32 %v6076_v28, %v5749_v8  ;;  %s10530_s26 = scalar_lea.vmem [#allocation15], %s7541_s25 }
 0x781   : > { %3366 = vmatpush.bf16.msrb.mxu3 %v5824_v5  ;;  %v5756_v5 = vor.u32 %v6079_v2, %v5755_v50  ;;  %3312 = vmatpush.bf16.msrb.mxu1 %v5752_v62 }
 0x783   : > { %3341 = vmatpush.bf16.msrb.mxu2 %v5756_v5 }
 0x785   : > { %3367 = vmatpush.bf16.msrb.mxu3 %v5808_v24 }
 0x789   : > { %3368 = vmatpush.bf16.msrb.mxu3 %v5792_v54  ;;  %v8639_v54 = vld [vmem:[%s10530_s26] ss:$0 sm:$0xff] }
 0x78d   : > { %3369 = vmatpush.bf16.msrb.mxu3 %v5776_v46 }
 0x791   : > { %3370 = vmatpush.bf16.msrb.mxu3 %v5760_v40 }
 0x7a6   : > { %v2929_v63 = vpop.xlane.xlu0 %2928 }
 0x7a7   : > { %v2944_v36 = vmul.f32 %v2929_v63, %v7620_v21 }
 0x7a9   : > { %v2952_v52 = vadd.f32 1e-05, %v2944_v36 }
 0x7ab   : > { %6605 = vrsqrt.f32 %v2952_v52  ;;  %vm2966_vm13 = vweird.f32 %v2952_v52 }
 0x7ae   : > { %v2931_v25 = vpop.xlane.xlu1 %2930  ;;  %v2903_v26 = vpop.xlane.xlu0 %2902 }
 0x7af   : > { %v2945_v43 = vmul.f32 %v2931_v25, %v7620_v21  ;;  %v2911_v18 = vmul.f32 %v2903_v26, %v7620_v21 }
 0x7b1   : > { %v6606_v38 = vpop.eup %6605  ;;  %v2953_v51 = vadd.f32 1e-05, %v2945_v43  ;;  %v8633_v31 = vsub.f32 %v8530_v0, %v2911_v18 }
 0x7b2   : > { %v2961_v35 = vmul.f32 %v6606_v38, %v2952_v52  ;;  %vm2967_vm12 = vweird.f32 %v6606_v38 }
 0x7b3   : > { %6607 = vrsqrt.f32 %v2953_v51  ;;  %v2927_v24 = vmul.f32 %v8633_v31, %v8633_v31  ;;  %vm2968_vm14 = vmor %vm2966_vm13, %vm2967_vm12  ;;  %vm2976_vm0 = vweird.f32 %v2953_v51 }
 0x7b4   : > { %v2962_v34 = vmul.f32 %v6606_v38, %v2961_v35 }
 0x7b5   : > { %2942 = vadd.xlane.f32.xlu0 %v2927_v24 }
 0x7b6   : > { %v2963_v19 = vmul.f32 0.5, %v2962_v34 }
 0x7b8   : > { %v2964_v59 = vsub.f32 1.5, %v2963_v19 }
 0x7b9   : > { %v6608_v4 = vpop.eup %6607 }
 0x7ba   : > { %v2965_v27 = vmul.f32 %v6606_v38, %v2964_v59  ;;  %v2971_v12 = vmul.f32 %v6608_v4, %v2953_v51  ;;  %vm2977_vm15 = vweird.f32 %v6608_v4 }
 0x7bb   : > { %vm2978_vm1 = vmor %vm2976_vm0, %vm2977_vm15 }
 0x7bc   : > { %v2972_v55 = vmul.f32 %v6608_v4, %v2971_v12  ;;  %v2969_v49 = vsel %vm2968_vm14, %v6606_v38, %v2965_v27 }
 0x7bd   : > { %v3040_v63 = vmul.f32 %v2969_v49, %v8522_v13 }
 0x7be   : > { %v2973_v48 = vmul.f32 0.5, %v2972_v55 }
 0x7bf   : > { %v3051_v53 = vmul.f32 %v8639_v54, %v3040_v63 }
 0x7c0   : > { %v2974_v10 = vsub.f32 1.5, %v2973_v48  ;;  %v2933_v7 = vpop.xlane.xlu1 %2932 }
 0x7c1   : > { %v2946_v30 = vmul.f32 %v2933_v7, %v7620_v21  ;;  %v3062_v13 = vadd.f32 %v8645_v14, %v3051_v53 }
 0x7c2   : > { %v2975_v39 = vmul.f32 %v6608_v4, %v2974_v10 }
 0x7c3   : > { %v2954_v15 = vadd.f32 1e-05, %v2946_v30 }
 0x7c4   : > { %v2979_v36 = vsel %vm2978_vm1, %v6608_v4, %v2975_v39 }
 0x7c5   : > { %v3041_v60 = vmul.f32 %v2979_v36, %v8528_v22  ;;  %6609 = vrsqrt.f32 %v2954_v15  ;;  %vm2986_vm3 = vweird.f32 %v2954_v15 }
 0x7c7   : > { %v3052_v56 = vmul.f32 %v8639_v54, %v3041_v60 }
 0x7c8   : > { %v2935_v23 = vpop.xlane.xlu2 %2934 }
 0x7c9   : > { %v3063_v20 = vadd.f32 %v8645_v14, %v3052_v56  ;;  %v2947_v47 = vmul.f32 %v2935_v23, %v7620_v21 }
 0x7cb   : > { %v6610_v44 = vpop.eup %6609  ;;  %v2955_v52 = vadd.f32 1e-05, %v2947_v47  ;;  %v3070_v46 = vpack.c.bf16 %v3063_v20, %v3062_v13 }
 0x7cc   : > { %v2981_v32 = vmul.f32 %v6610_v44, %v2954_v15  ;;  %vm2987_vm2 = vweird.f32 %v6610_v44 }
 0x7cd   : > { %6611 = vrsqrt.f32 %v2955_v52  ;;  %3284 = vmatmul.bf16.vlgmr.msrb.gmra.mxu0 %v3070_v46  ;;  %3313 = vmatmul.bf16.vlgmr.msrb.gmra.mxu1 %v3070_v46  ;;  %vm2988_vm4 = vmor %vm2986_vm3, %vm2987_vm2  ;;  %vm2996_vm6 = vweird.f32 %v2955_v52 }
 0x7ce   : > { %v2982_v41 = vmul.f32 %v6610_v44, %v2981_v32  ;;  %3342 = vmatmul.bf16.vlgmr.msrb.gmra.mxu2 %v3070_v46  ;;  %3371 = vmatmul.bf16.vlgmr.msrb.gmra.mxu3 %v3070_v46 }
 0x7d0   : > { %v2983_v22 = vmul.f32 0.5, %v2982_v41  ;;  %v2937_v28 = vpop.xlane.xlu0 %2936 }
 0x7d1   : > { %v2948_v42 = vmul.f32 %v2937_v28, %v7620_v21 }
 0x7d2   : > { %v2984_v8 = vsub.f32 1.5, %v2983_v22 }
 0x7d3   : > { %v6612_v50 = vpop.eup %6611  ;;  %v2956_v2 = vadd.f32 1e-05, %v2948_v42 }
 0x7d4   : > { %v2985_v62 = vmul.f32 %v6610_v44, %v2984_v8  ;;  %v2991_v5 = vmul.f32 %v6612_v50, %v2955_v52  ;;  %vm2997_vm5 = vweird.f32 %v6612_v50 }
 0x7d5   : > { %6613 = vrsqrt.f32 %v2956_v2  ;;  %vm2998_vm7 = vmor %vm2996_vm6, %vm2997_vm5  ;;  %vm3006_vm9 = vweird.f32 %v2956_v2 }
 0x7d6   : > { %v2992_v58 = vmul.f32 %v6612_v50, %v2991_v5  ;;  %v2989_v37 = vsel %vm2988_vm4, %v6610_v44, %v2985_v62 }
 0x7d7   : > { %v3042_v38 = vmul.f32 %v2989_v37, %v8537_v11 }
 0x7d8   : > { %v2993_v40 = vmul.f32 0.5, %v2992_v58  ;;  %v2939_v25 = vpop.xlane.xlu1 %2938 }
 0x7d9   : > { %v2949_v26 = vmul.f32 %v2939_v25, %v7620_v21  ;;  %v3053_v4 = vmul.f32 %v8639_v54, %v3042_v38 }
 0x7da   : > { %v2994_v43 = vsub.f32 1.5, %v2993_v40 }
 0x7db   : > { %v6614_v18 = vpop.eup %6613  ;;  %v2957_v51 = vadd.f32 1e-05, %v2949_v26  ;;  %v3064_v48 = vadd.f32 %v8645_v14, %v3053_v4 }
 0x7dc   : > { %v2995_v35 = vmul.f32 %v6612_v50, %v2994_v43  ;;  %v3001_v24 = vmul.f32 %v6614_v18, %v2956_v2  ;;  %vm3007_vm8 = vweird.f32 %v6614_v18  ;;  %v7181_v2 = vmov 1.4142135  }
 0x7dd   : > { %6615 = vrsqrt.f32 %v2957_v51  ;;  %vm3008_vm10 = vmor %vm3006_vm9, %vm3007_vm8  ;;  %vm3016_vm12 = vweird.f32 %v2957_v51 }
 0x7de   : > { %v2999_v34 = vsel %vm2998_vm7, %v6612_v50, %v2995_v35  ;;  %v3002_v19 = vmul.f32 %v6614_v18, %v3001_v24 }
 0x7df   : > { %v3043_v59 = vmul.f32 %v2999_v34, %v8543_v6 }
 0x7e0   : > { %v3003_v27 = vmul.f32 0.5, %v3002_v19 }
 0x7e1   : > { %v3054_v12 = vmul.f32 %v8639_v54, %v3043_v59 }
 0x7e2   : > { %v3004_v55 = vsub.f32 1.5, %v3003_v27 }
 0x7e3   : > { %v6616_v49 = vpop.eup %6615  ;;  %v3065_v11 = vadd.f32 %v8645_v14, %v3054_v12  ;;  %v3106_v12 = vld [vmem:[%s7599_s5] sm:$0xf] }
 0x7e4   : > { %v3005_v10 = vmul.f32 %v6614_v18, %v3004_v55  ;;  %v3011_v7 = vmul.f32 %v6616_v49, %v2957_v51  ;;  %vm3017_vm11 = vweird.f32 %v6616_v49 }
 0x7e5   : > { %v3071_v63 = vpack.c.bf16 %v3065_v11, %v3064_v48  ;;  %vm3018_vm13 = vmor %vm3016_vm12, %vm3017_vm11  ;;  %v8678_v48 = vperm.slane %v3106_v12, 1 }
 0x7e6   : > { %v3012_v30 = vmul.f32 %v6616_v49, %v3011_v7  ;;  %v3009_v6 = vsel %vm3008_vm10, %v6614_v18, %v3005_v10 }
 0x7e7   : > { %3289 = vmatmul.bf16.gmra.mxu0 %v3071_v63  ;;  %3318 = vmatmul.bf16.gmra.mxu1 %v3071_v63  ;;  %v3044_v36 = vmul.f32 %v3009_v6, %v8549_v16  ;;  %v8698_v6 = vperm.slane %v3106_v12, 3 }
 0x7e8   : > { %v3013_v39 = vmul.f32 0.5, %v3012_v30  ;;  %3347 = vmatmul.bf16.gmra.mxu2 %v3071_v63  ;;  %3376 = vmatmul.bf16.gmra.mxu3 %v3071_v63  ;;  %v8696_v30 = vperm.slane %v3106_v12, 2 }
 0x7e9   : > { %v3055_v23 = vmul.f32 %v8639_v54, %v3044_v36 }
 0x7ea   : > { %v3014_v15 = vsub.f32 1.5, %v3013_v39 }
 0x7eb   : > { %v3066_v20 = vadd.f32 %v8645_v14, %v3055_v23 }
 0x7ec   : > { %v3015_v53 = vmul.f32 %v6616_v49, %v3014_v15 }
 0x7ee   : > { %v3019_v60 = vsel %vm3018_vm13, %v6616_v49, %v3015_v53 }
 0x7ef   : > { %v3045_v56 = vmul.f32 %v3019_v60, %v8555_v33 }
 0x7f1   : > { %v3056_v13 = vmul.f32 %v8639_v54, %v3045_v56 }
 0x7f2   : > { %v2941_v16 = vpop.xlane.xlu2 %2940 }
 0x7f3   : > { %v3067_v47 = vadd.f32 %v8645_v14, %v3056_v13  ;;  %v2950_v52 = vmul.f32 %v2941_v16, %v7620_v21 }
 0x7f5   : > { %v3072_v44 = vpack.c.bf16 %v3067_v47, %v3066_v20  ;;  %v2958_v46 = vadd.f32 1e-05, %v2950_v52 }
 0x7f7   : > { %3294 = vmatmul.bf16.gmra.mxu0 %v3072_v44  ;;  %3323 = vmatmul.bf16.gmra.mxu1 %v3072_v44  ;;  %6617 = vrsqrt.f32 %v2958_v46  ;;  %vm3026_vm15 = vweird.f32 %v2958_v46 }
 0x7f8   : > { %3352 = vmatmul.bf16.gmra.mxu2 %v3072_v44  ;;  %3381 = vmatmul.bf16.gmra.mxu3 %v3072_v44 }
 0x7fd   : > { %v6618_v32 = vpop.eup %6617 }
 0x7fe   : > { %v3021_v33 = vmul.f32 %v6618_v32, %v2958_v46  ;;  %vm3027_vm14 = vweird.f32 %v6618_v32 }
 0x7ff   : > { %vm3028_vm0 = vmor %vm3026_vm15, %vm3027_vm14 }
 0x800   : > { %v3022_v41 = vmul.f32 %v6618_v32, %v3021_v33 }
 0x802   : > { %v3023_v8 = vmul.f32 0.5, %v3022_v41 }
 0x804   : > { %v3024_v50 = vsub.f32 1.5, %v3023_v8 }
 0x806   : > { %v3025_v5 = vmul.f32 %v6618_v32, %v3024_v50 }
 0x808   : > { %v3029_v25 = vsel %vm3028_vm0, %v6618_v32, %v3025_v5 }
 0x809   : > { %v3046_v18 = vmul.f32 %v3029_v25, %v8561_v57  ;;  %v8676_v57 = vperm.slane %v3106_v12, 0 }
 0x80b   : > { %v3057_v34 = vmul.f32 %v8639_v54, %v3046_v18 }
 0x80d   : > { %v3068_v4 = vadd.f32 %v8645_v14, %v3057_v34 }
 0x828   : > { %v2943_v22 = vpop.xlane.xlu0 %2942 }
 0x829   : > { %v2951_v28 = vmul.f32 %v2943_v22, %v7620_v21 }
 0x82b   : > { %v2959_v42 = vadd.f32 1e-05, %v2951_v28 }
 0x82d   : > { %6619 = vrsqrt.f32 %v2959_v42  ;;  %vm3036_vm2 = vweird.f32 %v2959_v42 }
 0x82e   : > { %6621 = vrcp.f32 %v7181_v2 }
 0x833   : > { %v6620_v62 = vpop.eup %6619 }
 0x834   : > { %v3031_v58 = vmul.f32 %v6620_v62, %v2959_v42  ;;  %v6622_v40 = vpop.eup %6621  ;;  %vm3037_vm1 = vweird.f32 %v6620_v62 }
 0x835   : > { %v3425_v21 = vmul.f32 1.4142135, %v6622_v40  ;;  %vm3038_vm3 = vmor %vm3036_vm2, %vm3037_vm1  ;;  %vm3429_vm4 = vweird.f32 %v6622_v40 }
 0x836   : > { %v3032_v37 = vmul.f32 %v6620_v62, %v3031_v58 }
 0x837   : > { %v3426_v35 = vsub.f32 1.0, %v3425_v21 }
 0x838   : > { %v3033_v26 = vmul.f32 0.5, %v3032_v37 }
 0x839   : > { %v3427_v59 = vmul.f32 %v6622_v40, %v3426_v35 }
 0x83a   : > { %v3034_v43 = vsub.f32 1.5, %v3033_v26 }
 0x83b   : > { %v3428_v49 = vadd.f32 %v6622_v40, %v3427_v59 }
 0x83c   : > { %v3035_v38 = vmul.f32 %v6620_v62, %v3034_v43 }
 0x83d   : > { %v8680_v11 = vsel %vm3429_vm4, %v6622_v40, %v3428_v49 }
 0x83e   : > { %v3039_v51 = vsel %vm3038_vm3, %v6620_v62, %v3035_v38 }
 0x83f   : > { %v3047_v24 = vmul.f32 %v3039_v51, %v8633_v31 }
 0x841   : > { %v3058_v19 = vmul.f32 %v8639_v54, %v3047_v24 }
 0x843   : > { %v3069_v27 = vadd.f32 %v8645_v14, %v3058_v19 }
 0x845   : > { %v3073_v55 = vpack.c.bf16 %v3069_v27, %v3068_v4 }
 0x847   : > { %3299 = vmatmul.bf16.gmra.mxu0 %v3073_v55  ;;  %3328 = vmatmul.bf16.gmra.mxu1 %v3073_v55 }
 0x848   : > { %3357 = vmatmul.bf16.gmra.mxu2 %v3073_v55  ;;  %3386 = vmatmul.bf16.gmra.mxu3 %v3073_v55 }
 0x84a   : > { %v3285_v31 = vpop.f32.mrf.mxu0  ;;  %v3314_v54 = vpop.f32.mrf.mxu1 }
 0x84b   : > { %v8683_v10 = vadd.f32 %v3285_v31, %v8676_v57  ;;  %v8686_v14 = vadd.f32 %v3314_v54, %v8678_v48 }
 0x84d   : > { %v8690_v7 = vmul.f32 %v8680_v11, %v8683_v10  ;;  %v8694_v63 = vmul.f32 %v8680_v11, %v8686_v14 }
 0x84f   : > { %v3463_v39 = vmul.f32 %v8690_v7, %v8690_v7  ;;  %v3503_v15 = vmul.f32 %v8694_v63, %v8694_v63 }
 0x851   : > { %v8704_v36 = vmin.f32 %v3463_v39, 16.0  ;;  %v8706_v53 = vmin.f32 %v3503_v15, 16.0  ;;  %v3343_v60 = vpop.f32.mrf.mxu2  ;;  %v3372_v56 = vpop.f32.mrf.mxu3 }
 0x852   : > { %v8709_v23 = vadd.f32 %v3343_v60, %v8696_v30  ;;  %v8712_v13 = vadd.f32 %v3372_v56, %v8698_v6  ;;  %v3287_v25 = vpop.f32.mrf.mxu0 }
 0x853   : > { %v3476_v20 = vmul.f32 3.8918573e-05, %v8704_v36  ;;  %v3516_v47 = vmul.f32 3.8918573e-05, %v8706_v53  ;;  %v3465_v16 = vmul.f32 2.1237322e-06, %v8704_v36  ;;  %v8743_v35 = vadd.f32 %v3287_v25, %v8676_v57 }
 0x854   : > { %v8718_v44 = vmul.f32 %v8680_v11, %v8709_v23  ;;  %v3505_v46 = vmul.f32 2.1237322e-06, %v8706_v53  ;;  %v8724_v32 = vmul.f32 %v8680_v11, %v8712_v13 }
 0x855   : > { %v3477_v52 = vadd.f32 0.001143296, %v3476_v20  ;;  %v3517_v33 = vadd.f32 0.001143296, %v3516_v47  ;;  %v3466_v50 = vadd.f32 0.00028619796, %v3465_v16  ;;  %v8751_v49 = vmul.f32 %v8680_v11, %v8743_v35 }
 0x856   : > { %v3543_v41 = vmul.f32 %v8718_v44, %v8718_v44  ;;  %v3583_v28 = vmul.f32 %v8724_v32, %v8724_v32  ;;  %v3506_v62 = vadd.f32 0.00028619796, %v3505_v46 }
 0x857   : > { %v3478_v22 = vmul.f32 %v3477_v52, %v8704_v36  ;;  %v3518_v42 = vmul.f32 %v3517_v33, %v8706_v53  ;;  %v3467_v21 = vmul.f32 %v3466_v50, %v8704_v36  ;;  %v3623_v16 = vmul.f32 %v8751_v49, %v8751_v49 }
 0x858   : > { %v8732_v8 = vmin.f32 %v3543_v41, 16.0  ;;  %v8736_v40 = vmin.f32 %v3583_v28, 16.0  ;;  %v3507_v38 = vmul.f32 %v3506_v62, %v8706_v53  ;;  %v3316_v41 = vpop.f32.mrf.mxu1 }
 0x859   : > { %v3479_v2 = vadd.f32 0.014752088, %v3478_v22  ;;  %v3519_v5 = vadd.f32 0.014752088, %v3518_v42  ;;  %v3468_v4 = vadd.f32 0.0036580483, %v3467_v21  ;;  %v8765_v62 = vadd.f32 %v3316_v41, %v8678_v48 }
 0x85a   : > { %v3556_v58 = vmul.f32 3.8918573e-05, %v8732_v8  ;;  %v3596_v19 = vmul.f32 3.8918573e-05, %v8736_v40  ;;  %v3508_v27 = vadd.f32 0.0036580483, %v3507_v38 }
 0x85b   : > { %v3480_v37 = vmul.f32 %v3479_v2, %v8704_v36  ;;  %v3520_v26 = vmul.f32 %v3519_v5, %v8706_v53  ;;  %v3545_v12 = vmul.f32 2.1237322e-06, %v8732_v8  ;;  %v3469_v60 = vmul.f32 %v3468_v4, %v8704_v36 }
 0x85c   : > { %v3557_v43 = vadd.f32 0.001143296, %v3556_v58  ;;  %v3597_v39 = vadd.f32 0.001143296, %v3596_v19  ;;  %v3509_v56 = vmul.f32 %v3508_v27, %v8706_v53  ;;  %v8762_v2 = vmin.f32 %v3623_v16, 16.0 }
 0x85d   : > { %v3481_v18 = vadd.f32 0.112945676, %v3480_v37  ;;  %v3521_v34 = vadd.f32 0.112945676, %v3520_v26  ;;  %v3546_v20 = vadd.f32 0.00028619796, %v3545_v12 }
 0x85e   : > { %v3558_v51 = vmul.f32 %v3557_v43, %v8732_v8  ;;  %v3598_v33 = vmul.f32 %v3597_v39, %v8736_v40  ;;  %v3470_v22 = vadd.f32 0.05243302, %v3469_v60  ;;  %v3510_v28 = vadd.f32 0.05243302, %v3509_v56 }
 0x85f   : > { %v3482_v24 = vmul.f32 %v3481_v18, %v8704_v36  ;;  %v3522_v54 = vmul.f32 %v3521_v34, %v8706_v53  ;;  %v3547_v42 = vmul.f32 %v3546_v20, %v8732_v8  ;;  %v3585_v37 = vmul.f32 2.1237322e-06, %v8736_v40 }
 0x860   : > { %v3559_v59 = vadd.f32 0.014752088, %v3558_v51  ;;  %v3599_v25 = vadd.f32 0.014752088, %v3598_v33  ;;  %v3471_v26 = vmul.f32 %v3470_v22, %v8704_v36  ;;  %v3511_v43 = vmul.f32 %v3510_v28, %v8706_v53 }
 0x861   : > { %v3483_v31 = vadd.f32 0.4994258, %v3482_v24  ;;  %v3523_v46 = vadd.f32 0.4994258, %v3522_v54  ;;  %v3548_v21 = vadd.f32 0.0036580483, %v3547_v42  ;;  %v8777_v51 = vmul.f32 %v8680_v11, %v8765_v62 }
 0x862   : > { %v3560_v55 = vmul.f32 %v3559_v59, %v8732_v8  ;;  %v3636_v38 = vmul.f32 3.8918573e-05, %v8762_v2  ;;  %v3586_v34 = vadd.f32 0.00028619796, %v3585_v37  ;;  %v3600_v19 = vmul.f32 %v3599_v25, %v8736_v40 }
 0x863   : > { %v3484_v52 = vmul.f32 %v3483_v31, %v8704_v36  ;;  %v3524_v58 = vmul.f32 %v3523_v46, %v8706_v53  ;;  %v3472_v59 = vadd.f32 0.18741608, %v3471_v26  ;;  %v3512_v4 = vadd.f32 0.18741608, %v3511_v43 }
 0x864   : > { %v3561_v15 = vadd.f32 0.112945676, %v3560_v55  ;;  %v3549_v27 = vmul.f32 %v3548_v21, %v8732_v8  ;;  %v3637_v55 = vadd.f32 0.001143296, %v3636_v38  ;;  %v3663_v31 = vmul.f32 %v8777_v51, %v8777_v51 }
 0x865   : > { %v8767_v5 = vadd.f32 1.0, %v3484_v52  ;;  %v8780_v24 = vadd.f32 1.0, %v3524_v58  ;;  %v3587_v54 = vmul.f32 %v3586_v34, %v8736_v40  ;;  %v3601_v39 = vadd.f32 0.112945676, %v3600_v19 }
 0x866   : > { %v3562_v47 = vmul.f32 %v3561_v15, %v8732_v8  ;;  %v3638_v15 = vmul.f32 %v3637_v55, %v8762_v2  ;;  %v3473_v56 = vmul.f32 %v3472_v59, %v8704_v36  ;;  %v3513_v20 = vmul.f32 %v3512_v4, %v8706_v53  ;;  %v3345_v36 = vpop.f32.mrf.mxu2 }
 0x867   : > { %6623 = vrcp.f32 %v8767_v5  ;;  %v3625_v16 = vmul.f32 2.1237322e-06, %v8762_v2  ;;  %v8797_v46 = vmin.f32 %v3663_v31, 16.0  ;;  %v3588_v33 = vadd.f32 0.0036580483, %v3587_v54 }
 0x868   : > { %v3563_v50 = vadd.f32 0.4994258, %v3562_v47  ;;  %6625 = vrcp.f32 %v8780_v24  ;;  %v3550_v47 = vadd.f32 0.05243302, %v3549_v27  ;;  %v3639_v52 = vadd.f32 0.014752088, %v3638_v15 }
 0x869   : > { %v3602_v41 = vmul.f32 %v3601_v39, %v8736_v40  ;;  %v8801_v22 = vmul.f32 0.5, %v8683_v10  ;;  %v3474_v53 = vadd.f32 1.1283791, %v3473_v56  ;;  %v3514_v58 = vadd.f32 1.1283791, %v3513_v20 }
 0x86a   : > { %v3564_v18 = vmul.f32 %v3563_v50, %v8732_v8  ;;  %v8808_v50 = vmul.f32 0.5, %v8686_v14  ;;  %v3640_v37 = vmul.f32 %v3639_v52, %v8762_v2  ;;  %v8812_v25 = vmul.f32 0.5, %v8709_v23 }
 0x86b   : > { %v3551_v26 = vmul.f32 %v3550_v47, %v8732_v8  ;;  %v3626_v10 = vadd.f32 0.00028619796, %v3625_v16  ;;  %v3676_v43 = vmul.f32 3.8918573e-05, %v8797_v46  ;;  %v8817_v21 = vmul.f32 0.5, %v8712_v13 }
 0x86c   : > { %v8784_v12 = vadd.f32 1.0, %v3564_v18  ;;  %v3589_v18 = vmul.f32 %v3588_v33, %v8736_v40  ;;  %v3603_v38 = vadd.f32 0.4994258, %v3602_v41  ;;  %v8821_v14 = vadd.f32 %v3345_v36, %v8696_v30 }
 0x86d   : > { %v8791_v60 = vpop.eup %6623  ;;  %v8828_v59 = vmul.f32 0.5, %v8743_v35  ;;  %v3641_v4 = vadd.f32 0.112945676, %v3640_v37  ;;  %v8831_v27 = vmul.f32 %v3474_v53, %v8690_v7  ;;  %v3495_v13 = vand.u32 2147483647, %v8767_v5 }
 0x86e   : > { %6627 = vrcp.f32 %v8784_v12  ;;  %v3487_v28 = vmul.f32 %v8791_v60, %v8767_v5  ;;  %v8805_v42 = vpop.eup %6625  ;;  %v3497_v55 = vand.u32 2147483648, %v8767_v5  ;;  %v8836_v31 = vmul.f32 %v3514_v58, %v8694_v63 }
 0x86f   : > { %v3527_v23 = vmul.f32 %v8805_v42, %v8780_v24  ;;  %vm3491_vm5 = vweird.f32 %v8767_v5  ;;  %v3552_v54 = vadd.f32 0.18741608, %v3551_v26  ;;  %v3627_v39 = vmul.f32 %v3626_v10, %v8762_v2 }
 0x870   : > { %v3488_v19 = vsub.f32 1.0, %v3487_v28  ;;  %v3642_v15 = vmul.f32 %v3641_v4, %v8762_v2  ;;  %v3677_v35 = vadd.f32 0.001143296, %v3676_v43  ;;  %v3590_v7 = vadd.f32 0.05243302, %v3589_v18  ;;  %v3374_v43 = vpop.f32.mrf.mxu3 }
 0x871   : > { %v3604_v20 = vmul.f32 %v3603_v38, %v8736_v40  ;;  %v8846_v47 = vmul.f32 %v8680_v11, %v8821_v14  ;;  %v3528_v16 = vsub.f32 1.0, %v3527_v23  ;;  %v3535_v52 = vand.u32 2147483647, %v8780_v24 }
 0x872   : > { %v3489_v63 = vmul.f32 %v8791_v60, %v3488_v19  ;;  %v3678_v33 = vmul.f32 %v3677_v35, %v8797_v46  ;;  %v3498_v41 = vor.u32 1.1754944e-38, %v3497_v55  ;;  %v3537_v28 = vand.u32 2147483648, %v8780_v24 }
 0x873   : > { %v3643_v36 = vadd.f32 0.4994258, %v3642_v15  ;;  %v3665_v53 = vmul.f32 2.1237322e-06, %v8797_v46  ;;  %vm3531_vm6 = vweird.f32 %v8780_v24  ;;  %v3553_v58 = vmul.f32 %v3552_v54, %v8732_v8 }
 0x874   : > { %v8823_v34 = vpop.eup %6627  ;;  %v3628_v37 = vadd.f32 0.0036580483, %v3627_v39  ;;  %v3679_v26 = vadd.f32 0.014752088, %v3678_v33  ;;  %v3703_v10 = vmul.f32 %v8846_v47, %v8846_v47  ;;  %vm3492_vm7 = vweird.f32 %v8791_v60 }
 0x875   : > { %v3567_v56 = vmul.f32 %v8823_v34, %v8784_v12  ;;  %vm8858_vm8 = vcmp.eq.f32.partialorder %v3495_v13, 8.507059e+37  ;;  %v3591_v19 = vmul.f32 %v3590_v7, %v8736_v40  ;;  %v8863_v23 = vadd.f32 1.0, %v3604_v20  ;;  %vm8886_vm10 = vmor %vm3491_vm5, %vm3492_vm7 }
 0x876   : > { %v3490_v4 = vadd.f32 %v8791_v60, %v3489_v63  ;;  %v3529_v8 = vmul.f32 %v8805_v42, %v3528_v16  ;;  %v3680_v55 = vmul.f32 %v3679_v26, %v8797_v46  ;;  %v8868_v54 = vmin.f32 %v3703_v10, 16.0 }
 0x877   : > { %v3568_v38 = vsub.f32 1.0, %v3567_v56  ;;  %v3644_v39 = vmul.f32 %v3643_v36, %v8762_v2  ;;  %v8872_v13 = vmul.f32 0.5, %v8765_v62  ;;  %v3666_v15 = vadd.f32 0.00028619796, %v3665_v53  ;;  %v3290_v36 = vpop.f32.mrf.mxu0 }
 0x878   : > { %v8875_v35 = vadd.f32 %v3374_v43, %v8698_v6  ;;  %vm8877_vm9 = vcmp.eq.f32.partialorder %v3535_v52, 8.507059e+37  ;;  %v3538_v7 = vor.u32 1.1754944e-38, %v3537_v28  ;;  %v3554_v20 = vadd.f32 1.1283791, %v3553_v58 }
 0x879   : > { %v3629_v63 = vmul.f32 %v3628_v37, %v8762_v2  ;;  %v3569_v62 = vmul.f32 %v8823_v34, %v3568_v38  ;;  %v3592_v33 = vadd.f32 0.18741608, %v3591_v19  ;;  %6629 = vrcp.f32 %v8863_v23 }
 0x87a   : > { %v3681_v52 = vadd.f32 0.112945676, %v3680_v55  ;;  %v3494_v28 = vsel %vm8886_vm10, %v8791_v60, %v3490_v4  ;;  %v3530_v53 = vadd.f32 %v8805_v42, %v3529_v8  ;;  %vm3532_vm11 = vweird.f32 %v8805_v42 }
 0x87b   : > { %v3716_v5 = vmul.f32 3.8918573e-05, %v8868_v54  ;;  %v8898_v58 = vadd.f32 1.0, %v3644_v39  ;;  %v3667_v37 = vmul.f32 %v3666_v15, %v8797_v46  ;;  %v8904_v10 = vmul.f32 %v8680_v11, %v8875_v35  ;;  %vm8912_vm13 = vmor %vm3531_vm6, %vm3532_vm11 }
 0x87c   : > { %v3682_v26 = vmul.f32 %v3681_v52, %v8797_v46  ;;  %vm3571_vm12 = vweird.f32 %v8784_v12  ;;  %v3630_v43 = vadd.f32 0.05243302, %v3629_v63  ;;  %v8908_v38 = vadd.f32 %v3290_v36, %v8676_v57 }
 0x87d   : > { %v3717_v60 = vadd.f32 0.001143296, %v3716_v5  ;;  %v3570_v4 = vadd.f32 %v8823_v34, %v3569_v62  ;;  %vm3572_vm14 = vweird.f32 %v8823_v34  ;;  %v3575_v8 = vand.u32 2147483647, %v8784_v12 }
 0x87e   : > { %v3743_v55 = vmul.f32 %v8904_v10, %v8904_v10  ;;  %v3499_v39 = vsel %vm8858_vm8, %v3498_v41, %v3494_v28  ;;  %v3534_v24 = vsel %vm8912_vm13, %v8805_v42, %v3530_v53  ;;  %v8929_v63 = vmul.f32 %v8680_v11, %v8908_v38  ;;  %vm8937_vm15 = vmor %vm3571_vm12, %vm3572_vm14 }
 0x87f   : > { %v3718_v15 = vmul.f32 %v3717_v60, %v8868_v54  ;;  %v8931_v16 = vpop.eup %6629  ;;  %v3577_v62 = vand.u32 2147483648, %v8784_v12  ;;  %6631 = vrcp.f32 %v8898_v58  ;;  %v3668_v52 = vadd.f32 0.0036580483, %v3667_v37 }
 0x880   : > { %v3683_v36 = vadd.f32 0.4994258, %v3682_v26  ;;  %v3593_v42 = vmul.f32 %v3592_v33, %v8736_v40  ;;  %v3631_v18 = vmul.f32 %v3630_v43, %v8762_v2  ;;  %v8943_v53 = vmin.f32 %v3743_v55, 16.0 }
 0x881   : > { %v3719_v28 = vadd.f32 0.014752088, %v3718_v15  ;;  %v3500_v5 = vmul.f32 %v3499_v39, %v8831_v27  ;;  %v3539_v60 = vsel %vm8877_vm9, %v3538_v7, %v3534_v24  ;;  %v3574_v12 = vsel %vm8937_vm15, %v8823_v34, %v3570_v4 }
 0x882   : > { %v3705_v37 = vmul.f32 2.1237322e-06, %v8868_v54  ;;  %v3607_v26 = vmul.f32 %v8931_v16, %v8863_v23  ;;  %v3756_v33 = vmul.f32 3.8918573e-05, %v8943_v53  ;;  %v3783_v43 = vmul.f32 %v8929_v63, %v8929_v63 }
 0x883   : > { %v3720_v40 = vmul.f32 %v3719_v28, %v8868_v54  ;;  %v3578_v27 = vor.u32 1.1754944e-38, %v3577_v62  ;;  %v3669_v56 = vmul.f32 %v3668_v52, %v8797_v46  ;;  %v3684_v7 = vmul.f32 %v3683_v36, %v8797_v46 }
 0x884   : > { %v8961_v19 = vmul.f32 0.5, %v8821_v14  ;;  %v3540_v34 = vmul.f32 %v3539_v60, %v8836_v31  ;;  %vm3576_vm0 = vcmp.eq.f32.partialorder %v3575_v8, 8.507059e+37  ;;  %v3594_v4 = vadd.f32 1.1283791, %v3593_v42 }
 0x885   : > { %v3632_v55 = vadd.f32 0.18741608, %v3631_v18  ;;  %v8964_v39 = vpop.eup %6631  ;;  %v3579_v24 = vsel %vm3576_vm0, %v3578_v27, %v3574_v12  ;;  %v3706_v15 = vadd.f32 0.00028619796, %v3705_v37  ;;  %v3721_v41 = vadd.f32 0.112945676, %v3720_v40 }
 0x886   : > { %v3757_v28 = vadd.f32 0.001143296, %v3756_v33  ;;  %v5873_v0 = vclamps-f32 %v3500_v5, 1.0  ;;  %v3555_v62 = vmul.f32 %v3554_v20, %v8718_v44  ;;  %v3608_v52 = vsub.f32 1.0, %v3607_v26 }
 0x887   : > { %v8967_v61 = vmin.f32 %v3783_v43, 16.0  ;;  %v3670_v36 = vadd.f32 0.05243302, %v3669_v56  ;;  %v8969_v14 = vadd.f32 1.0, %v3684_v7  ;;  %v3722_v31 = vmul.f32 %v3721_v41, %v8868_v54 }
 0x888   : > { %v3758_v8 = vmul.f32 %v3757_v28, %v8943_v53  ;;  %v5874_v42 = vclamps-f32 %v3540_v34, 1.0  ;;  %v3580_v18 = vmul.f32 %v3579_v24, %v3555_v62  ;;  %v3615_v60 = vand.u32 2147483647, %v8863_v23 }
 0x889   : > { %v3647_v12 = vmul.f32 %v8964_v39, %v8898_v58  ;;  %v8977_v5 = vmul.f32 %v3594_v4, %v8724_v32  ;;  %v3633_v44 = vmul.f32 %v3632_v55, %v8762_v2  ;;  %v3707_v20 = vmul.f32 %v3706_v15, %v8868_v54  ;;  %v3319_v55 = vpop.f32.mrf.mxu1 }
 0x88a   : > { %v3759_v37 = vadd.f32 0.014752088, %v3758_v8  ;;  %v4743_v26 = vadd.f32 1.0, %v5873_v0  ;;  %v3609_v40 = vmul.f32 %v8931_v16, %v3608_v52  ;;  %v3617_v33 = vand.u32 2147483648, %v8863_v23 }
 0x88b   : > { %v3796_v43 = vmul.f32 3.8918573e-05, %v8967_v61  ;;  %v3671_v27 = vmul.f32 %v3670_v36, %v8797_v46  ;;  %6633 = vrcp.f32 %v8969_v14  ;;  %v3723_v56 = vadd.f32 0.4994258, %v3722_v31 }
 0x88c   : > { %v3760_v32 = vmul.f32 %v3759_v37, %v8943_v53  ;;  %v4744_v7 = vadd.f32 1.0, %v5874_v42  ;;  %v5875_v34 = vclamps-f32 %v3580_v18, 1.0  ;;  %vm8987_vm1 = vcmp.eq.f32.partialorder %v3615_v60, 8.507059e+37 }
 0x88d   : > { %v3648_v0 = vsub.f32 1.0, %v3647_v12  ;;  %v3745_v4 = vmul.f32 2.1237322e-06, %v8943_v53  ;;  %vm3611_vm2 = vweird.f32 %v8863_v23  ;;  %v3634_v24 = vadd.f32 1.1283791, %v3633_v44 }
 0x88e   : > { %v3708_v15 = vadd.f32 0.0036580483, %v3707_v20  ;;  %v3761_v41 = vadd.f32 0.112945676, %v3760_v32  ;;  %v3610_v28 = vadd.f32 %v8931_v16, %v3609_v40  ;;  %vm3612_vm3 = vweird.f32 %v8931_v16 }
 0x88f   : > { %v3618_v62 = vor.u32 1.1754944e-38, %v3617_v33  ;;  %v3797_v52 = vadd.f32 0.001143296, %v3796_v43  ;;  %v8996_v36 = vmul.f32 %v4743_v26, %v8801_v22  ;;  %v3672_v31 = vadd.f32 0.18741608, %v3671_v27  ;;  %vm9011_vm4 = vmor %vm3611_vm2, %vm3612_vm3  ;;  %v3377_v22 = vpop.f32.mrf.mxu3 }
 0x890   : > { %v3724_v8 = vmul.f32 %v3723_v56, %v8868_v54  ;;  %v9000_v42 = vadd.f32 %v3319_v55, %v8678_v48  ;;  %v9003_v18 = vmul.f32 %v4744_v7, %v8808_v50  ;;  %v3649_v60 = vmul.f32 %v8964_v39, %v3648_v0 }
 0x891   : > { %v3746_v12 = vadd.f32 0.00028619796, %v3745_v4  ;;  %v3762_v44 = vmul.f32 %v3761_v41, %v8943_v53  ;;  %v9007_v20 = vpop.eup %6633  ;;  %v4745_v37 = vadd.f32 1.0, %v5875_v34  ;;  %v3635_v26 = vmul.f32 %v3634_v24, %v8751_v49 }
 0x892   : > { %v3709_v40 = vmul.f32 %v3708_v15, %v8868_v54  ;;  %v3798_v50 = vmul.f32 %v3797_v52, %v8967_v61  ;;  %v3614_v33 = vsel %vm9011_vm4, %v8931_v16, %v3610_v28  ;;  %v3657_v43 = vand.u32 2147483648, %v8898_v58  ;;  %v3348_v52 = vpop.f32.mrf.mxu2 }
 0x893   : > { %v3763_v27 = vadd.f32 0.4994258, %v3762_v44  ;;  %v3785_v56 = vmul.f32 2.1237322e-06, %v8967_v61  ;;  %v3673_v23 = vmul.f32 %v3672_v31, %v8797_v46  ;;  %v9024_v32 = vadd.f32 1.0, %v3724_v8  ;;  %v6122_v31 = vld [vmem:[%s7605_s7 + $0x70] sm:$0xff] }
 0x894   : > { %v3799_v7 = vadd.f32 0.014752088, %v3798_v50  ;;  %v9028_v49 = vmul.f32 %v8680_v11, %v9000_v42  ;;  %v3650_v34 = vadd.f32 %v8964_v39, %v3649_v60  ;;  %vm3652_vm5 = vweird.f32 %v8964_v39 }
 0x895   : > { %v3687_v16 = vmul.f32 %v9007_v20, %v8969_v14  ;;  %v3747_v0 = vmul.f32 %v3746_v12, %v8943_v53  ;;  %v3619_v4 = vsel %vm8987_vm1, %v3618_v62, %v3614_v33  ;;  %v3710_v46 = vadd.f32 0.05243302, %v3709_v40 }
 0x896   : > { %v3800_v55 = vmul.f32 %v3799_v7, %v8967_v61  ;;  %v3823_v24 = vmul.f32 %v9028_v49, %v9028_v49  ;;  %vm3651_vm6 = vweird.f32 %v8898_v58  ;;  %v3655_v15 = vand.u32 2147483647, %v8898_v58 }
 0x897   : > { %v3764_v41 = vmul.f32 %v3763_v27, %v8943_v53  ;;  %v3786_v28 = vadd.f32 0.00028619796, %v3785_v56  ;;  %vm9043_vm7 = vmor %vm3651_vm6, %vm3652_vm5  ;;  %v3674_v2 = vadd.f32 1.1283791, %v3673_v23  ;;  %6635 = vrcp.f32 %v9024_v32  ;;  %v6115_v23 = vld [vmem:[%s7605_s7 + $0x38] sm:$0xff] }
 0x898   : > { %v9049_v62 = vmul.f32 0.5, %v8875_v35  ;;  %v9051_v8 = vmin.f32 %v3823_v24, 16.0  ;;  %v3620_v58 = vmul.f32 %v3619_v4, %v8977_v5  ;;  %v3654_v60 = vsel %vm9043_vm7, %v8964_v39, %v3650_v34  ;;  %v6123_v39 = vld [vmem:[%s7605_s7 + $0x78] sm:$0xff]  ;;  %5083 = vmatpush.bf16.msra.mxu0 %v6115_v23 }
 0x899   : > { %v3688_v12 = vsub.f32 1.0, %v3687_v16  ;;  %v3748_v44 = vadd.f32 0.0036580483, %v3747_v0  ;;  %v3658_v40 = vor.u32 1.1754944e-38, %v3657_v43  ;;  %v3711_v50 = vmul.f32 %v3710_v46, %v8868_v54  ;;  %5112 = vmatpush.bf16.msra.mxu1 %v6123_v39 }
 0x89a   : > { %v3801_v33 = vadd.f32 0.112945676, %v3800_v55  ;;  %v9059_v27 = vadd.f32 %v3348_v52, %v8696_v30  ;;  %v9062_v35 = vmul.f32 %v4745_v37, %v8812_v25  ;;  %vm3656_vm8 = vcmp.eq.f32.partialorder %v3655_v15, 8.507059e+37 }
 0x89b   : > { %v9064_v56 = vadd.f32 1.0, %v3764_v41  ;;  %v3787_v5 = vmul.f32 %v3786_v28, %v8967_v61  ;;  %v3659_v7 = vsel %vm3656_vm8, %v3658_v40, %v3654_v60  ;;  %v9070_v34 = vmul.f32 %v3674_v2, %v8777_v51 }
 0x89c   : > { %v3836_v43 = vmul.f32 3.8918573e-05, %v9051_v8  ;;  %v9074_v16 = vadd.f32 %v3377_v22, %v8698_v6  ;;  %v5876_v0 = vclamps-f32 %v3620_v58, 1.0  ;;  %v3689_v25 = vmul.f32 %v9007_v20, %v3688_v12 }
 0x89d   : > { %v3749_v37 = vmul.f32 %v3748_v44, %v8943_v53  ;;  %v9079_v4 = vmul.f32 0.5, %v8908_v38  ;;  %v9081_v46 = vpop.eup %6635  ;;  %v3712_v51 = vadd.f32 0.18741608, %v3711_v50  ;;  %v3802_v55 = vmul.f32 %v3801_v33, %v8967_v61  ;;  %v6114_v38 = vld [vmem:[%s7605_s7 + $0x30] sm:$0xff]  ;;  %5113 = vmatpush.bf16.msra.mxu1 %v6122_v31 }
 0x89e   : > { %v3837_v24 = vadd.f32 0.001143296, %v3836_v43  ;;  %v9086_v15 = vmul.f32 %v8680_v11, %v9059_v27  ;;  %v3660_v41 = vmul.f32 %v3659_v7, %v3635_v26  ;;  %v3697_v28 = vand.u32 2147483648, %v8969_v14  ;;  %5084 = vmatpush.bf16.msra.mxu0 %v6114_v38 }
 0x89f   : > { %6637 = vrcp.f32 %v9064_v56  ;;  %v3788_v52 = vadd.f32 0.0036580483, %v3787_v5  ;;  %vm3692_vm9 = vweird.f32 %v9007_v20  ;;  %v9098_v60 = vmul.f32 %v8680_v11, %v9074_v16 }
 0x8a0   : > { %v3838_v2 = vmul.f32 %v3837_v24, %v9051_v8  ;;  %v3863_v58 = vmul.f32 %v9086_v15, %v9086_v15  ;;  %v3690_v26 = vadd.f32 %v9007_v20, %v3689_v25  ;;  %v3727_v12 = vmul.f32 %v9081_v46, %v9024_v32 }
 0x8a1   : > { %v3750_v44 = vadd.f32 0.05243302, %v3749_v37  ;;  %v3825_v22 = vmul.f32 2.1237322e-06, %v9051_v8  ;;  %v3713_v40 = vmul.f32 %v3712_v51, %v8868_v54  ;;  %v3803_v50 = vadd.f32 0.4994258, %v3802_v55 }
 0x8a2   : > { %v3839_v33 = vadd.f32 0.014752088, %v3838_v2  ;;  %v9105_v5 = vmin.f32 %v3863_v58, 16.0  ;;  %v5877_v23 = vclamps-f32 %v3660_v41, 1.0  ;;  %vm3691_vm10 = vweird.f32 %v8969_v14 }
 0x8a3   : > { %v3695_v39 = vand.u32 2147483647, %v8969_v14  ;;  %v3789_v7 = vmul.f32 %v3788_v52, %v8967_v61  ;;  %v4746_v43 = vadd.f32 1.0, %v5876_v0  ;;  %vm9112_vm11 = vmor %vm3691_vm10, %vm3692_vm9  ;;  %v3698_v37 = vor.u32 1.1754944e-38, %v3697_v28 }
 0x8a4   : > { %v3840_v54 = vmul.f32 %v3839_v33, %v9051_v8  ;;  %v3903_v51 = vmul.f32 %v9098_v60, %v9098_v60  ;;  %v3694_v14 = vsel %vm9112_vm11, %v9007_v20, %v3690_v26  ;;  %v3728_v24 = vsub.f32 1.0, %v3727_v12 }
 0x8a5   : > { %v9119_v55 = vpop.eup %6637  ;;  %v3751_v0 = vmul.f32 %v3750_v44, %v8943_v53  ;;  %v3876_v41 = vmul.f32 3.8918573e-05, %v9105_v5  ;;  %v3714_v52 = vadd.f32 1.1283791, %v3713_v40  ;;  %v3804_v38 = vmul.f32 %v3803_v50, %v8967_v61 }
 0x8a6   : > { %v3826_v28 = vadd.f32 0.00028619796, %v3825_v22  ;;  %v3841_v31 = vadd.f32 0.112945676, %v3840_v54  ;;  %v4747_v2 = vadd.f32 1.0, %v5877_v23  ;;  %vm3696_vm12 = vcmp.eq.f32.partialorder %v3695_v39, 8.507059e+37 }
 0x8a7   : > { %v3790_v58 = vadd.f32 0.05243302, %v3789_v7  ;;  %v3877_v33 = vadd.f32 0.001143296, %v3876_v41  ;;  %v9128_v29 = vmul.f32 %v4746_v43, %v8817_v21  ;;  %v3699_v17 = vsel %vm3696_vm12, %v3698_v37, %v3694_v14  ;;  %v3292_v41 = vpop.f32.mrf.mxu0 }
 0x8a8   : > { %v3767_v20 = vmul.f32 %v9119_v55, %v9064_v56  ;;  %v9132_v26 = vmin.f32 %v3903_v51, 16.0  ;;  %v3729_v12 = vmul.f32 %v9081_v46, %v3728_v24  ;;  %v3752_v44 = vadd.f32 0.18741608, %v3751_v0 }
 0x8a9   : > { %v9136_v40 = vmul.f32 0.5, %v9000_v42  ;;  %v3878_v22 = vmul.f32 %v3877_v33, %v9105_v5  ;;  %v9140_v50 = vmul.f32 %v3714_v52, %v8846_v47  ;;  %v9142_v23 = vadd.f32 1.0, %v3804_v38 }
 0x8aa   : > { %v3827_v21 = vmul.f32 %v3826_v28, %v9051_v8  ;;  %v3842_v39 = vmul.f32 %v3841_v31, %v9051_v8  ;;  %v9147_v7 = vmul.f32 %v4747_v2, %v8828_v59  ;;  %v3700_v43 = vmul.f32 %v3699_v17, %v9070_v34  ;;  %v6130_v31 = vld [vmem:[%s7605_s7 + $0xb0] sm:$0xff] }
 0x8ab   : > { %v3791_v25 = vmul.f32 %v3790_v58, %v8967_v61  ;;  %v3879_v42 = vadd.f32 0.014752088, %v3878_v22  ;;  %v3735_v37 = vand.u32 2147483647, %v9024_v32  ;;  %v3737_v54 = vand.u32 2147483648, %v9024_v32 }
 0x8ac   : > { %v3768_v47 = vsub.f32 1.0, %v3767_v20  ;;  %v3916_v51 = vmul.f32 3.8918573e-05, %v9132_v26  ;;  %v3730_v14 = vadd.f32 %v9081_v46, %v3729_v12  ;;  %vm3732_vm13 = vweird.f32 %v9081_v46 }
 0x8ad   : > { %v3753_v24 = vmul.f32 %v3752_v44, %v8943_v53  ;;  %v3880_v59 = vmul.f32 %v3879_v42, %v9105_v5  ;;  %6639 = vrcp.f32 %v9142_v23  ;;  %v3828_v17 = vadd.f32 0.0036580483, %v3827_v21 }
 0x8ae   : > { %v3843_v34 = vadd.f32 0.4994258, %v3842_v39  ;;  %v3917_v0 = vadd.f32 0.001143296, %v3916_v51  ;;  %v5878_v52 = vclamps-f32 %v3700_v43, 1.0  ;;  %vm3731_vm14 = vweird.f32 %v9024_v32  ;;  %v6139_v51 = vld [vmem:[%s7605_s7 + $0xf8] sm:$0xff] }
 0x8af   : > { %v3792_v38 = vadd.f32 0.18741608, %v3791_v25  ;;  %v3881_v28 = vadd.f32 0.112945676, %v3880_v59  ;;  %vm9162_vm15 = vcmp.eq.f32.partialorder %v3735_v37, 8.507059e+37  ;;  %v3738_v53 = vor.u32 1.1754944e-38, %v3737_v54  ;;  %vm9169_vm0 = vmor %vm3731_vm14, %vm3732_vm13  ;;  %v3321_v54 = vpop.f32.mrf.mxu1  ;;  %5170 = vmatpush.bf16.msra.mxu3 %v6139_v51 }
 0x8b0   : > { %v3769_v58 = vmul.f32 %v9119_v55, %v3768_v47  ;;  %v3754_v32 = vadd.f32 1.1283791, %v3753_v24  ;;  %v3865_v20 = vmul.f32 2.1237322e-06, %v9105_v5  ;;  %v3918_v12 = vmul.f32 %v3917_v0, %v9132_v26  ;;  %v6131_v47 = vld [vmem:[%s7605_s7 + $0xb8] sm:$0xff] }
 0x8b1   : > { %v9176_v44 = vadd.f32 %v3292_v41, %v8676_v57  ;;  %v3734_v22 = vsel %vm9169_vm0, %v9081_v46, %v3730_v14  ;;  %v3829_v21 = vmul.f32 %v3828_v17, %v9051_v8  ;;  %v3844_v39 = vmul.f32 %v3843_v34, %v9051_v8  ;;  %5141 = vmatpush.bf16.msra.mxu2 %v6131_v47 }
 0x8b2   : > { %v3882_v43 = vmul.f32 %v3881_v28, %v9105_v5  ;;  %v4748_v25 = vadd.f32 1.0, %v5878_v52  ;;  %vm3771_vm1 = vweird.f32 %v9064_v56  ;;  %v3775_v42 = vand.u32 2147483647, %v9064_v56 }
 0x8b3   : > { %v3793_v37 = vmul.f32 %v3792_v38, %v8967_v61  ;;  %v9189_v24 = vpop.eup %6639  ;;  %v3770_v46 = vadd.f32 %v9119_v55, %v3769_v58  ;;  %vm3772_vm2 = vweird.f32 %v9119_v55  ;;  %v3777_v14 = vand.u32 2147483648, %v9064_v56 }
 0x8b4   : > { %v3883_v59 = vadd.f32 0.4994258, %v3882_v43  ;;  %v3739_v17 = vsel %vm9162_vm15, %v3738_v53, %v3734_v22  ;;  %v3866_v34 = vadd.f32 0.00028619796, %v3865_v20  ;;  %v3919_v0 = vadd.f32 0.014752088, %v3918_v12  ;;  %vm9211_vm3 = vmor %vm3771_vm1, %vm3772_vm2 }
 0x8b5   : > { %v9198_v61 = vmul.f32 %v8680_v11, %v9176_v44  ;;  %v3830_v41 = vadd.f32 0.05243302, %v3829_v21  ;;  %v9200_v52 = vadd.f32 1.0, %v3844_v39  ;;  %v3905_v38 = vmul.f32 2.1237322e-06, %v9132_v26  ;;  %5142 = vmatpush.bf16.msra.mxu2 %v6130_v31 }
 0x8b6   : > { %v9204_v28 = vadd.f32 %v3321_v54, %v8678_v48  ;;  %v9207_v58 = vmul.f32 %v4748_v25, %v8872_v13  ;;  %v3807_v53 = vmul.f32 %v9189_v24, %v9142_v23  ;;  %v3884_v33 = vmul.f32 %v3883_v59, %v9105_v5 }
 0x8b7   : > { %v3943_v20 = vmul.f32 %v9198_v61, %v9198_v61  ;;  %v3740_v12 = vmul.f32 %v3739_v17, %v9140_v50  ;;  %v3774_v13 = vsel %vm9211_vm3, %v9119_v55, %v3770_v46  ;;  %v3794_v22 = vadd.f32 1.1283791, %v3793_v37 }
 0x8b8   : > { %v3920_v56 = vmul.f32 %v3919_v0, %v9132_v26  ;;  %vm3776_vm4 = vcmp.eq.f32.partialorder %v3775_v42, 8.507059e+37  ;;  %v3778_v21 = vor.u32 1.1754944e-38, %v3777_v14  ;;  %v3867_v39 = vmul.f32 %v3866_v34, %v9105_v5 }
 0x8b9   : > { %v9226_v43 = vmin.f32 %v3943_v20, 16.0  ;;  %v3831_v25 = vmul.f32 %v3830_v41, %v9051_v8  ;;  %6641 = vrcp.f32 %v9200_v52  ;;  %v3906_v54 = vadd.f32 0.00028619796, %v3905_v38 }
 0x8ba   : > { %v9232_v50 = vmul.f32 %v8680_v11, %v9204_v28  ;;  %v3755_v55 = vmul.f32 %v3754_v32, %v8904_v10  ;;  %v3779_v37 = vsel %vm3776_vm4, %v3778_v21, %v3774_v13  ;;  %v3808_v47 = vsub.f32 1.0, %v3807_v53  ;;  %v3350_v53 = vpop.f32.mrf.mxu2 }
 0x8bb   : > { %v9235_v51 = vadd.f32 1.0, %v3884_v33  ;;  %v5879_v46 = vclamps-f32 %v3740_v12, 1.0  ;;  %v9240_v14 = vmul.f32 0.5, %v9059_v27  ;;  %v3921_v59 = vadd.f32 0.112945676, %v3920_v56 }
 0x8bc   : > { %v9243_v17 = vmul.f32 %v3794_v22, %v8929_v63  ;;  %v3868_v34 = vadd.f32 0.0036580483, %v3867_v39  ;;  %v3956_v0 = vmul.f32 3.8918573e-05, %v9226_v43  ;;  %v3983_v10 = vmul.f32 %v9232_v50, %v9232_v50 }
 0x8bd   : > { %v3780_v32 = vmul.f32 %v3779_v37, %v3755_v55  ;;  %v3832_v41 = vadd.f32 0.18741608, %v3831_v25  ;;  %v9249_v38 = vmul.f32 0.5, %v9074_v16  ;;  %v3907_v2 = vmul.f32 %v3906_v54, %v9132_v26 }
 0x8be   : > { %v3809_v27 = vmul.f32 %v9189_v24, %v3808_v47  ;;  %6643 = vrcp.f32 %v9235_v51  ;;  %v3957_v63 = vadd.f32 0.001143296, %v3956_v0  ;;  %v9254_v33 = vmin.f32 %v3983_v10, 16.0  ;;  %v6138_v0 = vld [vmem:[%s7605_s7 + $0xf0] sm:$0xff] }
 0x8bf   : > { %v9256_v20 = vpop.eup %6641  ;;  %v4749_v12 = vadd.f32 1.0, %v5879_v46  ;;  %v3815_v13 = vand.u32 2147483647, %v9142_v23  ;;  %v3817_v22 = vand.u32 2147483648, %v9142_v23  ;;  %v3922_v16 = vmul.f32 %v3921_v59, %v9132_v26  ;;  %5171 = vmatpush.bf16.msra.mxu3 %v6138_v0 }
 0x8c0   : > { %v3869_v56 = vmul.f32 %v3868_v34, %v9105_v5  ;;  %v3958_v21 = vmul.f32 %v3957_v63, %v9226_v43  ;;  %v3996_v39 = vmul.f32 3.8918573e-05, %v9254_v33  ;;  %v9265_v25 = vadd.f32 %v3350_v53, %v8696_v30 }
 0x8c1   : > { %v5880_v54 = vclamps-f32 %v3780_v32, 1.0  ;;  %vm3812_vm5 = vweird.f32 %v9189_v24  ;;  %v3833_v55 = vmul.f32 %v3832_v41, %v9051_v8  ;;  %v3908_v37 = vadd.f32 0.0036580483, %v3907_v2 }
 0x8c2   : > { %v3810_v47 = vadd.f32 %v9189_v24, %v3809_v27  ;;  %v3847_v46 = vmul.f32 %v9256_v20, %v9200_v52  ;;  %v3945_v59 = vmul.f32 2.1237322e-06, %v9226_v43  ;;  %v3959_v34 = vadd.f32 0.014752088, %v3958_v21 }
 0x8c3   : > { %vm3811_vm6 = vweird.f32 %v9142_v23  ;;  %vm9274_vm7 = vcmp.eq.f32.partialorder %v3815_v13, 8.507059e+37  ;;  %v3923_v10 = vadd.f32 0.4994258, %v3922_v16  ;;  %v3997_v32 = vadd.f32 0.001143296, %v3996_v39 }
 0x8c4   : > { %v9278_v53 = vpop.eup %6643  ;;  %v9281_v8 = vmul.f32 %v4749_v12, %v8961_v19  ;;  %v3818_v41 = vor.u32 1.1754944e-38, %v3817_v22  ;;  %v3870_v2 = vadd.f32 0.05243302, %v3869_v56  ;;  %v9285_v27 = vmul.f32 %v8680_v11, %v9265_v25  ;;  %vm9289_vm8 = vmor %vm3811_vm6, %vm3812_vm5 }
 0x8c5   : > { %v4750_v63 = vadd.f32 1.0, %v5880_v54  ;;  %v3834_v13 = vadd.f32 1.1283791, %v3833_v55  ;;  %v3909_v16 = vmul.f32 %v3908_v37, %v9132_v26  ;;  %v3960_v19 = vmul.f32 %v3959_v34, %v9226_v43 }
 0x8c6   : > { %v3814_v12 = vsel %vm9289_vm8, %v9189_v24, %v3810_v47  ;;  %v3848_v22 = vsub.f32 1.0, %v3847_v46  ;;  %v3946_v56 = vadd.f32 0.00028619796, %v3945_v59  ;;  %v3998_v21 = vmul.f32 %v3997_v32, %v9254_v33  ;;  %v6113_v59 = vld [vmem:[%s7605_s7 + $0x28] sm:$0xff] }
 0x8c7   : > { %v3887_v39 = vmul.f32 %v9278_v53, %v9235_v51  ;;  %v3924_v54 = vmul.f32 %v3923_v10, %v9132_v26  ;;  %v9303_v55 = vmul.f32 0.5, %v9176_v44  ;;  %v3961_v37 = vadd.f32 0.112945676, %v3960_v19  ;;  %v6121_v19 = vld [vmem:[%s7605_s7 + $0x68] sm:$0xff]  ;;  %5085 = vmatpush.bf16.msra.mxu0 %v6113_v59 }
 0x8c8   : > { %v3871_v24 = vmul.f32 %v3870_v2, %v9105_v5  ;;  %v3999_v47 = vadd.f32 0.014752088, %v3998_v21  ;;  %v4023_v46 = vmul.f32 %v9285_v27, %v9285_v27  ;;  %v3819_v32 = vsel %vm9274_vm7, %v3818_v41, %v3814_v12  ;;  %5114 = vmatpush.bf16.msra.mxu1 %v6121_v19 }
 0x8c9   : > { %v9314_v10 = vmul.f32 %v3834_v13, %v9028_v49  ;;  %v3910_v44 = vadd.f32 0.05243302, %v3909_v16  ;;  %v3962_v23 = vmul.f32 %v3961_v37, %v9226_v43  ;;  %v9319_v34 = vmul.f32 %v4750_v63, %v9049_v62  ;;  %v3379_v62 = vpop.f32.mrf.mxu3  ;;  %v6112_v37 = vld [vmem:[%s7605_s7 + $0x20] sm:$0xff] }
 0x8ca   : > { %v3849_v2 = vmul.f32 %v9256_v20, %v3848_v22  ;;  %v3947_v21 = vmul.f32 %v3946_v56, %v9226_v43  ;;  %v4000_v42 = vmul.f32 %v3999_v47, %v9254_v33  ;;  %vm3851_vm9 = vweird.f32 %v9200_v52  ;;  %v6120_v47 = vld [vmem:[%s7605_s7 + $0x60] sm:$0xff] }
 0x8cb   : > { %v3888_v49 = vsub.f32 1.0, %v3887_v39  ;;  %v9327_v41 = vadd.f32 1.0, %v3924_v54  ;;  %v3985_v13 = vmul.f32 2.1237322e-06, %v9254_v33  ;;  %v3820_v63 = vmul.f32 %v3819_v32, %v9243_v17  ;;  %5086 = vmatpush.bf16.msra.mxu0 %v6112_v37 }
 0x8cc   : > { %v3872_v16 = vadd.f32 0.18741608, %v3871_v24  ;;  %v3963_v12 = vadd.f32 0.4994258, %v3962_v23  ;;  %v9331_v22 = vmin.f32 %v4023_v46, 16.0  ;;  %vm3852_vm10 = vweird.f32 %v9256_v20  ;;  %5115 = vmatpush.bf16.msra.mxu1 %v6120_v47 }
 0x8cd   : > { %v3855_v56 = vand.u32 2147483647, %v9200_v52  ;;  %v3857_v39 = vand.u32 2147483648, %v9200_v52  ;;  %v3911_v54 = vmul.f32 %v3910_v44, %v9132_v26  ;;  %v3850_v59 = vadd.f32 %v9256_v20, %v3849_v2  ;;  %vm9354_vm11 = vmor %vm3851_vm9, %vm3852_vm10 }
 0x8ce   : > { %v3948_v19 = vadd.f32 0.0036580483, %v3947_v21  ;;  %v4001_v17 = vadd.f32 0.112945676, %v4000_v42  ;;  %v9341_v24 = vadd.f32 %v3379_v62, %v8698_v6  ;;  %v3889_v31 = vmul.f32 %v9278_v53, %v3888_v49 }
 0x8cf   : > { %6645 = vrcp.f32 %v9327_v41  ;;  %v3964_v46 = vmul.f32 %v3963_v12, %v9226_v43  ;;  %v3986_v32 = vadd.f32 0.00028619796, %v3985_v13  ;;  %v5881_v23 = vclamps-f32 %v3820_v63, 1.0 }
 0x8d0   : > { %v3873_v2 = vmul.f32 %v3872_v16, %v9105_v5  ;;  %v4036_v42 = vmul.f32 3.8918573e-05, %v9331_v22  ;;  %vm9358_vm12 = vcmp.eq.f32.partialorder %v3855_v56, 8.507059e+37  ;;  %v3858_v49 = vor.u32 1.1754944e-38, %v3857_v39  ;;  %v3295_v5 = vpop.f32.mrf.mxu0 }
 0x8d1   : > { %v3912_v13 = vadd.f32 0.18741608, %v3911_v54  ;;  %v9363_v62 = vmul.f32 0.5, %v9204_v28  ;;  %v3854_v63 = vsel %vm9354_vm11, %v9256_v20, %v3850_v59  ;;  %vm3892_vm13 = vweird.f32 %v9278_v53 }
 0x8d2   : > { %v4002_v52 = vmul.f32 %v4001_v17, %v9254_v33  ;;  %v9372_v16 = vmul.f32 %v8680_v11, %v9341_v24  ;;  %v3890_v12 = vadd.f32 %v9278_v53, %v3889_v31  ;;  %v3949_v56 = vmul.f32 %v3948_v19, %v9226_v43 }
 0x8d3   : > { %v9376_v39 = vadd.f32 1.0, %v3964_v46  ;;  %v3987_v28 = vmul.f32 %v3986_v32, %v9254_v33  ;;  %v4751_v54 = vadd.f32 1.0, %v5881_v23  ;;  %v3874_v37 = vadd.f32 1.1283791, %v3873_v2 }
 0x8d4   : > { %v4037_v47 = vadd.f32 0.001143296, %v4036_v42  ;;  %v9380_v20 = vadd.f32 %v3295_v5, %v8676_v57  ;;  %vm3891_vm14 = vweird.f32 %v9235_v51  ;;  %v3895_v17 = vand.u32 2147483647, %v9235_v51 }
 0x8d5   : > { %v9382_v59 = vpop.eup %6645  ;;  %v3897_v31 = vand.u32 2147483648, %v9235_v51  ;;  %v3913_v19 = vmul.f32 %v3912_v13, %v9132_v26  ;;  %v3859_v46 = vsel %vm9358_vm12, %v3858_v49, %v3854_v63  ;;  %vm9392_vm15 = vmor %vm3891_vm14, %vm3892_vm13  ;;  %v4003_v23 = vadd.f32 0.4994258, %v4002_v52 }
 0x8d6   : > { %v4038_v2 = vmul.f32 %v4037_v47, %v9331_v22  ;;  %v4063_v42 = vmul.f32 %v9372_v16, %v9372_v16  ;;  %v3894_v51 = vsel %vm9392_vm15, %v9278_v53, %v3890_v12  ;;  %v3950_v26 = vadd.f32 0.05243302, %v3949_v56 }
 0x8d7   : > { %6647 = vrcp.f32 %v9376_v39  ;;  %v3988_v21 = vadd.f32 0.0036580483, %v3987_v28  ;;  %v3927_v0 = vmul.f32 %v9382_v59, %v9327_v41  ;;  %v4025_v49 = vmul.f32 2.1237322e-06, %v9331_v22 }
 0x8d8   : > { %v4039_v13 = vadd.f32 0.014752088, %v4038_v2  ;;  %v9408_v5 = vmul.f32 %v8680_v11, %v9380_v20  ;;  %v3860_v63 = vmul.f32 %v3859_v46, %v9314_v10  ;;  %v3875_v52 = vmul.f32 %v3874_v37, %v9086_v15 }
 0x8d9   : > { %v3898_v47 = vor.u32 1.1754944e-38, %v3897_v31  ;;  %v9412_v53 = vmin.f32 %v4063_v42, 16.0  ;;  %vm3896_vm0 = vcmp.eq.f32.partialorder %v3895_v17, 8.507059e+37  ;;  %v3914_v12 = vadd.f32 1.1283791, %v3913_v19 }
 0x8da   : > { %v4004_v56 = vmul.f32 %v4003_v23, %v9254_v33  ;;  %v4040_v28 = vmul.f32 %v4039_v13, %v9331_v22  ;;  %v3951_v2 = vmul.f32 %v3950_v26, %v9226_v43  ;;  %v3989_v44 = vmul.f32 %v3988_v21, %v9254_v33  ;;  %v6129_v13 = vld [vmem:[%s7605_s7 + $0xa8] sm:$0xff] }
 0x8db   : > { %v3899_v32 = vsel %vm3896_vm0, %v3898_v47, %v3894_v51  ;;  %v4076_v10 = vmul.f32 3.8918573e-05, %v9412_v53  ;;  %v3928_v46 = vsub.f32 1.0, %v3927_v0  ;;  %v4026_v15 = vadd.f32 0.00028619796, %v4025_v49  ;;  %v6137_v47 = vld [vmem:[%s7605_s7 + $0xe8] sm:$0xff]  ;;  %5143 = vmatpush.bf16.msra.mxu2 %v6129_v13 }
 0x8dc   : > { %v4041_v37 = vadd.f32 0.112945676, %v4040_v28  ;;  %v4103_v17 = vmul.f32 %v9408_v5, %v9408_v5  ;;  %v9424_v19 = vmul.f32 %v4751_v54, %v9079_v4  ;;  %v5882_v23 = vclamps-f32 %v3860_v63, 1.0  ;;  %v3324_v63 = vpop.f32.mrf.mxu1  ;;  %5172 = vmatpush.bf16.msra.mxu3 %v6137_v47 }
 0x8dd   : > { %v9421_v31 = vpop.eup %6647  ;;  %v9427_v42 = vmul.f32 0.5, %v9265_v25  ;;  %v4077_v51 = vadd.f32 0.001143296, %v4076_v10  ;;  %v3900_v26 = vmul.f32 %v3899_v32, %v3875_v52  ;;  %v9430_v21 = vmul.f32 %v3914_v12, %v9098_v60 }
 0x8de   : > { %v9432_v0 = vadd.f32 1.0, %v4004_v56  ;;  %v4042_v49 = vmul.f32 %v4041_v37, %v9331_v22  ;;  %v3952_v28 = vadd.f32 0.18741608, %v3951_v2  ;;  %v3990_v3 = vadd.f32 0.05243302, %v3989_v44 }
 0x8df   : > { %v4078_v4 = vmul.f32 %v4077_v51, %v9412_v53  ;;  %v9438_v54 = vmin.f32 %v4103_v17, 16.0  ;;  %v3929_v25 = vmul.f32 %v9382_v59, %v3928_v46  ;;  %v3967_v52 = vmul.f32 %v9421_v31, %v9376_v39 }
 0x8e0   : > { %v4027_v60 = vmul.f32 %v4026_v15, %v9331_v22  ;;  %v4043_v12 = vadd.f32 0.4994258, %v4042_v49  ;;  %v4752_v56 = vadd.f32 1.0, %v5882_v23  ;;  %v3935_v32 = vand.u32 2147483647, %v9327_v41 }
 0x8e1   : > { %v3937_v44 = vand.u32 2147483648, %v9327_v41  ;;  %v4079_v2 = vadd.f32 0.014752088, %v4078_v4  ;;  %6649 = vrcp.f32 %v9432_v0  ;;  %v4116_v46 = vmul.f32 3.8918573e-05, %v9438_v54 }
 0x8e2   : > { %v4044_v10 = vmul.f32 %v4043_v12, %v9331_v22  ;;  %v9450_v37 = vadd.f32 %v3324_v63, %v8678_v48  ;;  %v5883_v17 = vclamps-f32 %v3900_v26, 1.0  ;;  %v3953_v15 = vmul.f32 %v3952_v28, %v9226_v43 }
 0x8e3   : > { %v3991_v51 = vmul.f32 %v3990_v3, %v9254_v33  ;;  %v4080_v23 = vmul.f32 %v4079_v2, %v9412_v53  ;;  %v3930_v49 = vadd.f32 %v9382_v59, %v3929_v25  ;;  %vm3932_vm1 = vweird.f32 %v9382_v59  ;;  %v3353_v25 = vpop.f32.mrf.mxu2 }
 0x8e4   : > { %v3968_v13 = vsub.f32 1.0, %v3967_v52  ;;  %v4028_v47 = vadd.f32 0.0036580483, %v4027_v60  ;;  %vm3931_vm2 = vweird.f32 %v9327_v41  ;;  %v4065_v4 = vmul.f32 2.1237322e-06, %v9412_v53 }
 0x8e5   : > { %v4081_v12 = vadd.f32 0.112945676, %v4080_v23  ;;  %v4117_v63 = vadd.f32 0.001143296, %v4116_v46  ;;  %vm9459_vm3 = vcmp.eq.f32.partialorder %v3935_v32, 8.507059e+37  ;;  %v3938_v43 = vor.u32 1.1754944e-38, %v3937_v44  ;;  %vm9472_vm4 = vmor %vm3931_vm2, %vm3932_vm1 }
 0x8e6   : > { %v9463_v3 = vadd.f32 1.0, %v4044_v10  ;;  %v9467_v28 = vmul.f32 %v8680_v11, %v9450_v37  ;;  %v9470_v52 = vmul.f32 %v4752_v56, %v9136_v40  ;;  %v4753_v41 = vadd.f32 1.0, %v5883_v17 }
 0x8e7   : > { %v3954_v32 = vadd.f32 1.1283791, %v3953_v15  ;;  %v3992_v2 = vadd.f32 0.18741608, %v3991_v51  ;;  %v9476_v46 = vpop.eup %6649  ;;  %v3934_v44 = vsel %vm9472_vm4, %v9382_v59, %v3930_v49  ;;  %v4029_v10 = vmul.f32 %v4028_v47, %v9331_v22 }
 0x8e8   : > { %10568 = vst [vmem:[#allocation50_spill] sm:$0xff] %v9470_v52  ;;  %v9483_v23 = vmul.f32 0.5, %v9341_v24  ;;  %v4082_v40 = vmul.f32 %v4081_v12, %v9412_v53  ;;  %v3969_v56 = vmul.f32 %v9421_v31, %v3968_v13  ;;  %v4066_v17 = vadd.f32 0.00028619796, %v4065_v4 }
 0x8e9   : > { %v4118_v1 = vmul.f32 %v4117_v63, %v9438_v54  ;;  %v9489_v15 = vadd.f32 %v3353_v25, %v8696_v30  ;;  %6651 = vrcp.f32 %v9463_v3  ;;  %v4105_v59 = vmul.f32 2.1237322e-06, %v9438_v54 }
 0x8ea   : > { %v4083_v51 = vadd.f32 0.4994258, %v4082_v40  ;;  %v4143_v49 = vmul.f32 %v9467_v28, %v9467_v28  ;;  %v9496_v24 = vmul.f32 %v4753_v41, %v9240_v14  ;;  %v3975_v47 = vand.u32 2147483647, %v9376_v39 }
 0x8eb   : > { %10571 = vst [vmem:[#allocation51_spill] sm:$0xff] %v9489_v15  ;;  %v4007_v13 = vmul.f32 %v9476_v46, %v9432_v0  ;;  %v4119_v4 = vadd.f32 0.014752088, %v4118_v1  ;;  %v3939_v12 = vsel %vm9459_vm3, %v3938_v43, %v3934_v44  ;;  %v3993_v63 = vmul.f32 %v3992_v2, %v9254_v33 }
 0x8ec   : > { %10572 = vst [vmem:[#allocation52_spill] sm:$0xff] %v9496_v24  ;;  %v4084_v25 = vmul.f32 %v4083_v51, %v9412_v53  ;;  %v9505_v60 = vmin.f32 %v4143_v49, 16.0  ;;  %v3970_v40 = vadd.f32 %v9421_v31, %v3969_v56  ;;  %vm3972_vm5 = vweird.f32 %v9421_v31  ;;  %v6136_v24 = vld [vmem:[%s7605_s7 + $0xe0] sm:$0xff] }
 0x8ed   : > { %v4030_v14 = vadd.f32 0.05243302, %v4029_v10  ;;  %v4120_v41 = vmul.f32 %v4119_v4, %v9438_v54  ;;  %vm3971_vm6 = vweird.f32 %v9376_v39  ;;  %v4067_v1 = vmul.f32 %v4066_v17, %v9412_v53  ;;  %5173 = vmatpush.bf16.msra.mxu3 %v6136_v24 }
 0x8ee   : > { %v4106_v9 = vadd.f32 0.00028619796, %v4105_v59  ;;  %v9514_v26 = vmul.f32 %v8680_v11, %v9489_v15  ;;  %v4008_v33 = vsub.f32 1.0, %v4007_v13  ;;  %v9516_v43 = vadd.f32 1.0, %v4084_v25  ;;  %vm9523_vm7 = vmor %vm3971_vm6, %vm3972_vm5 }
 0x8ef   : > { %v4121_v2 = vadd.f32 0.112945676, %v4120_v41  ;;  %v4156_v44 = vmul.f32 3.8918573e-05, %v9505_v60  ;;  %v9519_v56 = vpop.eup %6651  ;;  %v3940_v10 = vmul.f32 %v3939_v12, %v9430_v21  ;;  %v3955_v51 = vmul.f32 %v3954_v32, %v9198_v61 }
 0x8f0   : > { %vm9527_vm8 = vcmp.eq.f32.partialorder %v3975_v47, 8.507059e+37  ;;  %v3977_v59 = vand.u32 2147483648, %v9376_v39  ;;  %v3974_v13 = vsel %vm9523_vm7, %v9421_v31, %v3970_v40  ;;  %v3994_v4 = vadd.f32 1.1283791, %v3993_v63 }
 0x8f1   : > { %v4031_v21 = vmul.f32 %v4030_v14, %v9331_v22  ;;  %v4122_v61 = vmul.f32 %v4121_v2, %v9438_v54  ;;  %v4068_v32 = vadd.f32 0.0036580483, %v4067_v1  ;;  %v4107_v12 = vmul.f32 %v4106_v9, %v9438_v54  ;;  %v6111_v2 = vld [vmem:[%s7605_s7 + $0x18] sm:$0xff] }
 0x8f2   : > { %v4157_v47 = vadd.f32 0.001143296, %v4156_v44  ;;  %v4183_v25 = vmul.f32 %v9514_v26, %v9514_v26  ;;  %v4009_v39 = vmul.f32 %v9476_v46, %v4008_v33  ;;  %v4047_v41 = vmul.f32 %v9519_v56, %v9463_v3  ;;  %v6119_v9 = vld [vmem:[%s7605_s7 + $0x58] sm:$0xff]  ;;  %5087 = vmatpush.bf16.msra.mxu0 %v6111_v2 }
 0x8f3   : > { %6653 = vrcp.f32 %v9516_v43  ;;  %v4145_v31 = vmul.f32 2.1237322e-06, %v9505_v60  ;;  %v5884_v63 = vclamps-f32 %v3940_v10, 1.0  ;;  %v3978_v40 = vor.u32 1.1754944e-38, %v3977_v59  ;;  %5116 = vmatpush.bf16.msra.mxu1 %v6119_v9 }
 0x8f4   : > { %v4123_v14 = vadd.f32 0.4994258, %v4122_v61  ;;  %v4158_v1 = vmul.f32 %v4157_v47, %v9505_v60  ;;  %v4015_v44 = vand.u32 2147483647, %v9432_v0  ;;  %v4032_v49 = vadd.f32 0.18741608, %v4031_v21 }
 0x8f5   : > { %v9550_v33 = vmul.f32 0.5, %v9380_v20  ;;  %v9552_v45 = vmin.f32 %v4183_v25, 16.0  ;;  %v3979_v15 = vsel %vm9527_vm8, %v3978_v40, %v3974_v13  ;;  %v4069_v10 = vmul.f32 %v4068_v32, %v9412_v53  ;;  %v6128_v25 = vld [vmem:[%s7605_s7 + $0xa0] sm:$0xff]  ;;  %v6118_v40 = vld [vmem:[%s7605_s7 + $0x50] sm:$0xff] }
 0x8f6   : > { %v4108_v59 = vadd.f32 0.0036580483, %v4107_v12  ;;  %v4159_v61 = vadd.f32 0.014752088, %v4158_v1  ;;  %v4010_v47 = vadd.f32 %v9476_v46, %v4009_v39  ;;  %vm4012_vm9 = vweird.f32 %v9476_v46  ;;  %v6110_v12 = vld [vmem:[%s7605_s7 + $0x10] sm:$0xff]  ;;  %5144 = vmatpush.bf16.msra.mxu2 %v6128_v25 }
 0x8f7   : > { %10577 = vst [vmem:[#allocation53_spill] sm:$0xff] %v9550_v33  ;;  %v4048_v21 = vsub.f32 1.0, %v4047_v41  ;;  %v4146_v20 = vadd.f32 0.00028619796, %v4145_v31  ;;  %v3382_v33 = vpop.f32.mrf.mxu3  ;;  %v4754_v52 = vadd.f32 1.0, %v5884_v63  ;;  %v3995_v17 = vmul.f32 %v3994_v4, %v9232_v50  ;;  %5088 = vmatpush.bf16.msra.mxu0 %v6110_v12  ;;  %5117 = vmatpush.bf16.msra.mxu1 %v6118_v40 }
 0x8f8   : > { %v4017_v13 = vand.u32 2147483648, %v9432_v0  ;;  %v4124_v32 = vmul.f32 %v4123_v14, %v9438_v54  ;;  %v3980_v2 = vmul.f32 %v3979_v15, %v3955_v51  ;;  %vm4011_vm10 = vweird.f32 %v9432_v0 }
 0x8f9   : > { %v9566_v1 = vpop.eup %6653  ;;  %v4033_v39 = vmul.f32 %v4032_v49, %v9331_v22  ;;  %v4196_v41 = vmul.f32 3.8918573e-05, %v9552_v45  ;;  %vm9573_vm11 = vmor %vm4011_vm10, %vm4012_vm9  ;;  %vm9577_vm12 = vcmp.eq.f32.partialorder %v4015_v44, 8.507059e+37  ;;  %v4070_v31 = vadd.f32 0.05243302, %v4069_v10  ;;  %v3297_v22 = vpop.f32.mrf.mxu0 }
 0x8fa   : > { %v4160_v15 = vmul.f32 %v4159_v61, %v9505_v60  ;;  %v9583_v0 = vadd.f32 %v3382_v33, %v8698_v6  ;;  %v4014_v24 = vsel %vm9573_vm11, %v9476_v46, %v4010_v47  ;;  %v4049_v51 = vmul.f32 %v9519_v56, %v4048_v21 }
 0x8fb   : > { %v4109_v63 = vmul.f32 %v4108_v59, %v9438_v54  ;;  %v4147_v14 = vmul.f32 %v4146_v20, %v9505_v60  ;;  %v9592_v9 = vmul.f32 %v4754_v52, %v9249_v38  ;;  %v4018_v44 = vor.u32 1.1754944e-38, %v4017_v13 }
 0x8fc   : > { %10582 = vst [vmem:[#allocation54_spill] sm:$0xff] %v9583_v0  ;;  %v4087_v49 = vmul.f32 %v9566_v1, %v9516_v43  ;;  %v9596_v33 = vadd.f32 1.0, %v4124_v32  ;;  %v5885_v10 = vclamps-f32 %v3980_v2, 1.0  ;;  %v4034_v61 = vadd.f32 1.1283791, %v4033_v39 }
 0x8fd   : > { %v4197_v25 = vadd.f32 0.001143296, %v4196_v41  ;;  %v9599_v46 = vadd.f32 %v3297_v22, %v8676_v57  ;;  %v4019_v59 = vsel %vm9577_vm12, %v4018_v44, %v4014_v24  ;;  %v4071_v47 = vmul.f32 %v4070_v31, %v9412_v53 }
 0x8fe   : > { %v4161_v21 = vadd.f32 0.112945676, %v4160_v15  ;;  %v9606_v38 = vmul.f32 %v8680_v11, %v9583_v0  ;;  %v4050_v52 = vadd.f32 %v9519_v56, %v4049_v51  ;;  %vm4052_vm13 = vweird.f32 %v9519_v56 }
 0x8ff   : > { %v4110_v20 = vadd.f32 0.05243302, %v4109_v63  ;;  %v4148_v13 = vadd.f32 0.0036580483, %v4147_v14  ;;  %v4088_v32 = vsub.f32 1.0, %v4087_v49  ;;  %6655 = vrcp.f32 %v9596_v33  ;;  %v6127_v63 = vld [vmem:[%s7605_s7 + $0x98] sm:$0xff] }
 0x900   : > { %v4185_v12 = vmul.f32 2.1237322e-06, %v9552_v45  ;;  %v4223_v40 = vmul.f32 %v9606_v38, %v9606_v38  ;;  %vm4051_vm14 = vweird.f32 %v9463_v3  ;;  %v4057_v2 = vand.u32 2147483648, %v9463_v3  ;;  %5145 = vmatpush.bf16.msra.mxu2 %v6127_v63  ;;  %v6126_v63 = vld [vmem:[%s7605_s7 + $0x90] sm:$0xff] }
 0x901   : > { %v4198_v39 = vmul.f32 %v4197_v25, %v9552_v45  ;;  %v9619_v41 = vmul.f32 %v8680_v11, %v9599_v46  ;;  %v4055_v50 = vand.u32 2147483647, %v9463_v3  ;;  %v4072_v4 = vadd.f32 0.18741608, %v4071_v47  ;;  %vm9628_vm15 = vmor %vm4051_vm14, %vm4052_vm13 }
 0x902   : > { %v4162_v31 = vmul.f32 %v4161_v21, %v9505_v60  ;;  %v9623_v15 = vmin.f32 %v4223_v40, 16.0  ;;  %v4755_v22 = vadd.f32 1.0, %v5885_v10  ;;  %v4020_v24 = vmul.f32 %v4019_v59, %v3995_v17 }
 0x903   : > { %v4035_v51 = vmul.f32 %v4034_v61, %v9285_v27  ;;  %v4111_v14 = vmul.f32 %v4110_v20, %v9438_v54  ;;  %v4054_v3 = vsel %vm9628_vm15, %v9519_v56, %v4050_v52  ;;  %v4089_v44 = vmul.f32 %v9566_v1, %v4088_v32 }
 0x904   : > { %v4149_v49 = vmul.f32 %v4148_v13, %v9505_v60  ;;  %v4186_v10 = vadd.f32 0.00028619796, %v4185_v12  ;;  %v4058_v17 = vor.u32 1.1754944e-38, %v4057_v2  ;;  %v4199_v25 = vadd.f32 0.014752088, %v4198_v39  ;;  %v3326_v12 = vpop.f32.mrf.mxu1  ;;  %5146 = vmatpush.bf16.msra.mxu2 %v6126_v63 }
 0x905   : > { %v4236_v27 = vmul.f32 3.8918573e-05, %v9623_v15  ;;  %v4263_v61 = vmul.f32 %v9619_v41, %v9619_v41  ;;  %v9641_v59 = vpop.eup %6655  ;;  %vm4056_vm0 = vcmp.eq.f32.partialorder %v4055_v50, 8.507059e+37  ;;  %v4073_v47 = vmul.f32 %v4072_v4, %v9412_v53 }
 0x906   : > { %v9645_v21 = vmul.f32 0.5, %v9450_v37  ;;  %v4163_v56 = vadd.f32 0.4994258, %v4162_v31  ;;  %v9648_v52 = vmul.f32 %v4755_v22, %v9303_v55  ;;  %v5886_v20 = vclamps-f32 %v4020_v24, 1.0 }
 0x907   : > { %v4059_v13 = vsel %vm4056_vm0, %v4058_v17, %v4054_v3  ;;  %v4112_v32 = vadd.f32 0.18741608, %v4111_v14  ;;  %v4090_v40 = vadd.f32 %v9566_v1, %v4089_v44  ;;  %vm4092_vm1 = vweird.f32 %v9566_v1  ;;  %v6135_v14 = vld [vmem:[%s7605_s7 + $0xd8] sm:$0xff] }
 0x908   : > { %v4150_v2 = vadd.f32 0.05243302, %v4149_v49  ;;  %v4187_v53 = vmul.f32 %v4186_v10, %v9552_v45  ;;  %v4127_v37 = vmul.f32 %v9641_v59, %v9596_v33  ;;  %v4200_v39 = vmul.f32 %v4199_v25, %v9552_v45  ;;  %5174 = vmatpush.bf16.msra.mxu3 %v6135_v14  ;;  %v6134_v14 = vld [vmem:[%s7605_s7 + $0xd0] sm:$0xff] }
 0x909   : > { %v4237_v55 = vadd.f32 0.001143296, %v4236_v27  ;;  %v9656_v50 = vmin.f32 %v4263_v61, 16.0  ;;  %v4074_v4 = vadd.f32 1.1283791, %v4073_v47  ;;  %v4097_v31 = vand.u32 2147483648, %v9516_v43 }
 0x90a   : > { %v4164_v22 = vmul.f32 %v4163_v56, %v9505_v60  ;;  %v9661_v24 = vadd.f32 %v3326_v12, %v8678_v48  ;;  %v4060_v3 = vmul.f32 %v4059_v13, %v4035_v51  ;;  %vm4091_vm2 = vweird.f32 %v9516_v43  ;;  %v6109_v56 = vld [vmem:[%s7605_s7 + $0x8] sm:$0xff] }
 0x90b   : > { %v4095_v44 = vand.u32 2147483647, %v9516_v43  ;;  %v4113_v49 = vmul.f32 %v4112_v32, %v9438_v54  ;;  %vm9670_vm3 = vmor %vm4091_vm2, %vm4092_vm1  ;;  %v4151_v17 = vmul.f32 %v4150_v2, %v9505_v60  ;;  %v4188_v25 = vadd.f32 0.0036580483, %v4187_v53  ;;  %v6117_v13 = vld [vmem:[%s7605_s7 + $0x48] sm:$0xff]  ;;  %5089 = vmatpush.bf16.msra.mxu0 %v6109_v56 }
 0x90c   : > { %v4265_v51 = vmul.f32 2.1237322e-06, %v9656_v50  ;;  %v4276_v27 = vmul.f32 3.8918573e-05, %v9656_v50  ;;  %v4094_v54 = vsel %vm9670_vm3, %v9566_v1, %v4090_v40  ;;  %v4128_v43 = vsub.f32 1.0, %v4127_v37  ;;  %5118 = vmatpush.bf16.msra.mxu1 %v6117_v13  ;;  %5175 = vmatpush.bf16.msra.mxu3 %v6134_v14 }
 0x90d   : > { %v4201_v61 = vadd.f32 0.112945676, %v4200_v39  ;;  %v4238_v47 = vmul.f32 %v4237_v55, %v9623_v15  ;;  %v4756_v32 = vadd.f32 1.0, %v5886_v20  ;;  %v4098_v12 = vor.u32 1.1754944e-38, %v4097_v31 }
 0x90e   : > { %v9683_v2 = vadd.f32 1.0, %v4164_v22  ;;  %v9687_v53 = vmul.f32 %v8680_v11, %v9661_v24  ;;  %v5887_v0 = vclamps-f32 %v4060_v3, 1.0  ;;  %v4075_v1 = vmul.f32 %v4074_v4, %v9372_v16  ;;  %v6108_v4 = vld [vmem:[%s7605_s7] sm:$0xff] }
 0x90f   : > { %vm4096_vm4 = vcmp.eq.f32.partialorder %v4095_v44, 8.507059e+37  ;;  %v4114_v40 = vadd.f32 1.1283791, %v4113_v49  ;;  %v4189_v20 = vmul.f32 %v4188_v25, %v9552_v45  ;;  %v4266_v39 = vadd.f32 0.00028619796, %v4265_v51  ;;  %v6116_v44 = vld [vmem:[%s7605_s7 + $0x40] sm:$0xff]  ;;  %5090 = vmatpush.bf16.msra.mxu0 %v6108_v4 }
 0x910   : > { %v4099_v37 = vsel %vm4096_vm4, %v4098_v12, %v4094_v54  ;;  %v4277_v55 = vadd.f32 0.001143296, %v4276_v27  ;;  %v4129_v31 = vmul.f32 %v9641_v59, %v4128_v43  ;;  %v4152_v22 = vadd.f32 0.18741608, %v4151_v17  ;;  %v6125_v51 = vld [vmem:[%s7605_s7 + $0x88] sm:$0xff]  ;;  %5119 = vmatpush.bf16.msra.mxu1 %v6116_v44 }
 0x911   : > { %v4202_v3 = vmul.f32 %v4201_v61, %v9552_v45  ;;  %v4239_v16 = vadd.f32 0.014752088, %v4238_v47  ;;  %6657 = vrcp.f32 %v9683_v2  ;;  %v4267_v49 = vmul.f32 %v4266_v39, %v9656_v50  ;;  %v6133_v27 = vld [vmem:[%s7605_s7 + $0xc8] sm:$0xff]  ;;  %5147 = vmatpush.bf16.msra.mxu2 %v6125_v51  ;;  %v6132_v39 = vld [vmem:[%s7605_s7 + $0xc0] sm:$0xff] }
 0x912   : > { %v4278_v10 = vmul.f32 %v4277_v55, %v9656_v50  ;;  %v4303_v25 = vmul.f32 %v9687_v53, %v9687_v53  ;;  %v9705_v54 = vmul.f32 %v4756_v32, %v9363_v62  ;;  %v4100_v17 = vmul.f32 %v4099_v37, %v4075_v1  ;;  %5176 = vmatpush.bf16.msra.mxu3 %v6133_v27 }
 0x913   : > { %v9708_v43 = vmul.f32 %v4114_v40, %v9408_v5  ;;  %v4135_v61 = vand.u32 2147483647, %v9596_v33  ;;  %v4137_v47 = vand.u32 2147483648, %v9596_v33  ;;  %v4190_v56 = vadd.f32 0.05243302, %v4189_v20  ;;  %v6124_v20 = vld [vmem:[%s7605_s7 + $0x80] sm:$0xff] }
 0x914   : > { %v4279_v13 = vadd.f32 0.014752088, %v4278_v10  ;;  %v9712_v12 = vmin.f32 %v4303_v25, 16.0  ;;  %v4757_v63 = vadd.f32 1.0, %v5887_v0  ;;  %vm4132_vm5 = vweird.f32 %v9641_v59 }
 0x915   : > { %v4240_v62 = vmul.f32 %v4239_v16, %v9623_v15  ;;  %v4268_v5 = vadd.f32 0.0036580483, %v4267_v49  ;;  %v4130_v32 = vadd.f32 %v9641_v59, %v4129_v31  ;;  %v4153_v14 = vmul.f32 %v4152_v22, %v9505_v60  ;;  %5148 = vmatpush.bf16.msra.mxu2 %v6124_v20  ;;  %v3355_v49 = vpop.f32.mrf.mxu2 }
 0x916   : > { %v4203_v1 = vadd.f32 0.4994258, %v4202_v3  ;;  %v4280_v40 = vmul.f32 %v4279_v13, %v9656_v50  ;;  %v10587_v37 = vpack.c.bf16 %v9147_v7, %v8996_v36  ;;  %v5888_v0 = vclamps-f32 %v4100_v17, 1.0  ;;  %5177 = vmatpush.bf16.msra.mxu3 %v6132_v39 }
 0x917   : > { %vm4131_vm6 = vweird.f32 %v9596_v33  ;;  %vm9725_vm7 = vcmp.eq.f32.partialorder %v4135_v61, 8.507059e+37  ;;  %v4305_v31 = vmul.f32 2.1237322e-06, %v9712_v12  ;;  %v10590_v60 = vpack.c.bf16 %v9207_v58, %v9003_v18  ;;  %v9733_v22 = vpop.eup %6657 }
 0x918   : > { %5091 = vmatmul.bf16.vlgmr.msra.gmra.mxu0 %v10587_v37  ;;  %v4191_v36 = vmul.f32 %v4190_v56, %v9552_v45  ;;  %v4225_v7 = vmul.f32 2.1237322e-06, %v9623_v15  ;;  %v4281_v3 = vadd.f32 0.112945676, %v4280_v40  ;;  %v4316_v16 = vmul.f32 3.8918573e-05, %v9712_v12  ;;  %vm9743_vm8 = vmor %vm4131_vm6, %vm4132_vm5  ;;  %v3384_v56 = vpop.f32.mrf.mxu3 }
 0x919   : > { %5120 = vmatmul.bf16.vlgmr.msra.gmra.mxu1 %v10590_v60  ;;  %v9739_v33 = vmul.f32 %v4757_v63, %v9427_v42  ;;  %v4138_v18 = vor.u32 1.1754944e-38, %v4137_v47  ;;  %v4241_v58 = vadd.f32 0.112945676, %v4240_v62  ;;  %v4269_v44 = vmul.f32 %v4268_v5, %v9656_v50 }
 0x91a   : > { %v4134_v10 = vsel %vm9743_vm8, %v9641_v59, %v4130_v32  ;;  %v4154_v25 = vadd.f32 1.1283791, %v4153_v14  ;;  %v4204_v42 = vmul.f32 %v4203_v1, %v9552_v45  ;;  %v4282_v51 = vmul.f32 %v4281_v3, %v9656_v50 }
 0x91b   : > { %v4167_v27 = vmul.f32 %v9733_v22, %v9683_v2  ;;  %v9756_v17 = vmul.f32 0.5, %v9599_v46  ;;  %v4306_v61 = vadd.f32 0.00028619796, %v4305_v31  ;;  %v4317_v47 = vadd.f32 0.001143296, %v4316_v16 }
 0x91c   : > { %v10593_v13 = vpack.c.bf16 %v9281_v8, %v9062_v35  ;;  %v4758_v63 = vadd.f32 1.0, %v5888_v0  ;;  %v4192_v59 = vadd.f32 0.18741608, %v4191_v36  ;;  %v4226_v62 = vadd.f32 0.00028619796, %v4225_v7 }
 0x91d   : > { %v9762_v5 = vadd.f32 %v3355_v49, %v8696_v30  ;;  %v10594_v32 = vpack.c.bf16 %v9319_v34, %v9128_v29  ;;  %v4139_v46 = vsel %vm9725_vm7, %v4138_v18, %v4134_v10  ;;  %v4242_v14 = vmul.f32 %v4241_v58, %v9623_v15 }
 0x91e   : > { %5149 = vmatmul.bf16.vlgmr.msra.gmra.mxu2 %v10593_v13  ;;  %v4270_v1 = vadd.f32 0.05243302, %v4269_v44  ;;  %v4283_v40 = vadd.f32 0.4994258, %v4282_v51  ;;  %v9771_v35 = vmul.f32 %v4154_v25, %v9467_v28  ;;  %v4177_v8 = vand.u32 2147483648, %v9683_v2 }
 0x91f   : > { %5178 = vmatmul.bf16.vlgmr.msra.gmra.mxu3 %v10594_v32  ;;  %v9774_v37 = vadd.f32 1.0, %v4204_v42  ;;  %v9777_v20 = vadd.f32 %v3384_v56, %v8698_v6  ;;  %v4168_v39 = vsub.f32 1.0, %v4167_v27  ;;  %v4307_v34 = vmul.f32 %v4306_v61, %v9712_v12 }
 0x920   : > { %v4284_v29 = vmul.f32 %v4283_v40, %v9656_v50  ;;  %v4318_v0 = vmul.f32 %v4317_v47, %v9712_v12  ;;  %v4140_v55 = vmul.f32 %v4139_v46, %v9708_v43  ;;  %v4193_v31 = vmul.f32 %v4192_v59, %v9552_v45 }
 0x921   : > { %v4227_v28 = vmul.f32 %v4226_v62, %v9623_v15  ;;  %v9787_v60 = vmul.f32 %v8680_v11, %v9762_v5  ;;  %v4243_v36 = vadd.f32 0.4994258, %v4242_v14  ;;  %v4271_v7 = vmul.f32 %v4270_v1, %v9656_v50 }
 0x922   : > { %v9790_v3 = vadd.f32 1.0, %v4284_v29  ;;  %v4319_v16 = vadd.f32 0.014752088, %v4318_v0  ;;  %vm4171_vm9 = vweird.f32 %v9683_v2  ;;  %6659 = vrcp.f32 %v9774_v37 }
 0x923   : > { %v4343_v43 = vmul.f32 %v9787_v60, %v9787_v60  ;;  %v9798_v45 = vmul.f32 %v8680_v11, %v9777_v20  ;;  %v9801_v4 = vmul.f32 %v4758_v63, %v9483_v23  ;;  %v4169_v18 = vmul.f32 %v9733_v22, %v4168_v39 }
 0x924   : > { %v4175_v58 = vand.u32 2147483647, %v9683_v2  ;;  %v4308_v44 = vadd.f32 0.0036580483, %v4307_v34  ;;  %v9805_v49 = vor.u32 1.1754944e-38, %v4177_v8  ;;  %6661 = vrcp.f32 %v9790_v3 }
 0x925   : > { %v4194_v10 = vadd.f32 1.1283791, %v4193_v31  ;;  %v4228_v25 = vadd.f32 0.0036580483, %v4227_v28  ;;  %v5889_v42 = vclamps-f32 %v4140_v55, 1.0  ;;  %v4244_v51 = vmul.f32 %v4243_v36, %v9623_v15 }
 0x926   : > { %v4272_v27 = vadd.f32 0.18741608, %v4271_v7  ;;  %v4320_v61 = vmul.f32 %v4319_v16, %v9712_v12  ;;  %vm4172_vm10 = vweird.f32 %v9733_v22  ;;  %v4217_v23 = vand.u32 2147483648, %v9774_v37 }
 0x927   : > { %v9812_v47 = vmin.f32 %v4343_v43, 16.0  ;;  %v4383_v56 = vmul.f32 %v9798_v45, %v9798_v45  ;;  %v9817_v13 = vadd.f32 %v9733_v22, %v4169_v18  ;;  %v4215_v63 = vand.u32 2147483647, %v9774_v37  ;;  %vm9840_vm11 = vmor %vm4171_vm9, %vm4172_vm10 }
 0x928   : > { %v4309_v59 = vmul.f32 %v4308_v44, %v9712_v12  ;;  %v4321_v62 = vadd.f32 0.112945676, %v4320_v61  ;;  %v9821_v32 = vpop.eup %6659  ;;  %v9824_v46 = vmul.f32 %v4194_v10, %v9514_v26  ;;  %v9830_v8 = vadd.f32 1.0, %v5889_v42 }
 0x929   : > { %v4345_v14 = vmul.f32 2.1237322e-06, %v9812_v47  ;;  %v4356_v1 = vmul.f32 3.8918573e-05, %v9812_v47  ;;  %v9828_v40 = vmin.f32 %v4383_v56, 16.0  ;;  %v9832_v39 = vadd.f32 1.0, %v4244_v51 }
 0x92a   : > { %v4273_v29 = vmul.f32 %v4272_v27, %v9656_v50  ;;  %v4322_v34 = vmul.f32 %v4321_v62, %v9712_v12  ;;  %v6662_v0 = vpop.eup %6661  ;;  %v9844_v55 = vor.u32 1.1754944e-38, %v4217_v23  ;;  %v4229_v31 = vmul.f32 %v4228_v25, %v9623_v15 }
 0x92b   : > { %v4346_v28 = vadd.f32 0.00028619796, %v4345_v14  ;;  %v4357_v36 = vadd.f32 0.001143296, %v4356_v1  ;;  %v4174_v50 = vsel %vm9840_vm11, %v9733_v22, %v9817_v13  ;;  %v4207_v7 = vmul.f32 %v9821_v32, %v9774_v37 }
 0x92c   : > { %v4287_v2 = vmul.f32 %v6662_v0, %v9790_v3  ;;  %v4310_v16 = vadd.f32 0.05243302, %v4309_v59  ;;  %vm9854_vm12 = vcmp.eq.f32.partialorder %v4175_v58, 8.507059e+37  ;;  %v4323_v18 = vadd.f32 0.4994258, %v4322_v34 }
 0x92d   : > { %v4347_v44 = vmul.f32 %v4346_v28, %v9812_v47  ;;  %v4358_v10 = vmul.f32 %v4357_v36, %v9812_v47  ;;  %v4385_v25 = vmul.f32 2.1237322e-06, %v9828_v40  ;;  %6663 = vrcp.f32 %v9832_v39  ;;  %v10599_v28 = vld [vmem:[#allocation50_spill] sm:$0xff] }
 0x92e   : > { %v4274_v22 = vadd.f32 1.1283791, %v4273_v29  ;;  %v4288_v42 = vsub.f32 1.0, %v4287_v2  ;;  %v4295_v51 = vand.u32 2147483647, %v9790_v3  ;;  %v4297_v27 = vand.u32 2147483648, %v9790_v3 }
 0x92f   : > { %v4324_v58 = vmul.f32 %v4323_v18, %v9712_v12  ;;  %v4359_v61 = vadd.f32 0.014752088, %v4358_v10  ;;  %v4396_v23 = vmul.f32 3.8918573e-05, %v9828_v40  ;;  %vm4292_vm13 = vweird.f32 %v6662_v0 }
 0x930   : > { %v4289_v56 = vmul.f32 %v6662_v0, %v4288_v42  ;;  %v4311_v13 = vmul.f32 %v4310_v16, %v9712_v12  ;;  %v4811_v59 = vpack.c.bf16 %v9648_v52, %v9424_v19  ;;  %v4348_v14 = vadd.f32 0.0036580483, %v4347_v44 }
 0x931   : > { %v9869_v62 = vadd.f32 1.0, %v4324_v58  ;;  %v4360_v1 = vmul.f32 %v4359_v61, %v9812_v47  ;;  %v4386_v29 = vadd.f32 0.00028619796, %v4385_v25  ;;  %vm4291_vm14 = vweird.f32 %v9790_v3 }
 0x932   : > { %v4290_v34 = vadd.f32 %v6662_v0, %v4289_v56  ;;  %v4397_v26 = vadd.f32 0.001143296, %v4396_v23  ;;  %5096 = vmatmul.bf16.gmra.mxu0 %v4811_v59  ;;  %v4812_v36 = vpack.c.bf16 %v9705_v54, %v10599_v28  ;;  %v4208_v2 = vsub.f32 1.0, %v4207_v7  ;;  %vm4293_vm15 = vmor %vm4291_vm14, %vm4292_vm13  ;;  %v10601_v23 = vld [vmem:[#allocation53_spill] sm:$0xff] }
 0x933   : > { %v4275_v16 = vmul.f32 %v4274_v22, %v9619_v41  ;;  %v4298_v18 = vor.u32 1.1754944e-38, %v4297_v27  ;;  %6665 = vrcp.f32 %v9869_v62  ;;  %v9877_v19 = vpop.eup %6663  ;;  %vm4296_vm0 = vcmp.eq.f32.partialorder %v4295_v51, 8.507059e+37 }
 0x934   : > { %v4294_v52 = vsel %vm4293_vm15, %v6662_v0, %v4290_v34  ;;  %v4312_v44 = vadd.f32 0.18741608, %v4311_v13  ;;  %v4361_v10 = vadd.f32 0.112945676, %v4360_v1  ;;  %5125 = vmatmul.bf16.gmra.mxu1 %v4812_v36  ;;  %vm4211_vm1 = vweird.f32 %v9774_v37 }
 0x935   : > { %v4230_v3 = vadd.f32 0.05243302, %v4229_v31  ;;  %v4299_v25 = vsel %vm4296_vm0, %v4298_v18, %v4294_v52  ;;  %v4349_v54 = vmul.f32 %v4348_v14, %v9812_v47  ;;  %v4387_v7 = vmul.f32 %v4386_v29, %v9828_v40  ;;  %v10600_v31 = vld [vmem:[#allocation52_spill] sm:$0xff] }
 0x936   : > { %v4179_v41 = vsel %vm9854_vm12, %v9805_v49, %v4174_v50  ;;  %v4300_v22 = vmul.f32 %v4299_v25, %v4275_v16  ;;  %v4362_v42 = vmul.f32 %v4361_v10, %v9812_v47  ;;  %v4398_v0 = vmul.f32 %v4397_v26, %v9828_v40 }
 0x937   : > { %v4209_v51 = vmul.f32 %v9821_v32, %v4208_v2  ;;  %v4247_v27 = vmul.f32 %v9877_v19, %v9832_v39  ;;  %v4813_v58 = vpack.c.bf16 %v9739_v33, %v10600_v31  ;;  %v4814_v61 = vpack.c.bf16 %v9801_v4, %v9592_v9 }
 0x938   : > { %v4791_v43 = vmul.f32 %v9830_v8, %v10601_v23  ;;  %v5893_v49 = vclamps-f32 %v4300_v22, 1.0  ;;  %v4313_v50 = vmul.f32 %v4312_v44, %v9712_v12  ;;  %v4363_v56 = vadd.f32 0.4994258, %v4362_v42 }
 0x939   : > { %v6666_v13 = vpop.eup %6665  ;;  %v4231_v59 = vmul.f32 %v4230_v3, %v9623_v15  ;;  %v4350_v14 = vadd.f32 0.05243302, %v4349_v54  ;;  %v4388_v1 = vadd.f32 0.0036580483, %v4387_v7  ;;  %v4399_v29 = vadd.f32 0.014752088, %v4398_v0  ;;  %5154 = vmatmul.bf16.gmra.mxu2 %v4813_v58  ;;  %5183 = vmatmul.bf16.gmra.mxu3 %v4814_v61 }
 0x93a   : > { %v4180_v33 = vmul.f32 %v4179_v41, %v9771_v35  ;;  %vm4212_vm2 = vweird.f32 %v9821_v32  ;;  %vm9902_vm3 = vcmp.eq.f32.partialorder %v4215_v63, 8.507059e+37  ;;  %v4763_v12 = vadd.f32 1.0, %v5893_v49  ;;  %v3300_v49 = vpop.f32.mrf.mxu0 }
 0x93b   : > { %v4327_v4 = vmul.f32 %v6666_v13, %v9869_v62  ;;  %v4210_v8 = vadd.f32 %v9821_v32, %v4209_v51  ;;  %v4248_v34 = vsub.f32 1.0, %v4247_v27  ;;  %v4364_v26 = vmul.f32 %v4363_v56, %v9812_v47  ;;  %vm9920_vm4 = vmor %vm4211_vm1, %vm4212_vm2 }
 0x93c   : > { %v4400_v28 = vmul.f32 %v4399_v29, %v9828_v40  ;;  %v4795_v35 = vmul.f32 %v4763_v12, %v9756_v17  ;;  %v4314_v36 = vadd.f32 1.1283791, %v4313_v50  ;;  %v4337_v16 = vand.u32 2147483648, %v9869_v62 }
 0x93d   : > { %v4328_v2 = vsub.f32 1.0, %v4327_v4  ;;  %v4351_v63 = vmul.f32 %v4350_v14, %v9812_v47  ;;  %v9913_v18 = vadd.f32 1.0, %v4364_v26  ;;  %v4389_v52 = vmul.f32 %v4388_v1, %v9828_v40 }
 0x93e   : > { %v4401_v44 = vadd.f32 0.112945676, %v4400_v28  ;;  %vm4332_vm5 = vweird.f32 %v6666_v13  ;;  %v4335_v3 = vand.u32 2147483647, %v9869_v62  ;;  %v4815_v25 = vpack.c.bf16 %v4795_v35, %v4791_v43 }
 0x93f   : > { %v4329_v17 = vmul.f32 %v6666_v13, %v4328_v2  ;;  %v5890_v54 = vclamps-f32 %v4180_v33, 1.0  ;;  %v4214_v7 = vsel %vm9920_vm4, %v9821_v32, %v4210_v8  ;;  %v4232_v41 = vadd.f32 0.18741608, %v4231_v59 }
 0x940   : > { %6667 = vrcp.f32 %v9913_v18  ;;  %v4249_v22 = vmul.f32 %v9877_v19, %v4248_v34  ;;  %vm4331_vm6 = vweird.f32 %v9869_v62  ;;  %v4402_v42 = vmul.f32 %v4401_v44, %v9828_v40 }
 0x941   : > { %v4330_v37 = vadd.f32 %v6666_v13, %v4329_v17  ;;  %v3413_v0 = vmul.f32 0.5, %v9661_v24  ;;  %vm4333_vm7 = vmor %vm4331_vm6, %vm4332_vm5  ;;  %v4338_v51 = vor.u32 1.1754944e-38, %v4337_v16  ;;  %v4352_v27 = vadd.f32 0.18741608, %v4351_v63 }
 0x942   : > { %v4390_v31 = vadd.f32 0.05243302, %v4389_v52  ;;  %v4315_v58 = vmul.f32 %v4314_v36, %v9687_v53  ;;  %vm4336_vm8 = vcmp.eq.f32.partialorder %v4335_v3, 8.507059e+37  ;;  %v4403_v32 = vadd.f32 0.4994258, %v4402_v42  ;;  %5101 = vmatmul.bf16.gmra.mxu0 %v4815_v25 }
 0x943   : > { %v4334_v61 = vsel %vm4333_vm7, %v6666_v13, %v4330_v37  ;;  %v4760_v23 = vadd.f32 1.0, %v5890_v54  ;;  %v4219_v43 = vsel %vm9902_vm3, %v9844_v55, %v4214_v7  ;;  %vm4252_vm9 = vweird.f32 %v9877_v19 }
 0x944   : > { %v4339_v62 = vsel %vm4336_vm8, %v4338_v51, %v4334_v61  ;;  %v4250_v24 = vadd.f32 %v9877_v19, %v4249_v22  ;;  %v4404_v56 = vmul.f32 %v4403_v32, %v9828_v40  ;;  %v9941_v53 = vadd.f32 %v3300_v49, %v8676_v57  ;;  %v3329_v32 = vpop.f32.mrf.mxu1 }
 0x945   : > { %v4340_v50 = vmul.f32 %v4339_v62, %v4315_v58  ;;  %v4233_v59 = vmul.f32 %v4232_v41, %v9623_v15  ;;  %vm4251_vm10 = vweird.f32 %v9832_v39  ;;  %v4353_v14 = vmul.f32 %v4352_v27, %v9812_v47 }
 0x946   : > { %v6668_v13 = vpop.eup %6667  ;;  %v4391_v55 = vmul.f32 %v4390_v31, %v9828_v40  ;;  %v4255_v1 = vand.u32 2147483647, %v9832_v39  ;;  %v9949_v9 = vadd.f32 1.0, %v4404_v56  ;;  %v4792_v12 = vmul.f32 %v4760_v23, %v9645_v21  ;;  %vm9955_vm11 = vmor %vm4251_vm10, %vm4252_vm9 }
 0x947   : > { %v5894_v29 = vclamps-f32 %v4340_v50, 1.0  ;;  %v4367_v33 = vmul.f32 %v6668_v13, %v9913_v18  ;;  %v4220_v4 = vmul.f32 %v4219_v43, %v9824_v46  ;;  %v4257_v47 = vand.u32 2147483648, %v9832_v39 }
 0x948   : > { %v9962_v8 = vmul.f32 %v8680_v11, %v9941_v53  ;;  %v4254_v34 = vsel %vm9955_vm11, %v9877_v19, %v4250_v24  ;;  %6669 = vrcp.f32 %v9949_v9  ;;  %v4354_v46 = vadd.f32 1.1283791, %v4353_v14 }
 0x949   : > { %v4764_v26 = vadd.f32 1.0, %v5894_v29  ;;  %v4368_v21 = vsub.f32 1.0, %v4367_v33  ;;  %v4377_v28 = vand.u32 2147483648, %v9913_v18  ;;  %v4392_v35 = vadd.f32 0.18741608, %v4391_v55 }
 0x94a   : > { %v4423_v36 = vmul.f32 %v9962_v8, %v9962_v8  ;;  %vm4372_vm12 = vweird.f32 %v6668_v13  ;;  %v4375_v16 = vand.u32 2147483647, %v9913_v18  ;;  %v4234_v63 = vadd.f32 1.1283791, %v4233_v59 }
 0x94b   : > { %v4796_v39 = vmul.f32 %v4764_v26, %v3413_v0  ;;  %v4369_v2 = vmul.f32 %v6668_v13, %v4368_v21  ;;  %vm4256_vm13 = vcmp.eq.f32.partialorder %v4255_v1, 8.507059e+37  ;;  %v4258_v52 = vor.u32 1.1754944e-38, %v4257_v47 }
 0x94c   : > { %v9972_v19 = vmin.f32 %v4423_v36, 16.0  ;;  %v5891_v44 = vclamps-f32 %v4220_v4, 1.0  ;;  %vm4371_vm14 = vweird.f32 %v9913_v18  ;;  %v4378_v25 = vor.u32 1.1754944e-38, %v4377_v28  ;;  %v10608_v18 = vld [vmem:[#allocation51_spill] sm:$0xff]  ;;  %v3387_v28 = vpop.f32.mrf.mxu3 }
 0x94d   : > { %v4370_v10 = vadd.f32 %v6668_v13, %v4369_v2  ;;  %v4816_v17 = vpack.c.bf16 %v4796_v39, %v4792_v12  ;;  %v4259_v3 = vsel %vm4256_vm13, %v4258_v52, %v4254_v34  ;;  %vm4373_vm15 = vmor %vm4371_vm14, %vm4372_vm12  ;;  %v4355_v41 = vmul.f32 %v4354_v46, %v9787_v60  ;;  %v3358_v34 = vpop.f32.mrf.mxu2 }
 0x94e   : > { %v4436_v54 = vmul.f32 3.8918573e-05, %v9972_v19  ;;  %v6670_v7 = vpop.eup %6669  ;;  %vm4376_vm0 = vcmp.eq.f32.partialorder %v4375_v16, 8.507059e+37  ;;  %v4393_v37 = vmul.f32 %v4392_v35, %v9828_v40  ;;  %v4235_v42 = vmul.f32 %v4234_v63, %v9606_v38 }
 0x94f   : > { %v4374_v22 = vsel %vm4373_vm15, %v6668_v13, %v4370_v10  ;;  %5130 = vmatmul.bf16.gmra.mxu1 %v4816_v17  ;;  %v4407_v51 = vmul.f32 %v6670_v7, %v9949_v9  ;;  %v3410_v27 = vmul.f32 0.5, %v10608_v18  ;;  %v4761_v31 = vadd.f32 1.0, %v5891_v44 }
 0x950   : > { %v4379_v0 = vsel %vm4376_vm0, %v4378_v25, %v4374_v22  ;;  %v4437_v61 = vadd.f32 0.001143296, %v4436_v54  ;;  %v4260_v23 = vmul.f32 %v4259_v3, %v4235_v42  ;;  %v3414_v43 = vmul.f32 0.5, %v9762_v5 }
 0x951   : > { %v4380_v58 = vmul.f32 %v4379_v0, %v4355_v41  ;;  %v4408_v60 = vsub.f32 1.0, %v4407_v51  ;;  %v9983_v62 = vadd.f32 %v3329_v32, %v8678_v48  ;;  %v4394_v49 = vadd.f32 1.1283791, %v4393_v37  ;;  %v10609_v41 = vld [vmem:[#allocation54_spill] sm:$0xff] }
 0x952   : > { %v4417_v38 = vand.u32 2147483648, %v9949_v9  ;;  %v4438_v24 = vmul.f32 %v4437_v61, %v9972_v19  ;;  %vm4412_vm1 = vweird.f32 %v6670_v7  ;;  %v4415_v56 = vand.u32 2147483647, %v9949_v9 }
 0x953   : > { %v5895_v40 = vclamps-f32 %v4380_v58, 1.0  ;;  %v4409_v50 = vmul.f32 %v6670_v7, %v4408_v60  ;;  %v9990_v13 = vmul.f32 %v8680_v11, %v9983_v62  ;;  %v4793_v59 = vmul.f32 %v4761_v31, %v3410_v27  ;;  %v3302_v31 = vpop.f32.mrf.mxu0 }
 0x954   : > { %v4425_v14 = vmul.f32 2.1237322e-06, %v9972_v19  ;;  %v4439_v55 = vadd.f32 0.014752088, %v4438_v24  ;;  %v5892_v1 = vclamps-f32 %v4260_v23, 1.0  ;;  %vm4411_vm2 = vweird.f32 %v9949_v9 }
 0x955   : > { %v4765_v5 = vadd.f32 1.0, %v5895_v40  ;;  %v4410_v29 = vadd.f32 %v6670_v7, %v4409_v50  ;;  %v4463_v33 = vmul.f32 %v9990_v13, %v9990_v13  ;;  %v4395_v4 = vmul.f32 %v4394_v49, %v9798_v45  ;;  %vm4413_vm3 = vmor %vm4411_vm2, %vm4412_vm1 }
 0x956   : > { %v4418_v15 = vor.u32 1.1754944e-38, %v4417_v38  ;;  %v4440_v47 = vmul.f32 %v4439_v55, %v9972_v19  ;;  %vm4416_vm4 = vcmp.eq.f32.partialorder %v4415_v56, 8.507059e+37  ;;  %v10001_v46 = vadd.f32 %v3358_v34, %v8696_v30 }
 0x957   : > { %v4797_v12 = vmul.f32 %v4765_v5, %v3414_v43  ;;  %v4414_v26 = vsel %vm4413_vm3, %v6670_v7, %v4410_v29  ;;  %v9998_v21 = vmin.f32 %v4463_v33, 16.0  ;;  %v4426_v36 = vadd.f32 0.00028619796, %v4425_v14 }
 0x958   : > { %v4419_v9 = vsel %vm4416_vm4, %v4418_v15, %v4414_v26  ;;  %v4441_v39 = vadd.f32 0.112945676, %v4440_v47  ;;  %v10008_v52 = vmul.f32 %v8680_v11, %v10001_v46  ;;  %v10011_v44 = vadd.f32 %v3387_v28, %v8698_v6 }
 0x959   : > { %v4817_v35 = vpack.c.bf16 %v4797_v12, %v4793_v59  ;;  %v4420_v2 = vmul.f32 %v4419_v9, %v4395_v4  ;;  %v4465_v45 = vmul.f32 2.1237322e-06, %v9998_v21  ;;  %v4476_v16 = vmul.f32 3.8918573e-05, %v9998_v21 }
 0x95a   : > { %v4442_v63 = vmul.f32 %v4441_v39, %v9972_v19  ;;  %v4762_v10 = vadd.f32 1.0, %v5892_v1  ;;  %v4427_v3 = vmul.f32 %v4426_v36, %v9972_v19  ;;  %v4503_v7 = vmul.f32 %v10008_v52, %v10008_v52 }
 0x95b   : > { %5159 = vmatmul.bf16.gmra.mxu2 %v4817_v35  ;;  %v5896_v17 = vclamps-f32 %v4420_v2, 1.0  ;;  %v4477_v54 = vadd.f32 0.001143296, %v4476_v16  ;;  %v3411_v22 = vmul.f32 0.5, %v10609_v41  ;;  %v3415_v37 = vmul.f32 0.5, %v9777_v20 }
 0x95c   : > { %v4443_v25 = vadd.f32 0.4994258, %v4442_v63  ;;  %v4466_v0 = vadd.f32 0.00028619796, %v4465_v45  ;;  %v10019_v18 = vmin.f32 %v4503_v7, 16.0  ;;  %v10023_v27 = vmul.f32 %v8680_v11, %v10011_v44 }
 0x95d   : > { %v4766_v42 = vadd.f32 1.0, %v5896_v17  ;;  %v4478_v51 = vmul.f32 %v4477_v54, %v9998_v21  ;;  %v4794_v58 = vmul.f32 %v4762_v10, %v3411_v22  ;;  %v4428_v23 = vadd.f32 0.0036580483, %v4427_v3  ;;  %v3331_v54 = vpop.f32.mrf.mxu1 }
 0x95e   : > { %v4444_v32 = vmul.f32 %v4443_v25, %v9972_v19  ;;  %v4467_v20 = vmul.f32 %v4466_v0, %v9998_v21  ;;  %v4516_v40 = vmul.f32 3.8918573e-05, %v10019_v18  ;;  %v3303_v49 = vadd.f32 %v3302_v31, %v8676_v57 }
 0x95f   : > { %v4798_v61 = vmul.f32 %v4766_v42, %v3415_v37  ;;  %v4479_v43 = vadd.f32 0.014752088, %v4478_v51  ;;  %v4543_v38 = vmul.f32 %v10023_v27, %v10023_v27  ;;  %v4429_v59 = vmul.f32 %v4428_v23, %v9972_v19 }
 0x960   : > { %v10031_v24 = vadd.f32 1.0, %v4444_v32  ;;  %v4517_v50 = vadd.f32 0.001143296, %v4516_v40  ;;  %v4468_v5 = vadd.f32 0.0036580483, %v4467_v20  ;;  %v10036_v14 = vmul.f32 %v8680_v11, %v3303_v49 }
 0x961   : > { %v4818_v60 = vpack.c.bf16 %v4798_v61, %v4794_v58  ;;  %v4480_v56 = vmul.f32 %v4479_v43, %v9998_v21  ;;  %v10038_v55 = vmin.f32 %v4543_v38, 16.0  ;;  %v4505_v57 = vmul.f32 2.1237322e-06, %v10019_v18 }
 0x962   : > { %6671 = vrcp.f32 %v10031_v24  ;;  %v4518_v1 = vmul.f32 %v4517_v50, %v10019_v18  ;;  %v4430_v33 = vadd.f32 0.05243302, %v4429_v59  ;;  %v4469_v12 = vmul.f32 %v4468_v5, %v9998_v21 }
 0x963   : > { %5188 = vmatmul.bf16.gmra.mxu3 %v4818_v60  ;;  %v4481_v29 = vadd.f32 0.112945676, %v4480_v56  ;;  %v4583_v4 = vmul.f32 %v10036_v14, %v10036_v14  ;;  %v4556_v15 = vmul.f32 3.8918573e-05, %v10038_v55  ;;  %v4506_v47 = vadd.f32 0.00028619796, %v4505_v57  ;;  %v3360_v57 = vpop.f32.mrf.mxu2 }
 0x964   : > { %v4519_v34 = vadd.f32 0.014752088, %v4518_v1  ;;  %v4431_v9 = vmul.f32 %v4430_v33, %v9972_v19  ;;  %v4470_v35 = vadd.f32 0.05243302, %v4469_v12  ;;  %v4545_v39 = vmul.f32 2.1237322e-06, %v10038_v55 }
 0x965   : > { %v4482_v26 = vmul.f32 %v4481_v29, %v9998_v21  ;;  %v10051_v36 = vmin.f32 %v4583_v4, 16.0  ;;  %v4557_v2 = vadd.f32 0.001143296, %v4556_v15  ;;  %v4507_v45 = vmul.f32 %v4506_v47, %v10019_v18 }
 0x966   : > { %v4520_v16 = vmul.f32 %v4519_v34, %v10019_v18  ;;  %v4432_v17 = vadd.f32 0.18741608, %v4431_v9  ;;  %v4471_v3 = vmul.f32 %v4470_v35, %v9998_v21  ;;  %v4546_v7 = vadd.f32 0.00028619796, %v4545_v39 }
 0x967   : > { %v4483_v10 = vadd.f32 0.4994258, %v4482_v26  ;;  %v4585_v25 = vmul.f32 2.1237322e-06, %v10051_v36  ;;  %v4558_v41 = vmul.f32 %v4557_v2, %v10038_v55  ;;  %v4508_v22 = vadd.f32 0.0036580483, %v4507_v45 }
 0x968   : > { %v10048_v28 = vpop.eup %6671  ;;  %v4521_v37 = vadd.f32 0.112945676, %v4520_v16  ;;  %v3332_v51 = vadd.f32 %v3331_v54, %v8678_v48  ;;  %v4433_v31 = vmul.f32 %v4432_v17, %v9972_v19  ;;  %v4472_v58 = vadd.f32 0.18741608, %v4471_v3 }
 0x969   : > { %v4447_v63 = vmul.f32 %v10048_v28, %v10031_v24  ;;  %v4484_v0 = vmul.f32 %v4483_v10, %v9998_v21  ;;  %v4586_v61 = vadd.f32 0.00028619796, %v4585_v25  ;;  %v4596_v32 = vmul.f32 3.8918573e-05, %v10051_v36 }
 0x96a   : > { %v4547_v23 = vmul.f32 %v4546_v7, %v10038_v55  ;;  %v4559_v43 = vadd.f32 0.014752088, %v4558_v41  ;;  %v10067_v60 = vmul.f32 0.5, %v9941_v53  ;;  %v10070_v20 = vmul.f32 0.5, %v9983_v62 }
 0x96b   : > { %v4448_v42 = vsub.f32 1.0, %v4447_v63  ;;  %v4509_v40 = vmul.f32 %v4508_v22, %v10019_v18  ;;  %v4522_v38 = vmul.f32 %v4521_v37, %v10019_v18  ;;  %v10075_v19 = vadd.f32 1.0, %v4484_v0 }
 0x96c   : > { %v10077_v50 = vmul.f32 0.5, %v3303_v49  ;;  %v10080_v56 = vmul.f32 %v8680_v11, %v3332_v51  ;;  %v4434_v59 = vadd.f32 1.1283791, %v4433_v31  ;;  %v4473_v53 = vmul.f32 %v4472_v58, %v9998_v21 }
 0x96d   : > { %v4449_v48 = vmul.f32 %v10048_v28, %v4448_v42  ;;  %v4587_v5 = vmul.f32 %v4586_v61, %v10051_v36  ;;  %v4597_v62 = vadd.f32 0.001143296, %v4596_v32  ;;  %v4455_v1 = vand.u32 2147483647, %v10031_v24 }
 0x96e   : > { %v4457_v29 = vand.u32 2147483648, %v10031_v24  ;;  %v4548_v33 = vadd.f32 0.0036580483, %v4547_v23  ;;  %v4560_v12 = vmul.f32 %v4559_v43, %v10038_v55  ;;  %vm4452_vm5 = vweird.f32 %v10048_v28 }
 0x96f   : > { %v4510_v49 = vadd.f32 0.05243302, %v4509_v40  ;;  %v4523_v4 = vadd.f32 0.4994258, %v4522_v38  ;;  %v4598_v15 = vmul.f32 %v4597_v62, %v10051_v36  ;;  %v4450_v47 = vadd.f32 %v10048_v28, %v4449_v48 }
 0x970   : > { %6673 = vrcp.f32 %v10075_v19  ;;  %v4623_v21 = vmul.f32 %v10080_v56, %v10080_v56  ;;  %v10094_v34 = vadd.f32 %v3360_v57, %v8696_v30  ;;  %v4435_v26 = vmul.f32 %v4434_v59, %v9962_v8 }
 0x971   : > { %vm4451_vm6 = vweird.f32 %v10031_v24  ;;  %v4474_v9 = vadd.f32 1.1283791, %v4473_v53  ;;  %v4588_v35 = vadd.f32 0.0036580483, %v4587_v5  ;;  %v4549_v39 = vmul.f32 %v4548_v33, %v10038_v55 }
 0x972   : > { %v4561_v2 = vadd.f32 0.112945676, %v4560_v12  ;;  %v4599_v45 = vadd.f32 0.014752088, %v4598_v15  ;;  %v10099_v16 = vmin.f32 %v4623_v21, 16.0  ;;  %vm10103_vm7 = vmor %vm4451_vm6, %vm4452_vm5  ;;  %vm10107_vm8 = vcmp.eq.f32.partialorder %v4455_v1, 8.507059e+37 }
 0x973   : > { %v4458_v8 = vor.u32 1.1754944e-38, %v4457_v29  ;;  %v4524_v24 = vmul.f32 %v4523_v4, %v10019_v18  ;;  %v10114_v10 = vmul.f32 %v8680_v11, %v10094_v34  ;;  %v4454_v17 = vsel %vm10103_vm7, %v10048_v28, %v4450_v47 }
 0x974   : > { %v4511_v3 = vmul.f32 %v4510_v49, %v10019_v18  ;;  %v4600_v25 = vmul.f32 %v4599_v45, %v10051_v36  ;;  %v4625_v54 = vmul.f32 2.1237322e-06, %v10099_v16  ;;  %v10123_v7 = vmul.f32 %v4474_v9, %v9990_v13  ;;  %v3389_v9 = vpop.f32.mrf.mxu3 }
 0x975   : > { %v4589_v41 = vmul.f32 %v4588_v35, %v10051_v36  ;;  %v10126_v22 = vmul.f32 0.5, %v3332_v51  ;;  %v4636_v37 = vmul.f32 3.8918573e-05, %v10099_v16  ;;  %v4550_v0 = vadd.f32 0.05243302, %v4549_v39 }
 0x976   : > { %v10129_v42 = vpop.eup %6673  ;;  %v4562_v28 = vmul.f32 %v4561_v2, %v10038_v55  ;;  %v4601_v31 = vadd.f32 0.112945676, %v4600_v25  ;;  %v4663_v58 = vmul.f32 %v10114_v10, %v10114_v10  ;;  %v4459_v61 = vsel %vm10107_vm8, %v4458_v8, %v4454_v17 }
 0x977   : > { %v10136_v13 = vadd.f32 1.0, %v4524_v24  ;;  %v4626_v32 = vadd.f32 0.00028619796, %v4625_v54  ;;  %v4637_v23 = vadd.f32 0.001143296, %v4636_v37  ;;  %v4487_v48 = vmul.f32 %v10129_v42, %v10075_v19 }
 0x978   : > { %v4495_v51 = vand.u32 2147483647, %v10075_v19  ;;  %v4512_v43 = vadd.f32 0.18741608, %v4511_v3  ;;  %v4602_v40 = vmul.f32 %v4601_v31, %v10051_v36  ;;  %v10140_v38 = vmin.f32 %v4663_v58, 16.0 }
 0x979   : > { %v4590_v59 = vadd.f32 0.05243302, %v4589_v41  ;;  %v4627_v53 = vmul.f32 %v4626_v32, %v10099_v16  ;;  %v4638_v5 = vmul.f32 %v4637_v23, %v10099_v16  ;;  %v4460_v62 = vmul.f32 %v4459_v61, %v4435_v26 }
 0x97a   : > { %v4551_v57 = vmul.f32 %v4550_v0, %v10038_v55  ;;  %v4603_v1 = vadd.f32 0.4994258, %v4602_v40  ;;  %v4665_v29 = vmul.f32 2.1237322e-06, %v10140_v38  ;;  %6675 = vrcp.f32 %v10136_v13 }
 0x97b   : > { %v4563_v33 = vadd.f32 0.4994258, %v4562_v28  ;;  %v4628_v12 = vadd.f32 0.0036580483, %v4627_v53  ;;  %v4639_v49 = vadd.f32 0.014752088, %v4638_v5  ;;  %v4513_v4 = vmul.f32 %v4512_v43, %v10019_v18 }
 0x97c   : > { %v4604_v15 = vmul.f32 %v4603_v1, %v10051_v36  ;;  %v4666_v47 = vadd.f32 0.00028619796, %v4665_v29  ;;  %v4676_v21 = vmul.f32 3.8918573e-05, %v10140_v38  ;;  %v4488_v35 = vsub.f32 1.0, %v4487_v48 }
 0x97d   : > { %v4497_v26 = vand.u32 2147483648, %v10075_v19  ;;  %v4591_v39 = vmul.f32 %v4590_v59, %v10051_v36  ;;  %v4640_v2 = vmul.f32 %v4639_v49, %v10099_v16  ;;  %v4552_v45 = vadd.f32 0.18741608, %v4551_v57 }
 0x97e   : > { %v10155_v63 = vadd.f32 1.0, %v4604_v15  ;;  %v4629_v30 = vmul.f32 %v4628_v12, %v10099_v16  ;;  %v4677_v8 = vadd.f32 0.001143296, %v4676_v21  ;;  %v5897_v18 = vclamps-f32 %v4460_v62, 1.0 }
 0x97f   : > { %v4564_v24 = vmul.f32 %v4563_v33, %v10038_v55  ;;  %v4641_v17 = vadd.f32 0.112945676, %v4640_v2  ;;  %v10160_v3 = vadd.f32 %v3389_v9, %v8698_v6  ;;  %vm4491_vm9 = vweird.f32 %v10075_v19 }
 0x980   : > { %v4514_v25 = vadd.f32 1.1283791, %v4513_v4  ;;  %6677 = vrcp.f32 %v10155_v63  ;;  %v4667_v54 = vmul.f32 %v4666_v47, %v10140_v38  ;;  %v10165_v41 = vpop.eup %6675  ;;  %v4489_v37 = vmul.f32 %v10129_v42, %v4488_v35 }
 0x981   : > { %v4498_v0 = vor.u32 1.1754944e-38, %v4497_v26  ;;  %v4592_v28 = vadd.f32 0.18741608, %v4591_v39  ;;  %v4642_v31 = vmul.f32 %v4641_v17, %v10099_v16  ;;  %vm4492_vm10 = vweird.f32 %v10129_v42 }
 0x982   : > { %v10171_v6 = vmul.f32 %v4552_v45, %v10038_v55  ;;  %v4630_v58 = vadd.f32 0.05243302, %v4629_v30  ;;  %v4678_v61 = vmul.f32 %v4677_v8, %v10140_v38  ;;  %v4767_v32 = vadd.f32 1.0, %v5897_v18  ;;  %vm10209_vm12 = vmor %vm4491_vm9, %vm4492_vm10 }
 0x983   : > { %vm10174_vm11 = vcmp.eq.f32.partialorder %v4495_v51, 8.507059e+37  ;;  %v10178_v43 = vadd.f32 1.0, %v4564_v24  ;;  %v4643_v40 = vadd.f32 0.4994258, %v4642_v31  ;;  %v10182_v48 = vmul.f32 %v8680_v11, %v10160_v3 }
 0x984   : > { %v10185_v59 = vmul.f32 %v4514_v25, %v10008_v52  ;;  %v4527_v55 = vmul.f32 %v10165_v41, %v10136_v13  ;;  %v4668_v53 = vadd.f32 0.0036580483, %v4667_v54  ;;  %v4679_v5 = vadd.f32 0.014752088, %v4678_v61 }
 0x985   : > { %v4490_v51 = vadd.f32 %v10129_v42, %v4489_v37  ;;  %v4593_v62 = vmul.f32 %v4592_v28, %v10051_v36  ;;  %v4644_v57 = vmul.f32 %v4643_v40, %v10099_v16  ;;  %v4703_v1 = vmul.f32 %v10182_v48, %v10182_v48 }
 0x986   : > { %v6678_v29 = vpop.eup %6677  ;;  %v4535_v11 = vand.u32 2147483647, %v10136_v13  ;;  %v4537_v52 = vand.u32 2147483648, %v10136_v13  ;;  %v4631_v33 = vmul.f32 %v4630_v58, %v10099_v16  ;;  %v4680_v12 = vmul.f32 %v4679_v5, %v10140_v38 }
 0x987   : > { %v10199_v49 = vmul.f32 %v4767_v32, %v10067_v60  ;;  %6679 = vrcp.f32 %v10178_v43  ;;  %v4607_v36 = vmul.f32 %v6678_v29, %v10155_v63  ;;  %v10203_v4 = vadd.f32 1.0, %v4644_v57 }
 0x988   : > { %v4528_v47 = vsub.f32 1.0, %v4527_v55  ;;  %v4669_v21 = vmul.f32 %v4668_v53, %v10140_v38  ;;  %v4681_v9 = vadd.f32 0.112945676, %v4680_v12  ;;  %v10214_v60 = vmin.f32 %v4703_v1, 16.0 }
 0x989   : > { %v4494_v35 = vsel %vm10209_vm12, %v10129_v42, %v4490_v51  ;;  %v4594_v26 = vadd.f32 1.1283791, %v4593_v62  ;;  %v4608_v39 = vsub.f32 1.0, %v4607_v36  ;;  %6681 = vrcp.f32 %v10203_v4 }
 0x98a   : > { %vm4532_vm13 = vweird.f32 %v10165_v41  ;;  %v4615_v19 = vand.u32 2147483647, %v10155_v63  ;;  %v4617_v2 = vand.u32 2147483648, %v10155_v63  ;;  %v4632_v45 = vadd.f32 0.18741608, %v4631_v33 }
 0x98b   : > { %v4682_v30 = vmul.f32 %v4681_v9, %v10140_v38  ;;  %v4609_v8 = vmul.f32 %v6678_v29, %v4608_v39  ;;  %vm4612_vm14 = vweird.f32 %v6678_v29  ;;  %v4705_v18 = vmul.f32 2.1237322e-06, %v10214_v60 }
 0x98c   : > { %v4716_v24 = vmul.f32 3.8918573e-05, %v10214_v60  ;;  %v4499_v42 = vsel %vm10174_vm11, %v4498_v0, %v4494_v35  ;;  %v4529_v17 = vmul.f32 %v10165_v41, %v4528_v47  ;;  %vm4531_vm15 = vweird.f32 %v10136_v13 }
 0x98d   : > { %v4670_v25 = vadd.f32 0.05243302, %v4669_v21  ;;  %v4683_v54 = vadd.f32 0.4994258, %v4682_v30  ;;  %v10230_v37 = vpop.eup %6679  ;;  %v4610_v28 = vadd.f32 %v6678_v29, %v4609_v8  ;;  %vm4611_vm0 = vweird.f32 %v10155_v63  ;;  %vm10258_vm5 = vmor %vm4531_vm15, %vm4532_vm13 }
 0x98e   : > { %v4706_v31 = vadd.f32 0.00028619796, %v4705_v18  ;;  %v4717_v58 = vadd.f32 0.001143296, %v4716_v24  ;;  %v4595_v61 = vmul.f32 %v4594_v26, %v10036_v14  ;;  %vm4613_vm1 = vmor %vm4611_vm0, %vm4612_vm14  ;;  %v4618_v32 = vor.u32 1.1754944e-38, %v4617_v2 }
 0x98f   : > { %v4633_v23 = vmul.f32 %v4632_v45, %v10099_v16  ;;  %v4684_v0 = vmul.f32 %v4683_v54, %v10140_v38  ;;  %v6682_v40 = vpop.eup %6681  ;;  %v4614_v55 = vsel %vm4613_vm1, %v6678_v29, %v4610_v28  ;;  %vm4616_vm2 = vcmp.eq.f32.partialorder %v4615_v19, 8.507059e+37 }
 0x990   : > { %v4707_v53 = vmul.f32 %v4706_v31, %v10214_v60  ;;  %v4718_v5 = vmul.f32 %v4717_v58, %v10214_v60  ;;  %v4500_v51 = vmul.f32 %v4499_v42, %v10123_v7  ;;  %vm10239_vm3 = vcmp.eq.f32.partialorder %v4535_v11, 8.507059e+37 }
 0x991   : > { %v4619_v14 = vsel %vm4616_vm2, %v4618_v32, %v4614_v55  ;;  %v4647_v62 = vmul.f32 %v6682_v40, %v10203_v4  ;;  %v4671_v16 = vmul.f32 %v4670_v25, %v10140_v38  ;;  %v4567_v57 = vmul.f32 %v10230_v37, %v10178_v43 }
 0x992   : > { %v4620_v1 = vmul.f32 %v4619_v14, %v4595_v61  ;;  %v10247_v29 = vadd.f32 1.0, %v4684_v0  ;;  %v4719_v33 = vadd.f32 0.014752088, %v4718_v5  ;;  %v4530_v12 = vadd.f32 %v10165_v41, %v4529_v17 }
 0x993   : > { %v4634_v36 = vadd.f32 1.1283791, %v4633_v23  ;;  %v4648_v7 = vsub.f32 1.0, %v4647_v62  ;;  %v4655_v11 = vand.u32 2147483647, %v10203_v4  ;;  %v4657_v47 = vand.u32 2147483648, %v10203_v4 }
 0x994   : > { %v5901_v15 = vclamps-f32 %v4620_v1, 1.0  ;;  %6683 = vrcp.f32 %v10247_v29  ;;  %v4708_v21 = vadd.f32 0.0036580483, %v4707_v53  ;;  %vm4652_vm4 = vweird.f32 %v6682_v40 }
 0x995   : > { %v4649_v9 = vmul.f32 %v6682_v40, %v4648_v7  ;;  %v4672_v35 = vadd.f32 0.18741608, %v4671_v16  ;;  %v4720_v26 = vmul.f32 %v4719_v33, %v10214_v60  ;;  %v5898_v39 = vclamps-f32 %v4500_v51, 1.0 }
 0x996   : > { %v4538_v2 = vor.u32 1.1754944e-38, %v4537_v52  ;;  %v4568_v45 = vsub.f32 1.0, %v4567_v57  ;;  %v4771_v30 = vadd.f32 1.0, %v5901_v15  ;;  %v4534_v8 = vsel %vm10258_vm5, %v10165_v41, %v4530_v12  ;;  %v10278_v41 = vld [vmem:[%s918_s22] ss:$0 sm:$0xff]  ;;  %v5121_v32 = vpop.f32.mrf.mxu1  ;;  %s10633_s22 = sld [smem:[#allocation32_spill]] }
 0x997   : > { %v4650_v18 = vadd.f32 %v6682_v40, %v4649_v9  ;;  %vm4651_vm6 = vweird.f32 %v10203_v4  ;;  %v4721_v24 = vadd.f32 0.112945676, %v4720_v26  ;;  %v4635_v17 = vmul.f32 %v4634_v36, %v10080_v56  ;;  %v5092_v4 = vpop.f32.mrf.mxu0 }
 0x998   : > { %v4803_v42 = vmul.f32 %v4771_v30, %v10077_v50  ;;  %vm4653_vm7 = vmor %vm4651_vm6, %vm4652_vm4  ;;  %v4658_v25 = vor.u32 1.1754944e-38, %v4657_v47  ;;  %v4709_v13 = vmul.f32 %v4708_v21, %v10214_v60  ;;  %vm4656_vm8 = vcmp.eq.f32.partialorder %v4655_v11, 8.507059e+37 }
 0x999   : > { %v4654_v52 = vsel %vm4653_vm7, %v6682_v40, %v4650_v18  ;;  %v4673_v54 = vmul.f32 %v4672_v35, %v10140_v38  ;;  %v4722_v28 = vmul.f32 %v4721_v24, %v10214_v60  ;;  %v4539_v56 = vsel %vm10239_vm3, %v4538_v2, %v4534_v8 }
 0x99a   : > { %v6684_v50 = vpop.eup %6683  ;;  %v4577_v31 = vand.u32 2147483648, %v10178_v43  ;;  %v4659_v58 = vsel %vm4656_vm8, %v4658_v25, %v4654_v52  ;;  %v4819_v61 = vpack.c.bf16 %v4803_v42, %v10199_v49  ;;  %v4768_v38 = vadd.f32 1.0, %v5898_v39  ;;  %v10625_v25 = vld [vmem:[#allocation42_spill] sm:$0xff] }
 0x99b   : > { %vm4572_vm9 = vweird.f32 %v10230_v37  ;;  %v4660_v23 = vmul.f32 %v4659_v58, %v4635_v17  ;;  %v4687_v0 = vmul.f32 %v6684_v50, %v10247_v29  ;;  %v4569_v40 = vmul.f32 %v10230_v37, %v4568_v45 }
 0x99c   : > { %v4710_v55 = vadd.f32 0.05243302, %v4709_v13  ;;  %v4723_v53 = vadd.f32 0.4994258, %v4722_v28  ;;  %5106 = vmatmul.bf16.gmra.mxu0 %v4819_v61  ;;  %v5093_v5 = vadd.f32 %v10278_v41, %v5092_v4  ;;  %v4540_v51 = vmul.f32 %v4539_v56, %v10185_v59  ;;  %p6033_p10 = scmp.ne.s32.totalorder %s10633_s22, 1 }
 0x99d   : > { %v5902_v63 = vclamps-f32 %v4660_v23, 1.0  ;;  %v4674_v14 = vadd.f32 1.1283791, %v4673_v54  ;;  %v4688_v62 = vsub.f32 1.0, %v4687_v0  ;;  %v4695_v16 = vand.u32 2147483647, %v10247_v29 }
 0x99e   : > { %v4697_v57 = vand.u32 2147483648, %v10247_v29  ;;  %v4724_v1 = vmul.f32 %v4723_v53, %v10214_v60  ;;  %v5122_v33 = vadd.f32 %v5121_v32, %v5093_v5  ;;  %v4800_v36 = vmul.f32 %v4768_v38, %v10070_v20 }
 0x99f   : > { %v4772_v7 = vadd.f32 1.0, %v5902_v63  ;;  %v4689_v11 = vmul.f32 %v6684_v50, %v4688_v62  ;;  %vm4692_vm10 = vweird.f32 %v6684_v50  ;;  %v4570_v15 = vadd.f32 %v10230_v37, %v4569_v40  ;;  %v5094_v39 = vpop.f32.mrf.mxu0  ;;  %v10626_v63 = vld [vmem:[#allocation43_spill] sm:$0xff] }
 0x9a0   : > { %v4711_v59 = vmul.f32 %v4710_v55, %v10214_v60  ;;  %v10295_v47 = vadd.f32 1.0, %v4724_v1  ;;  %v5899_v9 = vclamps-f32 %v4540_v51, 1.0  ;;  %vm4691_vm11 = vweird.f32 %v10247_v29  ;;  %v5123_v29 = vpop.f32.mrf.mxu1 }
 0x9a1   : > { %v5150_v49 = vpop.f32.mrf.mxu2  ;;  %v4804_v35 = vmul.f32 %v4772_v7, %v10126_v22  ;;  %v4690_v26 = vadd.f32 %v6684_v50, %v4689_v11  ;;  %v4675_v19 = vmul.f32 %v4674_v14, %v10114_v10  ;;  %vm4693_vm12 = vmor %vm4691_vm11, %vm4692_vm10  ;;  %vm4696_vm13 = vcmp.eq.f32.partialorder %v4695_v16, 8.507059e+37 }
 0x9a2   : > { %v5179_v12 = vpop.f32.mrf.mxu3  ;;  %v5151_v21 = vadd.f32 %v5150_v49, %v5122_v33  ;;  %v4698_v20 = vor.u32 1.1754944e-38, %v4697_v57  ;;  %6685 = vrcp.f32 %v10295_v47  ;;  %v5095_v30 = vadd.f32 %v10278_v41, %v5094_v39 }
 0x9a3   : > { %v4694_v2 = vsel %vm4693_vm12, %v6684_v50, %v4690_v26  ;;  %v4820_v45 = vpack.c.bf16 %v4804_v35, %v4800_v36  ;;  %vm4571_vm14 = vweird.f32 %v10178_v43  ;;  %v4575_v22 = vand.u32 2147483647, %v10178_v43 }
 0x9a4   : > { %v5180_v8 = vadd.f32 %v5179_v12, %v5151_v21  ;;  %v4699_v18 = vsel %vm4696_vm13, %v4698_v20, %v4694_v2  ;;  %v4712_v24 = vadd.f32 0.18741608, %v4711_v59  ;;  %vm10306_vm15 = vmor %vm4571_vm14, %vm4572_vm9  ;;  %v5124_v17 = vadd.f32 %v5123_v29, %v5095_v30 }
 0x9a5   : > { %v4700_v42 = vmul.f32 %v4699_v18, %v4675_v19  ;;  %5135 = vmatmul.bf16.gmra.mxu1 %v4820_v45  ;;  %v4554_v54 = vadd.f32 1.1283791, %v10171_v6  ;;  %v4574_v43 = vsel %vm10306_vm15, %v10230_v37, %v4570_v15  ;;  %v4769_v28 = vadd.f32 1.0, %v5899_v9 }
 0x9a6   : > { %v10311_v13 = vadd.f32 %v5180_v8, %v10625_v25  ;;  %v4578_v4 = vor.u32 1.1754944e-38, %v4577_v31  ;;  %v3418_v61 = vmul.f32 0.5, %v10001_v46  ;;  %vm4576_vm0 = vcmp.eq.f32.partialorder %v4575_v22, 8.507059e+37 }
 0x9a7   : > { %v5903_v50 = vclamps-f32 %v4700_v42, 1.0  ;;  %v3422_v32 = vmul.f32 0.5, %v10094_v34  ;;  %v4713_v38 = vmul.f32 %v4712_v24, %v10214_v60  ;;  %v4555_v31 = vmul.f32 %v4554_v54, %v10023_v27  ;;  %v10628_v54 = vld [vmem:[#allocation45_spill] sm:$0xff] }
 0x9a8   : > { %5207 = vst [vmem:[#allocation2 + $0x30] sm:$0xff] %v10311_v13  ;;  %v6686_v58 = vpop.eup %6685  ;;  %v4579_v6 = vsel %vm4576_vm0, %v4578_v4, %v4574_v43  ;;  %v4801_v53 = vmul.f32 %v4769_v28, %v3418_v61  ;;  %v4735_v34 = vand.u32 2147483647, %v10295_v47  ;;  %v4737_v60 = vand.u32 2147483648, %v10295_v47 }
 0x9a9   : > { %v5152_v52 = vpop.f32.mrf.mxu2  ;;  %v4773_v0 = vadd.f32 1.0, %v5903_v50  ;;  %v4727_v40 = vmul.f32 %v6686_v58, %v10295_v47  ;;  %v4580_v46 = vmul.f32 %v4579_v6, %v4555_v31  ;;  %v4714_v62 = vadd.f32 1.1283791, %v4713_v38 }
 0x9aa   : > { %v5153_v56 = vadd.f32 %v5152_v52, %v5124_v17  ;;  %v5181_v23 = vpop.f32.mrf.mxu3  ;;  %vm4732_vm1 = vweird.f32 %v6686_v58  ;;  %vm4731_vm2 = vweird.f32 %v10295_v47  ;;  %v4738_v12 = vor.u32 1.1754944e-38, %v4737_v60 }
 0x9ab   : > { %v4805_v5 = vmul.f32 %v4773_v0, %v3422_v32  ;;  %v4728_v51 = vsub.f32 1.0, %v4727_v40  ;;  %v5900_v33 = vclamps-f32 %v4580_v46, 1.0  ;;  %vm4733_vm3 = vmor %vm4731_vm2, %vm4732_vm1  ;;  %v4715_v36 = vmul.f32 %v4714_v62, %v10182_v48  ;;  %v10627_v48 = vld [vmem:[#allocation44_spill] sm:$0xff]  ;;  %v10629_v40 = vld [vmem:[#allocation46_spill] sm:$0xff] }
 0x9ac   : > { %v5182_v37 = vadd.f32 %v5181_v23, %v5153_v56  ;;  %vm4736_vm4 = vcmp.eq.f32.partialorder %v4735_v34, 8.507059e+37  ;;  %v3419_v2 = vmul.f32 0.5, %v10011_v44  ;;  %v3423_v45 = vmul.f32 0.5, %v10160_v3 }
 0x9ad   : > { %v4729_v49 = vmul.f32 %v6686_v58, %v4728_v51  ;;  %v4821_v16 = vpack.c.bf16 %v4805_v5, %v4801_v53  ;;  %v4770_v39 = vadd.f32 1.0, %v5900_v33  ;;  %v10630_v5 = vld [vmem:[#allocation47_spill] sm:$0xff] }
 0x9ae   : > { %v10324_v14 = vadd.f32 %v5182_v37, %v10626_v63 }
 0x9af   : > { %v5097_v55 = vpop.f32.mrf.mxu0  ;;  %v4730_v1 = vadd.f32 %v6686_v58, %v4729_v49  ;;  %5164 = vmatmul.bf16.gmra.mxu2 %v4821_v16  ;;  %v4802_v18 = vmul.f32 %v4770_v39, %v3419_v2 }
 0x9b0   : > { %5208 = vst [vmem:[#allocation2] sm:$0xff] %v10324_v14  ;;  %v5098_v57 = vadd.f32 %v10278_v41, %v5097_v55 }
 0x9b1   : > { %v5126_v27 = vpop.f32.mrf.mxu1  ;;  %v4734_v7 = vsel %vm4733_vm3, %v6686_v58, %v4730_v1 }
 0x9b2   : > { %v5127_v11 = vadd.f32 %v5126_v27, %v5098_v57  ;;  %v4739_v59 = vsel %vm4736_vm4, %v4738_v12, %v4734_v7  ;;  %v10631_v7 = vld [vmem:[#allocation48_spill] sm:$0xff] }
 0x9b3   : > { %v4740_v35 = vmul.f32 %v4739_v59, %v4715_v36 }
 0x9b5   : > { %v5904_v19 = vclamps-f32 %v4740_v35, 1.0 }
 0x9b7   : > { %v5099_v15 = vpop.f32.mrf.mxu0  ;;  %v4774_v30 = vadd.f32 1.0, %v5904_v19 }
 0x9b8   : > { %v5100_v20 = vadd.f32 %v10278_v41, %v5099_v15 }
 0x9b9   : > { %v5128_v22 = vpop.f32.mrf.mxu1  ;;  %v4806_v24 = vmul.f32 %v4774_v30, %v3423_v45 }
 0x9ba   : > { %v5129_v29 = vadd.f32 %v5128_v22, %v5100_v20 }
 0x9bb   : > { %v4822_v42 = vpack.c.bf16 %v4806_v24, %v4802_v18 }
 0x9bc   : > { %v5155_v21 = vpop.f32.mrf.mxu2  ;;  %v5184_v9 = vpop.f32.mrf.mxu3 }
 0x9bd   : > { %v5156_v26 = vadd.f32 %v5155_v21, %v5127_v11  ;;  %5193 = vmatmul.bf16.gmra.mxu3 %v4822_v42 }
 0x9bf   : > { %v5185_v47 = vadd.f32 %v5184_v9, %v5156_v26  ;;  %v5102_v44 = vpop.f32.mrf.mxu0  ;;  %v10632_v9 = vld [vmem:[#allocation49_spill] sm:$0xff] }
 0x9c0   : > { %v5103_v3 = vadd.f32 %v10278_v41, %v5102_v44 }
 0x9c1   : > { %v5201_v8 = vadd.f32 %v5185_v47, %v10627_v48 }
 0x9c3   : > { %5209 = vst [vmem:[#allocation2 + $0x18] sm:$0xff] %v5201_v8 }
 0x9c4   : > { %v5157_v10 = vpop.f32.mrf.mxu2  ;;  %v5186_v25 = vpop.f32.mrf.mxu3 }
 0x9c5   : > { %v5158_v17 = vadd.f32 %v5157_v10, %v5129_v29 }
 0x9c7   : > { %v5187_v52 = vadd.f32 %v5186_v25, %v5158_v17  ;;  %v5104_v56 = vpop.f32.mrf.mxu0 }
 0x9c8   : > { %v5105_v61 = vadd.f32 %v10278_v41, %v5104_v56 }
 0x9c9   : > { %v5202_v43 = vadd.f32 %v5187_v52, %v10628_v54 }
 0x9cb   : > { %5210 = vst [vmem:[#allocation2 + $0x10] sm:$0xff] %v5202_v43 }
 0x9cc   : > { %v5131_v28 = vpop.f32.mrf.mxu1 }
 0x9cd   : > { %v5132_v50 = vadd.f32 %v5131_v28, %v5103_v3 }
 0x9d4   : > { %v5133_v23 = vpop.f32.mrf.mxu1 }
 0x9d5   : > { %v5134_v0 = vadd.f32 %v5133_v23, %v5105_v61 }
 0x9de   : > { %v5160_v4 = vpop.f32.mrf.mxu2 }
 0x9df   : > { %v5161_v58 = vadd.f32 %v5160_v4, %v5132_v50 }
 0x9e6   : > { %v5189_v32 = vpop.f32.mrf.mxu3  ;;  %v5162_v6 = vpop.f32.mrf.mxu2 }
 0x9e7   : > { %v5190_v38 = vadd.f32 %v5189_v32, %v5161_v58  ;;  %v5163_v55 = vadd.f32 %v5162_v6, %v5134_v0 }
 0x9e9   : > { %v5203_v37 = vadd.f32 %v5190_v38, %v10629_v40 }
 0x9eb   : > { %5211 = vst [vmem:[#allocation2 + $0x8] sm:$0xff] %v5203_v37 }
 0x9ee   : > { %v5191_v31 = vpop.f32.mrf.mxu3 }
 0x9ef   : > { %v5192_v53 = vadd.f32 %v5191_v31, %v5163_v55 }
 0x9f1   : > { %v5204_v51 = vadd.f32 %v5192_v53, %v10630_v5 }
 0x9f3   : > { %5212 = vst [vmem:[#allocation2 + $0x20] sm:$0xff] %v5204_v51 }
 0xa19   : > { %v5107_v63 = vpop.f32.mrf.mxu0 }
 0xa1a   : > { %v5108_v46 = vadd.f32 %v10278_v41, %v5107_v63 }
 0xa21   : > { %v5109_v49 = vpop.f32.mrf.mxu0 }
 0xa22   : > { %v5136_v62 = vpop.f32.mrf.mxu1  ;;  %v5110_v57 = vadd.f32 %v10278_v41, %v5109_v49 }
 0xa23   : > { %v5137_v60 = vadd.f32 %v5136_v62, %v5108_v46 }
 0xa2a   : > { %v5138_v33 = vpop.f32.mrf.mxu1 }
 0xa2b   : > { %v5139_v36 = vadd.f32 %v5138_v33, %v5110_v57 }
 0xa32   : > { %v5165_v34 = vpop.f32.mrf.mxu2 }
 0xa33   : > { %v5166_v16 = vadd.f32 %v5165_v34, %v5137_v60 }
 0xa3a   : > { %v5167_v12 = vpop.f32.mrf.mxu2 }
 0xa3b   : > { %v5168_v15 = vadd.f32 %v5167_v12, %v5139_v36 }
 0xa40   : > { %v5194_v27 = vpop.f32.mrf.mxu3 }
 0xa41   : > { %v5195_v1 = vadd.f32 %v5194_v27, %v5166_v16 }
 0xa43   : > { %v5205_v11 = vadd.f32 %v5195_v1, %v10631_v7 }
 0xa45   : > { %5213 = vst [vmem:[#allocation2 + $0x28] sm:$0xff] %v5205_v11 }
 0xa48   : > { %v5196_v59 = vpop.f32.mrf.mxu3 }
 0xa49   : > { %v5197_v21 = vadd.f32 %v5196_v59, %v5168_v15  ;;  %5218 = sbr.rel (%p6033_p10) target bundleno = 2646 (0xa56), region = 128 }
 0xa4b   : > { %v5206_v35 = vadd.f32 %v5197_v21, %v10632_v9 }
 0xa4d   : > { %5214 = vst [vmem:[#allocation2 + $0x38] sm:$0xff] %v5206_v35 }
 0xa4e   : > { %5219 = vst [vmem:[%s7609_s21] sm:$0xff] %v10311_v13 }
 0xa4f   : > { %5220 = vst [vmem:[%s7609_s21 + $0x8] sm:$0xff] %v10324_v14 }
 0xa50   : > { %5221 = vst [vmem:[%s7609_s21 + $0x10] sm:$0xff] %v5201_v8 }
 0xa51   : > { %5222 = vst [vmem:[%s7609_s21 + $0x18] sm:$0xff] %v5202_v43 }
 0xa52   : > { %5223 = vst [vmem:[%s7609_s21 + $0x20] sm:$0xff] %v5203_v37 }
 0xa53   : > { %5224 = vst [vmem:[%s7609_s21 + $0x28] sm:$0xff] %v5204_v51 }
 0xa54   : > { %5225 = vst [vmem:[%s7609_s21 + $0x30] sm:$0xff] %v5205_v11 }
 0xa55   : > { %5226 = vst [vmem:[%s7609_s21 + $0x38] sm:$0xff] %v5206_v35 }
 0xa56 PF: > { %s10634_s6 = sld [smem:[#allocation33_spill]]  ;;  %s5240_s18 = sshll.u32 %s7609_s21, 4  ;;  %s5241_s18 = int_to_ptr.vmem [resolvable:$true] %s5240_s18 }
 0xa57   : > { %s10635_s11 = sld [smem:[#allocation69_spill]]  ;;  %s5228_s2 = scalar_lea.sflag [#allocation5], %s7525_s12 }
 0xa5c   : > { %s6140_s24 = sshll.u32 %s10634_s6, 6 }
 0xa5d   : > { %s5239_s27 = scalar_lea.hbm %s10635_s11, %s6140_s24  ;;  %s7045_s0 = scalar_lea.hbm %s10635_s11, 128 }
 0xa5e   : > { %s5242_s10 = sshll.u32 %s5239_s27, 4  ;;  %s5243_s10 = int_to_ptr.hbm [resolvable:$true] %s5242_s10 }
 0xa5f   : > { %s7039_s30 = sshra.s32 %s5243_s10, 4  ;;  %s7040_s30 = int_to_ptr.hbm [resolvable:$true] %s7039_s30 }
 0xa60   : > { %s7041_s8 = scalar_lea.hbm %s7040_s30, 64  ;;  %p7046_p0 = scmp.lt.s32.totalorder %s7040_s30, %s10635_s11 }
 0xa61   : > { %p7042_p11 = scmp.ne.s32.totalorder %s7040_s30, %s7041_s8  ;;  %p7047_p5 = scmp.lt.s32.totalorder %s7045_s0, %s7041_s8 }
 0xa63   : > { %p7043_p12 = pnand %p7042_p11, %p7454_p13  ;;  %p7048_p6 = por %p7047_p5, %p7046_p0 }
 0xa65   : > { %p7044_p1 = pneg %p7043_p12 }
 0xa67   : > { %p7049_p8 = pnand %p7048_p6, %p7044_p1 }
 0xa69   : > { %7052 = shalt.err (!%p7049_p8)
}
 0xa6a   : > { %s7182_s21 = smov 128   ;;  %s7183_s12 = smov 8  }
 0xa6b   : > { %6248 = dma.vmem_to_hbm [thread:$0]  (%p7454_p13), %s5241_s18, 1024, %s5243_s10, %s5228_s2, %s7182_s21, %s7182_s21, %s7183_s12  }
 0xa6c PF: > { %p6289_p2 = scmp.ge.s32.totalorder %s7167_s23, 2  ;;  %s5257_s13 = sand.u32 1, %s7139_s16  }
 0xa6d   : > { %s5258_s28 = scalar_lea.sflag [#allocation5], %s5257_s13 }
 0xa6e   : > { %p6285_p9 = pnand %p6289_p2, %p7461_p3 }
 0xa70   : > { %p6286_p4 = pneg %p6285_p9 }
 0xa72   : > { %7122 = dma.done.wait (%p6286_p4), %s5258_s28, 1024  }
 0xa73   : > { %7124 = vsyncadd (%p6286_p4), %s5258_s28, 4294966272  ;;  %s45_s23 = sadd.s32 1, %s7167_s23   ;;  %s10637_s29 = sld [smem:[#allocation29_spill]] }
 0xa74   : > { %p42_p7 = scmp.ge.s32.totalorder %s45_s23, 6   ;;  %s10638_s30 = sld [smem:[#allocation30_spill]] }
 0xa75   : > { %s10639_s15 = sld [smem:[#allocation39_spill]]  ;;  %s10646_s16 = smov %s7143_s17 }
 0xa76   : > { %s10640_s20 = sld [smem:[#allocation31_spill]] }
 0xa77   : > { %s10641_s18 = sld [smem:[#allocation40_spill]] }
 0xa78   : > { %s10642_s19 = sld [smem:[#allocation34_spill]] }
 0xa79   : > { %s10643_s26 = sld [smem:[#allocation35_spill]] }
 0xa7a   : > { %s10644_s21 = sld [smem:[#allocation37_spill]] }
 0xa7b   : > { %s10645_s22 = sld [smem:[#allocation38_spill]]  ;;  %44 = sbr.rel (!%p42_p7) target bundleno = 35 (0x23), region = 258 }
 0xa7c   : > { %s10647_s17 = smov %s10640_s20 }
 0xa7f   : > { %s10648_s20 = smov %s10643_s26 }
 0xa80   :  { %5264 = vsyncpa [#allocation4], 1 }
 0xa81   :  { %5266 = vsyncpa [#allocation4 + $0x1], 1 }
 0xa82   :  { %5267 = vsyncpa [#allocation7], 1 }
 0xa83   :  { %5269 = vsyncpa [#allocation7 + $0x1], 1 }
 0xa84   :  { %5270 = vsyncpa [#allocation10], 1 }
 0xa85   :  { %5272 = vsyncpa [#allocation10 + $0x1], 1 }
 0xa86   :  { %5273 = vsyncpa [#allocation13], 1 }
 0xa87   :  { %5275 = vsyncpa [#allocation13 + $0x1], 1 }
 0xa88   :  { %5276 = vsyncpa [#allocation16], 1 }
 0xa89   :  { %5278 = vsyncpa [#allocation16 + $0x1], 1 }
 0xa8a   :  { %5279 = vsyncpa [#allocation19], 1 }
 0xa8b   :  { %5281 = vsyncpa [#allocation19 + $0x1], 1 }
 0xa8c   :  { %5282 = vsyncpa [#allocation5], 1 }
 0xa8d   :  { %5284 = vsyncpa [#allocation5 + $0x1], 1 }

</bundles_post_ra>
